<compile_context>
chip_gen: v7x
topology: tpu7x:2x2x1
jax: 0.10.0
libtpu: 0.0.40
codegen_flags: <defaults>
</compile_context>

<pallas_src>
import functools
import math

import jax
import jax.numpy as jnp
from jax import lax
from jax.experimental import pallas as pl
from jax.experimental.pallas import tpu as pltpu


# --------------------------------------------------------------------------
# Conv kernels (direct, im2col-free)
# --------------------------------------------------------------------------

def _conv_rows(x_ref, w_ref, b_ref, taps, Wo, oh):
    """One output row: sum over taps of (Wo, Cin)bf16 @ (Cin, Cout)bf16, f32 acc."""
    cout = w_ref.shape[-1]
    acc = jnp.zeros((Wo, cout), jnp.float32)
    for t, (p, di, dj) in enumerate(taps):
        patch = x_ref[0, p, oh + di, pl.ds(dj, Wo), :]            # (Wo, Cin) bf16
        acc = acc + jnp.dot(patch, w_ref[t],
                            preferred_element_type=jnp.float32)
    return acc + b_ref[...]                                        # + (1, Cout) bias


def _conv_lrelu_kernel(x_ref, w_ref, b_ref, o_ref, *, taps, Ho, Wo):
    """Input conv (7x7, stride 1) + bias + LeakyReLU(0.2). Row loop via fori."""
    def body(oh, carry):
        acc = _conv_rows(x_ref, w_ref, b_ref, taps, Wo, oh)        # (Wo, Cout) f32
        o_ref[0, oh, :, :] = jnp.where(acc > 0, acc, 0.2 * acc).astype(o_ref.dtype)
        return carry
    lax.fori_loop(0, Ho, body, 0)


def _conv_in_lrelu_kernel(x_ref, w_ref, b_ref, o_ref, acc_ref, *, taps, Ho, Wo):
    """Down conv (3x3, stride 2) + InstanceNorm2d + LeakyReLU(0.2), fused."""
    for oh in range(Ho):                                           # static unroll
        acc_ref[oh * Wo:(oh + 1) * Wo, :] = _conv_rows(x_ref, w_ref, b_ref,
                                                       taps, Wo, oh)
    a = acc_ref[...]                                               # (Ho*Wo, C) f32
    inv = 1.0 / float(Ho * Wo)
    mean = jnp.sum(a, axis=0, keepdims=True) * inv                 # (1, C)
    d = a - mean
    var = jnp.sum(d * d, axis=0, keepdims=True) * inv              # biased, eps=1e-5
    y = d * lax.rsqrt(var + 1e-5)
    y = jnp.where(y > 0, y, 0.2 * y)
    o_ref[0, :, :] = y.astype(o_ref.dtype)


def _to_phases(x, pad, stride):
    """Pad + (for stride 2) space-to-depth so in-kernel reads are unstrided."""
    xp = jnp.pad(x, ((0, 0), (pad, pad), (pad, pad), (0, 0)))
    if stride == 1:
        return xp[:, None]                                          # (N,1,Hp,Wp,C)
    return jnp.stack([xp[:, a::stride, b::stride, :]
                      for a in range(stride) for b in range(stride)], axis=1)


def conv_layer(x, w, b, *, kh, stride, pad, fuse_in):
    """x: (N,H,W,Cin) bf16, w: (kh*kh, Cin, Cout) bf16, b: (1, Cout) f32."""
    N, H, W, Cin = x.shape
    T, _, Cout = w.shape
    Ho = (H + 2 * pad - kh) // stride + 1
    Wo = (W + 2 * pad - kh) // stride + 1
    taps = [((i % stride) * stride + (j % stride), i // stride, j // stride)
            for i in range(kh) for j in range(kh)]
    ph = _to_phases(x, pad, stride)                                 # (N,P,Hp,Wp,Cin)
    P, Hp, Wp = ph.shape[1], ph.shape[2], ph.shape[3]

    in_specs = [
        pl.BlockSpec((1, P, Hp, Wp, Cin), lambda n: (n, 0, 0, 0, 0)),
        pl.BlockSpec((T, Cin, Cout), lambda n: (0, 0, 0)),
        pl.BlockSpec((1, Cout), lambda n: (0, 0)),
    ]
    cparams = pltpu.CompilerParams(dimension_semantics=("parallel",))

    if fuse_in:
        out = pl.pallas_call(
            functools.partial(_conv_in_lrelu_kernel, taps=taps, Ho=Ho, Wo=Wo),
            out_shape=jax.ShapeDtypeStruct((N, Ho * Wo, Cout), jnp.bfloat16),
            grid=(N,),
            in_specs=in_specs,
            out_specs=pl.BlockSpec((1, Ho * Wo, Cout), lambda n: (n, 0, 0)),
            scratch_shapes=[pltpu.VMEM((Ho * Wo, Cout), jnp.float32)],
            compiler_params=cparams,
        )(ph, w, b)
        return out.reshape(N, Ho, Wo, Cout)

    return pl.pallas_call(
        functools.partial(_conv_lrelu_kernel, taps=taps, Ho=Ho, Wo=Wo),
        out_shape=jax.ShapeDtypeStruct((N, Ho, Wo, Cout), jnp.bfloat16),
        grid=(N,),
        in_specs=in_specs,
        out_specs=pl.BlockSpec((1, Ho, Wo, Cout), lambda n: (n, 0, 0, 0)),
        compiler_params=cparams,
    )(ph, w, b)


# --------------------------------------------------------------------------
# Fully-connected layers: K-tiled GEMM with f32 VMEM accumulator
# --------------------------------------------------------------------------

def _fc_kernel(x_ref, w_ref, b_ref, o_ref, acc_ref, *, act):
    @pl.when(pl.program_id(1) == 0)
    def _init():
        acc_ref[...] = jnp.zeros_like(acc_ref)

    acc_ref[...] += jnp.dot(x_ref[...], w_ref[...],
                            preferred_element_type=jnp.float32)

    @pl.when(pl.program_id(1) == pl.num_programs(1) - 1)
    def _finalize():
        y = acc_ref[...] + b_ref[...]
        if act == "lrelu":
            y = jnp.where(y > 0, y, 0.2 * y)
        o_ref[...] = y.astype(o_ref.dtype)


def _pick_tile(dim, cap):
    """Largest multiple-of-128 divisor of dim that is <= cap, else full dim."""
    if dim <= cap:
        return dim
    t = (cap // 128) * 128
    while t >= 128:
        if dim % t == 0:
            return t
        t -= 128
    return dim


def fc_layer(x, w, b, *, act=None, out_dtype=jnp.float32, bk_max=256, bn_max=256):
    """y = x @ w + b (w already stored (K, N), bf16). bk sized for v7x VMEM."""
    M, K = x.shape
    _, Nout = w.shape
    bk = _pick_tile(K, bk_max)
    bn = _pick_tile(Nout, bn_max)
    grid = (Nout // bn, K // bk)                  # K reduction axis last
    return pl.pallas_call(
        functools.partial(_fc_kernel, act=act),
        out_shape=jax.ShapeDtypeStruct((M, Nout), out_dtype),
        grid=grid,
        in_specs=[
            pl.BlockSpec((M, bk), lambda n, k: (0, k)),
            pl.BlockSpec((bk, bn), lambda n, k: (k, n)),
            pl.BlockSpec((1, bn), lambda n, k: (0, n)),
        ],
        out_specs=pl.BlockSpec((M, bn), lambda n, k: (0, n)),
        scratch_shapes=[pltpu.VMEM((M, bn), jnp.float32)],
        compiler_params=pltpu.CompilerParams(
            dimension_semantics=("parallel", "arbitrary")),
    )(x.astype(jnp.bfloat16), w, b)


# --------------------------------------------------------------------------
# Parameter setup (plain JAX, one time)
# --------------------------------------------------------------------------

def spectral_norm_weight(w, n_iter=5):
    """nn.utils.spectral_norm-style scaling done once at init (power iteration)."""
    wm = w.reshape(w.shape[0], -1).astype(jnp.float32)
    u = jnp.ones((wm.shape[0],), jnp.float32) / jnp.sqrt(float(wm.shape[0]))
    v = None
    for _ in range(n_iter):
        v = wm.T @ u
        v = v / (jnp.linalg.norm(v) + 1e-12)
        u = wm @ v
        u = u / (jnp.linalg.norm(u) + 1e-12)
    sigma = u @ (wm @ v)
    return w / sigma


def init_style_encoder_params(key, image_size, bottom_width, in_channels, channels):
    num_downs = int(math.log2(image_size) - math.log2(bottom_width))
    kit = iter(jax.random.split(key, 2 * (num_downs + 3)))

    def conv_params(cout, cin, k):
        w = jax.random.normal(next(kit), (cout, cin, k, k), jnp.float32)
        w = spectral_norm_weight(w / math.sqrt(cin * k * k))
        # OIHW -> (kh*kw, Cin, Cout), bf16 for the MXU
        w = jnp.transpose(w, (2, 3, 1, 0)).reshape(k * k, cin, cout)
        b = 0.01 * jax.random.normal(next(kit), (1, cout), jnp.float32)
        return w.astype(jnp.bfloat16), b

    params = {"conv_in": conv_params(channels, in_channels, 7)}
    downs, ch = [], channels
    for _ in range(num_downs):
        downs.append(conv_params(ch * 2, ch, 3))
        ch *= 2
    params["downs"] = downs
    out_channels = ch
    Hb = Wb = bottom_width

    # FC1: generate PyTorch-shaped (out, C*H*W) weight (NCHW flatten order),
    # then bake the NCHW->NHWC permutation into its rows and pre-transpose.
    cin1 = out_channels * Hb * Wb
    w1 = jax.random.normal(next(kit), (out_channels * 2, cin1), jnp.float32)
    w1 = spectral_norm_weight(w1 / math.sqrt(cin1))
    w1 = w1.reshape(out_channels * 2, out_channels, Hb, Wb)
    w1 = jnp.transpose(w1, (2, 3, 1, 0)).reshape(Hb * Wb * out_channels,
                                                 out_channels * 2)
    params["w_fc1"] = w1.astype(jnp.bfloat16)
    params["b_fc1"] = 0.01 * jax.random.normal(next(kit), (1, out_channels * 2),
                                               jnp.float32)

    w2 = jax.random.normal(next(kit), (out_channels * 2, out_channels * 2),
                           jnp.float32)
    w2 = spectral_norm_weight(w2 / math.sqrt(out_channels * 2))
    params["w_fc2"] = w2.T.astype(jnp.bfloat16)          # pre-transposed (in, out)
    params["b_fc2"] = 0.01 * jax.random.normal(next(kit), (1, out_channels * 2),
                                               jnp.float32)
    return params, out_channels


# --------------------------------------------------------------------------
# Forward pass
# --------------------------------------------------------------------------

@jax.jit
def style_encoder_forward(x_nchw, params):
    # self.input: Conv 7x7 s1 p3 (spectral norm) + LeakyReLU(0.2)
    x = jnp.transpose(x_nchw, (0, 2, 3, 1)).astype(jnp.bfloat16)   # NCHW -> NHWC
    w, b = params["conv_in"]
    x = conv_layer(x, w, b, kh=7, stride=1, pad=3, fuse_in=False)
    # self.extract: [Conv 3x3 s2 p1 -> InstanceNorm2d -> LeakyReLU(0.2)] * num_downs
    for (w, b) in params["downs"]:
        x = conv_layer(x, w, b, kh=3, stride=2, pad=1, fuse_in=True)
    # self.output: Flatten -> Linear -> LeakyReLU -> Linear
    # (NCHW-flatten permutation is baked into w_fc1's rows; plain reshape here)
    n = x.shape[0]
    x = x.reshape(n, -1)
    x = fc_layer(x, params["w_fc1"], params["b_fc1"], act="lrelu",
                 out_dtype=jnp.bfloat16)
    x = fc_layer(x, params["w_fc2"], params["b_fc2"], act=None,
                 out_dtype=jnp.float32)
    return x


if __name__ == "__main__":
    image_size = 16
    bottom_width = 4
    in_channels = 4
    channels = 8
    batch = 2

    key = jax.random.PRNGKey(0)
    k_param, k_x = jax.random.split(key)
    params, out_channels = init_style_encoder_params(
        k_param, image_size, bottom_width, in_channels, channels)
    x = jax.random.normal(k_x, (batch, in_channels, image_size, image_size),
                          jnp.float32)

    out = jax.block_until_ready(style_encoder_forward(x, params))

    expected = (batch, out_channels * 2)          # (2, 64)
    assert out.shape == expected, (out.shape, expected)
    assert bool(jnp.all(jnp.isfinite(out)))
    print("KERNEL_OK")
</pallas_src>

<mosaic_0001>
module attributes {stable_mosaic.version = 11 : i64} {
  func.func @_conv_lrelu_kernel(%arg0: i32, %arg1: memref<1x1x22x22x4xbf16, #tpu.memory_space<vmem>>, %arg2: memref<49x4x8xbf16, #tpu.memory_space<vmem>>, %arg3: memref<1x8xf32, #tpu.memory_space<vmem>>, %arg4: memref<1x16x16x8xbf16, #tpu.memory_space<vmem>>) attributes {dimension_semantics = [#tpu.dimension_semantics<parallel>], iteration_bounds = array<i64: 2>, scalar_prefetch = 0 : i64, scratch_operands = 0 : i64, tpu.core_type = #tpu.core_type<tc>, window_params = [{transform_indices = @transform_0, window_bounds = array<i64: 1, 1, 22, 22, 4>}, {pipeline_mode = #tpu.pipeline_mode<synchronous>, transform_indices = @transform_1, window_bounds = array<i64: 49, 4, 8>}, {pipeline_mode = #tpu.pipeline_mode<synchronous>, transform_indices = @transform_2, window_bounds = array<i64: 1, 8>}, {transform_indices = @transform_3, window_bounds = array<i64: 1, 16, 16, 8>}]} {
    %c0_i32 = arith.constant 0 : i32
    %c16_i32 = arith.constant 16 : i32
    %0 = arith.addi %c0_i32, %c16_i32 : i32
    %c1_i32 = arith.constant 1 : i32
    scf.for %arg5 = %c0_i32 to %0 step %c1_i32  : i32 {
      %cst = arith.constant 0.000000e+00 : f32
      %1 = vector.broadcast %cst : f32 to vector<16x8xf32>
      %c0_i32_1 = arith.constant 0 : i32
      %2 = arith.addi %arg5, %c0_i32_1 : i32
      %c0 = arith.constant 0 : index
      %c0_2 = arith.constant 0 : index
      %3 = arith.index_cast %2 : i32 to index
      %c0_3 = arith.constant 0 : index
      %c0_4 = arith.constant 0 : index
      %4 = vector.load %arg1[%c0, %c0_2, %3, %c0_3, %c0_4] : memref<1x1x22x22x4xbf16, #tpu.memory_space<vmem>>, vector<1x1x1x16x4xbf16>
      %5 = vector.shape_cast %4 : vector<1x1x1x16x4xbf16> to vector<16x4xbf16>
      %c0_5 = arith.constant 0 : index
      %c0_6 = arith.constant 0 : index
      %c0_7 = arith.constant 0 : index
      %6 = vector.load %arg2[%c0_5, %c0_6, %c0_7] : memref<49x4x8xbf16, #tpu.memory_space<vmem>>, vector<1x4x8xbf16>
      %7 = vector.shape_cast %6 : vector<1x4x8xbf16> to vector<4x8xbf16>
      %cst_8 = arith.constant dense<0.000000e+00> : vector<16x8xf32>
      %8 = tpu.matmul %5, %7, %cst_8 {dimension_numbers = #tpu.dot_dimension_numbers<[1], [0], [0], [1], [0, 0, 1, 1], [], []>} : vector<16x4xbf16>, vector<4x8xbf16>, vector<16x8xf32> -> vector<16x8xf32>
      %9 = arith.addf %1, %8 : vector<16x8xf32>
      %c0_i32_9 = arith.constant 0 : i32
      %10 = arith.addi %arg5, %c0_i32_9 : i32
      %c0_10 = arith.constant 0 : index
      %c0_11 = arith.constant 0 : index
      %11 = arith.index_cast %10 : i32 to index
      %c1 = arith.constant 1 : index
      %c0_12 = arith.constant 0 : index
      %12 = vector.load %arg1[%c0_10, %c0_11, %11, %c1, %c0_12] : memref<1x1x22x22x4xbf16, #tpu.memory_space<vmem>>, vector<1x1x1x16x4xbf16>
      %13 = vector.shape_cast %12 : vector<1x1x1x16x4xbf16> to vector<16x4xbf16>
      %c1_13 = arith.constant 1 : index
      %c0_14 = arith.constant 0 : index
      %c0_15 = arith.constant 0 : index
      %14 = vector.load %arg2[%c1_13, %c0_14, %c0_15] : memref<49x4x8xbf16, #tpu.memory_space<vmem>>, vector<1x4x8xbf16>
      %15 = vector.shape_cast %14 : vector<1x4x8xbf16> to vector<4x8xbf16>
      %cst_16 = arith.constant dense<0.000000e+00> : vector<16x8xf32>
      %16 = tpu.matmul %13, %15, %cst_16 {dimension_numbers = #tpu.dot_dimension_numbers<[1], [0], [0], [1], [0, 0, 1, 1], [], []>} : vector<16x4xbf16>, vector<4x8xbf16>, vector<16x8xf32> -> vector<16x8xf32>
      %17 = arith.addf %9, %16 : vector<16x8xf32>
      %c0_i32_17 = arith.constant 0 : i32
      %18 = arith.addi %arg5, %c0_i32_17 : i32
      %c0_18 = arith.constant 0 : index
      %c0_19 = arith.constant 0 : index
      %19 = arith.index_cast %18 : i32 to index
      %c2 = arith.constant 2 : index
      %c0_20 = arith.constant 0 : index
      %20 = vector.load %arg1[%c0_18, %c0_19, %19, %c2, %c0_20] : memref<1x1x22x22x4xbf16, #tpu.memory_space<vmem>>, vector<1x1x1x16x4xbf16>
      %21 = vector.shape_cast %20 : vector<1x1x1x16x4xbf16> to vector<16x4xbf16>
      %c2_21 = arith.constant 2 : index
      %c0_22 = arith.constant 0 : index
      %c0_23 = arith.constant 0 : index
      %22 = vector.load %arg2[%c2_21, %c0_22, %c0_23] : memref<49x4x8xbf16, #tpu.memory_space<vmem>>, vector<1x4x8xbf16>
      %23 = vector.shape_cast %22 : vector<1x4x8xbf16> to vector<4x8xbf16>
      %cst_24 = arith.constant dense<0.000000e+00> : vector<16x8xf32>
      %24 = tpu.matmul %21, %23, %cst_24 {dimension_numbers = #tpu.dot_dimension_numbers<[1], [0], [0], [1], [0, 0, 1, 1], [], []>} : vector<16x4xbf16>, vector<4x8xbf16>, vector<16x8xf32> -> vector<16x8xf32>
      %25 = arith.addf %17, %24 : vector<16x8xf32>
      %c0_i32_25 = arith.constant 0 : i32
      %26 = arith.addi %arg5, %c0_i32_25 : i32
      %c0_26 = arith.constant 0 : index
      %c0_27 = arith.constant 0 : index
      %27 = arith.index_cast %26 : i32 to index
      %c3 = arith.constant 3 : index
      %c0_28 = arith.constant 0 : index
      %28 = vector.load %arg1[%c0_26, %c0_27, %27, %c3, %c0_28] : memref<1x1x22x22x4xbf16, #tpu.memory_space<vmem>>, vector<1x1x1x16x4xbf16>
      %29 = vector.shape_cast %28 : vector<1x1x1x16x4xbf16> to vector<16x4xbf16>
      %c3_29 = arith.constant 3 : index
      %c0_30 = arith.constant 0 : index
      %c0_31 = arith.constant 0 : index
      %30 = vector.load %arg2[%c3_29, %c0_30, %c0_31] : memref<49x4x8xbf16, #tpu.memory_space<vmem>>, vector<1x4x8xbf16>
      %31 = vector.shape_cast %30 : vector<1x4x8xbf16> to vector<4x8xbf16>
      %cst_32 = arith.constant dense<0.000000e+00> : vector<16x8xf32>
      %32 = tpu.matmul %29, %31, %cst_32 {dimension_numbers = #tpu.dot_dimension_numbers<[1], [0], [0], [1], [0, 0, 1, 1], [], []>} : vector<16x4xbf16>, vector<4x8xbf16>, vector<16x8xf32> -> vector<16x8xf32>
      %33 = arith.addf %25, %32 : vector<16x8xf32>
      %c0_i32_33 = arith.constant 0 : i32
      %34 = arith.addi %arg5, %c0_i32_33 : i32
      %c0_34 = arith.constant 0 : index
      %c0_35 = arith.constant 0 : index
      %35 = arith.index_cast %34 : i32 to index
      %c4 = arith.constant 4 : index
      %c0_36 = arith.constant 0 : index
      %36 = vector.load %arg1[%c0_34, %c0_35, %35, %c4, %c0_36] : memref<1x1x22x22x4xbf16, #tpu.memory_space<vmem>>, vector<1x1x1x16x4xbf16>
      %37 = vector.shape_cast %36 : vector<1x1x1x16x4xbf16> to vector<16x4xbf16>
      %c4_37 = arith.constant 4 : index
      %c0_38 = arith.constant 0 : index
      %c0_39 = arith.constant 0 : index
      %38 = vector.load %arg2[%c4_37, %c0_38, %c0_39] : memref<49x4x8xbf16, #tpu.memory_space<vmem>>, vector<1x4x8xbf16>
      %39 = vector.shape_cast %38 : vector<1x4x8xbf16> to vector<4x8xbf16>
      %cst_40 = arith.constant dense<0.000000e+00> : vector<16x8xf32>
      %40 = tpu.matmul %37, %39, %cst_40 {dimension_numbers = #tpu.dot_dimension_numbers<[1], [0], [0], [1], [0, 0, 1, 1], [], []>} : vector<16x4xbf16>, vector<4x8xbf16>, vector<16x8xf32> -> vector<16x8xf32>
      %41 = arith.addf %33, %40 : vector<16x8xf32>
      %c0_i32_41 = arith.constant 0 : i32
      %42 = arith.addi %arg5, %c0_i32_41 : i32
      %c0_42 = arith.constant 0 : index
      %c0_43 = arith.constant 0 : index
      %43 = arith.index_cast %42 : i32 to index
      %c5 = arith.constant 5 : index
      %c0_44 = arith.constant 0 : index
      %44 = vector.load %arg1[%c0_42, %c0_43, %43, %c5, %c0_44] : memref<1x1x22x22x4xbf16, #tpu.memory_space<vmem>>, vector<1x1x1x16x4xbf16>
      %45 = vector.shape_cast %44 : vector<1x1x1x16x4xbf16> to vector<16x4xbf16>
      %c5_45 = arith.constant 5 : index
      %c0_46 = arith.constant 0 : index
      %c0_47 = arith.constant 0 : index
      %46 = vector.load %arg2[%c5_45, %c0_46, %c0_47] : memref<49x4x8xbf16, #tpu.memory_space<vmem>>, vector<1x4x8xbf16>
      %47 = vector.shape_cast %46 : vector<1x4x8xbf16> to vector<4x8xbf16>
      %cst_48 = arith.constant dense<0.000000e+00> : vector<16x8xf32>
      %48 = tpu.matmul %45, %47, %cst_48 {dimension_numbers = #tpu.dot_dimension_numbers<[1], [0], [0], [1], [0, 0, 1, 1], [], []>} : vector<16x4xbf16>, vector<4x8xbf16>, vector<16x8xf32> -> vector<16x8xf32>
      %49 = arith.addf %41, %48 : vector<16x8xf32>
      %c0_i32_49 = arith.constant 0 : i32
      %50 = arith.addi %arg5, %c0_i32_49 : i32
      %c0_50 = arith.constant 0 : index
      %c0_51 = arith.constant 0 : index
      %51 = arith.index_cast %50 : i32 to index
      %c6 = arith.constant 6 : index
      %c0_52 = arith.constant 0 : index
      %52 = vector.load %arg1[%c0_50, %c0_51, %51, %c6, %c0_52] : memref<1x1x22x22x4xbf16, #tpu.memory_space<vmem>>, vector<1x1x1x16x4xbf16>
      %53 = vector.shape_cast %52 : vector<1x1x1x16x4xbf16> to vector<16x4xbf16>
      %c6_53 = arith.constant 6 : index
      %c0_54 = arith.constant 0 : index
      %c0_55 = arith.constant 0 : index
      %54 = vector.load %arg2[%c6_53, %c0_54, %c0_55] : memref<49x4x8xbf16, #tpu.memory_space<vmem>>, vector<1x4x8xbf16>
      %55 = vector.shape_cast %54 : vector<1x4x8xbf16> to vector<4x8xbf16>
      %cst_56 = arith.constant dense<0.000000e+00> : vector<16x8xf32>
      %56 = tpu.matmul %53, %55, %cst_56 {dimension_numbers = #tpu.dot_dimension_numbers<[1], [0], [0], [1], [0, 0, 1, 1], [], []>} : vector<16x4xbf16>, vector<4x8xbf16>, vector<16x8xf32> -> vector<16x8xf32>
      %57 = arith.addf %49, %56 : vector<16x8xf32>
      %c1_i32_57 = arith.constant 1 : i32
      %58 = arith.addi %arg5, %c1_i32_57 : i32
      %c0_58 = arith.constant 0 : index
      %c0_59 = arith.constant 0 : index
      %59 = arith.index_cast %58 : i32 to index
      %c0_60 = arith.constant 0 : index
      %c0_61 = arith.constant 0 : index
      %60 = vector.load %arg1[%c0_58, %c0_59, %59, %c0_60, %c0_61] : memref<1x1x22x22x4xbf16, #tpu.memory_space<vmem>>, vector<1x1x1x16x4xbf16>
      %61 = vector.shape_cast %60 : vector<1x1x1x16x4xbf16> to vector<16x4xbf16>
      %c7 = arith.constant 7 : index
      %c0_62 = arith.constant 0 : index
      %c0_63 = arith.constant 0 : index
      %62 = vector.load %arg2[%c7, %c0_62, %c0_63] : memref<49x4x8xbf16, #tpu.memory_space<vmem>>, vector<1x4x8xbf16>
      %63 = vector.shape_cast %62 : vector<1x4x8xbf16> to vector<4x8xbf16>
      %cst_64 = arith.constant dense<0.000000e+00> : vector<16x8xf32>
      %64 = tpu.matmul %61, %63, %cst_64 {dimension_numbers = #tpu.dot_dimension_numbers<[1], [0], [0], [1], [0, 0, 1, 1], [], []>} : vector<16x4xbf16>, vector<4x8xbf16>, vector<16x8xf32> -> vector<16x8xf32>
      %65 = arith.addf %57, %64 : vector<16x8xf32>
      %c1_i32_65 = arith.constant 1 : i32
      %66 = arith.addi %arg5, %c1_i32_65 : i32
      %c0_66 = arith.constant 0 : index
      %c0_67 = arith.constant 0 : index
      %67 = arith.index_cast %66 : i32 to index
      %c1_68 = arith.constant 1 : index
      %c0_69 = arith.constant 0 : index
      %68 = vector.load %arg1[%c0_66, %c0_67, %67, %c1_68, %c0_69] : memref<1x1x22x22x4xbf16, #tpu.memory_space<vmem>>, vector<1x1x1x16x4xbf16>
      %69 = vector.shape_cast %68 : vector<1x1x1x16x4xbf16> to vector<16x4xbf16>
      %c8 = arith.constant 8 : index
      %c0_70 = arith.constant 0 : index
      %c0_71 = arith.constant 0 : index
      %70 = vector.load %arg2[%c8, %c0_70, %c0_71] : memref<49x4x8xbf16, #tpu.memory_space<vmem>>, vector<1x4x8xbf16>
      %71 = vector.shape_cast %70 : vector<1x4x8xbf16> to vector<4x8xbf16>
      %cst_72 = arith.constant dense<0.000000e+00> : vector<16x8xf32>
      %72 = tpu.matmul %69, %71, %cst_72 {dimension_numbers = #tpu.dot_dimension_numbers<[1], [0], [0], [1], [0, 0, 1, 1], [], []>} : vector<16x4xbf16>, vector<4x8xbf16>, vector<16x8xf32> -> vector<16x8xf32>
      %73 = arith.addf %65, %72 : vector<16x8xf32>
      %c1_i32_73 = arith.constant 1 : i32
      %74 = arith.addi %arg5, %c1_i32_73 : i32
      %c0_74 = arith.constant 0 : index
      %c0_75 = arith.constant 0 : index
      %75 = arith.index_cast %74 : i32 to index
      %c2_76 = arith.constant 2 : index
      %c0_77 = arith.constant 0 : index
      %76 = vector.load %arg1[%c0_74, %c0_75, %75, %c2_76, %c0_77] : memref<1x1x22x22x4xbf16, #tpu.memory_space<vmem>>, vector<1x1x1x16x4xbf16>
      %77 = vector.shape_cast %76 : vector<1x1x1x16x4xbf16> to vector<16x4xbf16>
      %c9 = arith.constant 9 : index
      %c0_78 = arith.constant 0 : index
      %c0_79 = arith.constant 0 : index
      %78 = vector.load %arg2[%c9, %c0_78, %c0_79] : memref<49x4x8xbf16, #tpu.memory_space<vmem>>, vector<1x4x8xbf16>
      %79 = vector.shape_cast %78 : vector<1x4x8xbf16> to vector<4x8xbf16>
      %cst_80 = arith.constant dense<0.000000e+00> : vector<16x8xf32>
      %80 = tpu.matmul %77, %79, %cst_80 {dimension_numbers = #tpu.dot_dimension_numbers<[1], [0], [0], [1], [0, 0, 1, 1], [], []>} : vector<16x4xbf16>, vector<4x8xbf16>, vector<16x8xf32> -> vector<16x8xf32>
      %81 = arith.addf %73, %80 : vector<16x8xf32>
      %c1_i32_81 = arith.constant 1 : i32
      %82 = arith.addi %arg5, %c1_i32_81 : i32
      %c0_82 = arith.constant 0 : index
      %c0_83 = arith.constant 0 : index
      %83 = arith.index_cast %82 : i32 to index
      %c3_84 = arith.constant 3 : index
      %c0_85 = arith.constant 0 : index
      %84 = vector.load %arg1[%c0_82, %c0_83, %83, %c3_84, %c0_85] : memref<1x1x22x22x4xbf16, #tpu.memory_space<vmem>>, vector<1x1x1x16x4xbf16>
      %85 = vector.shape_cast %84 : vector<1x1x1x16x4xbf16> to vector<16x4xbf16>
      %c10 = arith.constant 10 : index
      %c0_86 = arith.constant 0 : index
      %c0_87 = arith.constant 0 : index
      %86 = vector.load %arg2[%c10, %c0_86, %c0_87] : memref<49x4x8xbf16, #tpu.memory_space<vmem>>, vector<1x4x8xbf16>
      %87 = vector.shape_cast %86 : vector<1x4x8xbf16> to vector<4x8xbf16>
      %cst_88 = arith.constant dense<0.000000e+00> : vector<16x8xf32>
      %88 = tpu.matmul %85, %87, %cst_88 {dimension_numbers = #tpu.dot_dimension_numbers<[1], [0], [0], [1], [0, 0, 1, 1], [], []>} : vector<16x4xbf16>, vector<4x8xbf16>, vector<16x8xf32> -> vector<16x8xf32>
      %89 = arith.addf %81, %88 : vector<16x8xf32>
      %c1_i32_89 = arith.constant 1 : i32
      %90 = arith.addi %arg5, %c1_i32_89 : i32
      %c0_90 = arith.constant 0 : index
      %c0_91 = arith.constant 0 : index
      %91 = arith.index_cast %90 : i32 to index
      %c4_92 = arith.constant 4 : index
      %c0_93 = arith.constant 0 : index
      %92 = vector.load %arg1[%c0_90, %c0_91, %91, %c4_92, %c0_93] : memref<1x1x22x22x4xbf16, #tpu.memory_space<vmem>>, vector<1x1x1x16x4xbf16>
      %93 = vector.shape_cast %92 : vector<1x1x1x16x4xbf16> to vector<16x4xbf16>
      %c11 = arith.constant 11 : index
      %c0_94 = arith.constant 0 : index
      %c0_95 = arith.constant 0 : index
      %94 = vector.load %arg2[%c11, %c0_94, %c0_95] : memref<49x4x8xbf16, #tpu.memory_space<vmem>>, vector<1x4x8xbf16>
      %95 = vector.shape_cast %94 : vector<1x4x8xbf16> to vector<4x8xbf16>
      %cst_96 = arith.constant dense<0.000000e+00> : vector<16x8xf32>
      %96 = tpu.matmul %93, %95, %cst_96 {dimension_numbers = #tpu.dot_dimension_numbers<[1], [0], [0], [1], [0, 0, 1, 1], [], []>} : vector<16x4xbf16>, vector<4x8xbf16>, vector<16x8xf32> -> vector<16x8xf32>
      %97 = arith.addf %89, %96 : vector<16x8xf32>
      %c1_i32_97 = arith.constant 1 : i32
      %98 = arith.addi %arg5, %c1_i32_97 : i32
      %c0_98 = arith.constant 0 : index
      %c0_99 = arith.constant 0 : index
      %99 = arith.index_cast %98 : i32 to index
      %c5_100 = arith.constant 5 : index
      %c0_101 = arith.constant 0 : index
      %100 = vector.load %arg1[%c0_98, %c0_99, %99, %c5_100, %c0_101] : memref<1x1x22x22x4xbf16, #tpu.memory_space<vmem>>, vector<1x1x1x16x4xbf16>
      %101 = vector.shape_cast %100 : vector<1x1x1x16x4xbf16> to vector<16x4xbf16>
      %c12 = arith.constant 12 : index
      %c0_102 = arith.constant 0 : index
      %c0_103 = arith.constant 0 : index
      %102 = vector.load %arg2[%c12, %c0_102, %c0_103] : memref<49x4x8xbf16, #tpu.memory_space<vmem>>, vector<1x4x8xbf16>
      %103 = vector.shape_cast %102 : vector<1x4x8xbf16> to vector<4x8xbf16>
      %cst_104 = arith.constant dense<0.000000e+00> : vector<16x8xf32>
      %104 = tpu.matmul %101, %103, %cst_104 {dimension_numbers = #tpu.dot_dimension_numbers<[1], [0], [0], [1], [0, 0, 1, 1], [], []>} : vector<16x4xbf16>, vector<4x8xbf16>, vector<16x8xf32> -> vector<16x8xf32>
      %105 = arith.addf %97, %104 : vector<16x8xf32>
      %c1_i32_105 = arith.constant 1 : i32
      %106 = arith.addi %arg5, %c1_i32_105 : i32
      %c0_106 = arith.constant 0 : index
      %c0_107 = arith.constant 0 : index
      %107 = arith.index_cast %106 : i32 to index
      %c6_108 = arith.constant 6 : index
      %c0_109 = arith.constant 0 : index
      %108 = vector.load %arg1[%c0_106, %c0_107, %107, %c6_108, %c0_109] : memref<1x1x22x22x4xbf16, #tpu.memory_space<vmem>>, vector<1x1x1x16x4xbf16>
      %109 = vector.shape_cast %108 : vector<1x1x1x16x4xbf16> to vector<16x4xbf16>
      %c13 = arith.constant 13 : index
      %c0_110 = arith.constant 0 : index
      %c0_111 = arith.constant 0 : index
      %110 = vector.load %arg2[%c13, %c0_110, %c0_111] : memref<49x4x8xbf16, #tpu.memory_space<vmem>>, vector<1x4x8xbf16>
      %111 = vector.shape_cast %110 : vector<1x4x8xbf16> to vector<4x8xbf16>
      %cst_112 = arith.constant dense<0.000000e+00> : vector<16x8xf32>
      %112 = tpu.matmul %109, %111, %cst_112 {dimension_numbers = #tpu.dot_dimension_numbers<[1], [0], [0], [1], [0, 0, 1, 1], [], []>} : vector<16x4xbf16>, vector<4x8xbf16>, vector<16x8xf32> -> vector<16x8xf32>
      %113 = arith.addf %105, %112 : vector<16x8xf32>
      %c2_i32 = arith.constant 2 : i32
      %114 = arith.addi %arg5, %c2_i32 : i32
      %c0_113 = arith.constant 0 : index
      %c0_114 = arith.constant 0 : index
      %115 = arith.index_cast %114 : i32 to index
      %c0_115 = arith.constant 0 : index
      %c0_116 = arith.constant 0 : index
      %116 = vector.load %arg1[%c0_113, %c0_114, %115, %c0_115, %c0_116] : memref<1x1x22x22x4xbf16, #tpu.memory_space<vmem>>, vector<1x1x1x16x4xbf16>
      %117 = vector.shape_cast %116 : vector<1x1x1x16x4xbf16> to vector<16x4xbf16>
      %c14 = arith.constant 14 : index
      %c0_117 = arith.constant 0 : index
      %c0_118 = arith.constant 0 : index
      %118 = vector.load %arg2[%c14, %c0_117, %c0_118] : memref<49x4x8xbf16, #tpu.memory_space<vmem>>, vector<1x4x8xbf16>
      %119 = vector.shape_cast %118 : vector<1x4x8xbf16> to vector<4x8xbf16>
      %cst_119 = arith.constant dense<0.000000e+00> : vector<16x8xf32>
      %120 = tpu.matmul %117, %119, %cst_119 {dimension_numbers = #tpu.dot_dimension_numbers<[1], [0], [0], [1], [0, 0, 1, 1], [], []>} : vector<16x4xbf16>, vector<4x8xbf16>, vector<16x8xf32> -> vector<16x8xf32>
      %121 = arith.addf %113, %120 : vector<16x8xf32>
      %c2_i32_120 = arith.constant 2 : i32
      %122 = arith.addi %arg5, %c2_i32_120 : i32
      %c0_121 = arith.constant 0 : index
      %c0_122 = arith.constant 0 : index
      %123 = arith.index_cast %122 : i32 to index
      %c1_123 = arith.constant 1 : index
      %c0_124 = arith.constant 0 : index
      %124 = vector.load %arg1[%c0_121, %c0_122, %123, %c1_123, %c0_124] : memref<1x1x22x22x4xbf16, #tpu.memory_space<vmem>>, vector<1x1x1x16x4xbf16>
      %125 = vector.shape_cast %124 : vector<1x1x1x16x4xbf16> to vector<16x4xbf16>
      %c15 = arith.constant 15 : index
      %c0_125 = arith.constant 0 : index
      %c0_126 = arith.constant 0 : index
      %126 = vector.load %arg2[%c15, %c0_125, %c0_126] : memref<49x4x8xbf16, #tpu.memory_space<vmem>>, vector<1x4x8xbf16>
      %127 = vector.shape_cast %126 : vector<1x4x8xbf16> to vector<4x8xbf16>
      %cst_127 = arith.constant dense<0.000000e+00> : vector<16x8xf32>
      %128 = tpu.matmul %125, %127, %cst_127 {dimension_numbers = #tpu.dot_dimension_numbers<[1], [0], [0], [1], [0, 0, 1, 1], [], []>} : vector<16x4xbf16>, vector<4x8xbf16>, vector<16x8xf32> -> vector<16x8xf32>
      %129 = arith.addf %121, %128 : vector<16x8xf32>
      %c2_i32_128 = arith.constant 2 : i32
      %130 = arith.addi %arg5, %c2_i32_128 : i32
      %c0_129 = arith.constant 0 : index
      %c0_130 = arith.constant 0 : index
      %131 = arith.index_cast %130 : i32 to index
      %c2_131 = arith.constant 2 : index
      %c0_132 = arith.constant 0 : index
      %132 = vector.load %arg1[%c0_129, %c0_130, %131, %c2_131, %c0_132] : memref<1x1x22x22x4xbf16, #tpu.memory_space<vmem>>, vector<1x1x1x16x4xbf16>
      %133 = vector.shape_cast %132 : vector<1x1x1x16x4xbf16> to vector<16x4xbf16>
      %c16 = arith.constant 16 : index
      %c0_133 = arith.constant 0 : index
      %c0_134 = arith.constant 0 : index
      %134 = vector.load %arg2[%c16, %c0_133, %c0_134] : memref<49x4x8xbf16, #tpu.memory_space<vmem>>, vector<1x4x8xbf16>
      %135 = vector.shape_cast %134 : vector<1x4x8xbf16> to vector<4x8xbf16>
      %cst_135 = arith.constant dense<0.000000e+00> : vector<16x8xf32>
      %136 = tpu.matmul %133, %135, %cst_135 {dimension_numbers = #tpu.dot_dimension_numbers<[1], [0], [0], [1], [0, 0, 1, 1], [], []>} : vector<16x4xbf16>, vector<4x8xbf16>, vector<16x8xf32> -> vector<16x8xf32>
      %137 = arith.addf %129, %136 : vector<16x8xf32>
      %c2_i32_136 = arith.constant 2 : i32
      %138 = arith.addi %arg5, %c2_i32_136 : i32
      %c0_137 = arith.constant 0 : index
      %c0_138 = arith.constant 0 : index
      %139 = arith.index_cast %138 : i32 to index
      %c3_139 = arith.constant 3 : index
      %c0_140 = arith.constant 0 : index
      %140 = vector.load %arg1[%c0_137, %c0_138, %139, %c3_139, %c0_140] : memref<1x1x22x22x4xbf16, #tpu.memory_space<vmem>>, vector<1x1x1x16x4xbf16>
      %141 = vector.shape_cast %140 : vector<1x1x1x16x4xbf16> to vector<16x4xbf16>
      %c17 = arith.constant 17 : index
      %c0_141 = arith.constant 0 : index
      %c0_142 = arith.constant 0 : index
      %142 = vector.load %arg2[%c17, %c0_141, %c0_142] : memref<49x4x8xbf16, #tpu.memory_space<vmem>>, vector<1x4x8xbf16>
      %143 = vector.shape_cast %142 : vector<1x4x8xbf16> to vector<4x8xbf16>
      %cst_143 = arith.constant dense<0.000000e+00> : vector<16x8xf32>
      %144 = tpu.matmul %141, %143, %cst_143 {dimension_numbers = #tpu.dot_dimension_numbers<[1], [0], [0], [1], [0, 0, 1, 1], [], []>} : vector<16x4xbf16>, vector<4x8xbf16>, vector<16x8xf32> -> vector<16x8xf32>
      %145 = arith.addf %137, %144 : vector<16x8xf32>
      %c2_i32_144 = arith.constant 2 : i32
      %146 = arith.addi %arg5, %c2_i32_144 : i32
      %c0_145 = arith.constant 0 : index
      %c0_146 = arith.constant 0 : index
      %147 = arith.index_cast %146 : i32 to index
      %c4_147 = arith.constant 4 : index
      %c0_148 = arith.constant 0 : index
      %148 = vector.load %arg1[%c0_145, %c0_146, %147, %c4_147, %c0_148] : memref<1x1x22x22x4xbf16, #tpu.memory_space<vmem>>, vector<1x1x1x16x4xbf16>
      %149 = vector.shape_cast %148 : vector<1x1x1x16x4xbf16> to vector<16x4xbf16>
      %c18 = arith.constant 18 : index
      %c0_149 = arith.constant 0 : index
      %c0_150 = arith.constant 0 : index
      %150 = vector.load %arg2[%c18, %c0_149, %c0_150] : memref<49x4x8xbf16, #tpu.memory_space<vmem>>, vector<1x4x8xbf16>
      %151 = vector.shape_cast %150 : vector<1x4x8xbf16> to vector<4x8xbf16>
      %cst_151 = arith.constant dense<0.000000e+00> : vector<16x8xf32>
      %152 = tpu.matmul %149, %151, %cst_151 {dimension_numbers = #tpu.dot_dimension_numbers<[1], [0], [0], [1], [0, 0, 1, 1], [], []>} : vector<16x4xbf16>, vector<4x8xbf16>, vector<16x8xf32> -> vector<16x8xf32>
      %153 = arith.addf %145, %152 : vector<16x8xf32>
      %c2_i32_152 = arith.constant 2 : i32
      %154 = arith.addi %arg5, %c2_i32_152 : i32
      %c0_153 = arith.constant 0 : index
      %c0_154 = arith.constant 0 : index
      %155 = arith.index_cast %154 : i32 to index
      %c5_155 = arith.constant 5 : index
      %c0_156 = arith.constant 0 : index
      %156 = vector.load %arg1[%c0_153, %c0_154, %155, %c5_155, %c0_156] : memref<1x1x22x22x4xbf16, #tpu.memory_space<vmem>>, vector<1x1x1x16x4xbf16>
      %157 = vector.shape_cast %156 : vector<1x1x1x16x4xbf16> to vector<16x4xbf16>
      %c19 = arith.constant 19 : index
      %c0_157 = arith.constant 0 : index
      %c0_158 = arith.constant 0 : index
      %158 = vector.load %arg2[%c19, %c0_157, %c0_158] : memref<49x4x8xbf16, #tpu.memory_space<vmem>>, vector<1x4x8xbf16>
      %159 = vector.shape_cast %158 : vector<1x4x8xbf16> to vector<4x8xbf16>
      %cst_159 = arith.constant dense<0.000000e+00> : vector<16x8xf32>
      %160 = tpu.matmul %157, %159, %cst_159 {dimension_numbers = #tpu.dot_dimension_numbers<[1], [0], [0], [1], [0, 0, 1, 1], [], []>} : vector<16x4xbf16>, vector<4x8xbf16>, vector<16x8xf32> -> vector<16x8xf32>
      %161 = arith.addf %153, %160 : vector<16x8xf32>
      %c2_i32_160 = arith.constant 2 : i32
      %162 = arith.addi %arg5, %c2_i32_160 : i32
      %c0_161 = arith.constant 0 : index
      %c0_162 = arith.constant 0 : index
      %163 = arith.index_cast %162 : i32 to index
      %c6_163 = arith.constant 6 : index
      %c0_164 = arith.constant 0 : index
      %164 = vector.load %arg1[%c0_161, %c0_162, %163, %c6_163, %c0_164] : memref<1x1x22x22x4xbf16, #tpu.memory_space<vmem>>, vector<1x1x1x16x4xbf16>
      %165 = vector.shape_cast %164 : vector<1x1x1x16x4xbf16> to vector<16x4xbf16>
      %c20 = arith.constant 20 : index
      %c0_165 = arith.constant 0 : index
      %c0_166 = arith.constant 0 : index
      %166 = vector.load %arg2[%c20, %c0_165, %c0_166] : memref<49x4x8xbf16, #tpu.memory_space<vmem>>, vector<1x4x8xbf16>
      %167 = vector.shape_cast %166 : vector<1x4x8xbf16> to vector<4x8xbf16>
      %cst_167 = arith.constant dense<0.000000e+00> : vector<16x8xf32>
      %168 = tpu.matmul %165, %167, %cst_167 {dimension_numbers = #tpu.dot_dimension_numbers<[1], [0], [0], [1], [0, 0, 1, 1], [], []>} : vector<16x4xbf16>, vector<4x8xbf16>, vector<16x8xf32> -> vector<16x8xf32>
      %169 = arith.addf %161, %168 : vector<16x8xf32>
      %c3_i32 = arith.constant 3 : i32
      %170 = arith.addi %arg5, %c3_i32 : i32
      %c0_168 = arith.constant 0 : index
      %c0_169 = arith.constant 0 : index
      %171 = arith.index_cast %170 : i32 to index
      %c0_170 = arith.constant 0 : index
      %c0_171 = arith.constant 0 : index
      %172 = vector.load %arg1[%c0_168, %c0_169, %171, %c0_170, %c0_171] : memref<1x1x22x22x4xbf16, #tpu.memory_space<vmem>>, vector<1x1x1x16x4xbf16>
      %173 = vector.shape_cast %172 : vector<1x1x1x16x4xbf16> to vector<16x4xbf16>
      %c21 = arith.constant 21 : index
      %c0_172 = arith.constant 0 : index
      %c0_173 = arith.constant 0 : index
      %174 = vector.load %arg2[%c21, %c0_172, %c0_173] : memref<49x4x8xbf16, #tpu.memory_space<vmem>>, vector<1x4x8xbf16>
      %175 = vector.shape_cast %174 : vector<1x4x8xbf16> to vector<4x8xbf16>
      %cst_174 = arith.constant dense<0.000000e+00> : vector<16x8xf32>
      %176 = tpu.matmul %173, %175, %cst_174 {dimension_numbers = #tpu.dot_dimension_numbers<[1], [0], [0], [1], [0, 0, 1, 1], [], []>} : vector<16x4xbf16>, vector<4x8xbf16>, vector<16x8xf32> -> vector<16x8xf32>
      %177 = arith.addf %169, %176 : vector<16x8xf32>
      %c3_i32_175 = arith.constant 3 : i32
      %178 = arith.addi %arg5, %c3_i32_175 : i32
      %c0_176 = arith.constant 0 : index
      %c0_177 = arith.constant 0 : index
      %179 = arith.index_cast %178 : i32 to index
      %c1_178 = arith.constant 1 : index
      %c0_179 = arith.constant 0 : index
      %180 = vector.load %arg1[%c0_176, %c0_177, %179, %c1_178, %c0_179] : memref<1x1x22x22x4xbf16, #tpu.memory_space<vmem>>, vector<1x1x1x16x4xbf16>
      %181 = vector.shape_cast %180 : vector<1x1x1x16x4xbf16> to vector<16x4xbf16>
      %c22 = arith.constant 22 : index
      %c0_180 = arith.constant 0 : index
      %c0_181 = arith.constant 0 : index
      %182 = vector.load %arg2[%c22, %c0_180, %c0_181] : memref<49x4x8xbf16, #tpu.memory_space<vmem>>, vector<1x4x8xbf16>
      %183 = vector.shape_cast %182 : vector<1x4x8xbf16> to vector<4x8xbf16>
      %cst_182 = arith.constant dense<0.000000e+00> : vector<16x8xf32>
      %184 = tpu.matmul %181, %183, %cst_182 {dimension_numbers = #tpu.dot_dimension_numbers<[1], [0], [0], [1], [0, 0, 1, 1], [], []>} : vector<16x4xbf16>, vector<4x8xbf16>, vector<16x8xf32> -> vector<16x8xf32>
      %185 = arith.addf %177, %184 : vector<16x8xf32>
      %c3_i32_183 = arith.constant 3 : i32
      %186 = arith.addi %arg5, %c3_i32_183 : i32
      %c0_184 = arith.constant 0 : index
      %c0_185 = arith.constant 0 : index
      %187 = arith.index_cast %186 : i32 to index
      %c2_186 = arith.constant 2 : index
      %c0_187 = arith.constant 0 : index
      %188 = vector.load %arg1[%c0_184, %c0_185, %187, %c2_186, %c0_187] : memref<1x1x22x22x4xbf16, #tpu.memory_space<vmem>>, vector<1x1x1x16x4xbf16>
      %189 = vector.shape_cast %188 : vector<1x1x1x16x4xbf16> to vector<16x4xbf16>
      %c23 = arith.constant 23 : index
      %c0_188 = arith.constant 0 : index
      %c0_189 = arith.constant 0 : index
      %190 = vector.load %arg2[%c23, %c0_188, %c0_189] : memref<49x4x8xbf16, #tpu.memory_space<vmem>>, vector<1x4x8xbf16>
      %191 = vector.shape_cast %190 : vector<1x4x8xbf16> to vector<4x8xbf16>
      %cst_190 = arith.constant dense<0.000000e+00> : vector<16x8xf32>
      %192 = tpu.matmul %189, %191, %cst_190 {dimension_numbers = #tpu.dot_dimension_numbers<[1], [0], [0], [1], [0, 0, 1, 1], [], []>} : vector<16x4xbf16>, vector<4x8xbf16>, vector<16x8xf32> -> vector<16x8xf32>
      %193 = arith.addf %185, %192 : vector<16x8xf32>
      %c3_i32_191 = arith.constant 3 : i32
      %194 = arith.addi %arg5, %c3_i32_191 : i32
      %c0_192 = arith.constant 0 : index
      %c0_193 = arith.constant 0 : index
      %195 = arith.index_cast %194 : i32 to index
      %c3_194 = arith.constant 3 : index
      %c0_195 = arith.constant 0 : index
      %196 = vector.load %arg1[%c0_192, %c0_193, %195, %c3_194, %c0_195] : memref<1x1x22x22x4xbf16, #tpu.memory_space<vmem>>, vector<1x1x1x16x4xbf16>
      %197 = vector.shape_cast %196 : vector<1x1x1x16x4xbf16> to vector<16x4xbf16>
      %c24 = arith.constant 24 : index
      %c0_196 = arith.constant 0 : index
      %c0_197 = arith.constant 0 : index
      %198 = vector.load %arg2[%c24, %c0_196, %c0_197] : memref<49x4x8xbf16, #tpu.memory_space<vmem>>, vector<1x4x8xbf16>
      %199 = vector.shape_cast %198 : vector<1x4x8xbf16> to vector<4x8xbf16>
      %cst_198 = arith.constant dense<0.000000e+00> : vector<16x8xf32>
      %200 = tpu.matmul %197, %199, %cst_198 {dimension_numbers = #tpu.dot_dimension_numbers<[1], [0], [0], [1], [0, 0, 1, 1], [], []>} : vector<16x4xbf16>, vector<4x8xbf16>, vector<16x8xf32> -> vector<16x8xf32>
      %201 = arith.addf %193, %200 : vector<16x8xf32>
      %c3_i32_199 = arith.constant 3 : i32
      %202 = arith.addi %arg5, %c3_i32_199 : i32
      %c0_200 = arith.constant 0 : index
      %c0_201 = arith.constant 0 : index
      %203 = arith.index_cast %202 : i32 to index
      %c4_202 = arith.constant 4 : index
      %c0_203 = arith.constant 0 : index
      %204 = vector.load %arg1[%c0_200, %c0_201, %203, %c4_202, %c0_203] : memref<1x1x22x22x4xbf16, #tpu.memory_space<vmem>>, vector<1x1x1x16x4xbf16>
      %205 = vector.shape_cast %204 : vector<1x1x1x16x4xbf16> to vector<16x4xbf16>
      %c25 = arith.constant 25 : index
      %c0_204 = arith.constant 0 : index
      %c0_205 = arith.constant 0 : index
      %206 = vector.load %arg2[%c25, %c0_204, %c0_205] : memref<49x4x8xbf16, #tpu.memory_space<vmem>>, vector<1x4x8xbf16>
      %207 = vector.shape_cast %206 : vector<1x4x8xbf16> to vector<4x8xbf16>
      %cst_206 = arith.constant dense<0.000000e+00> : vector<16x8xf32>
      %208 = tpu.matmul %205, %207, %cst_206 {dimension_numbers = #tpu.dot_dimension_numbers<[1], [0], [0], [1], [0, 0, 1, 1], [], []>} : vector<16x4xbf16>, vector<4x8xbf16>, vector<16x8xf32> -> vector<16x8xf32>
      %209 = arith.addf %201, %208 : vector<16x8xf32>
      %c3_i32_207 = arith.constant 3 : i32
      %210 = arith.addi %arg5, %c3_i32_207 : i32
      %c0_208 = arith.constant 0 : index
      %c0_209 = arith.constant 0 : index
      %211 = arith.index_cast %210 : i32 to index
      %c5_210 = arith.constant 5 : index
      %c0_211 = arith.constant 0 : index
      %212 = vector.load %arg1[%c0_208, %c0_209, %211, %c5_210, %c0_211] : memref<1x1x22x22x4xbf16, #tpu.memory_space<vmem>>, vector<1x1x1x16x4xbf16>
      %213 = vector.shape_cast %212 : vector<1x1x1x16x4xbf16> to vector<16x4xbf16>
      %c26 = arith.constant 26 : index
      %c0_212 = arith.constant 0 : index
      %c0_213 = arith.constant 0 : index
      %214 = vector.load %arg2[%c26, %c0_212, %c0_213] : memref<49x4x8xbf16, #tpu.memory_space<vmem>>, vector<1x4x8xbf16>
      %215 = vector.shape_cast %214 : vector<1x4x8xbf16> to vector<4x8xbf16>
      %cst_214 = arith.constant dense<0.000000e+00> : vector<16x8xf32>
      %216 = tpu.matmul %213, %215, %cst_214 {dimension_numbers = #tpu.dot_dimension_numbers<[1], [0], [0], [1], [0, 0, 1, 1], [], []>} : vector<16x4xbf16>, vector<4x8xbf16>, vector<16x8xf32> -> vector<16x8xf32>
      %217 = arith.addf %209, %216 : vector<16x8xf32>
      %c3_i32_215 = arith.constant 3 : i32
      %218 = arith.addi %arg5, %c3_i32_215 : i32
      %c0_216 = arith.constant 0 : index
      %c0_217 = arith.constant 0 : index
      %219 = arith.index_cast %218 : i32 to index
      %c6_218 = arith.constant 6 : index
      %c0_219 = arith.constant 0 : index
      %220 = vector.load %arg1[%c0_216, %c0_217, %219, %c6_218, %c0_219] : memref<1x1x22x22x4xbf16, #tpu.memory_space<vmem>>, vector<1x1x1x16x4xbf16>
      %221 = vector.shape_cast %220 : vector<1x1x1x16x4xbf16> to vector<16x4xbf16>
      %c27 = arith.constant 27 : index
      %c0_220 = arith.constant 0 : index
      %c0_221 = arith.constant 0 : index
      %222 = vector.load %arg2[%c27, %c0_220, %c0_221] : memref<49x4x8xbf16, #tpu.memory_space<vmem>>, vector<1x4x8xbf16>
      %223 = vector.shape_cast %222 : vector<1x4x8xbf16> to vector<4x8xbf16>
      %cst_222 = arith.constant dense<0.000000e+00> : vector<16x8xf32>
      %224 = tpu.matmul %221, %223, %cst_222 {dimension_numbers = #tpu.dot_dimension_numbers<[1], [0], [0], [1], [0, 0, 1, 1], [], []>} : vector<16x4xbf16>, vector<4x8xbf16>, vector<16x8xf32> -> vector<16x8xf32>
      %225 = arith.addf %217, %224 : vector<16x8xf32>
      %c4_i32 = arith.constant 4 : i32
      %226 = arith.addi %arg5, %c4_i32 : i32
      %c0_223 = arith.constant 0 : index
      %c0_224 = arith.constant 0 : index
      %227 = arith.index_cast %226 : i32 to index
      %c0_225 = arith.constant 0 : index
      %c0_226 = arith.constant 0 : index
      %228 = vector.load %arg1[%c0_223, %c0_224, %227, %c0_225, %c0_226] : memref<1x1x22x22x4xbf16, #tpu.memory_space<vmem>>, vector<1x1x1x16x4xbf16>
      %229 = vector.shape_cast %228 : vector<1x1x1x16x4xbf16> to vector<16x4xbf16>
      %c28 = arith.constant 28 : index
      %c0_227 = arith.constant 0 : index
      %c0_228 = arith.constant 0 : index
      %230 = vector.load %arg2[%c28, %c0_227, %c0_228] : memref<49x4x8xbf16, #tpu.memory_space<vmem>>, vector<1x4x8xbf16>
      %231 = vector.shape_cast %230 : vector<1x4x8xbf16> to vector<4x8xbf16>
      %cst_229 = arith.constant dense<0.000000e+00> : vector<16x8xf32>
      %232 = tpu.matmul %229, %231, %cst_229 {dimension_numbers = #tpu.dot_dimension_numbers<[1], [0], [0], [1], [0, 0, 1, 1], [], []>} : vector<16x4xbf16>, vector<4x8xbf16>, vector<16x8xf32> -> vector<16x8xf32>
      %233 = arith.addf %225, %232 : vector<16x8xf32>
      %c4_i32_230 = arith.constant 4 : i32
      %234 = arith.addi %arg5, %c4_i32_230 : i32
      %c0_231 = arith.constant 0 : index
      %c0_232 = arith.constant 0 : index
      %235 = arith.index_cast %234 : i32 to index
      %c1_233 = arith.constant 1 : index
      %c0_234 = arith.constant 0 : index
      %236 = vector.load %arg1[%c0_231, %c0_232, %235, %c1_233, %c0_234] : memref<1x1x22x22x4xbf16, #tpu.memory_space<vmem>>, vector<1x1x1x16x4xbf16>
      %237 = vector.shape_cast %236 : vector<1x1x1x16x4xbf16> to vector<16x4xbf16>
      %c29 = arith.constant 29 : index
      %c0_235 = arith.constant 0 : index
      %c0_236 = arith.constant 0 : index
      %238 = vector.load %arg2[%c29, %c0_235, %c0_236] : memref<49x4x8xbf16, #tpu.memory_space<vmem>>, vector<1x4x8xbf16>
      %239 = vector.shape_cast %238 : vector<1x4x8xbf16> to vector<4x8xbf16>
      %cst_237 = arith.constant dense<0.000000e+00> : vector<16x8xf32>
      %240 = tpu.matmul %237, %239, %cst_237 {dimension_numbers = #tpu.dot_dimension_numbers<[1], [0], [0], [1], [0, 0, 1, 1], [], []>} : vector<16x4xbf16>, vector<4x8xbf16>, vector<16x8xf32> -> vector<16x8xf32>
      %241 = arith.addf %233, %240 : vector<16x8xf32>
      %c4_i32_238 = arith.constant 4 : i32
      %242 = arith.addi %arg5, %c4_i32_238 : i32
      %c0_239 = arith.constant 0 : index
      %c0_240 = arith.constant 0 : index
      %243 = arith.index_cast %242 : i32 to index
      %c2_241 = arith.constant 2 : index
      %c0_242 = arith.constant 0 : index
      %244 = vector.load %arg1[%c0_239, %c0_240, %243, %c2_241, %c0_242] : memref<1x1x22x22x4xbf16, #tpu.memory_space<vmem>>, vector<1x1x1x16x4xbf16>
      %245 = vector.shape_cast %244 : vector<1x1x1x16x4xbf16> to vector<16x4xbf16>
      %c30 = arith.constant 30 : index
      %c0_243 = arith.constant 0 : index
      %c0_244 = arith.constant 0 : index
      %246 = vector.load %arg2[%c30, %c0_243, %c0_244] : memref<49x4x8xbf16, #tpu.memory_space<vmem>>, vector<1x4x8xbf16>
      %247 = vector.shape_cast %246 : vector<1x4x8xbf16> to vector<4x8xbf16>
      %cst_245 = arith.constant dense<0.000000e+00> : vector<16x8xf32>
      %248 = tpu.matmul %245, %247, %cst_245 {dimension_numbers = #tpu.dot_dimension_numbers<[1], [0], [0], [1], [0, 0, 1, 1], [], []>} : vector<16x4xbf16>, vector<4x8xbf16>, vector<16x8xf32> -> vector<16x8xf32>
      %249 = arith.addf %241, %248 : vector<16x8xf32>
      %c4_i32_246 = arith.constant 4 : i32
      %250 = arith.addi %arg5, %c4_i32_246 : i32
      %c0_247 = arith.constant 0 : index
      %c0_248 = arith.constant 0 : index
      %251 = arith.index_cast %250 : i32 to index
      %c3_249 = arith.constant 3 : index
      %c0_250 = arith.constant 0 : index
      %252 = vector.load %arg1[%c0_247, %c0_248, %251, %c3_249, %c0_250] : memref<1x1x22x22x4xbf16, #tpu.memory_space<vmem>>, vector<1x1x1x16x4xbf16>
      %253 = vector.shape_cast %252 : vector<1x1x1x16x4xbf16> to vector<16x4xbf16>
      %c31 = arith.constant 31 : index
      %c0_251 = arith.constant 0 : index
      %c0_252 = arith.constant 0 : index
      %254 = vector.load %arg2[%c31, %c0_251, %c0_252] : memref<49x4x8xbf16, #tpu.memory_space<vmem>>, vector<1x4x8xbf16>
      %255 = vector.shape_cast %254 : vector<1x4x8xbf16> to vector<4x8xbf16>
      %cst_253 = arith.constant dense<0.000000e+00> : vector<16x8xf32>
      %256 = tpu.matmul %253, %255, %cst_253 {dimension_numbers = #tpu.dot_dimension_numbers<[1], [0], [0], [1], [0, 0, 1, 1], [], []>} : vector<16x4xbf16>, vector<4x8xbf16>, vector<16x8xf32> -> vector<16x8xf32>
      %257 = arith.addf %249, %256 : vector<16x8xf32>
      %c4_i32_254 = arith.constant 4 : i32
      %258 = arith.addi %arg5, %c4_i32_254 : i32
      %c0_255 = arith.constant 0 : index
      %c0_256 = arith.constant 0 : index
      %259 = arith.index_cast %258 : i32 to index
      %c4_257 = arith.constant 4 : index
      %c0_258 = arith.constant 0 : index
      %260 = vector.load %arg1[%c0_255, %c0_256, %259, %c4_257, %c0_258] : memref<1x1x22x22x4xbf16, #tpu.memory_space<vmem>>, vector<1x1x1x16x4xbf16>
      %261 = vector.shape_cast %260 : vector<1x1x1x16x4xbf16> to vector<16x4xbf16>
      %c32 = arith.constant 32 : index
      %c0_259 = arith.constant 0 : index
      %c0_260 = arith.constant 0 : index
      %262 = vector.load %arg2[%c32, %c0_259, %c0_260] : memref<49x4x8xbf16, #tpu.memory_space<vmem>>, vector<1x4x8xbf16>
      %263 = vector.shape_cast %262 : vector<1x4x8xbf16> to vector<4x8xbf16>
      %cst_261 = arith.constant dense<0.000000e+00> : vector<16x8xf32>
      %264 = tpu.matmul %261, %263, %cst_261 {dimension_numbers = #tpu.dot_dimension_numbers<[1], [0], [0], [1], [0, 0, 1, 1], [], []>} : vector<16x4xbf16>, vector<4x8xbf16>, vector<16x8xf32> -> vector<16x8xf32>
      %265 = arith.addf %257, %264 : vector<16x8xf32>
      %c4_i32_262 = arith.constant 4 : i32
      %266 = arith.addi %arg5, %c4_i32_262 : i32
      %c0_263 = arith.constant 0 : index
      %c0_264 = arith.constant 0 : index
      %267 = arith.index_cast %266 : i32 to index
      %c5_265 = arith.constant 5 : index
      %c0_266 = arith.constant 0 : index
      %268 = vector.load %arg1[%c0_263, %c0_264, %267, %c5_265, %c0_266] : memref<1x1x22x22x4xbf16, #tpu.memory_space<vmem>>, vector<1x1x1x16x4xbf16>
      %269 = vector.shape_cast %268 : vector<1x1x1x16x4xbf16> to vector<16x4xbf16>
      %c33 = arith.constant 33 : index
      %c0_267 = arith.constant 0 : index
      %c0_268 = arith.constant 0 : index
      %270 = vector.load %arg2[%c33, %c0_267, %c0_268] : memref<49x4x8xbf16, #tpu.memory_space<vmem>>, vector<1x4x8xbf16>
      %271 = vector.shape_cast %270 : vector<1x4x8xbf16> to vector<4x8xbf16>
      %cst_269 = arith.constant dense<0.000000e+00> : vector<16x8xf32>
      %272 = tpu.matmul %269, %271, %cst_269 {dimension_numbers = #tpu.dot_dimension_numbers<[1], [0], [0], [1], [0, 0, 1, 1], [], []>} : vector<16x4xbf16>, vector<4x8xbf16>, vector<16x8xf32> -> vector<16x8xf32>
      %273 = arith.addf %265, %272 : vector<16x8xf32>
      %c4_i32_270 = arith.constant 4 : i32
      %274 = arith.addi %arg5, %c4_i32_270 : i32
      %c0_271 = arith.constant 0 : index
      %c0_272 = arith.constant 0 : index
      %275 = arith.index_cast %274 : i32 to index
      %c6_273 = arith.constant 6 : index
      %c0_274 = arith.constant 0 : index
      %276 = vector.load %arg1[%c0_271, %c0_272, %275, %c6_273, %c0_274] : memref<1x1x22x22x4xbf16, #tpu.memory_space<vmem>>, vector<1x1x1x16x4xbf16>
      %277 = vector.shape_cast %276 : vector<1x1x1x16x4xbf16> to vector<16x4xbf16>
      %c34 = arith.constant 34 : index
      %c0_275 = arith.constant 0 : index
      %c0_276 = arith.constant 0 : index
      %278 = vector.load %arg2[%c34, %c0_275, %c0_276] : memref<49x4x8xbf16, #tpu.memory_space<vmem>>, vector<1x4x8xbf16>
      %279 = vector.shape_cast %278 : vector<1x4x8xbf16> to vector<4x8xbf16>
      %cst_277 = arith.constant dense<0.000000e+00> : vector<16x8xf32>
      %280 = tpu.matmul %277, %279, %cst_277 {dimension_numbers = #tpu.dot_dimension_numbers<[1], [0], [0], [1], [0, 0, 1, 1], [], []>} : vector<16x4xbf16>, vector<4x8xbf16>, vector<16x8xf32> -> vector<16x8xf32>
      %281 = arith.addf %273, %280 : vector<16x8xf32>
      %c5_i32 = arith.constant 5 : i32
      %282 = arith.addi %arg5, %c5_i32 : i32
      %c0_278 = arith.constant 0 : index
      %c0_279 = arith.constant 0 : index
      %283 = arith.index_cast %282 : i32 to index
      %c0_280 = arith.constant 0 : index
      %c0_281 = arith.constant 0 : index
      %284 = vector.load %arg1[%c0_278, %c0_279, %283, %c0_280, %c0_281] : memref<1x1x22x22x4xbf16, #tpu.memory_space<vmem>>, vector<1x1x1x16x4xbf16>
      %285 = vector.shape_cast %284 : vector<1x1x1x16x4xbf16> to vector<16x4xbf16>
      %c35 = arith.constant 35 : index
      %c0_282 = arith.constant 0 : index
      %c0_283 = arith.constant 0 : index
      %286 = vector.load %arg2[%c35, %c0_282, %c0_283] : memref<49x4x8xbf16, #tpu.memory_space<vmem>>, vector<1x4x8xbf16>
      %287 = vector.shape_cast %286 : vector<1x4x8xbf16> to vector<4x8xbf16>
      %cst_284 = arith.constant dense<0.000000e+00> : vector<16x8xf32>
      %288 = tpu.matmul %285, %287, %cst_284 {dimension_numbers = #tpu.dot_dimension_numbers<[1], [0], [0], [1], [0, 0, 1, 1], [], []>} : vector<16x4xbf16>, vector<4x8xbf16>, vector<16x8xf32> -> vector<16x8xf32>
      %289 = arith.addf %281, %288 : vector<16x8xf32>
      %c5_i32_285 = arith.constant 5 : i32
      %290 = arith.addi %arg5, %c5_i32_285 : i32
      %c0_286 = arith.constant 0 : index
      %c0_287 = arith.constant 0 : index
      %291 = arith.index_cast %290 : i32 to index
      %c1_288 = arith.constant 1 : index
      %c0_289 = arith.constant 0 : index
      %292 = vector.load %arg1[%c0_286, %c0_287, %291, %c1_288, %c0_289] : memref<1x1x22x22x4xbf16, #tpu.memory_space<vmem>>, vector<1x1x1x16x4xbf16>
      %293 = vector.shape_cast %292 : vector<1x1x1x16x4xbf16> to vector<16x4xbf16>
      %c36 = arith.constant 36 : index
      %c0_290 = arith.constant 0 : index
      %c0_291 = arith.constant 0 : index
      %294 = vector.load %arg2[%c36, %c0_290, %c0_291] : memref<49x4x8xbf16, #tpu.memory_space<vmem>>, vector<1x4x8xbf16>
      %295 = vector.shape_cast %294 : vector<1x4x8xbf16> to vector<4x8xbf16>
      %cst_292 = arith.constant dense<0.000000e+00> : vector<16x8xf32>
      %296 = tpu.matmul %293, %295, %cst_292 {dimension_numbers = #tpu.dot_dimension_numbers<[1], [0], [0], [1], [0, 0, 1, 1], [], []>} : vector<16x4xbf16>, vector<4x8xbf16>, vector<16x8xf32> -> vector<16x8xf32>
      %297 = arith.addf %289, %296 : vector<16x8xf32>
      %c5_i32_293 = arith.constant 5 : i32
      %298 = arith.addi %arg5, %c5_i32_293 : i32
      %c0_294 = arith.constant 0 : index
      %c0_295 = arith.constant 0 : index
      %299 = arith.index_cast %298 : i32 to index
      %c2_296 = arith.constant 2 : index
      %c0_297 = arith.constant 0 : index
      %300 = vector.load %arg1[%c0_294, %c0_295, %299, %c2_296, %c0_297] : memref<1x1x22x22x4xbf16, #tpu.memory_space<vmem>>, vector<1x1x1x16x4xbf16>
      %301 = vector.shape_cast %300 : vector<1x1x1x16x4xbf16> to vector<16x4xbf16>
      %c37 = arith.constant 37 : index
      %c0_298 = arith.constant 0 : index
      %c0_299 = arith.constant 0 : index
      %302 = vector.load %arg2[%c37, %c0_298, %c0_299] : memref<49x4x8xbf16, #tpu.memory_space<vmem>>, vector<1x4x8xbf16>
      %303 = vector.shape_cast %302 : vector<1x4x8xbf16> to vector<4x8xbf16>
      %cst_300 = arith.constant dense<0.000000e+00> : vector<16x8xf32>
      %304 = tpu.matmul %301, %303, %cst_300 {dimension_numbers = #tpu.dot_dimension_numbers<[1], [0], [0], [1], [0, 0, 1, 1], [], []>} : vector<16x4xbf16>, vector<4x8xbf16>, vector<16x8xf32> -> vector<16x8xf32>
      %305 = arith.addf %297, %304 : vector<16x8xf32>
      %c5_i32_301 = arith.constant 5 : i32
      %306 = arith.addi %arg5, %c5_i32_301 : i32
      %c0_302 = arith.constant 0 : index
      %c0_303 = arith.constant 0 : index
      %307 = arith.index_cast %306 : i32 to index
      %c3_304 = arith.constant 3 : index
      %c0_305 = arith.constant 0 : index
      %308 = vector.load %arg1[%c0_302, %c0_303, %307, %c3_304, %c0_305] : memref<1x1x22x22x4xbf16, #tpu.memory_space<vmem>>, vector<1x1x1x16x4xbf16>
      %309 = vector.shape_cast %308 : vector<1x1x1x16x4xbf16> to vector<16x4xbf16>
      %c38 = arith.constant 38 : index
      %c0_306 = arith.constant 0 : index
      %c0_307 = arith.constant 0 : index
      %310 = vector.load %arg2[%c38, %c0_306, %c0_307] : memref<49x4x8xbf16, #tpu.memory_space<vmem>>, vector<1x4x8xbf16>
      %311 = vector.shape_cast %310 : vector<1x4x8xbf16> to vector<4x8xbf16>
      %cst_308 = arith.constant dense<0.000000e+00> : vector<16x8xf32>
      %312 = tpu.matmul %309, %311, %cst_308 {dimension_numbers = #tpu.dot_dimension_numbers<[1], [0], [0], [1], [0, 0, 1, 1], [], []>} : vector<16x4xbf16>, vector<4x8xbf16>, vector<16x8xf32> -> vector<16x8xf32>
      %313 = arith.addf %305, %312 : vector<16x8xf32>
      %c5_i32_309 = arith.constant 5 : i32
      %314 = arith.addi %arg5, %c5_i32_309 : i32
      %c0_310 = arith.constant 0 : index
      %c0_311 = arith.constant 0 : index
      %315 = arith.index_cast %314 : i32 to index
      %c4_312 = arith.constant 4 : index
      %c0_313 = arith.constant 0 : index
      %316 = vector.load %arg1[%c0_310, %c0_311, %315, %c4_312, %c0_313] : memref<1x1x22x22x4xbf16, #tpu.memory_space<vmem>>, vector<1x1x1x16x4xbf16>
      %317 = vector.shape_cast %316 : vector<1x1x1x16x4xbf16> to vector<16x4xbf16>
      %c39 = arith.constant 39 : index
      %c0_314 = arith.constant 0 : index
      %c0_315 = arith.constant 0 : index
      %318 = vector.load %arg2[%c39, %c0_314, %c0_315] : memref<49x4x8xbf16, #tpu.memory_space<vmem>>, vector<1x4x8xbf16>
      %319 = vector.shape_cast %318 : vector<1x4x8xbf16> to vector<4x8xbf16>
      %cst_316 = arith.constant dense<0.000000e+00> : vector<16x8xf32>
      %320 = tpu.matmul %317, %319, %cst_316 {dimension_numbers = #tpu.dot_dimension_numbers<[1], [0], [0], [1], [0, 0, 1, 1], [], []>} : vector<16x4xbf16>, vector<4x8xbf16>, vector<16x8xf32> -> vector<16x8xf32>
      %321 = arith.addf %313, %320 : vector<16x8xf32>
      %c5_i32_317 = arith.constant 5 : i32
      %322 = arith.addi %arg5, %c5_i32_317 : i32
      %c0_318 = arith.constant 0 : index
      %c0_319 = arith.constant 0 : index
      %323 = arith.index_cast %322 : i32 to index
      %c5_320 = arith.constant 5 : index
      %c0_321 = arith.constant 0 : index
      %324 = vector.load %arg1[%c0_318, %c0_319, %323, %c5_320, %c0_321] : memref<1x1x22x22x4xbf16, #tpu.memory_space<vmem>>, vector<1x1x1x16x4xbf16>
      %325 = vector.shape_cast %324 : vector<1x1x1x16x4xbf16> to vector<16x4xbf16>
      %c40 = arith.constant 40 : index
      %c0_322 = arith.constant 0 : index
      %c0_323 = arith.constant 0 : index
      %326 = vector.load %arg2[%c40, %c0_322, %c0_323] : memref<49x4x8xbf16, #tpu.memory_space<vmem>>, vector<1x4x8xbf16>
      %327 = vector.shape_cast %326 : vector<1x4x8xbf16> to vector<4x8xbf16>
      %cst_324 = arith.constant dense<0.000000e+00> : vector<16x8xf32>
      %328 = tpu.matmul %325, %327, %cst_324 {dimension_numbers = #tpu.dot_dimension_numbers<[1], [0], [0], [1], [0, 0, 1, 1], [], []>} : vector<16x4xbf16>, vector<4x8xbf16>, vector<16x8xf32> -> vector<16x8xf32>
      %329 = arith.addf %321, %328 : vector<16x8xf32>
      %c5_i32_325 = arith.constant 5 : i32
      %330 = arith.addi %arg5, %c5_i32_325 : i32
      %c0_326 = arith.constant 0 : index
      %c0_327 = arith.constant 0 : index
      %331 = arith.index_cast %330 : i32 to index
      %c6_328 = arith.constant 6 : index
      %c0_329 = arith.constant 0 : index
      %332 = vector.load %arg1[%c0_326, %c0_327, %331, %c6_328, %c0_329] : memref<1x1x22x22x4xbf16, #tpu.memory_space<vmem>>, vector<1x1x1x16x4xbf16>
      %333 = vector.shape_cast %332 : vector<1x1x1x16x4xbf16> to vector<16x4xbf16>
      %c41 = arith.constant 41 : index
      %c0_330 = arith.constant 0 : index
      %c0_331 = arith.constant 0 : index
      %334 = vector.load %arg2[%c41, %c0_330, %c0_331] : memref<49x4x8xbf16, #tpu.memory_space<vmem>>, vector<1x4x8xbf16>
      %335 = vector.shape_cast %334 : vector<1x4x8xbf16> to vector<4x8xbf16>
      %cst_332 = arith.constant dense<0.000000e+00> : vector<16x8xf32>
      %336 = tpu.matmul %333, %335, %cst_332 {dimension_numbers = #tpu.dot_dimension_numbers<[1], [0], [0], [1], [0, 0, 1, 1], [], []>} : vector<16x4xbf16>, vector<4x8xbf16>, vector<16x8xf32> -> vector<16x8xf32>
      %337 = arith.addf %329, %336 : vector<16x8xf32>
      %c6_i32 = arith.constant 6 : i32
      %338 = arith.addi %arg5, %c6_i32 : i32
      %c0_333 = arith.constant 0 : index
      %c0_334 = arith.constant 0 : index
      %339 = arith.index_cast %338 : i32 to index
      %c0_335 = arith.constant 0 : index
      %c0_336 = arith.constant 0 : index
      %340 = vector.load %arg1[%c0_333, %c0_334, %339, %c0_335, %c0_336] : memref<1x1x22x22x4xbf16, #tpu.memory_space<vmem>>, vector<1x1x1x16x4xbf16>
      %341 = vector.shape_cast %340 : vector<1x1x1x16x4xbf16> to vector<16x4xbf16>
      %c42 = arith.constant 42 : index
      %c0_337 = arith.constant 0 : index
      %c0_338 = arith.constant 0 : index
      %342 = vector.load %arg2[%c42, %c0_337, %c0_338] : memref<49x4x8xbf16, #tpu.memory_space<vmem>>, vector<1x4x8xbf16>
      %343 = vector.shape_cast %342 : vector<1x4x8xbf16> to vector<4x8xbf16>
      %cst_339 = arith.constant dense<0.000000e+00> : vector<16x8xf32>
      %344 = tpu.matmul %341, %343, %cst_339 {dimension_numbers = #tpu.dot_dimension_numbers<[1], [0], [0], [1], [0, 0, 1, 1], [], []>} : vector<16x4xbf16>, vector<4x8xbf16>, vector<16x8xf32> -> vector<16x8xf32>
      %345 = arith.addf %337, %344 : vector<16x8xf32>
      %c6_i32_340 = arith.constant 6 : i32
      %346 = arith.addi %arg5, %c6_i32_340 : i32
      %c0_341 = arith.constant 0 : index
      %c0_342 = arith.constant 0 : index
      %347 = arith.index_cast %346 : i32 to index
      %c1_343 = arith.constant 1 : index
      %c0_344 = arith.constant 0 : index
      %348 = vector.load %arg1[%c0_341, %c0_342, %347, %c1_343, %c0_344] : memref<1x1x22x22x4xbf16, #tpu.memory_space<vmem>>, vector<1x1x1x16x4xbf16>
      %349 = vector.shape_cast %348 : vector<1x1x1x16x4xbf16> to vector<16x4xbf16>
      %c43 = arith.constant 43 : index
      %c0_345 = arith.constant 0 : index
      %c0_346 = arith.constant 0 : index
      %350 = vector.load %arg2[%c43, %c0_345, %c0_346] : memref<49x4x8xbf16, #tpu.memory_space<vmem>>, vector<1x4x8xbf16>
      %351 = vector.shape_cast %350 : vector<1x4x8xbf16> to vector<4x8xbf16>
      %cst_347 = arith.constant dense<0.000000e+00> : vector<16x8xf32>
      %352 = tpu.matmul %349, %351, %cst_347 {dimension_numbers = #tpu.dot_dimension_numbers<[1], [0], [0], [1], [0, 0, 1, 1], [], []>} : vector<16x4xbf16>, vector<4x8xbf16>, vector<16x8xf32> -> vector<16x8xf32>
      %353 = arith.addf %345, %352 : vector<16x8xf32>
      %c6_i32_348 = arith.constant 6 : i32
      %354 = arith.addi %arg5, %c6_i32_348 : i32
      %c0_349 = arith.constant 0 : index
      %c0_350 = arith.constant 0 : index
      %355 = arith.index_cast %354 : i32 to index
      %c2_351 = arith.constant 2 : index
      %c0_352 = arith.constant 0 : index
      %356 = vector.load %arg1[%c0_349, %c0_350, %355, %c2_351, %c0_352] : memref<1x1x22x22x4xbf16, #tpu.memory_space<vmem>>, vector<1x1x1x16x4xbf16>
      %357 = vector.shape_cast %356 : vector<1x1x1x16x4xbf16> to vector<16x4xbf16>
      %c44 = arith.constant 44 : index
      %c0_353 = arith.constant 0 : index
      %c0_354 = arith.constant 0 : index
      %358 = vector.load %arg2[%c44, %c0_353, %c0_354] : memref<49x4x8xbf16, #tpu.memory_space<vmem>>, vector<1x4x8xbf16>
      %359 = vector.shape_cast %358 : vector<1x4x8xbf16> to vector<4x8xbf16>
      %cst_355 = arith.constant dense<0.000000e+00> : vector<16x8xf32>
      %360 = tpu.matmul %357, %359, %cst_355 {dimension_numbers = #tpu.dot_dimension_numbers<[1], [0], [0], [1], [0, 0, 1, 1], [], []>} : vector<16x4xbf16>, vector<4x8xbf16>, vector<16x8xf32> -> vector<16x8xf32>
      %361 = arith.addf %353, %360 : vector<16x8xf32>
      %c6_i32_356 = arith.constant 6 : i32
      %362 = arith.addi %arg5, %c6_i32_356 : i32
      %c0_357 = arith.constant 0 : index
      %c0_358 = arith.constant 0 : index
      %363 = arith.index_cast %362 : i32 to index
      %c3_359 = arith.constant 3 : index
      %c0_360 = arith.constant 0 : index
      %364 = vector.load %arg1[%c0_357, %c0_358, %363, %c3_359, %c0_360] : memref<1x1x22x22x4xbf16, #tpu.memory_space<vmem>>, vector<1x1x1x16x4xbf16>
      %365 = vector.shape_cast %364 : vector<1x1x1x16x4xbf16> to vector<16x4xbf16>
      %c45 = arith.constant 45 : index
      %c0_361 = arith.constant 0 : index
      %c0_362 = arith.constant 0 : index
      %366 = vector.load %arg2[%c45, %c0_361, %c0_362] : memref<49x4x8xbf16, #tpu.memory_space<vmem>>, vector<1x4x8xbf16>
      %367 = vector.shape_cast %366 : vector<1x4x8xbf16> to vector<4x8xbf16>
      %cst_363 = arith.constant dense<0.000000e+00> : vector<16x8xf32>
      %368 = tpu.matmul %365, %367, %cst_363 {dimension_numbers = #tpu.dot_dimension_numbers<[1], [0], [0], [1], [0, 0, 1, 1], [], []>} : vector<16x4xbf16>, vector<4x8xbf16>, vector<16x8xf32> -> vector<16x8xf32>
      %369 = arith.addf %361, %368 : vector<16x8xf32>
      %c6_i32_364 = arith.constant 6 : i32
      %370 = arith.addi %arg5, %c6_i32_364 : i32
      %c0_365 = arith.constant 0 : index
      %c0_366 = arith.constant 0 : index
      %371 = arith.index_cast %370 : i32 to index
      %c4_367 = arith.constant 4 : index
      %c0_368 = arith.constant 0 : index
      %372 = vector.load %arg1[%c0_365, %c0_366, %371, %c4_367, %c0_368] : memref<1x1x22x22x4xbf16, #tpu.memory_space<vmem>>, vector<1x1x1x16x4xbf16>
      %373 = vector.shape_cast %372 : vector<1x1x1x16x4xbf16> to vector<16x4xbf16>
      %c46 = arith.constant 46 : index
      %c0_369 = arith.constant 0 : index
      %c0_370 = arith.constant 0 : index
      %374 = vector.load %arg2[%c46, %c0_369, %c0_370] : memref<49x4x8xbf16, #tpu.memory_space<vmem>>, vector<1x4x8xbf16>
      %375 = vector.shape_cast %374 : vector<1x4x8xbf16> to vector<4x8xbf16>
      %cst_371 = arith.constant dense<0.000000e+00> : vector<16x8xf32>
      %376 = tpu.matmul %373, %375, %cst_371 {dimension_numbers = #tpu.dot_dimension_numbers<[1], [0], [0], [1], [0, 0, 1, 1], [], []>} : vector<16x4xbf16>, vector<4x8xbf16>, vector<16x8xf32> -> vector<16x8xf32>
      %377 = arith.addf %369, %376 : vector<16x8xf32>
      %c6_i32_372 = arith.constant 6 : i32
      %378 = arith.addi %arg5, %c6_i32_372 : i32
      %c0_373 = arith.constant 0 : index
      %c0_374 = arith.constant 0 : index
      %379 = arith.index_cast %378 : i32 to index
      %c5_375 = arith.constant 5 : index
      %c0_376 = arith.constant 0 : index
      %380 = vector.load %arg1[%c0_373, %c0_374, %379, %c5_375, %c0_376] : memref<1x1x22x22x4xbf16, #tpu.memory_space<vmem>>, vector<1x1x1x16x4xbf16>
      %381 = vector.shape_cast %380 : vector<1x1x1x16x4xbf16> to vector<16x4xbf16>
      %c47 = arith.constant 47 : index
      %c0_377 = arith.constant 0 : index
      %c0_378 = arith.constant 0 : index
      %382 = vector.load %arg2[%c47, %c0_377, %c0_378] : memref<49x4x8xbf16, #tpu.memory_space<vmem>>, vector<1x4x8xbf16>
      %383 = vector.shape_cast %382 : vector<1x4x8xbf16> to vector<4x8xbf16>
      %cst_379 = arith.constant dense<0.000000e+00> : vector<16x8xf32>
      %384 = tpu.matmul %381, %383, %cst_379 {dimension_numbers = #tpu.dot_dimension_numbers<[1], [0], [0], [1], [0, 0, 1, 1], [], []>} : vector<16x4xbf16>, vector<4x8xbf16>, vector<16x8xf32> -> vector<16x8xf32>
      %385 = arith.addf %377, %384 : vector<16x8xf32>
      %c6_i32_380 = arith.constant 6 : i32
      %386 = arith.addi %arg5, %c6_i32_380 : i32
      %c0_381 = arith.constant 0 : index
      %c0_382 = arith.constant 0 : index
      %387 = arith.index_cast %386 : i32 to index
      %c6_383 = arith.constant 6 : index
      %c0_384 = arith.constant 0 : index
      %388 = vector.load %arg1[%c0_381, %c0_382, %387, %c6_383, %c0_384] : memref<1x1x22x22x4xbf16, #tpu.memory_space<vmem>>, vector<1x1x1x16x4xbf16>
      %389 = vector.shape_cast %388 : vector<1x1x1x16x4xbf16> to vector<16x4xbf16>
      %c48 = arith.constant 48 : index
      %c0_385 = arith.constant 0 : index
      %c0_386 = arith.constant 0 : index
      %390 = vector.load %arg2[%c48, %c0_385, %c0_386] : memref<49x4x8xbf16, #tpu.memory_space<vmem>>, vector<1x4x8xbf16>
      %391 = vector.shape_cast %390 : vector<1x4x8xbf16> to vector<4x8xbf16>
      %cst_387 = arith.constant dense<0.000000e+00> : vector<16x8xf32>
      %392 = tpu.matmul %389, %391, %cst_387 {dimension_numbers = #tpu.dot_dimension_numbers<[1], [0], [0], [1], [0, 0, 1, 1], [], []>} : vector<16x4xbf16>, vector<4x8xbf16>, vector<16x8xf32> -> vector<16x8xf32>
      %393 = arith.addf %385, %392 : vector<16x8xf32>
      %c0_388 = arith.constant 0 : index
      %c0_389 = arith.constant 0 : index
      %394 = vector.load %arg3[%c0_388, %c0_389] : memref<1x8xf32, #tpu.memory_space<vmem>>, vector<1x8xf32>
      %395 = vector.broadcast %394 : vector<1x8xf32> to vector<16x8xf32>
      %396 = arith.addf %393, %395 : vector<16x8xf32>
      %cst_390 = arith.constant 0.000000e+00 : f32
      %397 = vector.broadcast %cst_390 : f32 to vector<16x8xf32>
      %398 = arith.cmpf ogt, %396, %397 : vector<16x8xf32>
      %cst_391 = arith.constant 2.000000e-01 : f32
      %399 = vector.broadcast %cst_391 : f32 to vector<16x8xf32>
      %400 = arith.mulf %399, %396 : vector<16x8xf32>
      %401 = arith.select %398, %396, %400 : vector<16x8xi1>, vector<16x8xf32>
      %402 = arith.truncf %401 : vector<16x8xf32> to vector<16x8xbf16>
      %c0_392 = arith.constant 0 : index
      %403 = arith.index_cast %arg5 : i32 to index
      %c0_393 = arith.constant 0 : index
      %c0_394 = arith.constant 0 : index
      %404 = vector.load %arg4[%c0_392, %403, %c0_393, %c0_394] : memref<1x16x16x8xbf16, #tpu.memory_space<vmem>>, vector<1x1x16x8xbf16>
      %405 = vector.shape_cast %404 : vector<1x1x16x8xbf16> to vector<16x8xbf16>
      %406 = vector.shape_cast %402 : vector<16x8xbf16> to vector<1x1x16x8xbf16>
      tpu.vector_store %arg4[%c0_392, %403, %c0_393, %c0_394], %406 {strides = array<i32>} : memref<1x16x16x8xbf16, #tpu.memory_space<vmem>>, vector<1x1x16x8xbf16>,
    }
    %c16_i32_0 = arith.constant 16 : i32
    return
  }
  func.func @transform_0(%arg0: i32) -> (i32, i32, i32, i32, i32) {
    %c0_i32 = arith.constant 0 : i32
    %c0_i32_0 = arith.constant 0 : i32
    %c0_i32_1 = arith.constant 0 : i32
    %c0_i32_2 = arith.constant 0 : i32
    %c0_i32_3 = arith.constant 0 : i32
    return %arg0, %c0_i32, %c0_i32_0, %c0_i32_1, %c0_i32_2 : i32, i32, i32, i32, i32
  }
  func.func @transform_1(%arg0: i32) -> (i32, i32, i32) {
    %c0_i32 = arith.constant 0 : i32
    %c0_i32_0 = arith.constant 0 : i32
    %c0_i32_1 = arith.constant 0 : i32
    %c0_i32_2 = arith.constant 0 : i32
    return %c0_i32, %c0_i32_0, %c0_i32_1 : i32, i32, i32
  }
  func.func @transform_2(%arg0: i32) -> (i32, i32) {
    %c0_i32 = arith.constant 0 : i32
    %c0_i32_0 = arith.constant 0 : i32
    %c0_i32_1 = arith.constant 0 : i32
    return %c0_i32, %c0_i32_0 : i32, i32
  }
  func.func @transform_3(%arg0: i32) -> (i32, i32, i32, i32) {
    %c0_i32 = arith.constant 0 : i32
    %c0_i32_0 = arith.constant 0 : i32
    %c0_i32_1 = arith.constant 0 : i32
    %c0_i32_2 = arith.constant 0 : i32
    return %arg0, %c0_i32, %c0_i32_0, %c0_i32_1 : i32, i32, i32, i32
  }
}

module attributes {stable_mosaic.version = 11 : i64} {
  func.func @_conv_in_lrelu_kernel(%arg0: i32, %arg1: memref<1x4x9x9x8xbf16, #tpu.memory_space<vmem>>, %arg2: memref<9x8x16xbf16, #tpu.memory_space<vmem>>, %arg3: memref<1x16xf32, #tpu.memory_space<vmem>>, %arg4: memref<1x64x16xbf16, #tpu.memory_space<vmem>>, %arg5: memref<64x16xf32, #tpu.memory_space<vmem>>) attributes {dimension_semantics = [#tpu.dimension_semantics<parallel>], iteration_bounds = array<i64: 2>, scalar_prefetch = 0 : i64, scratch_operands = 1 : i64, tpu.core_type = #tpu.core_type<tc>, window_params = [{transform_indices = @transform_0, window_bounds = array<i64: 1, 4, 9, 9, 8>}, {pipeline_mode = #tpu.pipeline_mode<synchronous>, transform_indices = @transform_1, window_bounds = array<i64: 9, 8, 16>}, {pipeline_mode = #tpu.pipeline_mode<synchronous>, transform_indices = @transform_2, window_bounds = array<i64: 1, 16>}, {transform_indices = @transform_3, window_bounds = array<i64: 1, 64, 16>}]} {
    %cst = arith.constant 0.000000e+00 : f32
    %0 = vector.broadcast %cst : f32 to vector<8x16xf32>
    %c0 = arith.constant 0 : index
    %c0_0 = arith.constant 0 : index
    %c0_1 = arith.constant 0 : index
    %c0_2 = arith.constant 0 : index
    %c0_3 = arith.constant 0 : index
    %1 = vector.load %arg1[%c0, %c0_0, %c0_1, %c0_2, %c0_3] : memref<1x4x9x9x8xbf16, #tpu.memory_space<vmem>>, vector<1x1x1x8x8xbf16>
    %2 = vector.shape_cast %1 : vector<1x1x1x8x8xbf16> to vector<8x8xbf16>
    %c0_4 = arith.constant 0 : index
    %c0_5 = arith.constant 0 : index
    %c0_6 = arith.constant 0 : index
    %3 = vector.load %arg2[%c0_4, %c0_5, %c0_6] : memref<9x8x16xbf16, #tpu.memory_space<vmem>>, vector<1x8x16xbf16>
    %4 = vector.shape_cast %3 : vector<1x8x16xbf16> to vector<8x16xbf16>
    %cst_7 = arith.constant dense<0.000000e+00> : vector<8x16xf32>
    %5 = tpu.matmul %2, %4, %cst_7 {dimension_numbers = #tpu.dot_dimension_numbers<[1], [0], [0], [1], [0, 0, 1, 1], [], []>} : vector<8x8xbf16>, vector<8x16xbf16>, vector<8x16xf32> -> vector<8x16xf32>
    %6 = arith.addf %0, %5 : vector<8x16xf32>
    %c0_8 = arith.constant 0 : index
    %c1 = arith.constant 1 : index
    %c0_9 = arith.constant 0 : index
    %c0_10 = arith.constant 0 : index
    %c0_11 = arith.constant 0 : index
    %7 = vector.load %arg1[%c0_8, %c1, %c0_9, %c0_10, %c0_11] : memref<1x4x9x9x8xbf16, #tpu.memory_space<vmem>>, vector<1x1x1x8x8xbf16>
    %8 = vector.shape_cast %7 : vector<1x1x1x8x8xbf16> to vector<8x8xbf16>
    %c1_12 = arith.constant 1 : index
    %c0_13 = arith.constant 0 : index
    %c0_14 = arith.constant 0 : index
    %9 = vector.load %arg2[%c1_12, %c0_13, %c0_14] : memref<9x8x16xbf16, #tpu.memory_space<vmem>>, vector<1x8x16xbf16>
    %10 = vector.shape_cast %9 : vector<1x8x16xbf16> to vector<8x16xbf16>
    %cst_15 = arith.constant dense<0.000000e+00> : vector<8x16xf32>
    %11 = tpu.matmul %8, %10, %cst_15 {dimension_numbers = #tpu.dot_dimension_numbers<[1], [0], [0], [1], [0, 0, 1, 1], [], []>} : vector<8x8xbf16>, vector<8x16xbf16>, vector<8x16xf32> -> vector<8x16xf32>
    %12 = arith.addf %6, %11 : vector<8x16xf32>
    %c0_16 = arith.constant 0 : index
    %c0_17 = arith.constant 0 : index
    %c0_18 = arith.constant 0 : index
    %c1_19 = arith.constant 1 : index
    %c0_20 = arith.constant 0 : index
    %13 = vector.load %arg1[%c0_16, %c0_17, %c0_18, %c1_19, %c0_20] : memref<1x4x9x9x8xbf16, #tpu.memory_space<vmem>>, vector<1x1x1x8x8xbf16>
    %14 = vector.shape_cast %13 : vector<1x1x1x8x8xbf16> to vector<8x8xbf16>
    %c2 = arith.constant 2 : index
    %c0_21 = arith.constant 0 : index
    %c0_22 = arith.constant 0 : index
    %15 = vector.load %arg2[%c2, %c0_21, %c0_22] : memref<9x8x16xbf16, #tpu.memory_space<vmem>>, vector<1x8x16xbf16>
    %16 = vector.shape_cast %15 : vector<1x8x16xbf16> to vector<8x16xbf16>
    %cst_23 = arith.constant dense<0.000000e+00> : vector<8x16xf32>
    %17 = tpu.matmul %14, %16, %cst_23 {dimension_numbers = #tpu.dot_dimension_numbers<[1], [0], [0], [1], [0, 0, 1, 1], [], []>} : vector<8x8xbf16>, vector<8x16xbf16>, vector<8x16xf32> -> vector<8x16xf32>
    %18 = arith.addf %12, %17 : vector<8x16xf32>
    %c0_24 = arith.constant 0 : index
    %c2_25 = arith.constant 2 : index
    %c0_26 = arith.constant 0 : index
    %c0_27 = arith.constant 0 : index
    %c0_28 = arith.constant 0 : index
    %19 = vector.load %arg1[%c0_24, %c2_25, %c0_26, %c0_27, %c0_28] : memref<1x4x9x9x8xbf16, #tpu.memory_space<vmem>>, vector<1x1x1x8x8xbf16>
    %20 = vector.shape_cast %19 : vector<1x1x1x8x8xbf16> to vector<8x8xbf16>
    %c3 = arith.constant 3 : index
    %c0_29 = arith.constant 0 : index
    %c0_30 = arith.constant 0 : index
    %21 = vector.load %arg2[%c3, %c0_29, %c0_30] : memref<9x8x16xbf16, #tpu.memory_space<vmem>>, vector<1x8x16xbf16>
    %22 = vector.shape_cast %21 : vector<1x8x16xbf16> to vector<8x16xbf16>
    %cst_31 = arith.constant dense<0.000000e+00> : vector<8x16xf32>
    %23 = tpu.matmul %20, %22, %cst_31 {dimension_numbers = #tpu.dot_dimension_numbers<[1], [0], [0], [1], [0, 0, 1, 1], [], []>} : vector<8x8xbf16>, vector<8x16xbf16>, vector<8x16xf32> -> vector<8x16xf32>
    %24 = arith.addf %18, %23 : vector<8x16xf32>
    %c0_32 = arith.constant 0 : index
    %c3_33 = arith.constant 3 : index
    %c0_34 = arith.constant 0 : index
    %c0_35 = arith.constant 0 : index
    %c0_36 = arith.constant 0 : index
    %25 = vector.load %arg1[%c0_32, %c3_33, %c0_34, %c0_35, %c0_36] : memref<1x4x9x9x8xbf16, #tpu.memory_space<vmem>>, vector<1x1x1x8x8xbf16>
    %26 = vector.shape_cast %25 : vector<1x1x1x8x8xbf16> to vector<8x8xbf16>
    %c4 = arith.constant 4 : index
    %c0_37 = arith.constant 0 : index
    %c0_38 = arith.constant 0 : index
    %27 = vector.load %arg2[%c4, %c0_37, %c0_38] : memref<9x8x16xbf16, #tpu.memory_space<vmem>>, vector<1x8x16xbf16>
    %28 = vector.shape_cast %27 : vector<1x8x16xbf16> to vector<8x16xbf16>
    %cst_39 = arith.constant dense<0.000000e+00> : vector<8x16xf32>
    %29 = tpu.matmul %26, %28, %cst_39 {dimension_numbers = #tpu.dot_dimension_numbers<[1], [0], [0], [1], [0, 0, 1, 1], [], []>} : vector<8x8xbf16>, vector<8x16xbf16>, vector<8x16xf32> -> vector<8x16xf32>
    %30 = arith.addf %24, %29 : vector<8x16xf32>
    %c0_40 = arith.constant 0 : index
    %c2_41 = arith.constant 2 : index
    %c0_42 = arith.constant 0 : index
    %c1_43 = arith.constant 1 : index
    %c0_44 = arith.constant 0 : index
    %31 = vector.load %arg1[%c0_40, %c2_41, %c0_42, %c1_43, %c0_44] : memref<1x4x9x9x8xbf16, #tpu.memory_space<vmem>>, vector<1x1x1x8x8xbf16>
    %32 = vector.shape_cast %31 : vector<1x1x1x8x8xbf16> to vector<8x8xbf16>
    %c5 = arith.constant 5 : index
    %c0_45 = arith.constant 0 : index
    %c0_46 = arith.constant 0 : index
    %33 = vector.load %arg2[%c5, %c0_45, %c0_46] : memref<9x8x16xbf16, #tpu.memory_space<vmem>>, vector<1x8x16xbf16>
    %34 = vector.shape_cast %33 : vector<1x8x16xbf16> to vector<8x16xbf16>
    %cst_47 = arith.constant dense<0.000000e+00> : vector<8x16xf32>
    %35 = tpu.matmul %32, %34, %cst_47 {dimension_numbers = #tpu.dot_dimension_numbers<[1], [0], [0], [1], [0, 0, 1, 1], [], []>} : vector<8x8xbf16>, vector<8x16xbf16>, vector<8x16xf32> -> vector<8x16xf32>
    %36 = arith.addf %30, %35 : vector<8x16xf32>
    %c0_48 = arith.constant 0 : index
    %c0_49 = arith.constant 0 : index
    %c1_50 = arith.constant 1 : index
    %c0_51 = arith.constant 0 : index
    %c0_52 = arith.constant 0 : index
    %37 = vector.load %arg1[%c0_48, %c0_49, %c1_50, %c0_51, %c0_52] : memref<1x4x9x9x8xbf16, #tpu.memory_space<vmem>>, vector<1x1x1x8x8xbf16>
    %38 = vector.shape_cast %37 : vector<1x1x1x8x8xbf16> to vector<8x8xbf16>
    %c6 = arith.constant 6 : index
    %c0_53 = arith.constant 0 : index
    %c0_54 = arith.constant 0 : index
    %39 = vector.load %arg2[%c6, %c0_53, %c0_54] : memref<9x8x16xbf16, #tpu.memory_space<vmem>>, vector<1x8x16xbf16>
    %40 = vector.shape_cast %39 : vector<1x8x16xbf16> to vector<8x16xbf16>
    %cst_55 = arith.constant dense<0.000000e+00> : vector<8x16xf32>
    %41 = tpu.matmul %38, %40, %cst_55 {dimension_numbers = #tpu.dot_dimension_numbers<[1], [0], [0], [1], [0, 0, 1, 1], [], []>} : vector<8x8xbf16>, vector<8x16xbf16>, vector<8x16xf32> -> vector<8x16xf32>
    %42 = arith.addf %36, %41 : vector<8x16xf32>
    %c0_56 = arith.constant 0 : index
    %c1_57 = arith.constant 1 : index
    %c1_58 = arith.constant 1 : index
    %c0_59 = arith.constant 0 : index
    %c0_60 = arith.constant 0 : index
    %43 = vector.load %arg1[%c0_56, %c1_57, %c1_58, %c0_59, %c0_60] : memref<1x4x9x9x8xbf16, #tpu.memory_space<vmem>>, vector<1x1x1x8x8xbf16>
    %44 = vector.shape_cast %43 : vector<1x1x1x8x8xbf16> to vector<8x8xbf16>
    %c7 = arith.constant 7 : index
    %c0_61 = arith.constant 0 : index
    %c0_62 = arith.constant 0 : index
    %45 = vector.load %arg2[%c7, %c0_61, %c0_62] : memref<9x8x16xbf16, #tpu.memory_space<vmem>>, vector<1x8x16xbf16>
    %46 = vector.shape_cast %45 : vector<1x8x16xbf16> to vector<8x16xbf16>
    %cst_63 = arith.constant dense<0.000000e+00> : vector<8x16xf32>
    %47 = tpu.matmul %44, %46, %cst_63 {dimension_numbers = #tpu.dot_dimension_numbers<[1], [0], [0], [1], [0, 0, 1, 1], [], []>} : vector<8x8xbf16>, vector<8x16xbf16>, vector<8x16xf32> -> vector<8x16xf32>
    %48 = arith.addf %42, %47 : vector<8x16xf32>
    %c0_64 = arith.constant 0 : index
    %c0_65 = arith.constant 0 : index
    %c1_66 = arith.constant 1 : index
    %c1_67 = arith.constant 1 : index
    %c0_68 = arith.constant 0 : index
    %49 = vector.load %arg1[%c0_64, %c0_65, %c1_66, %c1_67, %c0_68] : memref<1x4x9x9x8xbf16, #tpu.memory_space<vmem>>, vector<1x1x1x8x8xbf16>
    %50 = vector.shape_cast %49 : vector<1x1x1x8x8xbf16> to vector<8x8xbf16>
    %c8 = arith.constant 8 : index
    %c0_69 = arith.constant 0 : index
    %c0_70 = arith.constant 0 : index
    %51 = vector.load %arg2[%c8, %c0_69, %c0_70] : memref<9x8x16xbf16, #tpu.memory_space<vmem>>, vector<1x8x16xbf16>
    %52 = vector.shape_cast %51 : vector<1x8x16xbf16> to vector<8x16xbf16>
    %cst_71 = arith.constant dense<0.000000e+00> : vector<8x16xf32>
    %53 = tpu.matmul %50, %52, %cst_71 {dimension_numbers = #tpu.dot_dimension_numbers<[1], [0], [0], [1], [0, 0, 1, 1], [], []>} : vector<8x8xbf16>, vector<8x16xbf16>, vector<8x16xf32> -> vector<8x16xf32>
    %54 = arith.addf %48, %53 : vector<8x16xf32>
    %c0_72 = arith.constant 0 : index
    %c0_73 = arith.constant 0 : index
    %55 = vector.load %arg3[%c0_72, %c0_73] : memref<1x16xf32, #tpu.memory_space<vmem>>, vector<1x16xf32>
    %56 = vector.broadcast %55 : vector<1x16xf32> to vector<8x16xf32>
    %57 = arith.addf %54, %56 : vector<8x16xf32>
    %c0_74 = arith.constant 0 : index
    %c0_75 = arith.constant 0 : index
    %58 = vector.load %arg5[%c0_74, %c0_75] : memref<64x16xf32, #tpu.memory_space<vmem>>, vector<8x16xf32>
    tpu.vector_store %arg5[%c0_74, %c0_75], %57 {strides = array<i32>} : memref<64x16xf32, #tpu.memory_space<vmem>>, vector<8x16xf32>,
    %cst_76 = arith.constant 0.000000e+00 : f32
    %59 = vector.broadcast %cst_76 : f32 to vector<8x16xf32>
    %c0_77 = arith.constant 0 : index
    %c0_78 = arith.constant 0 : index
    %c1_79 = arith.constant 1 : index
    %c0_80 = arith.constant 0 : index
    %c0_81 = arith.constant 0 : index
    %60 = vector.load %arg1[%c0_77, %c0_78, %c1_79, %c0_80, %c0_81] : memref<1x4x9x9x8xbf16, #tpu.memory_space<vmem>>, vector<1x1x1x8x8xbf16>
    %61 = vector.shape_cast %60 : vector<1x1x1x8x8xbf16> to vector<8x8xbf16>
    %c0_82 = arith.constant 0 : index
    %c0_83 = arith.constant 0 : index
    %c0_84 = arith.constant 0 : index
    %62 = vector.load %arg2[%c0_82, %c0_83, %c0_84] : memref<9x8x16xbf16, #tpu.memory_space<vmem>>, vector<1x8x16xbf16>
    %63 = vector.shape_cast %62 : vector<1x8x16xbf16> to vector<8x16xbf16>
    %cst_85 = arith.constant dense<0.000000e+00> : vector<8x16xf32>
    %64 = tpu.matmul %61, %63, %cst_85 {dimension_numbers = #tpu.dot_dimension_numbers<[1], [0], [0], [1], [0, 0, 1, 1], [], []>} : vector<8x8xbf16>, vector<8x16xbf16>, vector<8x16xf32> -> vector<8x16xf32>
    %65 = arith.addf %59, %64 : vector<8x16xf32>
    %c0_86 = arith.constant 0 : index
    %c1_87 = arith.constant 1 : index
    %c1_88 = arith.constant 1 : index
    %c0_89 = arith.constant 0 : index
    %c0_90 = arith.constant 0 : index
    %66 = vector.load %arg1[%c0_86, %c1_87, %c1_88, %c0_89, %c0_90] : memref<1x4x9x9x8xbf16, #tpu.memory_space<vmem>>, vector<1x1x1x8x8xbf16>
    %67 = vector.shape_cast %66 : vector<1x1x1x8x8xbf16> to vector<8x8xbf16>
    %c1_91 = arith.constant 1 : index
    %c0_92 = arith.constant 0 : index
    %c0_93 = arith.constant 0 : index
    %68 = vector.load %arg2[%c1_91, %c0_92, %c0_93] : memref<9x8x16xbf16, #tpu.memory_space<vmem>>, vector<1x8x16xbf16>
    %69 = vector.shape_cast %68 : vector<1x8x16xbf16> to vector<8x16xbf16>
    %cst_94 = arith.constant dense<0.000000e+00> : vector<8x16xf32>
    %70 = tpu.matmul %67, %69, %cst_94 {dimension_numbers = #tpu.dot_dimension_numbers<[1], [0], [0], [1], [0, 0, 1, 1], [], []>} : vector<8x8xbf16>, vector<8x16xbf16>, vector<8x16xf32> -> vector<8x16xf32>
    %71 = arith.addf %65, %70 : vector<8x16xf32>
    %c0_95 = arith.constant 0 : index
    %c0_96 = arith.constant 0 : index
    %c1_97 = arith.constant 1 : index
    %c1_98 = arith.constant 1 : index
    %c0_99 = arith.constant 0 : index
    %72 = vector.load %arg1[%c0_95, %c0_96, %c1_97, %c1_98, %c0_99] : memref<1x4x9x9x8xbf16, #tpu.memory_space<vmem>>, vector<1x1x1x8x8xbf16>
    %73 = vector.shape_cast %72 : vector<1x1x1x8x8xbf16> to vector<8x8xbf16>
    %c2_100 = arith.constant 2 : index
    %c0_101 = arith.constant 0 : index
    %c0_102 = arith.constant 0 : index
    %74 = vector.load %arg2[%c2_100, %c0_101, %c0_102] : memref<9x8x16xbf16, #tpu.memory_space<vmem>>, vector<1x8x16xbf16>
    %75 = vector.shape_cast %74 : vector<1x8x16xbf16> to vector<8x16xbf16>
    %cst_103 = arith.constant dense<0.000000e+00> : vector<8x16xf32>
    %76 = tpu.matmul %73, %75, %cst_103 {dimension_numbers = #tpu.dot_dimension_numbers<[1], [0], [0], [1], [0, 0, 1, 1], [], []>} : vector<8x8xbf16>, vector<8x16xbf16>, vector<8x16xf32> -> vector<8x16xf32>
    %77 = arith.addf %71, %76 : vector<8x16xf32>
    %c0_104 = arith.constant 0 : index
    %c2_105 = arith.constant 2 : index
    %c1_106 = arith.constant 1 : index
    %c0_107 = arith.constant 0 : index
    %c0_108 = arith.constant 0 : index
    %78 = vector.load %arg1[%c0_104, %c2_105, %c1_106, %c0_107, %c0_108] : memref<1x4x9x9x8xbf16, #tpu.memory_space<vmem>>, vector<1x1x1x8x8xbf16>
    %79 = vector.shape_cast %78 : vector<1x1x1x8x8xbf16> to vector<8x8xbf16>
    %c3_109 = arith.constant 3 : index
    %c0_110 = arith.constant 0 : index
    %c0_111 = arith.constant 0 : index
    %80 = vector.load %arg2[%c3_109, %c0_110, %c0_111] : memref<9x8x16xbf16, #tpu.memory_space<vmem>>, vector<1x8x16xbf16>
    %81 = vector.shape_cast %80 : vector<1x8x16xbf16> to vector<8x16xbf16>
    %cst_112 = arith.constant dense<0.000000e+00> : vector<8x16xf32>
    %82 = tpu.matmul %79, %81, %cst_112 {dimension_numbers = #tpu.dot_dimension_numbers<[1], [0], [0], [1], [0, 0, 1, 1], [], []>} : vector<8x8xbf16>, vector<8x16xbf16>, vector<8x16xf32> -> vector<8x16xf32>
    %83 = arith.addf %77, %82 : vector<8x16xf32>
    %c0_113 = arith.constant 0 : index
    %c3_114 = arith.constant 3 : index
    %c1_115 = arith.constant 1 : index
    %c0_116 = arith.constant 0 : index
    %c0_117 = arith.constant 0 : index
    %84 = vector.load %arg1[%c0_113, %c3_114, %c1_115, %c0_116, %c0_117] : memref<1x4x9x9x8xbf16, #tpu.memory_space<vmem>>, vector<1x1x1x8x8xbf16>
    %85 = vector.shape_cast %84 : vector<1x1x1x8x8xbf16> to vector<8x8xbf16>
    %c4_118 = arith.constant 4 : index
    %c0_119 = arith.constant 0 : index
    %c0_120 = arith.constant 0 : index
    %86 = vector.load %arg2[%c4_118, %c0_119, %c0_120] : memref<9x8x16xbf16, #tpu.memory_space<vmem>>, vector<1x8x16xbf16>
    %87 = vector.shape_cast %86 : vector<1x8x16xbf16> to vector<8x16xbf16>
    %cst_121 = arith.constant dense<0.000000e+00> : vector<8x16xf32>
    %88 = tpu.matmul %85, %87, %cst_121 {dimension_numbers = #tpu.dot_dimension_numbers<[1], [0], [0], [1], [0, 0, 1, 1], [], []>} : vector<8x8xbf16>, vector<8x16xbf16>, vector<8x16xf32> -> vector<8x16xf32>
    %89 = arith.addf %83, %88 : vector<8x16xf32>
    %c0_122 = arith.constant 0 : index
    %c2_123 = arith.constant 2 : index
    %c1_124 = arith.constant 1 : index
    %c1_125 = arith.constant 1 : index
    %c0_126 = arith.constant 0 : index
    %90 = vector.load %arg1[%c0_122, %c2_123, %c1_124, %c1_125, %c0_126] : memref<1x4x9x9x8xbf16, #tpu.memory_space<vmem>>, vector<1x1x1x8x8xbf16>
    %91 = vector.shape_cast %90 : vector<1x1x1x8x8xbf16> to vector<8x8xbf16>
    %c5_127 = arith.constant 5 : index
    %c0_128 = arith.constant 0 : index
    %c0_129 = arith.constant 0 : index
    %92 = vector.load %arg2[%c5_127, %c0_128, %c0_129] : memref<9x8x16xbf16, #tpu.memory_space<vmem>>, vector<1x8x16xbf16>
    %93 = vector.shape_cast %92 : vector<1x8x16xbf16> to vector<8x16xbf16>
    %cst_130 = arith.constant dense<0.000000e+00> : vector<8x16xf32>
    %94 = tpu.matmul %91, %93, %cst_130 {dimension_numbers = #tpu.dot_dimension_numbers<[1], [0], [0], [1], [0, 0, 1, 1], [], []>} : vector<8x8xbf16>, vector<8x16xbf16>, vector<8x16xf32> -> vector<8x16xf32>
    %95 = arith.addf %89, %94 : vector<8x16xf32>
    %c0_131 = arith.constant 0 : index
    %c0_132 = arith.constant 0 : index
    %c2_133 = arith.constant 2 : index
    %c0_134 = arith.constant 0 : index
    %c0_135 = arith.constant 0 : index
    %96 = vector.load %arg1[%c0_131, %c0_132, %c2_133, %c0_134, %c0_135] : memref<1x4x9x9x8xbf16, #tpu.memory_space<vmem>>, vector<1x1x1x8x8xbf16>
    %97 = vector.shape_cast %96 : vector<1x1x1x8x8xbf16> to vector<8x8xbf16>
    %c6_136 = arith.constant 6 : index
    %c0_137 = arith.constant 0 : index
    %c0_138 = arith.constant 0 : index
    %98 = vector.load %arg2[%c6_136, %c0_137, %c0_138] : memref<9x8x16xbf16, #tpu.memory_space<vmem>>, vector<1x8x16xbf16>
    %99 = vector.shape_cast %98 : vector<1x8x16xbf16> to vector<8x16xbf16>
    %cst_139 = arith.constant dense<0.000000e+00> : vector<8x16xf32>
    %100 = tpu.matmul %97, %99, %cst_139 {dimension_numbers = #tpu.dot_dimension_numbers<[1], [0], [0], [1], [0, 0, 1, 1], [], []>} : vector<8x8xbf16>, vector<8x16xbf16>, vector<8x16xf32> -> vector<8x16xf32>
    %101 = arith.addf %95, %100 : vector<8x16xf32>
    %c0_140 = arith.constant 0 : index
    %c1_141 = arith.constant 1 : index
    %c2_142 = arith.constant 2 : index
    %c0_143 = arith.constant 0 : index
    %c0_144 = arith.constant 0 : index
    %102 = vector.load %arg1[%c0_140, %c1_141, %c2_142, %c0_143, %c0_144] : memref<1x4x9x9x8xbf16, #tpu.memory_space<vmem>>, vector<1x1x1x8x8xbf16>
    %103 = vector.shape_cast %102 : vector<1x1x1x8x8xbf16> to vector<8x8xbf16>
    %c7_145 = arith.constant 7 : index
    %c0_146 = arith.constant 0 : index
    %c0_147 = arith.constant 0 : index
    %104 = vector.load %arg2[%c7_145, %c0_146, %c0_147] : memref<9x8x16xbf16, #tpu.memory_space<vmem>>, vector<1x8x16xbf16>
    %105 = vector.shape_cast %104 : vector<1x8x16xbf16> to vector<8x16xbf16>
    %cst_148 = arith.constant dense<0.000000e+00> : vector<8x16xf32>
    %106 = tpu.matmul %103, %105, %cst_148 {dimension_numbers = #tpu.dot_dimension_numbers<[1], [0], [0], [1], [0, 0, 1, 1], [], []>} : vector<8x8xbf16>, vector<8x16xbf16>, vector<8x16xf32> -> vector<8x16xf32>
    %107 = arith.addf %101, %106 : vector<8x16xf32>
    %c0_149 = arith.constant 0 : index
    %c0_150 = arith.constant 0 : index
    %c2_151 = arith.constant 2 : index
    %c1_152 = arith.constant 1 : index
    %c0_153 = arith.constant 0 : index
    %108 = vector.load %arg1[%c0_149, %c0_150, %c2_151, %c1_152, %c0_153] : memref<1x4x9x9x8xbf16, #tpu.memory_space<vmem>>, vector<1x1x1x8x8xbf16>
    %109 = vector.shape_cast %108 : vector<1x1x1x8x8xbf16> to vector<8x8xbf16>
    %c8_154 = arith.constant 8 : index
    %c0_155 = arith.constant 0 : index
    %c0_156 = arith.constant 0 : index
    %110 = vector.load %arg2[%c8_154, %c0_155, %c0_156] : memref<9x8x16xbf16, #tpu.memory_space<vmem>>, vector<1x8x16xbf16>
    %111 = vector.shape_cast %110 : vector<1x8x16xbf16> to vector<8x16xbf16>
    %cst_157 = arith.constant dense<0.000000e+00> : vector<8x16xf32>
    %112 = tpu.matmul %109, %111, %cst_157 {dimension_numbers = #tpu.dot_dimension_numbers<[1], [0], [0], [1], [0, 0, 1, 1], [], []>} : vector<8x8xbf16>, vector<8x16xbf16>, vector<8x16xf32> -> vector<8x16xf32>
    %113 = arith.addf %107, %112 : vector<8x16xf32>
    %c0_158 = arith.constant 0 : index
    %c0_159 = arith.constant 0 : index
    %114 = vector.load %arg3[%c0_158, %c0_159] : memref<1x16xf32, #tpu.memory_space<vmem>>, vector<1x16xf32>
    %115 = vector.broadcast %114 : vector<1x16xf32> to vector<8x16xf32>
    %116 = arith.addf %113, %115 : vector<8x16xf32>
    %c8_160 = arith.constant 8 : index
    %c0_161 = arith.constant 0 : index
    %117 = vector.load %arg5[%c8_160, %c0_161] : memref<64x16xf32, #tpu.memory_space<vmem>>, vector<8x16xf32>
    tpu.vector_store %arg5[%c8_160, %c0_161], %116 {strides = array<i32>} : memref<64x16xf32, #tpu.memory_space<vmem>>, vector<8x16xf32>,
    %cst_162 = arith.constant 0.000000e+00 : f32
    %118 = vector.broadcast %cst_162 : f32 to vector<8x16xf32>
    %c0_163 = arith.constant 0 : index
    %c0_164 = arith.constant 0 : index
    %c2_165 = arith.constant 2 : index
    %c0_166 = arith.constant 0 : index
    %c0_167 = arith.constant 0 : index
    %119 = vector.load %arg1[%c0_163, %c0_164, %c2_165, %c0_166, %c0_167] : memref<1x4x9x9x8xbf16, #tpu.memory_space<vmem>>, vector<1x1x1x8x8xbf16>
    %120 = vector.shape_cast %119 : vector<1x1x1x8x8xbf16> to vector<8x8xbf16>
    %c0_168 = arith.constant 0 : index
    %c0_169 = arith.constant 0 : index
    %c0_170 = arith.constant 0 : index
    %121 = vector.load %arg2[%c0_168, %c0_169, %c0_170] : memref<9x8x16xbf16, #tpu.memory_space<vmem>>, vector<1x8x16xbf16>
    %122 = vector.shape_cast %121 : vector<1x8x16xbf16> to vector<8x16xbf16>
    %cst_171 = arith.constant dense<0.000000e+00> : vector<8x16xf32>
    %123 = tpu.matmul %120, %122, %cst_171 {dimension_numbers = #tpu.dot_dimension_numbers<[1], [0], [0], [1], [0, 0, 1, 1], [], []>} : vector<8x8xbf16>, vector<8x16xbf16>, vector<8x16xf32> -> vector<8x16xf32>
    %124 = arith.addf %118, %123 : vector<8x16xf32>
    %c0_172 = arith.constant 0 : index
    %c1_173 = arith.constant 1 : index
    %c2_174 = arith.constant 2 : index
    %c0_175 = arith.constant 0 : index
    %c0_176 = arith.constant 0 : index
    %125 = vector.load %arg1[%c0_172, %c1_173, %c2_174, %c0_175, %c0_176] : memref<1x4x9x9x8xbf16, #tpu.memory_space<vmem>>, vector<1x1x1x8x8xbf16>
    %126 = vector.shape_cast %125 : vector<1x1x1x8x8xbf16> to vector<8x8xbf16>
    %c1_177 = arith.constant 1 : index
    %c0_178 = arith.constant 0 : index
    %c0_179 = arith.constant 0 : index
    %127 = vector.load %arg2[%c1_177, %c0_178, %c0_179] : memref<9x8x16xbf16, #tpu.memory_space<vmem>>, vector<1x8x16xbf16>
    %128 = vector.shape_cast %127 : vector<1x8x16xbf16> to vector<8x16xbf16>
    %cst_180 = arith.constant dense<0.000000e+00> : vector<8x16xf32>
    %129 = tpu.matmul %126, %128, %cst_180 {dimension_numbers = #tpu.dot_dimension_numbers<[1], [0], [0], [1], [0, 0, 1, 1], [], []>} : vector<8x8xbf16>, vector<8x16xbf16>, vector<8x16xf32> -> vector<8x16xf32>
    %130 = arith.addf %124, %129 : vector<8x16xf32>
    %c0_181 = arith.constant 0 : index
    %c0_182 = arith.constant 0 : index
    %c2_183 = arith.constant 2 : index
    %c1_184 = arith.constant 1 : index
    %c0_185 = arith.constant 0 : index
    %131 = vector.load %arg1[%c0_181, %c0_182, %c2_183, %c1_184, %c0_185] : memref<1x4x9x9x8xbf16, #tpu.memory_space<vmem>>, vector<1x1x1x8x8xbf16>
    %132 = vector.shape_cast %131 : vector<1x1x1x8x8xbf16> to vector<8x8xbf16>
    %c2_186 = arith.constant 2 : index
    %c0_187 = arith.constant 0 : index
    %c0_188 = arith.constant 0 : index
    %133 = vector.load %arg2[%c2_186, %c0_187, %c0_188] : memref<9x8x16xbf16, #tpu.memory_space<vmem>>, vector<1x8x16xbf16>
    %134 = vector.shape_cast %133 : vector<1x8x16xbf16> to vector<8x16xbf16>
    %cst_189 = arith.constant dense<0.000000e+00> : vector<8x16xf32>
    %135 = tpu.matmul %132, %134, %cst_189 {dimension_numbers = #tpu.dot_dimension_numbers<[1], [0], [0], [1], [0, 0, 1, 1], [], []>} : vector<8x8xbf16>, vector<8x16xbf16>, vector<8x16xf32> -> vector<8x16xf32>
    %136 = arith.addf %130, %135 : vector<8x16xf32>
    %c0_190 = arith.constant 0 : index
    %c2_191 = arith.constant 2 : index
    %c2_192 = arith.constant 2 : index
    %c0_193 = arith.constant 0 : index
    %c0_194 = arith.constant 0 : index
    %137 = vector.load %arg1[%c0_190, %c2_191, %c2_192, %c0_193, %c0_194] : memref<1x4x9x9x8xbf16, #tpu.memory_space<vmem>>, vector<1x1x1x8x8xbf16>
    %138 = vector.shape_cast %137 : vector<1x1x1x8x8xbf16> to vector<8x8xbf16>
    %c3_195 = arith.constant 3 : index
    %c0_196 = arith.constant 0 : index
    %c0_197 = arith.constant 0 : index
    %139 = vector.load %arg2[%c3_195, %c0_196, %c0_197] : memref<9x8x16xbf16, #tpu.memory_space<vmem>>, vector<1x8x16xbf16>
    %140 = vector.shape_cast %139 : vector<1x8x16xbf16> to vector<8x16xbf16>
    %cst_198 = arith.constant dense<0.000000e+00> : vector<8x16xf32>
    %141 = tpu.matmul %138, %140, %cst_198 {dimension_numbers = #tpu.dot_dimension_numbers<[1], [0], [0], [1], [0, 0, 1, 1], [], []>} : vector<8x8xbf16>, vector<8x16xbf16>, vector<8x16xf32> -> vector<8x16xf32>
    %142 = arith.addf %136, %141 : vector<8x16xf32>
    %c0_199 = arith.constant 0 : index
    %c3_200 = arith.constant 3 : index
    %c2_201 = arith.constant 2 : index
    %c0_202 = arith.constant 0 : index
    %c0_203 = arith.constant 0 : index
    %143 = vector.load %arg1[%c0_199, %c3_200, %c2_201, %c0_202, %c0_203] : memref<1x4x9x9x8xbf16, #tpu.memory_space<vmem>>, vector<1x1x1x8x8xbf16>
    %144 = vector.shape_cast %143 : vector<1x1x1x8x8xbf16> to vector<8x8xbf16>
    %c4_204 = arith.constant 4 : index
    %c0_205 = arith.constant 0 : index
    %c0_206 = arith.constant 0 : index
    %145 = vector.load %arg2[%c4_204, %c0_205, %c0_206] : memref<9x8x16xbf16, #tpu.memory_space<vmem>>, vector<1x8x16xbf16>
    %146 = vector.shape_cast %145 : vector<1x8x16xbf16> to vector<8x16xbf16>
    %cst_207 = arith.constant dense<0.000000e+00> : vector<8x16xf32>
    %147 = tpu.matmul %144, %146, %cst_207 {dimension_numbers = #tpu.dot_dimension_numbers<[1], [0], [0], [1], [0, 0, 1, 1], [], []>} : vector<8x8xbf16>, vector<8x16xbf16>, vector<8x16xf32> -> vector<8x16xf32>
    %148 = arith.addf %142, %147 : vector<8x16xf32>
    %c0_208 = arith.constant 0 : index
    %c2_209 = arith.constant 2 : index
    %c2_210 = arith.constant 2 : index
    %c1_211 = arith.constant 1 : index
    %c0_212 = arith.constant 0 : index
    %149 = vector.load %arg1[%c0_208, %c2_209, %c2_210, %c1_211, %c0_212] : memref<1x4x9x9x8xbf16, #tpu.memory_space<vmem>>, vector<1x1x1x8x8xbf16>
    %150 = vector.shape_cast %149 : vector<1x1x1x8x8xbf16> to vector<8x8xbf16>
    %c5_213 = arith.constant 5 : index
    %c0_214 = arith.constant 0 : index
    %c0_215 = arith.constant 0 : index
    %151 = vector.load %arg2[%c5_213, %c0_214, %c0_215] : memref<9x8x16xbf16, #tpu.memory_space<vmem>>, vector<1x8x16xbf16>
    %152 = vector.shape_cast %151 : vector<1x8x16xbf16> to vector<8x16xbf16>
    %cst_216 = arith.constant dense<0.000000e+00> : vector<8x16xf32>
    %153 = tpu.matmul %150, %152, %cst_216 {dimension_numbers = #tpu.dot_dimension_numbers<[1], [0], [0], [1], [0, 0, 1, 1], [], []>} : vector<8x8xbf16>, vector<8x16xbf16>, vector<8x16xf32> -> vector<8x16xf32>
    %154 = arith.addf %148, %153 : vector<8x16xf32>
    %c0_217 = arith.constant 0 : index
    %c0_218 = arith.constant 0 : index
    %c3_219 = arith.constant 3 : index
    %c0_220 = arith.constant 0 : index
    %c0_221 = arith.constant 0 : index
    %155 = vector.load %arg1[%c0_217, %c0_218, %c3_219, %c0_220, %c0_221] : memref<1x4x9x9x8xbf16, #tpu.memory_space<vmem>>, vector<1x1x1x8x8xbf16>
    %156 = vector.shape_cast %155 : vector<1x1x1x8x8xbf16> to vector<8x8xbf16>
    %c6_222 = arith.constant 6 : index
    %c0_223 = arith.constant 0 : index
    %c0_224 = arith.constant 0 : index
    %157 = vector.load %arg2[%c6_222, %c0_223, %c0_224] : memref<9x8x16xbf16, #tpu.memory_space<vmem>>, vector<1x8x16xbf16>
    %158 = vector.shape_cast %157 : vector<1x8x16xbf16> to vector<8x16xbf16>
    %cst_225 = arith.constant dense<0.000000e+00> : vector<8x16xf32>
    %159 = tpu.matmul %156, %158, %cst_225 {dimension_numbers = #tpu.dot_dimension_numbers<[1], [0], [0], [1], [0, 0, 1, 1], [], []>} : vector<8x8xbf16>, vector<8x16xbf16>, vector<8x16xf32> -> vector<8x16xf32>
    %160 = arith.addf %154, %159 : vector<8x16xf32>
    %c0_226 = arith.constant 0 : index
    %c1_227 = arith.constant 1 : index
    %c3_228 = arith.constant 3 : index
    %c0_229 = arith.constant 0 : index
    %c0_230 = arith.constant 0 : index
    %161 = vector.load %arg1[%c0_226, %c1_227, %c3_228, %c0_229, %c0_230] : memref<1x4x9x9x8xbf16, #tpu.memory_space<vmem>>, vector<1x1x1x8x8xbf16>
    %162 = vector.shape_cast %161 : vector<1x1x1x8x8xbf16> to vector<8x8xbf16>
    %c7_231 = arith.constant 7 : index
    %c0_232 = arith.constant 0 : index
    %c0_233 = arith.constant 0 : index
    %163 = vector.load %arg2[%c7_231, %c0_232, %c0_233] : memref<9x8x16xbf16, #tpu.memory_space<vmem>>, vector<1x8x16xbf16>
    %164 = vector.shape_cast %163 : vector<1x8x16xbf16> to vector<8x16xbf16>
    %cst_234 = arith.constant dense<0.000000e+00> : vector<8x16xf32>
    %165 = tpu.matmul %162, %164, %cst_234 {dimension_numbers = #tpu.dot_dimension_numbers<[1], [0], [0], [1], [0, 0, 1, 1], [], []>} : vector<8x8xbf16>, vector<8x16xbf16>, vector<8x16xf32> -> vector<8x16xf32>
    %166 = arith.addf %160, %165 : vector<8x16xf32>
    %c0_235 = arith.constant 0 : index
    %c0_236 = arith.constant 0 : index
    %c3_237 = arith.constant 3 : index
    %c1_238 = arith.constant 1 : index
    %c0_239 = arith.constant 0 : index
    %167 = vector.load %arg1[%c0_235, %c0_236, %c3_237, %c1_238, %c0_239] : memref<1x4x9x9x8xbf16, #tpu.memory_space<vmem>>, vector<1x1x1x8x8xbf16>
    %168 = vector.shape_cast %167 : vector<1x1x1x8x8xbf16> to vector<8x8xbf16>
    %c8_240 = arith.constant 8 : index
    %c0_241 = arith.constant 0 : index
    %c0_242 = arith.constant 0 : index
    %169 = vector.load %arg2[%c8_240, %c0_241, %c0_242] : memref<9x8x16xbf16, #tpu.memory_space<vmem>>, vector<1x8x16xbf16>
    %170 = vector.shape_cast %169 : vector<1x8x16xbf16> to vector<8x16xbf16>
    %cst_243 = arith.constant dense<0.000000e+00> : vector<8x16xf32>
    %171 = tpu.matmul %168, %170, %cst_243 {dimension_numbers = #tpu.dot_dimension_numbers<[1], [0], [0], [1], [0, 0, 1, 1], [], []>} : vector<8x8xbf16>, vector<8x16xbf16>, vector<8x16xf32> -> vector<8x16xf32>
    %172 = arith.addf %166, %171 : vector<8x16xf32>
    %c0_244 = arith.constant 0 : index
    %c0_245 = arith.constant 0 : index
    %173 = vector.load %arg3[%c0_244, %c0_245] : memref<1x16xf32, #tpu.memory_space<vmem>>, vector<1x16xf32>
    %174 = vector.broadcast %173 : vector<1x16xf32> to vector<8x16xf32>
    %175 = arith.addf %172, %174 : vector<8x16xf32>
    %c16 = arith.constant 16 : index
    %c0_246 = arith.constant 0 : index
    %176 = vector.load %arg5[%c16, %c0_246] : memref<64x16xf32, #tpu.memory_space<vmem>>, vector<8x16xf32>
    tpu.vector_store %arg5[%c16, %c0_246], %175 {strides = array<i32>} : memref<64x16xf32, #tpu.memory_space<vmem>>, vector<8x16xf32>,
    %cst_247 = arith.constant 0.000000e+00 : f32
    %177 = vector.broadcast %cst_247 : f32 to vector<8x16xf32>
    %c0_248 = arith.constant 0 : index
    %c0_249 = arith.constant 0 : index
    %c3_250 = arith.constant 3 : index
    %c0_251 = arith.constant 0 : index
    %c0_252 = arith.constant 0 : index
    %178 = vector.load %arg1[%c0_248, %c0_249, %c3_250, %c0_251, %c0_252] : memref<1x4x9x9x8xbf16, #tpu.memory_space<vmem>>, vector<1x1x1x8x8xbf16>
    %179 = vector.shape_cast %178 : vector<1x1x1x8x8xbf16> to vector<8x8xbf16>
    %c0_253 = arith.constant 0 : index
    %c0_254 = arith.constant 0 : index
    %c0_255 = arith.constant 0 : index
    %180 = vector.load %arg2[%c0_253, %c0_254, %c0_255] : memref<9x8x16xbf16, #tpu.memory_space<vmem>>, vector<1x8x16xbf16>
    %181 = vector.shape_cast %180 : vector<1x8x16xbf16> to vector<8x16xbf16>
    %cst_256 = arith.constant dense<0.000000e+00> : vector<8x16xf32>
    %182 = tpu.matmul %179, %181, %cst_256 {dimension_numbers = #tpu.dot_dimension_numbers<[1], [0], [0], [1], [0, 0, 1, 1], [], []>} : vector<8x8xbf16>, vector<8x16xbf16>, vector<8x16xf32> -> vector<8x16xf32>
    %183 = arith.addf %177, %182 : vector<8x16xf32>
    %c0_257 = arith.constant 0 : index
    %c1_258 = arith.constant 1 : index
    %c3_259 = arith.constant 3 : index
    %c0_260 = arith.constant 0 : index
    %c0_261 = arith.constant 0 : index
    %184 = vector.load %arg1[%c0_257, %c1_258, %c3_259, %c0_260, %c0_261] : memref<1x4x9x9x8xbf16, #tpu.memory_space<vmem>>, vector<1x1x1x8x8xbf16>
    %185 = vector.shape_cast %184 : vector<1x1x1x8x8xbf16> to vector<8x8xbf16>
    %c1_262 = arith.constant 1 : index
    %c0_263 = arith.constant 0 : index
    %c0_264 = arith.constant 0 : index
    %186 = vector.load %arg2[%c1_262, %c0_263, %c0_264] : memref<9x8x16xbf16, #tpu.memory_space<vmem>>, vector<1x8x16xbf16>
    %187 = vector.shape_cast %186 : vector<1x8x16xbf16> to vector<8x16xbf16>
    %cst_265 = arith.constant dense<0.000000e+00> : vector<8x16xf32>
    %188 = tpu.matmul %185, %187, %cst_265 {dimension_numbers = #tpu.dot_dimension_numbers<[1], [0], [0], [1], [0, 0, 1, 1], [], []>} : vector<8x8xbf16>, vector<8x16xbf16>, vector<8x16xf32> -> vector<8x16xf32>
    %189 = arith.addf %183, %188 : vector<8x16xf32>
    %c0_266 = arith.constant 0 : index
    %c0_267 = arith.constant 0 : index
    %c3_268 = arith.constant 3 : index
    %c1_269 = arith.constant 1 : index
    %c0_270 = arith.constant 0 : index
    %190 = vector.load %arg1[%c0_266, %c0_267, %c3_268, %c1_269, %c0_270] : memref<1x4x9x9x8xbf16, #tpu.memory_space<vmem>>, vector<1x1x1x8x8xbf16>
    %191 = vector.shape_cast %190 : vector<1x1x1x8x8xbf16> to vector<8x8xbf16>
    %c2_271 = arith.constant 2 : index
    %c0_272 = arith.constant 0 : index
    %c0_273 = arith.constant 0 : index
    %192 = vector.load %arg2[%c2_271, %c0_272, %c0_273] : memref<9x8x16xbf16, #tpu.memory_space<vmem>>, vector<1x8x16xbf16>
    %193 = vector.shape_cast %192 : vector<1x8x16xbf16> to vector<8x16xbf16>
    %cst_274 = arith.constant dense<0.000000e+00> : vector<8x16xf32>
    %194 = tpu.matmul %191, %193, %cst_274 {dimension_numbers = #tpu.dot_dimension_numbers<[1], [0], [0], [1], [0, 0, 1, 1], [], []>} : vector<8x8xbf16>, vector<8x16xbf16>, vector<8x16xf32> -> vector<8x16xf32>
    %195 = arith.addf %189, %194 : vector<8x16xf32>
    %c0_275 = arith.constant 0 : index
    %c2_276 = arith.constant 2 : index
    %c3_277 = arith.constant 3 : index
    %c0_278 = arith.constant 0 : index
    %c0_279 = arith.constant 0 : index
    %196 = vector.load %arg1[%c0_275, %c2_276, %c3_277, %c0_278, %c0_279] : memref<1x4x9x9x8xbf16, #tpu.memory_space<vmem>>, vector<1x1x1x8x8xbf16>
    %197 = vector.shape_cast %196 : vector<1x1x1x8x8xbf16> to vector<8x8xbf16>
    %c3_280 = arith.constant 3 : index
    %c0_281 = arith.constant 0 : index
    %c0_282 = arith.constant 0 : index
    %198 = vector.load %arg2[%c3_280, %c0_281, %c0_282] : memref<9x8x16xbf16, #tpu.memory_space<vmem>>, vector<1x8x16xbf16>
    %199 = vector.shape_cast %198 : vector<1x8x16xbf16> to vector<8x16xbf16>
    %cst_283 = arith.constant dense<0.000000e+00> : vector<8x16xf32>
    %200 = tpu.matmul %197, %199, %cst_283 {dimension_numbers = #tpu.dot_dimension_numbers<[1], [0], [0], [1], [0, 0, 1, 1], [], []>} : vector<8x8xbf16>, vector<8x16xbf16>, vector<8x16xf32> -> vector<8x16xf32>
    %201 = arith.addf %195, %200 : vector<8x16xf32>
    %c0_284 = arith.constant 0 : index
    %c3_285 = arith.constant 3 : index
    %c3_286 = arith.constant 3 : index
    %c0_287 = arith.constant 0 : index
    %c0_288 = arith.constant 0 : index
    %202 = vector.load %arg1[%c0_284, %c3_285, %c3_286, %c0_287, %c0_288] : memref<1x4x9x9x8xbf16, #tpu.memory_space<vmem>>, vector<1x1x1x8x8xbf16>
    %203 = vector.shape_cast %202 : vector<1x1x1x8x8xbf16> to vector<8x8xbf16>
    %c4_289 = arith.constant 4 : index
    %c0_290 = arith.constant 0 : index
    %c0_291 = arith.constant 0 : index
    %204 = vector.load %arg2[%c4_289, %c0_290, %c0_291] : memref<9x8x16xbf16, #tpu.memory_space<vmem>>, vector<1x8x16xbf16>
    %205 = vector.shape_cast %204 : vector<1x8x16xbf16> to vector<8x16xbf16>
    %cst_292 = arith.constant dense<0.000000e+00> : vector<8x16xf32>
    %206 = tpu.matmul %203, %205, %cst_292 {dimension_numbers = #tpu.dot_dimension_numbers<[1], [0], [0], [1], [0, 0, 1, 1], [], []>} : vector<8x8xbf16>, vector<8x16xbf16>, vector<8x16xf32> -> vector<8x16xf32>
    %207 = arith.addf %201, %206 : vector<8x16xf32>
    %c0_293 = arith.constant 0 : index
    %c2_294 = arith.constant 2 : index
    %c3_295 = arith.constant 3 : index
    %c1_296 = arith.constant 1 : index
    %c0_297 = arith.constant 0 : index
    %208 = vector.load %arg1[%c0_293, %c2_294, %c3_295, %c1_296, %c0_297] : memref<1x4x9x9x8xbf16, #tpu.memory_space<vmem>>, vector<1x1x1x8x8xbf16>
    %209 = vector.shape_cast %208 : vector<1x1x1x8x8xbf16> to vector<8x8xbf16>
    %c5_298 = arith.constant 5 : index
    %c0_299 = arith.constant 0 : index
    %c0_300 = arith.constant 0 : index
    %210 = vector.load %arg2[%c5_298, %c0_299, %c0_300] : memref<9x8x16xbf16, #tpu.memory_space<vmem>>, vector<1x8x16xbf16>
    %211 = vector.shape_cast %210 : vector<1x8x16xbf16> to vector<8x16xbf16>
    %cst_301 = arith.constant dense<0.000000e+00> : vector<8x16xf32>
    %212 = tpu.matmul %209, %211, %cst_301 {dimension_numbers = #tpu.dot_dimension_numbers<[1], [0], [0], [1], [0, 0, 1, 1], [], []>} : vector<8x8xbf16>, vector<8x16xbf16>, vector<8x16xf32> -> vector<8x16xf32>
    %213 = arith.addf %207, %212 : vector<8x16xf32>
    %c0_302 = arith.constant 0 : index
    %c0_303 = arith.constant 0 : index
    %c4_304 = arith.constant 4 : index
    %c0_305 = arith.constant 0 : index
    %c0_306 = arith.constant 0 : index
    %214 = vector.load %arg1[%c0_302, %c0_303, %c4_304, %c0_305, %c0_306] : memref<1x4x9x9x8xbf16, #tpu.memory_space<vmem>>, vector<1x1x1x8x8xbf16>
    %215 = vector.shape_cast %214 : vector<1x1x1x8x8xbf16> to vector<8x8xbf16>
    %c6_307 = arith.constant 6 : index
    %c0_308 = arith.constant 0 : index
    %c0_309 = arith.constant 0 : index
    %216 = vector.load %arg2[%c6_307, %c0_308, %c0_309] : memref<9x8x16xbf16, #tpu.memory_space<vmem>>, vector<1x8x16xbf16>
    %217 = vector.shape_cast %216 : vector<1x8x16xbf16> to vector<8x16xbf16>
    %cst_310 = arith.constant dense<0.000000e+00> : vector<8x16xf32>
    %218 = tpu.matmul %215, %217, %cst_310 {dimension_numbers = #tpu.dot_dimension_numbers<[1], [0], [0], [1], [0, 0, 1, 1], [], []>} : vector<8x8xbf16>, vector<8x16xbf16>, vector<8x16xf32> -> vector<8x16xf32>
    %219 = arith.addf %213, %218 : vector<8x16xf32>
    %c0_311 = arith.constant 0 : index
    %c1_312 = arith.constant 1 : index
    %c4_313 = arith.constant 4 : index
    %c0_314 = arith.constant 0 : index
    %c0_315 = arith.constant 0 : index
    %220 = vector.load %arg1[%c0_311, %c1_312, %c4_313, %c0_314, %c0_315] : memref<1x4x9x9x8xbf16, #tpu.memory_space<vmem>>, vector<1x1x1x8x8xbf16>
    %221 = vector.shape_cast %220 : vector<1x1x1x8x8xbf16> to vector<8x8xbf16>
    %c7_316 = arith.constant 7 : index
    %c0_317 = arith.constant 0 : index
    %c0_318 = arith.constant 0 : index
    %222 = vector.load %arg2[%c7_316, %c0_317, %c0_318] : memref<9x8x16xbf16, #tpu.memory_space<vmem>>, vector<1x8x16xbf16>
    %223 = vector.shape_cast %222 : vector<1x8x16xbf16> to vector<8x16xbf16>
    %cst_319 = arith.constant dense<0.000000e+00> : vector<8x16xf32>
    %224 = tpu.matmul %221, %223, %cst_319 {dimension_numbers = #tpu.dot_dimension_numbers<[1], [0], [0], [1], [0, 0, 1, 1], [], []>} : vector<8x8xbf16>, vector<8x16xbf16>, vector<8x16xf32> -> vector<8x16xf32>
    %225 = arith.addf %219, %224 : vector<8x16xf32>
    %c0_320 = arith.constant 0 : index
    %c0_321 = arith.constant 0 : index
    %c4_322 = arith.constant 4 : index
    %c1_323 = arith.constant 1 : index
    %c0_324 = arith.constant 0 : index
    %226 = vector.load %arg1[%c0_320, %c0_321, %c4_322, %c1_323, %c0_324] : memref<1x4x9x9x8xbf16, #tpu.memory_space<vmem>>, vector<1x1x1x8x8xbf16>
    %227 = vector.shape_cast %226 : vector<1x1x1x8x8xbf16> to vector<8x8xbf16>
    %c8_325 = arith.constant 8 : index
    %c0_326 = arith.constant 0 : index
    %c0_327 = arith.constant 0 : index
    %228 = vector.load %arg2[%c8_325, %c0_326, %c0_327] : memref<9x8x16xbf16, #tpu.memory_space<vmem>>, vector<1x8x16xbf16>
    %229 = vector.shape_cast %228 : vector<1x8x16xbf16> to vector<8x16xbf16>
    %cst_328 = arith.constant dense<0.000000e+00> : vector<8x16xf32>
    %230 = tpu.matmul %227, %229, %cst_328 {dimension_numbers = #tpu.dot_dimension_numbers<[1], [0], [0], [1], [0, 0, 1, 1], [], []>} : vector<8x8xbf16>, vector<8x16xbf16>, vector<8x16xf32> -> vector<8x16xf32>
    %231 = arith.addf %225, %230 : vector<8x16xf32>
    %c0_329 = arith.constant 0 : index
    %c0_330 = arith.constant 0 : index
    %232 = vector.load %arg3[%c0_329, %c0_330] : memref<1x16xf32, #tpu.memory_space<vmem>>, vector<1x16xf32>
    %233 = vector.broadcast %232 : vector<1x16xf32> to vector<8x16xf32>
    %234 = arith.addf %231, %233 : vector<8x16xf32>
    %c24 = arith.constant 24 : index
    %c0_331 = arith.constant 0 : index
    %235 = vector.load %arg5[%c24, %c0_331] : memref<64x16xf32, #tpu.memory_space<vmem>>, vector<8x16xf32>
    tpu.vector_store %arg5[%c24, %c0_331], %234 {strides = array<i32>} : memref<64x16xf32, #tpu.memory_space<vmem>>, vector<8x16xf32>,
    %cst_332 = arith.constant 0.000000e+00 : f32
    %236 = vector.broadcast %cst_332 : f32 to vector<8x16xf32>
    %c0_333 = arith.constant 0 : index
    %c0_334 = arith.constant 0 : index
    %c4_335 = arith.constant 4 : index
    %c0_336 = arith.constant 0 : index
    %c0_337 = arith.constant 0 : index
    %237 = vector.load %arg1[%c0_333, %c0_334, %c4_335, %c0_336, %c0_337] : memref<1x4x9x9x8xbf16, #tpu.memory_space<vmem>>, vector<1x1x1x8x8xbf16>
    %238 = vector.shape_cast %237 : vector<1x1x1x8x8xbf16> to vector<8x8xbf16>
    %c0_338 = arith.constant 0 : index
    %c0_339 = arith.constant 0 : index
    %c0_340 = arith.constant 0 : index
    %239 = vector.load %arg2[%c0_338, %c0_339, %c0_340] : memref<9x8x16xbf16, #tpu.memory_space<vmem>>, vector<1x8x16xbf16>
    %240 = vector.shape_cast %239 : vector<1x8x16xbf16> to vector<8x16xbf16>
    %cst_341 = arith.constant dense<0.000000e+00> : vector<8x16xf32>
    %241 = tpu.matmul %238, %240, %cst_341 {dimension_numbers = #tpu.dot_dimension_numbers<[1], [0], [0], [1], [0, 0, 1, 1], [], []>} : vector<8x8xbf16>, vector<8x16xbf16>, vector<8x16xf32> -> vector<8x16xf32>
    %242 = arith.addf %236, %241 : vector<8x16xf32>
    %c0_342 = arith.constant 0 : index
    %c1_343 = arith.constant 1 : index
    %c4_344 = arith.constant 4 : index
    %c0_345 = arith.constant 0 : index
    %c0_346 = arith.constant 0 : index
    %243 = vector.load %arg1[%c0_342, %c1_343, %c4_344, %c0_345, %c0_346] : memref<1x4x9x9x8xbf16, #tpu.memory_space<vmem>>, vector<1x1x1x8x8xbf16>
    %244 = vector.shape_cast %243 : vector<1x1x1x8x8xbf16> to vector<8x8xbf16>
    %c1_347 = arith.constant 1 : index
    %c0_348 = arith.constant 0 : index
    %c0_349 = arith.constant 0 : index
    %245 = vector.load %arg2[%c1_347, %c0_348, %c0_349] : memref<9x8x16xbf16, #tpu.memory_space<vmem>>, vector<1x8x16xbf16>
    %246 = vector.shape_cast %245 : vector<1x8x16xbf16> to vector<8x16xbf16>
    %cst_350 = arith.constant dense<0.000000e+00> : vector<8x16xf32>
    %247 = tpu.matmul %244, %246, %cst_350 {dimension_numbers = #tpu.dot_dimension_numbers<[1], [0], [0], [1], [0, 0, 1, 1], [], []>} : vector<8x8xbf16>, vector<8x16xbf16>, vector<8x16xf32> -> vector<8x16xf32>
    %248 = arith.addf %242, %247 : vector<8x16xf32>
    %c0_351 = arith.constant 0 : index
    %c0_352 = arith.constant 0 : index
    %c4_353 = arith.constant 4 : index
    %c1_354 = arith.constant 1 : index
    %c0_355 = arith.constant 0 : index
    %249 = vector.load %arg1[%c0_351, %c0_352, %c4_353, %c1_354, %c0_355] : memref<1x4x9x9x8xbf16, #tpu.memory_space<vmem>>, vector<1x1x1x8x8xbf16>
    %250 = vector.shape_cast %249 : vector<1x1x1x8x8xbf16> to vector<8x8xbf16>
    %c2_356 = arith.constant 2 : index
    %c0_357 = arith.constant 0 : index
    %c0_358 = arith.constant 0 : index
    %251 = vector.load %arg2[%c2_356, %c0_357, %c0_358] : memref<9x8x16xbf16, #tpu.memory_space<vmem>>, vector<1x8x16xbf16>
    %252 = vector.shape_cast %251 : vector<1x8x16xbf16> to vector<8x16xbf16>
    %cst_359 = arith.constant dense<0.000000e+00> : vector<8x16xf32>
    %253 = tpu.matmul %250, %252, %cst_359 {dimension_numbers = #tpu.dot_dimension_numbers<[1], [0], [0], [1], [0, 0, 1, 1], [], []>} : vector<8x8xbf16>, vector<8x16xbf16>, vector<8x16xf32> -> vector<8x16xf32>
    %254 = arith.addf %248, %253 : vector<8x16xf32>
    %c0_360 = arith.constant 0 : index
    %c2_361 = arith.constant 2 : index
    %c4_362 = arith.constant 4 : index
    %c0_363 = arith.constant 0 : index
    %c0_364 = arith.constant 0 : index
    %255 = vector.load %arg1[%c0_360, %c2_361, %c4_362, %c0_363, %c0_364] : memref<1x4x9x9x8xbf16, #tpu.memory_space<vmem>>, vector<1x1x1x8x8xbf16>
    %256 = vector.shape_cast %255 : vector<1x1x1x8x8xbf16> to vector<8x8xbf16>
    %c3_365 = arith.constant 3 : index
    %c0_366 = arith.constant 0 : index
    %c0_367 = arith.constant 0 : index
    %257 = vector.load %arg2[%c3_365, %c0_366, %c0_367] : memref<9x8x16xbf16, #tpu.memory_space<vmem>>, vector<1x8x16xbf16>
    %258 = vector.shape_cast %257 : vector<1x8x16xbf16> to vector<8x16xbf16>
    %cst_368 = arith.constant dense<0.000000e+00> : vector<8x16xf32>
    %259 = tpu.matmul %256, %258, %cst_368 {dimension_numbers = #tpu.dot_dimension_numbers<[1], [0], [0], [1], [0, 0, 1, 1], [], []>} : vector<8x8xbf16>, vector<8x16xbf16>, vector<8x16xf32> -> vector<8x16xf32>
    %260 = arith.addf %254, %259 : vector<8x16xf32>
    %c0_369 = arith.constant 0 : index
    %c3_370 = arith.constant 3 : index
    %c4_371 = arith.constant 4 : index
    %c0_372 = arith.constant 0 : index
    %c0_373 = arith.constant 0 : index
    %261 = vector.load %arg1[%c0_369, %c3_370, %c4_371, %c0_372, %c0_373] : memref<1x4x9x9x8xbf16, #tpu.memory_space<vmem>>, vector<1x1x1x8x8xbf16>
    %262 = vector.shape_cast %261 : vector<1x1x1x8x8xbf16> to vector<8x8xbf16>
    %c4_374 = arith.constant 4 : index
    %c0_375 = arith.constant 0 : index
    %c0_376 = arith.constant 0 : index
    %263 = vector.load %arg2[%c4_374, %c0_375, %c0_376] : memref<9x8x16xbf16, #tpu.memory_space<vmem>>, vector<1x8x16xbf16>
    %264 = vector.shape_cast %263 : vector<1x8x16xbf16> to vector<8x16xbf16>
    %cst_377 = arith.constant dense<0.000000e+00> : vector<8x16xf32>
    %265 = tpu.matmul %262, %264, %cst_377 {dimension_numbers = #tpu.dot_dimension_numbers<[1], [0], [0], [1], [0, 0, 1, 1], [], []>} : vector<8x8xbf16>, vector<8x16xbf16>, vector<8x16xf32> -> vector<8x16xf32>
    %266 = arith.addf %260, %265 : vector<8x16xf32>
    %c0_378 = arith.constant 0 : index
    %c2_379 = arith.constant 2 : index
    %c4_380 = arith.constant 4 : index
    %c1_381 = arith.constant 1 : index
    %c0_382 = arith.constant 0 : index
    %267 = vector.load %arg1[%c0_378, %c2_379, %c4_380, %c1_381, %c0_382] : memref<1x4x9x9x8xbf16, #tpu.memory_space<vmem>>, vector<1x1x1x8x8xbf16>
    %268 = vector.shape_cast %267 : vector<1x1x1x8x8xbf16> to vector<8x8xbf16>
    %c5_383 = arith.constant 5 : index
    %c0_384 = arith.constant 0 : index
    %c0_385 = arith.constant 0 : index
    %269 = vector.load %arg2[%c5_383, %c0_384, %c0_385] : memref<9x8x16xbf16, #tpu.memory_space<vmem>>, vector<1x8x16xbf16>
    %270 = vector.shape_cast %269 : vector<1x8x16xbf16> to vector<8x16xbf16>
    %cst_386 = arith.constant dense<0.000000e+00> : vector<8x16xf32>
    %271 = tpu.matmul %268, %270, %cst_386 {dimension_numbers = #tpu.dot_dimension_numbers<[1], [0], [0], [1], [0, 0, 1, 1], [], []>} : vector<8x8xbf16>, vector<8x16xbf16>, vector<8x16xf32> -> vector<8x16xf32>
    %272 = arith.addf %266, %271 : vector<8x16xf32>
    %c0_387 = arith.constant 0 : index
    %c0_388 = arith.constant 0 : index
    %c5_389 = arith.constant 5 : index
    %c0_390 = arith.constant 0 : index
    %c0_391 = arith.constant 0 : index
    %273 = vector.load %arg1[%c0_387, %c0_388, %c5_389, %c0_390, %c0_391] : memref<1x4x9x9x8xbf16, #tpu.memory_space<vmem>>, vector<1x1x1x8x8xbf16>
    %274 = vector.shape_cast %273 : vector<1x1x1x8x8xbf16> to vector<8x8xbf16>
    %c6_392 = arith.constant 6 : index
    %c0_393 = arith.constant 0 : index
    %c0_394 = arith.constant 0 : index
    %275 = vector.load %arg2[%c6_392, %c0_393, %c0_394] : memref<9x8x16xbf16, #tpu.memory_space<vmem>>, vector<1x8x16xbf16>
    %276 = vector.shape_cast %275 : vector<1x8x16xbf16> to vector<8x16xbf16>
    %cst_395 = arith.constant dense<0.000000e+00> : vector<8x16xf32>
    %277 = tpu.matmul %274, %276, %cst_395 {dimension_numbers = #tpu.dot_dimension_numbers<[1], [0], [0], [1], [0, 0, 1, 1], [], []>} : vector<8x8xbf16>, vector<8x16xbf16>, vector<8x16xf32> -> vector<8x16xf32>
    %278 = arith.addf %272, %277 : vector<8x16xf32>
    %c0_396 = arith.constant 0 : index
    %c1_397 = arith.constant 1 : index
    %c5_398 = arith.constant 5 : index
    %c0_399 = arith.constant 0 : index
    %c0_400 = arith.constant 0 : index
    %279 = vector.load %arg1[%c0_396, %c1_397, %c5_398, %c0_399, %c0_400] : memref<1x4x9x9x8xbf16, #tpu.memory_space<vmem>>, vector<1x1x1x8x8xbf16>
    %280 = vector.shape_cast %279 : vector<1x1x1x8x8xbf16> to vector<8x8xbf16>
    %c7_401 = arith.constant 7 : index
    %c0_402 = arith.constant 0 : index
    %c0_403 = arith.constant 0 : index
    %281 = vector.load %arg2[%c7_401, %c0_402, %c0_403] : memref<9x8x16xbf16, #tpu.memory_space<vmem>>, vector<1x8x16xbf16>
    %282 = vector.shape_cast %281 : vector<1x8x16xbf16> to vector<8x16xbf16>
    %cst_404 = arith.constant dense<0.000000e+00> : vector<8x16xf32>
    %283 = tpu.matmul %280, %282, %cst_404 {dimension_numbers = #tpu.dot_dimension_numbers<[1], [0], [0], [1], [0, 0, 1, 1], [], []>} : vector<8x8xbf16>, vector<8x16xbf16>, vector<8x16xf32> -> vector<8x16xf32>
    %284 = arith.addf %278, %283 : vector<8x16xf32>
    %c0_405 = arith.constant 0 : index
    %c0_406 = arith.constant 0 : index
    %c5_407 = arith.constant 5 : index
    %c1_408 = arith.constant 1 : index
    %c0_409 = arith.constant 0 : index
    %285 = vector.load %arg1[%c0_405, %c0_406, %c5_407, %c1_408, %c0_409] : memref<1x4x9x9x8xbf16, #tpu.memory_space<vmem>>, vector<1x1x1x8x8xbf16>
    %286 = vector.shape_cast %285 : vector<1x1x1x8x8xbf16> to vector<8x8xbf16>
    %c8_410 = arith.constant 8 : index
    %c0_411 = arith.constant 0 : index
    %c0_412 = arith.constant 0 : index
    %287 = vector.load %arg2[%c8_410, %c0_411, %c0_412] : memref<9x8x16xbf16, #tpu.memory_space<vmem>>, vector<1x8x16xbf16>
    %288 = vector.shape_cast %287 : vector<1x8x16xbf16> to vector<8x16xbf16>
    %cst_413 = arith.constant dense<0.000000e+00> : vector<8x16xf32>
    %289 = tpu.matmul %286, %288, %cst_413 {dimension_numbers = #tpu.dot_dimension_numbers<[1], [0], [0], [1], [0, 0, 1, 1], [], []>} : vector<8x8xbf16>, vector<8x16xbf16>, vector<8x16xf32> -> vector<8x16xf32>
    %290 = arith.addf %284, %289 : vector<8x16xf32>
    %c0_414 = arith.constant 0 : index
    %c0_415 = arith.constant 0 : index
    %291 = vector.load %arg3[%c0_414, %c0_415] : memref<1x16xf32, #tpu.memory_space<vmem>>, vector<1x16xf32>
    %292 = vector.broadcast %291 : vector<1x16xf32> to vector<8x16xf32>
    %293 = arith.addf %290, %292 : vector<8x16xf32>
    %c32 = arith.constant 32 : index
    %c0_416 = arith.constant 0 : index
    %294 = vector.load %arg5[%c32, %c0_416] : memref<64x16xf32, #tpu.memory_space<vmem>>, vector<8x16xf32>
    tpu.vector_store %arg5[%c32, %c0_416], %293 {strides = array<i32>} : memref<64x16xf32, #tpu.memory_space<vmem>>, vector<8x16xf32>,
    %cst_417 = arith.constant 0.000000e+00 : f32
    %295 = vector.broadcast %cst_417 : f32 to vector<8x16xf32>
    %c0_418 = arith.constant 0 : index
    %c0_419 = arith.constant 0 : index
    %c5_420 = arith.constant 5 : index
    %c0_421 = arith.constant 0 : index
    %c0_422 = arith.constant 0 : index
    %296 = vector.load %arg1[%c0_418, %c0_419, %c5_420, %c0_421, %c0_422] : memref<1x4x9x9x8xbf16, #tpu.memory_space<vmem>>, vector<1x1x1x8x8xbf16>
    %297 = vector.shape_cast %296 : vector<1x1x1x8x8xbf16> to vector<8x8xbf16>
    %c0_423 = arith.constant 0 : index
    %c0_424 = arith.constant 0 : index
    %c0_425 = arith.constant 0 : index
    %298 = vector.load %arg2[%c0_423, %c0_424, %c0_425] : memref<9x8x16xbf16, #tpu.memory_space<vmem>>, vector<1x8x16xbf16>
    %299 = vector.shape_cast %298 : vector<1x8x16xbf16> to vector<8x16xbf16>
    %cst_426 = arith.constant dense<0.000000e+00> : vector<8x16xf32>
    %300 = tpu.matmul %297, %299, %cst_426 {dimension_numbers = #tpu.dot_dimension_numbers<[1], [0], [0], [1], [0, 0, 1, 1], [], []>} : vector<8x8xbf16>, vector<8x16xbf16>, vector<8x16xf32> -> vector<8x16xf32>
    %301 = arith.addf %295, %300 : vector<8x16xf32>
    %c0_427 = arith.constant 0 : index
    %c1_428 = arith.constant 1 : index
    %c5_429 = arith.constant 5 : index
    %c0_430 = arith.constant 0 : index
    %c0_431 = arith.constant 0 : index
    %302 = vector.load %arg1[%c0_427, %c1_428, %c5_429, %c0_430, %c0_431] : memref<1x4x9x9x8xbf16, #tpu.memory_space<vmem>>, vector<1x1x1x8x8xbf16>
    %303 = vector.shape_cast %302 : vector<1x1x1x8x8xbf16> to vector<8x8xbf16>
    %c1_432 = arith.constant 1 : index
    %c0_433 = arith.constant 0 : index
    %c0_434 = arith.constant 0 : index
    %304 = vector.load %arg2[%c1_432, %c0_433, %c0_434] : memref<9x8x16xbf16, #tpu.memory_space<vmem>>, vector<1x8x16xbf16>
    %305 = vector.shape_cast %304 : vector<1x8x16xbf16> to vector<8x16xbf16>
    %cst_435 = arith.constant dense<0.000000e+00> : vector<8x16xf32>
    %306 = tpu.matmul %303, %305, %cst_435 {dimension_numbers = #tpu.dot_dimension_numbers<[1], [0], [0], [1], [0, 0, 1, 1], [], []>} : vector<8x8xbf16>, vector<8x16xbf16>, vector<8x16xf32> -> vector<8x16xf32>
    %307 = arith.addf %301, %306 : vector<8x16xf32>
    %c0_436 = arith.constant 0 : index
    %c0_437 = arith.constant 0 : index
    %c5_438 = arith.constant 5 : index
    %c1_439 = arith.constant 1 : index
    %c0_440 = arith.constant 0 : index
    %308 = vector.load %arg1[%c0_436, %c0_437, %c5_438, %c1_439, %c0_440] : memref<1x4x9x9x8xbf16, #tpu.memory_space<vmem>>, vector<1x1x1x8x8xbf16>
    %309 = vector.shape_cast %308 : vector<1x1x1x8x8xbf16> to vector<8x8xbf16>
    %c2_441 = arith.constant 2 : index
    %c0_442 = arith.constant 0 : index
    %c0_443 = arith.constant 0 : index
    %310 = vector.load %arg2[%c2_441, %c0_442, %c0_443] : memref<9x8x16xbf16, #tpu.memory_space<vmem>>, vector<1x8x16xbf16>
    %311 = vector.shape_cast %310 : vector<1x8x16xbf16> to vector<8x16xbf16>
    %cst_444 = arith.constant dense<0.000000e+00> : vector<8x16xf32>
    %312 = tpu.matmul %309, %311, %cst_444 {dimension_numbers = #tpu.dot_dimension_numbers<[1], [0], [0], [1], [0, 0, 1, 1], [], []>} : vector<8x8xbf16>, vector<8x16xbf16>, vector<8x16xf32> -> vector<8x16xf32>
    %313 = arith.addf %307, %312 : vector<8x16xf32>
    %c0_445 = arith.constant 0 : index
    %c2_446 = arith.constant 2 : index
    %c5_447 = arith.constant 5 : index
    %c0_448 = arith.constant 0 : index
    %c0_449 = arith.constant 0 : index
    %314 = vector.load %arg1[%c0_445, %c2_446, %c5_447, %c0_448, %c0_449] : memref<1x4x9x9x8xbf16, #tpu.memory_space<vmem>>, vector<1x1x1x8x8xbf16>
    %315 = vector.shape_cast %314 : vector<1x1x1x8x8xbf16> to vector<8x8xbf16>
    %c3_450 = arith.constant 3 : index
    %c0_451 = arith.constant 0 : index
    %c0_452 = arith.constant 0 : index
    %316 = vector.load %arg2[%c3_450, %c0_451, %c0_452] : memref<9x8x16xbf16, #tpu.memory_space<vmem>>, vector<1x8x16xbf16>
    %317 = vector.shape_cast %316 : vector<1x8x16xbf16> to vector<8x16xbf16>
    %cst_453 = arith.constant dense<0.000000e+00> : vector<8x16xf32>
    %318 = tpu.matmul %315, %317, %cst_453 {dimension_numbers = #tpu.dot_dimension_numbers<[1], [0], [0], [1], [0, 0, 1, 1], [], []>} : vector<8x8xbf16>, vector<8x16xbf16>, vector<8x16xf32> -> vector<8x16xf32>
    %319 = arith.addf %313, %318 : vector<8x16xf32>
    %c0_454 = arith.constant 0 : index
    %c3_455 = arith.constant 3 : index
    %c5_456 = arith.constant 5 : index
    %c0_457 = arith.constant 0 : index
    %c0_458 = arith.constant 0 : index
    %320 = vector.load %arg1[%c0_454, %c3_455, %c5_456, %c0_457, %c0_458] : memref<1x4x9x9x8xbf16, #tpu.memory_space<vmem>>, vector<1x1x1x8x8xbf16>
    %321 = vector.shape_cast %320 : vector<1x1x1x8x8xbf16> to vector<8x8xbf16>
    %c4_459 = arith.constant 4 : index
    %c0_460 = arith.constant 0 : index
    %c0_461 = arith.constant 0 : index
    %322 = vector.load %arg2[%c4_459, %c0_460, %c0_461] : memref<9x8x16xbf16, #tpu.memory_space<vmem>>, vector<1x8x16xbf16>
    %323 = vector.shape_cast %322 : vector<1x8x16xbf16> to vector<8x16xbf16>
    %cst_462 = arith.constant dense<0.000000e+00> : vector<8x16xf32>
    %324 = tpu.matmul %321, %323, %cst_462 {dimension_numbers = #tpu.dot_dimension_numbers<[1], [0], [0], [1], [0, 0, 1, 1], [], []>} : vector<8x8xbf16>, vector<8x16xbf16>, vector<8x16xf32> -> vector<8x16xf32>
    %325 = arith.addf %319, %324 : vector<8x16xf32>
    %c0_463 = arith.constant 0 : index
    %c2_464 = arith.constant 2 : index
    %c5_465 = arith.constant 5 : index
    %c1_466 = arith.constant 1 : index
    %c0_467 = arith.constant 0 : index
    %326 = vector.load %arg1[%c0_463, %c2_464, %c5_465, %c1_466, %c0_467] : memref<1x4x9x9x8xbf16, #tpu.memory_space<vmem>>, vector<1x1x1x8x8xbf16>
    %327 = vector.shape_cast %326 : vector<1x1x1x8x8xbf16> to vector<8x8xbf16>
    %c5_468 = arith.constant 5 : index
    %c0_469 = arith.constant 0 : index
    %c0_470 = arith.constant 0 : index
    %328 = vector.load %arg2[%c5_468, %c0_469, %c0_470] : memref<9x8x16xbf16, #tpu.memory_space<vmem>>, vector<1x8x16xbf16>
    %329 = vector.shape_cast %328 : vector<1x8x16xbf16> to vector<8x16xbf16>
    %cst_471 = arith.constant dense<0.000000e+00> : vector<8x16xf32>
    %330 = tpu.matmul %327, %329, %cst_471 {dimension_numbers = #tpu.dot_dimension_numbers<[1], [0], [0], [1], [0, 0, 1, 1], [], []>} : vector<8x8xbf16>, vector<8x16xbf16>, vector<8x16xf32> -> vector<8x16xf32>
    %331 = arith.addf %325, %330 : vector<8x16xf32>
    %c0_472 = arith.constant 0 : index
    %c0_473 = arith.constant 0 : index
    %c6_474 = arith.constant 6 : index
    %c0_475 = arith.constant 0 : index
    %c0_476 = arith.constant 0 : index
    %332 = vector.load %arg1[%c0_472, %c0_473, %c6_474, %c0_475, %c0_476] : memref<1x4x9x9x8xbf16, #tpu.memory_space<vmem>>, vector<1x1x1x8x8xbf16>
    %333 = vector.shape_cast %332 : vector<1x1x1x8x8xbf16> to vector<8x8xbf16>
    %c6_477 = arith.constant 6 : index
    %c0_478 = arith.constant 0 : index
    %c0_479 = arith.constant 0 : index
    %334 = vector.load %arg2[%c6_477, %c0_478, %c0_479] : memref<9x8x16xbf16, #tpu.memory_space<vmem>>, vector<1x8x16xbf16>
    %335 = vector.shape_cast %334 : vector<1x8x16xbf16> to vector<8x16xbf16>
    %cst_480 = arith.constant dense<0.000000e+00> : vector<8x16xf32>
    %336 = tpu.matmul %333, %335, %cst_480 {dimension_numbers = #tpu.dot_dimension_numbers<[1], [0], [0], [1], [0, 0, 1, 1], [], []>} : vector<8x8xbf16>, vector<8x16xbf16>, vector<8x16xf32> -> vector<8x16xf32>
    %337 = arith.addf %331, %336 : vector<8x16xf32>
    %c0_481 = arith.constant 0 : index
    %c1_482 = arith.constant 1 : index
    %c6_483 = arith.constant 6 : index
    %c0_484 = arith.constant 0 : index
    %c0_485 = arith.constant 0 : index
    %338 = vector.load %arg1[%c0_481, %c1_482, %c6_483, %c0_484, %c0_485] : memref<1x4x9x9x8xbf16, #tpu.memory_space<vmem>>, vector<1x1x1x8x8xbf16>
    %339 = vector.shape_cast %338 : vector<1x1x1x8x8xbf16> to vector<8x8xbf16>
    %c7_486 = arith.constant 7 : index
    %c0_487 = arith.constant 0 : index
    %c0_488 = arith.constant 0 : index
    %340 = vector.load %arg2[%c7_486, %c0_487, %c0_488] : memref<9x8x16xbf16, #tpu.memory_space<vmem>>, vector<1x8x16xbf16>
    %341 = vector.shape_cast %340 : vector<1x8x16xbf16> to vector<8x16xbf16>
    %cst_489 = arith.constant dense<0.000000e+00> : vector<8x16xf32>
    %342 = tpu.matmul %339, %341, %cst_489 {dimension_numbers = #tpu.dot_dimension_numbers<[1], [0], [0], [1], [0, 0, 1, 1], [], []>} : vector<8x8xbf16>, vector<8x16xbf16>, vector<8x16xf32> -> vector<8x16xf32>
    %343 = arith.addf %337, %342 : vector<8x16xf32>
    %c0_490 = arith.constant 0 : index
    %c0_491 = arith.constant 0 : index
    %c6_492 = arith.constant 6 : index
    %c1_493 = arith.constant 1 : index
    %c0_494 = arith.constant 0 : index
    %344 = vector.load %arg1[%c0_490, %c0_491, %c6_492, %c1_493, %c0_494] : memref<1x4x9x9x8xbf16, #tpu.memory_space<vmem>>, vector<1x1x1x8x8xbf16>
    %345 = vector.shape_cast %344 : vector<1x1x1x8x8xbf16> to vector<8x8xbf16>
    %c8_495 = arith.constant 8 : index
    %c0_496 = arith.constant 0 : index
    %c0_497 = arith.constant 0 : index
    %346 = vector.load %arg2[%c8_495, %c0_496, %c0_497] : memref<9x8x16xbf16, #tpu.memory_space<vmem>>, vector<1x8x16xbf16>
    %347 = vector.shape_cast %346 : vector<1x8x16xbf16> to vector<8x16xbf16>
    %cst_498 = arith.constant dense<0.000000e+00> : vector<8x16xf32>
    %348 = tpu.matmul %345, %347, %cst_498 {dimension_numbers = #tpu.dot_dimension_numbers<[1], [0], [0], [1], [0, 0, 1, 1], [], []>} : vector<8x8xbf16>, vector<8x16xbf16>, vector<8x16xf32> -> vector<8x16xf32>
    %349 = arith.addf %343, %348 : vector<8x16xf32>
    %c0_499 = arith.constant 0 : index
    %c0_500 = arith.constant 0 : index
    %350 = vector.load %arg3[%c0_499, %c0_500] : memref<1x16xf32, #tpu.memory_space<vmem>>, vector<1x16xf32>
    %351 = vector.broadcast %350 : vector<1x16xf32> to vector<8x16xf32>
    %352 = arith.addf %349, %351 : vector<8x16xf32>
    %c40 = arith.constant 40 : index
    %c0_501 = arith.constant 0 : index
    %353 = vector.load %arg5[%c40, %c0_501] : memref<64x16xf32, #tpu.memory_space<vmem>>, vector<8x16xf32>
    tpu.vector_store %arg5[%c40, %c0_501], %352 {strides = array<i32>} : memref<64x16xf32, #tpu.memory_space<vmem>>, vector<8x16xf32>,
    %cst_502 = arith.constant 0.000000e+00 : f32
    %354 = vector.broadcast %cst_502 : f32 to vector<8x16xf32>
    %c0_503 = arith.constant 0 : index
    %c0_504 = arith.constant 0 : index
    %c6_505 = arith.constant 6 : index
    %c0_506 = arith.constant 0 : index
    %c0_507 = arith.constant 0 : index
    %355 = vector.load %arg1[%c0_503, %c0_504, %c6_505, %c0_506, %c0_507] : memref<1x4x9x9x8xbf16, #tpu.memory_space<vmem>>, vector<1x1x1x8x8xbf16>
    %356 = vector.shape_cast %355 : vector<1x1x1x8x8xbf16> to vector<8x8xbf16>
    %c0_508 = arith.constant 0 : index
    %c0_509 = arith.constant 0 : index
    %c0_510 = arith.constant 0 : index
    %357 = vector.load %arg2[%c0_508, %c0_509, %c0_510] : memref<9x8x16xbf16, #tpu.memory_space<vmem>>, vector<1x8x16xbf16>
    %358 = vector.shape_cast %357 : vector<1x8x16xbf16> to vector<8x16xbf16>
    %cst_511 = arith.constant dense<0.000000e+00> : vector<8x16xf32>
    %359 = tpu.matmul %356, %358, %cst_511 {dimension_numbers = #tpu.dot_dimension_numbers<[1], [0], [0], [1], [0, 0, 1, 1], [], []>} : vector<8x8xbf16>, vector<8x16xbf16>, vector<8x16xf32> -> vector<8x16xf32>
    %360 = arith.addf %354, %359 : vector<8x16xf32>
    %c0_512 = arith.constant 0 : index
    %c1_513 = arith.constant 1 : index
    %c6_514 = arith.constant 6 : index
    %c0_515 = arith.constant 0 : index
    %c0_516 = arith.constant 0 : index
    %361 = vector.load %arg1[%c0_512, %c1_513, %c6_514, %c0_515, %c0_516] : memref<1x4x9x9x8xbf16, #tpu.memory_space<vmem>>, vector<1x1x1x8x8xbf16>
    %362 = vector.shape_cast %361 : vector<1x1x1x8x8xbf16> to vector<8x8xbf16>
    %c1_517 = arith.constant 1 : index
    %c0_518 = arith.constant 0 : index
    %c0_519 = arith.constant 0 : index
    %363 = vector.load %arg2[%c1_517, %c0_518, %c0_519] : memref<9x8x16xbf16, #tpu.memory_space<vmem>>, vector<1x8x16xbf16>
    %364 = vector.shape_cast %363 : vector<1x8x16xbf16> to vector<8x16xbf16>
    %cst_520 = arith.constant dense<0.000000e+00> : vector<8x16xf32>
    %365 = tpu.matmul %362, %364, %cst_520 {dimension_numbers = #tpu.dot_dimension_numbers<[1], [0], [0], [1], [0, 0, 1, 1], [], []>} : vector<8x8xbf16>, vector<8x16xbf16>, vector<8x16xf32> -> vector<8x16xf32>
    %366 = arith.addf %360, %365 : vector<8x16xf32>
    %c0_521 = arith.constant 0 : index
    %c0_522 = arith.constant 0 : index
    %c6_523 = arith.constant 6 : index
    %c1_524 = arith.constant 1 : index
    %c0_525 = arith.constant 0 : index
    %367 = vector.load %arg1[%c0_521, %c0_522, %c6_523, %c1_524, %c0_525] : memref<1x4x9x9x8xbf16, #tpu.memory_space<vmem>>, vector<1x1x1x8x8xbf16>
    %368 = vector.shape_cast %367 : vector<1x1x1x8x8xbf16> to vector<8x8xbf16>
    %c2_526 = arith.constant 2 : index
    %c0_527 = arith.constant 0 : index
    %c0_528 = arith.constant 0 : index
    %369 = vector.load %arg2[%c2_526, %c0_527, %c0_528] : memref<9x8x16xbf16, #tpu.memory_space<vmem>>, vector<1x8x16xbf16>
    %370 = vector.shape_cast %369 : vector<1x8x16xbf16> to vector<8x16xbf16>
    %cst_529 = arith.constant dense<0.000000e+00> : vector<8x16xf32>
    %371 = tpu.matmul %368, %370, %cst_529 {dimension_numbers = #tpu.dot_dimension_numbers<[1], [0], [0], [1], [0, 0, 1, 1], [], []>} : vector<8x8xbf16>, vector<8x16xbf16>, vector<8x16xf32> -> vector<8x16xf32>
    %372 = arith.addf %366, %371 : vector<8x16xf32>
    %c0_530 = arith.constant 0 : index
    %c2_531 = arith.constant 2 : index
    %c6_532 = arith.constant 6 : index
    %c0_533 = arith.constant 0 : index
    %c0_534 = arith.constant 0 : index
    %373 = vector.load %arg1[%c0_530, %c2_531, %c6_532, %c0_533, %c0_534] : memref<1x4x9x9x8xbf16, #tpu.memory_space<vmem>>, vector<1x1x1x8x8xbf16>
    %374 = vector.shape_cast %373 : vector<1x1x1x8x8xbf16> to vector<8x8xbf16>
    %c3_535 = arith.constant 3 : index
    %c0_536 = arith.constant 0 : index
    %c0_537 = arith.constant 0 : index
    %375 = vector.load %arg2[%c3_535, %c0_536, %c0_537] : memref<9x8x16xbf16, #tpu.memory_space<vmem>>, vector<1x8x16xbf16>
    %376 = vector.shape_cast %375 : vector<1x8x16xbf16> to vector<8x16xbf16>
    %cst_538 = arith.constant dense<0.000000e+00> : vector<8x16xf32>
    %377 = tpu.matmul %374, %376, %cst_538 {dimension_numbers = #tpu.dot_dimension_numbers<[1], [0], [0], [1], [0, 0, 1, 1], [], []>} : vector<8x8xbf16>, vector<8x16xbf16>, vector<8x16xf32> -> vector<8x16xf32>
    %378 = arith.addf %372, %377 : vector<8x16xf32>
    %c0_539 = arith.constant 0 : index
    %c3_540 = arith.constant 3 : index
    %c6_541 = arith.constant 6 : index
    %c0_542 = arith.constant 0 : index
    %c0_543 = arith.constant 0 : index
    %379 = vector.load %arg1[%c0_539, %c3_540, %c6_541, %c0_542, %c0_543] : memref<1x4x9x9x8xbf16, #tpu.memory_space<vmem>>, vector<1x1x1x8x8xbf16>
    %380 = vector.shape_cast %379 : vector<1x1x1x8x8xbf16> to vector<8x8xbf16>
    %c4_544 = arith.constant 4 : index
    %c0_545 = arith.constant 0 : index
    %c0_546 = arith.constant 0 : index
    %381 = vector.load %arg2[%c4_544, %c0_545, %c0_546] : memref<9x8x16xbf16, #tpu.memory_space<vmem>>, vector<1x8x16xbf16>
    %382 = vector.shape_cast %381 : vector<1x8x16xbf16> to vector<8x16xbf16>
    %cst_547 = arith.constant dense<0.000000e+00> : vector<8x16xf32>
    %383 = tpu.matmul %380, %382, %cst_547 {dimension_numbers = #tpu.dot_dimension_numbers<[1], [0], [0], [1], [0, 0, 1, 1], [], []>} : vector<8x8xbf16>, vector<8x16xbf16>, vector<8x16xf32> -> vector<8x16xf32>
    %384 = arith.addf %378, %383 : vector<8x16xf32>
    %c0_548 = arith.constant 0 : index
    %c2_549 = arith.constant 2 : index
    %c6_550 = arith.constant 6 : index
    %c1_551 = arith.constant 1 : index
    %c0_552 = arith.constant 0 : index
    %385 = vector.load %arg1[%c0_548, %c2_549, %c6_550, %c1_551, %c0_552] : memref<1x4x9x9x8xbf16, #tpu.memory_space<vmem>>, vector<1x1x1x8x8xbf16>
    %386 = vector.shape_cast %385 : vector<1x1x1x8x8xbf16> to vector<8x8xbf16>
    %c5_553 = arith.constant 5 : index
    %c0_554 = arith.constant 0 : index
    %c0_555 = arith.constant 0 : index
    %387 = vector.load %arg2[%c5_553, %c0_554, %c0_555] : memref<9x8x16xbf16, #tpu.memory_space<vmem>>, vector<1x8x16xbf16>
    %388 = vector.shape_cast %387 : vector<1x8x16xbf16> to vector<8x16xbf16>
    %cst_556 = arith.constant dense<0.000000e+00> : vector<8x16xf32>
    %389 = tpu.matmul %386, %388, %cst_556 {dimension_numbers = #tpu.dot_dimension_numbers<[1], [0], [0], [1], [0, 0, 1, 1], [], []>} : vector<8x8xbf16>, vector<8x16xbf16>, vector<8x16xf32> -> vector<8x16xf32>
    %390 = arith.addf %384, %389 : vector<8x16xf32>
    %c0_557 = arith.constant 0 : index
    %c0_558 = arith.constant 0 : index
    %c7_559 = arith.constant 7 : index
    %c0_560 = arith.constant 0 : index
    %c0_561 = arith.constant 0 : index
    %391 = vector.load %arg1[%c0_557, %c0_558, %c7_559, %c0_560, %c0_561] : memref<1x4x9x9x8xbf16, #tpu.memory_space<vmem>>, vector<1x1x1x8x8xbf16>
    %392 = vector.shape_cast %391 : vector<1x1x1x8x8xbf16> to vector<8x8xbf16>
    %c6_562 = arith.constant 6 : index
    %c0_563 = arith.constant 0 : index
    %c0_564 = arith.constant 0 : index
    %393 = vector.load %arg2[%c6_562, %c0_563, %c0_564] : memref<9x8x16xbf16, #tpu.memory_space<vmem>>, vector<1x8x16xbf16>
    %394 = vector.shape_cast %393 : vector<1x8x16xbf16> to vector<8x16xbf16>
    %cst_565 = arith.constant dense<0.000000e+00> : vector<8x16xf32>
    %395 = tpu.matmul %392, %394, %cst_565 {dimension_numbers = #tpu.dot_dimension_numbers<[1], [0], [0], [1], [0, 0, 1, 1], [], []>} : vector<8x8xbf16>, vector<8x16xbf16>, vector<8x16xf32> -> vector<8x16xf32>
    %396 = arith.addf %390, %395 : vector<8x16xf32>
    %c0_566 = arith.constant 0 : index
    %c1_567 = arith.constant 1 : index
    %c7_568 = arith.constant 7 : index
    %c0_569 = arith.constant 0 : index
    %c0_570 = arith.constant 0 : index
    %397 = vector.load %arg1[%c0_566, %c1_567, %c7_568, %c0_569, %c0_570] : memref<1x4x9x9x8xbf16, #tpu.memory_space<vmem>>, vector<1x1x1x8x8xbf16>
    %398 = vector.shape_cast %397 : vector<1x1x1x8x8xbf16> to vector<8x8xbf16>
    %c7_571 = arith.constant 7 : index
    %c0_572 = arith.constant 0 : index
    %c0_573 = arith.constant 0 : index
    %399 = vector.load %arg2[%c7_571, %c0_572, %c0_573] : memref<9x8x16xbf16, #tpu.memory_space<vmem>>, vector<1x8x16xbf16>
    %400 = vector.shape_cast %399 : vector<1x8x16xbf16> to vector<8x16xbf16>
    %cst_574 = arith.constant dense<0.000000e+00> : vector<8x16xf32>
    %401 = tpu.matmul %398, %400, %cst_574 {dimension_numbers = #tpu.dot_dimension_numbers<[1], [0], [0], [1], [0, 0, 1, 1], [], []>} : vector<8x8xbf16>, vector<8x16xbf16>, vector<8x16xf32> -> vector<8x16xf32>
    %402 = arith.addf %396, %401 : vector<8x16xf32>
    %c0_575 = arith.constant 0 : index
    %c0_576 = arith.constant 0 : index
    %c7_577 = arith.constant 7 : index
    %c1_578 = arith.constant 1 : index
    %c0_579 = arith.constant 0 : index
    %403 = vector.load %arg1[%c0_575, %c0_576, %c7_577, %c1_578, %c0_579] : memref<1x4x9x9x8xbf16, #tpu.memory_space<vmem>>, vector<1x1x1x8x8xbf16>
    %404 = vector.shape_cast %403 : vector<1x1x1x8x8xbf16> to vector<8x8xbf16>
    %c8_580 = arith.constant 8 : index
    %c0_581 = arith.constant 0 : index
    %c0_582 = arith.constant 0 : index
    %405 = vector.load %arg2[%c8_580, %c0_581, %c0_582] : memref<9x8x16xbf16, #tpu.memory_space<vmem>>, vector<1x8x16xbf16>
    %406 = vector.shape_cast %405 : vector<1x8x16xbf16> to vector<8x16xbf16>
    %cst_583 = arith.constant dense<0.000000e+00> : vector<8x16xf32>
    %407 = tpu.matmul %404, %406, %cst_583 {dimension_numbers = #tpu.dot_dimension_numbers<[1], [0], [0], [1], [0, 0, 1, 1], [], []>} : vector<8x8xbf16>, vector<8x16xbf16>, vector<8x16xf32> -> vector<8x16xf32>
    %408 = arith.addf %402, %407 : vector<8x16xf32>
    %c0_584 = arith.constant 0 : index
    %c0_585 = arith.constant 0 : index
    %409 = vector.load %arg3[%c0_584, %c0_585] : memref<1x16xf32, #tpu.memory_space<vmem>>, vector<1x16xf32>
    %410 = vector.broadcast %409 : vector<1x16xf32> to vector<8x16xf32>
    %411 = arith.addf %408, %410 : vector<8x16xf32>
    %c48 = arith.constant 48 : index
    %c0_586 = arith.constant 0 : index
    %412 = vector.load %arg5[%c48, %c0_586] : memref<64x16xf32, #tpu.memory_space<vmem>>, vector<8x16xf32>
    tpu.vector_store %arg5[%c48, %c0_586], %411 {strides = array<i32>} : memref<64x16xf32, #tpu.memory_space<vmem>>, vector<8x16xf32>,
    %cst_587 = arith.constant 0.000000e+00 : f32
    %413 = vector.broadcast %cst_587 : f32 to vector<8x16xf32>
    %c0_588 = arith.constant 0 : index
    %c0_589 = arith.constant 0 : index
    %c7_590 = arith.constant 7 : index
    %c0_591 = arith.constant 0 : index
    %c0_592 = arith.constant 0 : index
    %414 = vector.load %arg1[%c0_588, %c0_589, %c7_590, %c0_591, %c0_592] : memref<1x4x9x9x8xbf16, #tpu.memory_space<vmem>>, vector<1x1x1x8x8xbf16>
    %415 = vector.shape_cast %414 : vector<1x1x1x8x8xbf16> to vector<8x8xbf16>
    %c0_593 = arith.constant 0 : index
    %c0_594 = arith.constant 0 : index
    %c0_595 = arith.constant 0 : index
    %416 = vector.load %arg2[%c0_593, %c0_594, %c0_595] : memref<9x8x16xbf16, #tpu.memory_space<vmem>>, vector<1x8x16xbf16>
    %417 = vector.shape_cast %416 : vector<1x8x16xbf16> to vector<8x16xbf16>
    %cst_596 = arith.constant dense<0.000000e+00> : vector<8x16xf32>
    %418 = tpu.matmul %415, %417, %cst_596 {dimension_numbers = #tpu.dot_dimension_numbers<[1], [0], [0], [1], [0, 0, 1, 1], [], []>} : vector<8x8xbf16>, vector<8x16xbf16>, vector<8x16xf32> -> vector<8x16xf32>
    %419 = arith.addf %413, %418 : vector<8x16xf32>
    %c0_597 = arith.constant 0 : index
    %c1_598 = arith.constant 1 : index
    %c7_599 = arith.constant 7 : index
    %c0_600 = arith.constant 0 : index
    %c0_601 = arith.constant 0 : index
    %420 = vector.load %arg1[%c0_597, %c1_598, %c7_599, %c0_600, %c0_601] : memref<1x4x9x9x8xbf16, #tpu.memory_space<vmem>>, vector<1x1x1x8x8xbf16>
    %421 = vector.shape_cast %420 : vector<1x1x1x8x8xbf16> to vector<8x8xbf16>
    %c1_602 = arith.constant 1 : index
    %c0_603 = arith.constant 0 : index
    %c0_604 = arith.constant 0 : index
    %422 = vector.load %arg2[%c1_602, %c0_603, %c0_604] : memref<9x8x16xbf16, #tpu.memory_space<vmem>>, vector<1x8x16xbf16>
    %423 = vector.shape_cast %422 : vector<1x8x16xbf16> to vector<8x16xbf16>
    %cst_605 = arith.constant dense<0.000000e+00> : vector<8x16xf32>
    %424 = tpu.matmul %421, %423, %cst_605 {dimension_numbers = #tpu.dot_dimension_numbers<[1], [0], [0], [1], [0, 0, 1, 1], [], []>} : vector<8x8xbf16>, vector<8x16xbf16>, vector<8x16xf32> -> vector<8x16xf32>
    %425 = arith.addf %419, %424 : vector<8x16xf32>
    %c0_606 = arith.constant 0 : index
    %c0_607 = arith.constant 0 : index
    %c7_608 = arith.constant 7 : index
    %c1_609 = arith.constant 1 : index
    %c0_610 = arith.constant 0 : index
    %426 = vector.load %arg1[%c0_606, %c0_607, %c7_608, %c1_609, %c0_610] : memref<1x4x9x9x8xbf16, #tpu.memory_space<vmem>>, vector<1x1x1x8x8xbf16>
    %427 = vector.shape_cast %426 : vector<1x1x1x8x8xbf16> to vector<8x8xbf16>
    %c2_611 = arith.constant 2 : index
    %c0_612 = arith.constant 0 : index
    %c0_613 = arith.constant 0 : index
    %428 = vector.load %arg2[%c2_611, %c0_612, %c0_613] : memref<9x8x16xbf16, #tpu.memory_space<vmem>>, vector<1x8x16xbf16>
    %429 = vector.shape_cast %428 : vector<1x8x16xbf16> to vector<8x16xbf16>
    %cst_614 = arith.constant dense<0.000000e+00> : vector<8x16xf32>
    %430 = tpu.matmul %427, %429, %cst_614 {dimension_numbers = #tpu.dot_dimension_numbers<[1], [0], [0], [1], [0, 0, 1, 1], [], []>} : vector<8x8xbf16>, vector<8x16xbf16>, vector<8x16xf32> -> vector<8x16xf32>
    %431 = arith.addf %425, %430 : vector<8x16xf32>
    %c0_615 = arith.constant 0 : index
    %c2_616 = arith.constant 2 : index
    %c7_617 = arith.constant 7 : index
    %c0_618 = arith.constant 0 : index
    %c0_619 = arith.constant 0 : index
    %432 = vector.load %arg1[%c0_615, %c2_616, %c7_617, %c0_618, %c0_619] : memref<1x4x9x9x8xbf16, #tpu.memory_space<vmem>>, vector<1x1x1x8x8xbf16>
    %433 = vector.shape_cast %432 : vector<1x1x1x8x8xbf16> to vector<8x8xbf16>
    %c3_620 = arith.constant 3 : index
    %c0_621 = arith.constant 0 : index
    %c0_622 = arith.constant 0 : index
    %434 = vector.load %arg2[%c3_620, %c0_621, %c0_622] : memref<9x8x16xbf16, #tpu.memory_space<vmem>>, vector<1x8x16xbf16>
    %435 = vector.shape_cast %434 : vector<1x8x16xbf16> to vector<8x16xbf16>
    %cst_623 = arith.constant dense<0.000000e+00> : vector<8x16xf32>
    %436 = tpu.matmul %433, %435, %cst_623 {dimension_numbers = #tpu.dot_dimension_numbers<[1], [0], [0], [1], [0, 0, 1, 1], [], []>} : vector<8x8xbf16>, vector<8x16xbf16>, vector<8x16xf32> -> vector<8x16xf32>
    %437 = arith.addf %431, %436 : vector<8x16xf32>
    %c0_624 = arith.constant 0 : index
    %c3_625 = arith.constant 3 : index
    %c7_626 = arith.constant 7 : index
    %c0_627 = arith.constant 0 : index
    %c0_628 = arith.constant 0 : index
    %438 = vector.load %arg1[%c0_624, %c3_625, %c7_626, %c0_627, %c0_628] : memref<1x4x9x9x8xbf16, #tpu.memory_space<vmem>>, vector<1x1x1x8x8xbf16>
    %439 = vector.shape_cast %438 : vector<1x1x1x8x8xbf16> to vector<8x8xbf16>
    %c4_629 = arith.constant 4 : index
    %c0_630 = arith.constant 0 : index
    %c0_631 = arith.constant 0 : index
    %440 = vector.load %arg2[%c4_629, %c0_630, %c0_631] : memref<9x8x16xbf16, #tpu.memory_space<vmem>>, vector<1x8x16xbf16>
    %441 = vector.shape_cast %440 : vector<1x8x16xbf16> to vector<8x16xbf16>
    %cst_632 = arith.constant dense<0.000000e+00> : vector<8x16xf32>
    %442 = tpu.matmul %439, %441, %cst_632 {dimension_numbers = #tpu.dot_dimension_numbers<[1], [0], [0], [1], [0, 0, 1, 1], [], []>} : vector<8x8xbf16>, vector<8x16xbf16>, vector<8x16xf32> -> vector<8x16xf32>
    %443 = arith.addf %437, %442 : vector<8x16xf32>
    %c0_633 = arith.constant 0 : index
    %c2_634 = arith.constant 2 : index
    %c7_635 = arith.constant 7 : index
    %c1_636 = arith.constant 1 : index
    %c0_637 = arith.constant 0 : index
    %444 = vector.load %arg1[%c0_633, %c2_634, %c7_635, %c1_636, %c0_637] : memref<1x4x9x9x8xbf16, #tpu.memory_space<vmem>>, vector<1x1x1x8x8xbf16>
    %445 = vector.shape_cast %444 : vector<1x1x1x8x8xbf16> to vector<8x8xbf16>
    %c5_638 = arith.constant 5 : index
    %c0_639 = arith.constant 0 : index
    %c0_640 = arith.constant 0 : index
    %446 = vector.load %arg2[%c5_638, %c0_639, %c0_640] : memref<9x8x16xbf16, #tpu.memory_space<vmem>>, vector<1x8x16xbf16>
    %447 = vector.shape_cast %446 : vector<1x8x16xbf16> to vector<8x16xbf16>
    %cst_641 = arith.constant dense<0.000000e+00> : vector<8x16xf32>
    %448 = tpu.matmul %445, %447, %cst_641 {dimension_numbers = #tpu.dot_dimension_numbers<[1], [0], [0], [1], [0, 0, 1, 1], [], []>} : vector<8x8xbf16>, vector<8x16xbf16>, vector<8x16xf32> -> vector<8x16xf32>
    %449 = arith.addf %443, %448 : vector<8x16xf32>
    %c0_642 = arith.constant 0 : index
    %c0_643 = arith.constant 0 : index
    %c8_644 = arith.constant 8 : index
    %c0_645 = arith.constant 0 : index
    %c0_646 = arith.constant 0 : index
    %450 = vector.load %arg1[%c0_642, %c0_643, %c8_644, %c0_645, %c0_646] : memref<1x4x9x9x8xbf16, #tpu.memory_space<vmem>>, vector<1x1x1x8x8xbf16>
    %451 = vector.shape_cast %450 : vector<1x1x1x8x8xbf16> to vector<8x8xbf16>
    %c6_647 = arith.constant 6 : index
    %c0_648 = arith.constant 0 : index
    %c0_649 = arith.constant 0 : index
    %452 = vector.load %arg2[%c6_647, %c0_648, %c0_649] : memref<9x8x16xbf16, #tpu.memory_space<vmem>>, vector<1x8x16xbf16>
    %453 = vector.shape_cast %452 : vector<1x8x16xbf16> to vector<8x16xbf16>
    %cst_650 = arith.constant dense<0.000000e+00> : vector<8x16xf32>
    %454 = tpu.matmul %451, %453, %cst_650 {dimension_numbers = #tpu.dot_dimension_numbers<[1], [0], [0], [1], [0, 0, 1, 1], [], []>} : vector<8x8xbf16>, vector<8x16xbf16>, vector<8x16xf32> -> vector<8x16xf32>
    %455 = arith.addf %449, %454 : vector<8x16xf32>
    %c0_651 = arith.constant 0 : index
    %c1_652 = arith.constant 1 : index
    %c8_653 = arith.constant 8 : index
    %c0_654 = arith.constant 0 : index
    %c0_655 = arith.constant 0 : index
    %456 = vector.load %arg1[%c0_651, %c1_652, %c8_653, %c0_654, %c0_655] : memref<1x4x9x9x8xbf16, #tpu.memory_space<vmem>>, vector<1x1x1x8x8xbf16>
    %457 = vector.shape_cast %456 : vector<1x1x1x8x8xbf16> to vector<8x8xbf16>
    %c7_656 = arith.constant 7 : index
    %c0_657 = arith.constant 0 : index
    %c0_658 = arith.constant 0 : index
    %458 = vector.load %arg2[%c7_656, %c0_657, %c0_658] : memref<9x8x16xbf16, #tpu.memory_space<vmem>>, vector<1x8x16xbf16>
    %459 = vector.shape_cast %458 : vector<1x8x16xbf16> to vector<8x16xbf16>
    %cst_659 = arith.constant dense<0.000000e+00> : vector<8x16xf32>
    %460 = tpu.matmul %457, %459, %cst_659 {dimension_numbers = #tpu.dot_dimension_numbers<[1], [0], [0], [1], [0, 0, 1, 1], [], []>} : vector<8x8xbf16>, vector<8x16xbf16>, vector<8x16xf32> -> vector<8x16xf32>
    %461 = arith.addf %455, %460 : vector<8x16xf32>
    %c0_660 = arith.constant 0 : index
    %c0_661 = arith.constant 0 : index
    %c8_662 = arith.constant 8 : index
    %c1_663 = arith.constant 1 : index
    %c0_664 = arith.constant 0 : index
    %462 = vector.load %arg1[%c0_660, %c0_661, %c8_662, %c1_663, %c0_664] : memref<1x4x9x9x8xbf16, #tpu.memory_space<vmem>>, vector<1x1x1x8x8xbf16>
    %463 = vector.shape_cast %462 : vector<1x1x1x8x8xbf16> to vector<8x8xbf16>
    %c8_665 = arith.constant 8 : index
    %c0_666 = arith.constant 0 : index
    %c0_667 = arith.constant 0 : index
    %464 = vector.load %arg2[%c8_665, %c0_666, %c0_667] : memref<9x8x16xbf16, #tpu.memory_space<vmem>>, vector<1x8x16xbf16>
    %465 = vector.shape_cast %464 : vector<1x8x16xbf16> to vector<8x16xbf16>
    %cst_668 = arith.constant dense<0.000000e+00> : vector<8x16xf32>
    %466 = tpu.matmul %463, %465, %cst_668 {dimension_numbers = #tpu.dot_dimension_numbers<[1], [0], [0], [1], [0, 0, 1, 1], [], []>} : vector<8x8xbf16>, vector<8x16xbf16>, vector<8x16xf32> -> vector<8x16xf32>
    %467 = arith.addf %461, %466 : vector<8x16xf32>
    %c0_669 = arith.constant 0 : index
    %c0_670 = arith.constant 0 : index
    %468 = vector.load %arg3[%c0_669, %c0_670] : memref<1x16xf32, #tpu.memory_space<vmem>>, vector<1x16xf32>
    %469 = vector.broadcast %468 : vector<1x16xf32> to vector<8x16xf32>
    %470 = arith.addf %467, %469 : vector<8x16xf32>
    %c56 = arith.constant 56 : index
    %c0_671 = arith.constant 0 : index
    %471 = vector.load %arg5[%c56, %c0_671] : memref<64x16xf32, #tpu.memory_space<vmem>>, vector<8x16xf32>
    tpu.vector_store %arg5[%c56, %c0_671], %470 {strides = array<i32>} : memref<64x16xf32, #tpu.memory_space<vmem>>, vector<8x16xf32>,
    %c0_672 = arith.constant 0 : index
    %c0_673 = arith.constant 0 : index
    %472 = vector.load %arg5[%c0_672, %c0_673] : memref<64x16xf32, #tpu.memory_space<vmem>>, vector<64x16xf32>
    %cst_674 = arith.constant dense<0.000000e+00> : vector<16xf32>
    %473 = vector.multi_reduction <add>, %472, %cst_674 [0] : vector<64x16xf32> to vector<16xf32>
    %474 = vector.shape_cast %473 : vector<16xf32> to vector<1x16xf32>
    %cst_675 = arith.constant 1.562500e-02 : f32
    %475 = vector.broadcast %cst_675 : f32 to vector<1x16xf32>
    %476 = arith.mulf %474, %475 : vector<1x16xf32>
    %477 = vector.broadcast %476 : vector<1x16xf32> to vector<64x16xf32>
    %478 = arith.subf %472, %477 : vector<64x16xf32>
    %479 = arith.mulf %478, %478 : vector<64x16xf32>
    %cst_676 = arith.constant dense<0.000000e+00> : vector<16xf32>
    %480 = vector.multi_reduction <add>, %479, %cst_676 [0] : vector<64x16xf32> to vector<16xf32>
    %481 = vector.shape_cast %480 : vector<16xf32> to vector<1x16xf32>
    %cst_677 = arith.constant 1.562500e-02 : f32
    %482 = vector.broadcast %cst_677 : f32 to vector<1x16xf32>
    %483 = arith.mulf %481, %482 : vector<1x16xf32>
    %cst_678 = arith.constant 9.99999974E-6 : f32
    %484 = vector.broadcast %cst_678 : f32 to vector<1x16xf32>
    %485 = arith.addf %483, %484 : vector<1x16xf32>
    %486 = math.rsqrt %485 : vector<1x16xf32>
    %487 = vector.broadcast %486 : vector<1x16xf32> to vector<64x16xf32>
    %488 = arith.mulf %478, %487 : vector<64x16xf32>
    %cst_679 = arith.constant 0.000000e+00 : f32
    %489 = vector.broadcast %cst_679 : f32 to vector<64x16xf32>
    %490 = arith.cmpf ogt, %488, %489 : vector<64x16xf32>
    %cst_680 = arith.constant 2.000000e-01 : f32
    %491 = vector.broadcast %cst_680 : f32 to vector<64x16xf32>
    %492 = arith.mulf %491, %488 : vector<64x16xf32>
    %493 = arith.select %490, %488, %492 : vector<64x16xi1>, vector<64x16xf32>
    %494 = arith.truncf %493 : vector<64x16xf32> to vector<64x16xbf16>
    %c0_681 = arith.constant 0 : index
    %c0_682 = arith.constant 0 : index
    %c0_683 = arith.constant 0 : index
    %495 = vector.load %arg4[%c0_681, %c0_682, %c0_683] : memref<1x64x16xbf16, #tpu.memory_space<vmem>>, vector<1x64x16xbf16>
    %496 = vector.shape_cast %495 : vector<1x64x16xbf16> to vector<64x16xbf16>
    %497 = vector.shape_cast %494 : vector<64x16xbf16> to vector<1x64x16xbf16>
    tpu.vector_store %arg4[%c0_681, %c0_682, %c0_683], %497 {strides = array<i32>} : memref<1x64x16xbf16, #tpu.memory_space<vmem>>, vector<1x64x16xbf16>,
    return
  }
  func.func @transform_0(%arg0: i32) -> (i32, i32, i32, i32, i32) {
    %c0_i32 = arith.constant 0 : i32
    %c0_i32_0 = arith.constant 0 : i32
    %c0_i32_1 = arith.constant 0 : i32
    %c0_i32_2 = arith.constant 0 : i32
    %c0_i32_3 = arith.constant 0 : i32
    return %arg0, %c0_i32, %c0_i32_0, %c0_i32_1, %c0_i32_2 : i32, i32, i32, i32, i32
  }
  func.func @transform_1(%arg0: i32) -> (i32, i32, i32) {
    %c0_i32 = arith.constant 0 : i32
    %c0_i32_0 = arith.constant 0 : i32
    %c0_i32_1 = arith.constant 0 : i32
    %c0_i32_2 = arith.constant 0 : i32
    return %c0_i32, %c0_i32_0, %c0_i32_1 : i32, i32, i32
  }
  func.func @transform_2(%arg0: i32) -> (i32, i32) {
    %c0_i32 = arith.constant 0 : i32
    %c0_i32_0 = arith.constant 0 : i32
    %c0_i32_1 = arith.constant 0 : i32
    return %c0_i32, %c0_i32_0 : i32, i32
  }
  func.func @transform_3(%arg0: i32) -> (i32, i32, i32) {
    %c0_i32 = arith.constant 0 : i32
    %c0_i32_0 = arith.constant 0 : i32
    %c0_i32_1 = arith.constant 0 : i32
    return %arg0, %c0_i32, %c0_i32_0 : i32, i32, i32
  }
}

module attributes {stable_mosaic.version = 11 : i64} {
  func.func @_conv_in_lrelu_kernel(%arg0: i32, %arg1: memref<1x4x5x5x16xbf16, #tpu.memory_space<vmem>>, %arg2: memref<9x16x32xbf16, #tpu.memory_space<vmem>>, %arg3: memref<1x32xf32, #tpu.memory_space<vmem>>, %arg4: memref<1x16x32xbf16, #tpu.memory_space<vmem>>, %arg5: memref<16x32xf32, #tpu.memory_space<vmem>>) attributes {dimension_semantics = [#tpu.dimension_semantics<parallel>], iteration_bounds = array<i64: 2>, scalar_prefetch = 0 : i64, scratch_operands = 1 : i64, tpu.core_type = #tpu.core_type<tc>, window_params = [{transform_indices = @transform_0, window_bounds = array<i64: 1, 4, 5, 5, 16>}, {pipeline_mode = #tpu.pipeline_mode<synchronous>, transform_indices = @transform_1, window_bounds = array<i64: 9, 16, 32>}, {pipeline_mode = #tpu.pipeline_mode<synchronous>, transform_indices = @transform_2, window_bounds = array<i64: 1, 32>}, {transform_indices = @transform_3, window_bounds = array<i64: 1, 16, 32>}]} {
    %cst = arith.constant 0.000000e+00 : f32
    %0 = vector.broadcast %cst : f32 to vector<4x32xf32>
    %c0 = arith.constant 0 : index
    %c0_0 = arith.constant 0 : index
    %c0_1 = arith.constant 0 : index
    %c0_2 = arith.constant 0 : index
    %c0_3 = arith.constant 0 : index
    %1 = vector.load %arg1[%c0, %c0_0, %c0_1, %c0_2, %c0_3] : memref<1x4x5x5x16xbf16, #tpu.memory_space<vmem>>, vector<1x1x1x4x16xbf16>
    %2 = vector.shape_cast %1 : vector<1x1x1x4x16xbf16> to vector<4x16xbf16>
    %c0_4 = arith.constant 0 : index
    %c0_5 = arith.constant 0 : index
    %c0_6 = arith.constant 0 : index
    %3 = vector.load %arg2[%c0_4, %c0_5, %c0_6] : memref<9x16x32xbf16, #tpu.memory_space<vmem>>, vector<1x16x32xbf16>
    %4 = vector.shape_cast %3 : vector<1x16x32xbf16> to vector<16x32xbf16>
    %cst_7 = arith.constant dense<0.000000e+00> : vector<4x32xf32>
    %5 = tpu.matmul %2, %4, %cst_7 {dimension_numbers = #tpu.dot_dimension_numbers<[1], [0], [0], [1], [0, 0, 1, 1], [], []>} : vector<4x16xbf16>, vector<16x32xbf16>, vector<4x32xf32> -> vector<4x32xf32>
    %6 = arith.addf %0, %5 : vector<4x32xf32>
    %c0_8 = arith.constant 0 : index
    %c1 = arith.constant 1 : index
    %c0_9 = arith.constant 0 : index
    %c0_10 = arith.constant 0 : index
    %c0_11 = arith.constant 0 : index
    %7 = vector.load %arg1[%c0_8, %c1, %c0_9, %c0_10, %c0_11] : memref<1x4x5x5x16xbf16, #tpu.memory_space<vmem>>, vector<1x1x1x4x16xbf16>
    %8 = vector.shape_cast %7 : vector<1x1x1x4x16xbf16> to vector<4x16xbf16>
    %c1_12 = arith.constant 1 : index
    %c0_13 = arith.constant 0 : index
    %c0_14 = arith.constant 0 : index
    %9 = vector.load %arg2[%c1_12, %c0_13, %c0_14] : memref<9x16x32xbf16, #tpu.memory_space<vmem>>, vector<1x16x32xbf16>
    %10 = vector.shape_cast %9 : vector<1x16x32xbf16> to vector<16x32xbf16>
    %cst_15 = arith.constant dense<0.000000e+00> : vector<4x32xf32>
    %11 = tpu.matmul %8, %10, %cst_15 {dimension_numbers = #tpu.dot_dimension_numbers<[1], [0], [0], [1], [0, 0, 1, 1], [], []>} : vector<4x16xbf16>, vector<16x32xbf16>, vector<4x32xf32> -> vector<4x32xf32>
    %12 = arith.addf %6, %11 : vector<4x32xf32>
    %c0_16 = arith.constant 0 : index
    %c0_17 = arith.constant 0 : index
    %c0_18 = arith.constant 0 : index
    %c1_19 = arith.constant 1 : index
    %c0_20 = arith.constant 0 : index
    %13 = vector.load %arg1[%c0_16, %c0_17, %c0_18, %c1_19, %c0_20] : memref<1x4x5x5x16xbf16, #tpu.memory_space<vmem>>, vector<1x1x1x4x16xbf16>
    %14 = vector.shape_cast %13 : vector<1x1x1x4x16xbf16> to vector<4x16xbf16>
    %c2 = arith.constant 2 : index
    %c0_21 = arith.constant 0 : index
    %c0_22 = arith.constant 0 : index
    %15 = vector.load %arg2[%c2, %c0_21, %c0_22] : memref<9x16x32xbf16, #tpu.memory_space<vmem>>, vector<1x16x32xbf16>
    %16 = vector.shape_cast %15 : vector<1x16x32xbf16> to vector<16x32xbf16>
    %cst_23 = arith.constant dense<0.000000e+00> : vector<4x32xf32>
    %17 = tpu.matmul %14, %16, %cst_23 {dimension_numbers = #tpu.dot_dimension_numbers<[1], [0], [0], [1], [0, 0, 1, 1], [], []>} : vector<4x16xbf16>, vector<16x32xbf16>, vector<4x32xf32> -> vector<4x32xf32>
    %18 = arith.addf %12, %17 : vector<4x32xf32>
    %c0_24 = arith.constant 0 : index
    %c2_25 = arith.constant 2 : index
    %c0_26 = arith.constant 0 : index
    %c0_27 = arith.constant 0 : index
    %c0_28 = arith.constant 0 : index
    %19 = vector.load %arg1[%c0_24, %c2_25, %c0_26, %c0_27, %c0_28] : memref<1x4x5x5x16xbf16, #tpu.memory_space<vmem>>, vector<1x1x1x4x16xbf16>
    %20 = vector.shape_cast %19 : vector<1x1x1x4x16xbf16> to vector<4x16xbf16>
    %c3 = arith.constant 3 : index
    %c0_29 = arith.constant 0 : index
    %c0_30 = arith.constant 0 : index
    %21 = vector.load %arg2[%c3, %c0_29, %c0_30] : memref<9x16x32xbf16, #tpu.memory_space<vmem>>, vector<1x16x32xbf16>
    %22 = vector.shape_cast %21 : vector<1x16x32xbf16> to vector<16x32xbf16>
    %cst_31 = arith.constant dense<0.000000e+00> : vector<4x32xf32>
    %23 = tpu.matmul %20, %22, %cst_31 {dimension_numbers = #tpu.dot_dimension_numbers<[1], [0], [0], [1], [0, 0, 1, 1], [], []>} : vector<4x16xbf16>, vector<16x32xbf16>, vector<4x32xf32> -> vector<4x32xf32>
    %24 = arith.addf %18, %23 : vector<4x32xf32>
    %c0_32 = arith.constant 0 : index
    %c3_33 = arith.constant 3 : index
    %c0_34 = arith.constant 0 : index
    %c0_35 = arith.constant 0 : index
    %c0_36 = arith.constant 0 : index
    %25 = vector.load %arg1[%c0_32, %c3_33, %c0_34, %c0_35, %c0_36] : memref<1x4x5x5x16xbf16, #tpu.memory_space<vmem>>, vector<1x1x1x4x16xbf16>
    %26 = vector.shape_cast %25 : vector<1x1x1x4x16xbf16> to vector<4x16xbf16>
    %c4 = arith.constant 4 : index
    %c0_37 = arith.constant 0 : index
    %c0_38 = arith.constant 0 : index
    %27 = vector.load %arg2[%c4, %c0_37, %c0_38] : memref<9x16x32xbf16, #tpu.memory_space<vmem>>, vector<1x16x32xbf16>
    %28 = vector.shape_cast %27 : vector<1x16x32xbf16> to vector<16x32xbf16>
    %cst_39 = arith.constant dense<0.000000e+00> : vector<4x32xf32>
    %29 = tpu.matmul %26, %28, %cst_39 {dimension_numbers = #tpu.dot_dimension_numbers<[1], [0], [0], [1], [0, 0, 1, 1], [], []>} : vector<4x16xbf16>, vector<16x32xbf16>, vector<4x32xf32> -> vector<4x32xf32>
    %30 = arith.addf %24, %29 : vector<4x32xf32>
    %c0_40 = arith.constant 0 : index
    %c2_41 = arith.constant 2 : index
    %c0_42 = arith.constant 0 : index
    %c1_43 = arith.constant 1 : index
    %c0_44 = arith.constant 0 : index
    %31 = vector.load %arg1[%c0_40, %c2_41, %c0_42, %c1_43, %c0_44] : memref<1x4x5x5x16xbf16, #tpu.memory_space<vmem>>, vector<1x1x1x4x16xbf16>
    %32 = vector.shape_cast %31 : vector<1x1x1x4x16xbf16> to vector<4x16xbf16>
    %c5 = arith.constant 5 : index
    %c0_45 = arith.constant 0 : index
    %c0_46 = arith.constant 0 : index
    %33 = vector.load %arg2[%c5, %c0_45, %c0_46] : memref<9x16x32xbf16, #tpu.memory_space<vmem>>, vector<1x16x32xbf16>
    %34 = vector.shape_cast %33 : vector<1x16x32xbf16> to vector<16x32xbf16>
    %cst_47 = arith.constant dense<0.000000e+00> : vector<4x32xf32>
    %35 = tpu.matmul %32, %34, %cst_47 {dimension_numbers = #tpu.dot_dimension_numbers<[1], [0], [0], [1], [0, 0, 1, 1], [], []>} : vector<4x16xbf16>, vector<16x32xbf16>, vector<4x32xf32> -> vector<4x32xf32>
    %36 = arith.addf %30, %35 : vector<4x32xf32>
    %c0_48 = arith.constant 0 : index
    %c0_49 = arith.constant 0 : index
    %c1_50 = arith.constant 1 : index
    %c0_51 = arith.constant 0 : index
    %c0_52 = arith.constant 0 : index
    %37 = vector.load %arg1[%c0_48, %c0_49, %c1_50, %c0_51, %c0_52] : memref<1x4x5x5x16xbf16, #tpu.memory_space<vmem>>, vector<1x1x1x4x16xbf16>
    %38 = vector.shape_cast %37 : vector<1x1x1x4x16xbf16> to vector<4x16xbf16>
    %c6 = arith.constant 6 : index
    %c0_53 = arith.constant 0 : index
    %c0_54 = arith.constant 0 : index
    %39 = vector.load %arg2[%c6, %c0_53, %c0_54] : memref<9x16x32xbf16, #tpu.memory_space<vmem>>, vector<1x16x32xbf16>
    %40 = vector.shape_cast %39 : vector<1x16x32xbf16> to vector<16x32xbf16>
    %cst_55 = arith.constant dense<0.000000e+00> : vector<4x32xf32>
    %41 = tpu.matmul %38, %40, %cst_55 {dimension_numbers = #tpu.dot_dimension_numbers<[1], [0], [0], [1], [0, 0, 1, 1], [], []>} : vector<4x16xbf16>, vector<16x32xbf16>, vector<4x32xf32> -> vector<4x32xf32>
    %42 = arith.addf %36, %41 : vector<4x32xf32>
    %c0_56 = arith.constant 0 : index
    %c1_57 = arith.constant 1 : index
    %c1_58 = arith.constant 1 : index
    %c0_59 = arith.constant 0 : index
    %c0_60 = arith.constant 0 : index
    %43 = vector.load %arg1[%c0_56, %c1_57, %c1_58, %c0_59, %c0_60] : memref<1x4x5x5x16xbf16, #tpu.memory_space<vmem>>, vector<1x1x1x4x16xbf16>
    %44 = vector.shape_cast %43 : vector<1x1x1x4x16xbf16> to vector<4x16xbf16>
    %c7 = arith.constant 7 : index
    %c0_61 = arith.constant 0 : index
    %c0_62 = arith.constant 0 : index
    %45 = vector.load %arg2[%c7, %c0_61, %c0_62] : memref<9x16x32xbf16, #tpu.memory_space<vmem>>, vector<1x16x32xbf16>
    %46 = vector.shape_cast %45 : vector<1x16x32xbf16> to vector<16x32xbf16>
    %cst_63 = arith.constant dense<0.000000e+00> : vector<4x32xf32>
    %47 = tpu.matmul %44, %46, %cst_63 {dimension_numbers = #tpu.dot_dimension_numbers<[1], [0], [0], [1], [0, 0, 1, 1], [], []>} : vector<4x16xbf16>, vector<16x32xbf16>, vector<4x32xf32> -> vector<4x32xf32>
    %48 = arith.addf %42, %47 : vector<4x32xf32>
    %c0_64 = arith.constant 0 : index
    %c0_65 = arith.constant 0 : index
    %c1_66 = arith.constant 1 : index
    %c1_67 = arith.constant 1 : index
    %c0_68 = arith.constant 0 : index
    %49 = vector.load %arg1[%c0_64, %c0_65, %c1_66, %c1_67, %c0_68] : memref<1x4x5x5x16xbf16, #tpu.memory_space<vmem>>, vector<1x1x1x4x16xbf16>
    %50 = vector.shape_cast %49 : vector<1x1x1x4x16xbf16> to vector<4x16xbf16>
    %c8 = arith.constant 8 : index
    %c0_69 = arith.constant 0 : index
    %c0_70 = arith.constant 0 : index
    %51 = vector.load %arg2[%c8, %c0_69, %c0_70] : memref<9x16x32xbf16, #tpu.memory_space<vmem>>, vector<1x16x32xbf16>
    %52 = vector.shape_cast %51 : vector<1x16x32xbf16> to vector<16x32xbf16>
    %cst_71 = arith.constant dense<0.000000e+00> : vector<4x32xf32>
    %53 = tpu.matmul %50, %52, %cst_71 {dimension_numbers = #tpu.dot_dimension_numbers<[1], [0], [0], [1], [0, 0, 1, 1], [], []>} : vector<4x16xbf16>, vector<16x32xbf16>, vector<4x32xf32> -> vector<4x32xf32>
    %54 = arith.addf %48, %53 : vector<4x32xf32>
    %c0_72 = arith.constant 0 : index
    %c0_73 = arith.constant 0 : index
    %55 = vector.load %arg3[%c0_72, %c0_73] : memref<1x32xf32, #tpu.memory_space<vmem>>, vector<1x32xf32>
    %56 = vector.broadcast %55 : vector<1x32xf32> to vector<4x32xf32>
    %57 = arith.addf %54, %56 : vector<4x32xf32>
    %c0_74 = arith.constant 0 : index
    %c0_75 = arith.constant 0 : index
    %58 = vector.load %arg5[%c0_74, %c0_75] : memref<16x32xf32, #tpu.memory_space<vmem>>, vector<4x32xf32>
    tpu.vector_store %arg5[%c0_74, %c0_75], %57 {strides = array<i32>} : memref<16x32xf32, #tpu.memory_space<vmem>>, vector<4x32xf32>,
    %cst_76 = arith.constant 0.000000e+00 : f32
    %59 = vector.broadcast %cst_76 : f32 to vector<4x32xf32>
    %c0_77 = arith.constant 0 : index
    %c0_78 = arith.constant 0 : index
    %c1_79 = arith.constant 1 : index
    %c0_80 = arith.constant 0 : index
    %c0_81 = arith.constant 0 : index
    %60 = vector.load %arg1[%c0_77, %c0_78, %c1_79, %c0_80, %c0_81] : memref<1x4x5x5x16xbf16, #tpu.memory_space<vmem>>, vector<1x1x1x4x16xbf16>
    %61 = vector.shape_cast %60 : vector<1x1x1x4x16xbf16> to vector<4x16xbf16>
    %c0_82 = arith.constant 0 : index
    %c0_83 = arith.constant 0 : index
    %c0_84 = arith.constant 0 : index
    %62 = vector.load %arg2[%c0_82, %c0_83, %c0_84] : memref<9x16x32xbf16, #tpu.memory_space<vmem>>, vector<1x16x32xbf16>
    %63 = vector.shape_cast %62 : vector<1x16x32xbf16> to vector<16x32xbf16>
    %cst_85 = arith.constant dense<0.000000e+00> : vector<4x32xf32>
    %64 = tpu.matmul %61, %63, %cst_85 {dimension_numbers = #tpu.dot_dimension_numbers<[1], [0], [0], [1], [0, 0, 1, 1], [], []>} : vector<4x16xbf16>, vector<16x32xbf16>, vector<4x32xf32> -> vector<4x32xf32>
    %65 = arith.addf %59, %64 : vector<4x32xf32>
    %c0_86 = arith.constant 0 : index
    %c1_87 = arith.constant 1 : index
    %c1_88 = arith.constant 1 : index
    %c0_89 = arith.constant 0 : index
    %c0_90 = arith.constant 0 : index
    %66 = vector.load %arg1[%c0_86, %c1_87, %c1_88, %c0_89, %c0_90] : memref<1x4x5x5x16xbf16, #tpu.memory_space<vmem>>, vector<1x1x1x4x16xbf16>
    %67 = vector.shape_cast %66 : vector<1x1x1x4x16xbf16> to vector<4x16xbf16>
    %c1_91 = arith.constant 1 : index
    %c0_92 = arith.constant 0 : index
    %c0_93 = arith.constant 0 : index
    %68 = vector.load %arg2[%c1_91, %c0_92, %c0_93] : memref<9x16x32xbf16, #tpu.memory_space<vmem>>, vector<1x16x32xbf16>
    %69 = vector.shape_cast %68 : vector<1x16x32xbf16> to vector<16x32xbf16>
    %cst_94 = arith.constant dense<0.000000e+00> : vector<4x32xf32>
    %70 = tpu.matmul %67, %69, %cst_94 {dimension_numbers = #tpu.dot_dimension_numbers<[1], [0], [0], [1], [0, 0, 1, 1], [], []>} : vector<4x16xbf16>, vector<16x32xbf16>, vector<4x32xf32> -> vector<4x32xf32>
    %71 = arith.addf %65, %70 : vector<4x32xf32>
    %c0_95 = arith.constant 0 : index
    %c0_96 = arith.constant 0 : index
    %c1_97 = arith.constant 1 : index
    %c1_98 = arith.constant 1 : index
    %c0_99 = arith.constant 0 : index
    %72 = vector.load %arg1[%c0_95, %c0_96, %c1_97, %c1_98, %c0_99] : memref<1x4x5x5x16xbf16, #tpu.memory_space<vmem>>, vector<1x1x1x4x16xbf16>
    %73 = vector.shape_cast %72 : vector<1x1x1x4x16xbf16> to vector<4x16xbf16>
    %c2_100 = arith.constant 2 : index
    %c0_101 = arith.constant 0 : index
    %c0_102 = arith.constant 0 : index
    %74 = vector.load %arg2[%c2_100, %c0_101, %c0_102] : memref<9x16x32xbf16, #tpu.memory_space<vmem>>, vector<1x16x32xbf16>
    %75 = vector.shape_cast %74 : vector<1x16x32xbf16> to vector<16x32xbf16>
    %cst_103 = arith.constant dense<0.000000e+00> : vector<4x32xf32>
    %76 = tpu.matmul %73, %75, %cst_103 {dimension_numbers = #tpu.dot_dimension_numbers<[1], [0], [0], [1], [0, 0, 1, 1], [], []>} : vector<4x16xbf16>, vector<16x32xbf16>, vector<4x32xf32> -> vector<4x32xf32>
    %77 = arith.addf %71, %76 : vector<4x32xf32>
    %c0_104 = arith.constant 0 : index
    %c2_105 = arith.constant 2 : index
    %c1_106 = arith.constant 1 : index
    %c0_107 = arith.constant 0 : index
    %c0_108 = arith.constant 0 : index
    %78 = vector.load %arg1[%c0_104, %c2_105, %c1_106, %c0_107, %c0_108] : memref<1x4x5x5x16xbf16, #tpu.memory_space<vmem>>, vector<1x1x1x4x16xbf16>
    %79 = vector.shape_cast %78 : vector<1x1x1x4x16xbf16> to vector<4x16xbf16>
    %c3_109 = arith.constant 3 : index
    %c0_110 = arith.constant 0 : index
    %c0_111 = arith.constant 0 : index
    %80 = vector.load %arg2[%c3_109, %c0_110, %c0_111] : memref<9x16x32xbf16, #tpu.memory_space<vmem>>, vector<1x16x32xbf16>
    %81 = vector.shape_cast %80 : vector<1x16x32xbf16> to vector<16x32xbf16>
    %cst_112 = arith.constant dense<0.000000e+00> : vector<4x32xf32>
    %82 = tpu.matmul %79, %81, %cst_112 {dimension_numbers = #tpu.dot_dimension_numbers<[1], [0], [0], [1], [0, 0, 1, 1], [], []>} : vector<4x16xbf16>, vector<16x32xbf16>, vector<4x32xf32> -> vector<4x32xf32>
    %83 = arith.addf %77, %82 : vector<4x32xf32>
    %c0_113 = arith.constant 0 : index
    %c3_114 = arith.constant 3 : index
    %c1_115 = arith.constant 1 : index
    %c0_116 = arith.constant 0 : index
    %c0_117 = arith.constant 0 : index
    %84 = vector.load %arg1[%c0_113, %c3_114, %c1_115, %c0_116, %c0_117] : memref<1x4x5x5x16xbf16, #tpu.memory_space<vmem>>, vector<1x1x1x4x16xbf16>
    %85 = vector.shape_cast %84 : vector<1x1x1x4x16xbf16> to vector<4x16xbf16>
    %c4_118 = arith.constant 4 : index
    %c0_119 = arith.constant 0 : index
    %c0_120 = arith.constant 0 : index
    %86 = vector.load %arg2[%c4_118, %c0_119, %c0_120] : memref<9x16x32xbf16, #tpu.memory_space<vmem>>, vector<1x16x32xbf16>
    %87 = vector.shape_cast %86 : vector<1x16x32xbf16> to vector<16x32xbf16>
    %cst_121 = arith.constant dense<0.000000e+00> : vector<4x32xf32>
    %88 = tpu.matmul %85, %87, %cst_121 {dimension_numbers = #tpu.dot_dimension_numbers<[1], [0], [0], [1], [0, 0, 1, 1], [], []>} : vector<4x16xbf16>, vector<16x32xbf16>, vector<4x32xf32> -> vector<4x32xf32>
    %89 = arith.addf %83, %88 : vector<4x32xf32>
    %c0_122 = arith.constant 0 : index
    %c2_123 = arith.constant 2 : index
    %c1_124 = arith.constant 1 : index
    %c1_125 = arith.constant 1 : index
    %c0_126 = arith.constant 0 : index
    %90 = vector.load %arg1[%c0_122, %c2_123, %c1_124, %c1_125, %c0_126] : memref<1x4x5x5x16xbf16, #tpu.memory_space<vmem>>, vector<1x1x1x4x16xbf16>
    %91 = vector.shape_cast %90 : vector<1x1x1x4x16xbf16> to vector<4x16xbf16>
    %c5_127 = arith.constant 5 : index
    %c0_128 = arith.constant 0 : index
    %c0_129 = arith.constant 0 : index
    %92 = vector.load %arg2[%c5_127, %c0_128, %c0_129] : memref<9x16x32xbf16, #tpu.memory_space<vmem>>, vector<1x16x32xbf16>
    %93 = vector.shape_cast %92 : vector<1x16x32xbf16> to vector<16x32xbf16>
    %cst_130 = arith.constant dense<0.000000e+00> : vector<4x32xf32>
    %94 = tpu.matmul %91, %93, %cst_130 {dimension_numbers = #tpu.dot_dimension_numbers<[1], [0], [0], [1], [0, 0, 1, 1], [], []>} : vector<4x16xbf16>, vector<16x32xbf16>, vector<4x32xf32> -> vector<4x32xf32>
    %95 = arith.addf %89, %94 : vector<4x32xf32>
    %c0_131 = arith.constant 0 : index
    %c0_132 = arith.constant 0 : index
    %c2_133 = arith.constant 2 : index
    %c0_134 = arith.constant 0 : index
    %c0_135 = arith.constant 0 : index
    %96 = vector.load %arg1[%c0_131, %c0_132, %c2_133, %c0_134, %c0_135] : memref<1x4x5x5x16xbf16, #tpu.memory_space<vmem>>, vector<1x1x1x4x16xbf16>
    %97 = vector.shape_cast %96 : vector<1x1x1x4x16xbf16> to vector<4x16xbf16>
    %c6_136 = arith.constant 6 : index
    %c0_137 = arith.constant 0 : index
    %c0_138 = arith.constant 0 : index
    %98 = vector.load %arg2[%c6_136, %c0_137, %c0_138] : memref<9x16x32xbf16, #tpu.memory_space<vmem>>, vector<1x16x32xbf16>
    %99 = vector.shape_cast %98 : vector<1x16x32xbf16> to vector<16x32xbf16>
    %cst_139 = arith.constant dense<0.000000e+00> : vector<4x32xf32>
    %100 = tpu.matmul %97, %99, %cst_139 {dimension_numbers = #tpu.dot_dimension_numbers<[1], [0], [0], [1], [0, 0, 1, 1], [], []>} : vector<4x16xbf16>, vector<16x32xbf16>, vector<4x32xf32> -> vector<4x32xf32>
    %101 = arith.addf %95, %100 : vector<4x32xf32>
    %c0_140 = arith.constant 0 : index
    %c1_141 = arith.constant 1 : index
    %c2_142 = arith.constant 2 : index
    %c0_143 = arith.constant 0 : index
    %c0_144 = arith.constant 0 : index
    %102 = vector.load %arg1[%c0_140, %c1_141, %c2_142, %c0_143, %c0_144] : memref<1x4x5x5x16xbf16, #tpu.memory_space<vmem>>, vector<1x1x1x4x16xbf16>
    %103 = vector.shape_cast %102 : vector<1x1x1x4x16xbf16> to vector<4x16xbf16>
    %c7_145 = arith.constant 7 : index
    %c0_146 = arith.constant 0 : index
    %c0_147 = arith.constant 0 : index
    %104 = vector.load %arg2[%c7_145, %c0_146, %c0_147] : memref<9x16x32xbf16, #tpu.memory_space<vmem>>, vector<1x16x32xbf16>
    %105 = vector.shape_cast %104 : vector<1x16x32xbf16> to vector<16x32xbf16>
    %cst_148 = arith.constant dense<0.000000e+00> : vector<4x32xf32>
    %106 = tpu.matmul %103, %105, %cst_148 {dimension_numbers = #tpu.dot_dimension_numbers<[1], [0], [0], [1], [0, 0, 1, 1], [], []>} : vector<4x16xbf16>, vector<16x32xbf16>, vector<4x32xf32> -> vector<4x32xf32>
    %107 = arith.addf %101, %106 : vector<4x32xf32>
    %c0_149 = arith.constant 0 : index
    %c0_150 = arith.constant 0 : index
    %c2_151 = arith.constant 2 : index
    %c1_152 = arith.constant 1 : index
    %c0_153 = arith.constant 0 : index
    %108 = vector.load %arg1[%c0_149, %c0_150, %c2_151, %c1_152, %c0_153] : memref<1x4x5x5x16xbf16, #tpu.memory_space<vmem>>, vector<1x1x1x4x16xbf16>
    %109 = vector.shape_cast %108 : vector<1x1x1x4x16xbf16> to vector<4x16xbf16>
    %c8_154 = arith.constant 8 : index
    %c0_155 = arith.constant 0 : index
    %c0_156 = arith.constant 0 : index
    %110 = vector.load %arg2[%c8_154, %c0_155, %c0_156] : memref<9x16x32xbf16, #tpu.memory_space<vmem>>, vector<1x16x32xbf16>
    %111 = vector.shape_cast %110 : vector<1x16x32xbf16> to vector<16x32xbf16>
    %cst_157 = arith.constant dense<0.000000e+00> : vector<4x32xf32>
    %112 = tpu.matmul %109, %111, %cst_157 {dimension_numbers = #tpu.dot_dimension_numbers<[1], [0], [0], [1], [0, 0, 1, 1], [], []>} : vector<4x16xbf16>, vector<16x32xbf16>, vector<4x32xf32> -> vector<4x32xf32>
    %113 = arith.addf %107, %112 : vector<4x32xf32>
    %c0_158 = arith.constant 0 : index
    %c0_159 = arith.constant 0 : index
    %114 = vector.load %arg3[%c0_158, %c0_159] : memref<1x32xf32, #tpu.memory_space<vmem>>, vector<1x32xf32>
    %115 = vector.broadcast %114 : vector<1x32xf32> to vector<4x32xf32>
    %116 = arith.addf %113, %115 : vector<4x32xf32>
    %c4_160 = arith.constant 4 : index
    %c0_161 = arith.constant 0 : index
    %117 = vector.load %arg5[%c4_160, %c0_161] : memref<16x32xf32, #tpu.memory_space<vmem>>, vector<4x32xf32>
    tpu.vector_store %arg5[%c4_160, %c0_161], %116 {strides = array<i32>} : memref<16x32xf32, #tpu.memory_space<vmem>>, vector<4x32xf32>,
    %cst_162 = arith.constant 0.000000e+00 : f32
    %118 = vector.broadcast %cst_162 : f32 to vector<4x32xf32>
    %c0_163 = arith.constant 0 : index
    %c0_164 = arith.constant 0 : index
    %c2_165 = arith.constant 2 : index
    %c0_166 = arith.constant 0 : index
    %c0_167 = arith.constant 0 : index
    %119 = vector.load %arg1[%c0_163, %c0_164, %c2_165, %c0_166, %c0_167] : memref<1x4x5x5x16xbf16, #tpu.memory_space<vmem>>, vector<1x1x1x4x16xbf16>
    %120 = vector.shape_cast %119 : vector<1x1x1x4x16xbf16> to vector<4x16xbf16>
    %c0_168 = arith.constant 0 : index
    %c0_169 = arith.constant 0 : index
    %c0_170 = arith.constant 0 : index
    %121 = vector.load %arg2[%c0_168, %c0_169, %c0_170] : memref<9x16x32xbf16, #tpu.memory_space<vmem>>, vector<1x16x32xbf16>
    %122 = vector.shape_cast %121 : vector<1x16x32xbf16> to vector<16x32xbf16>
    %cst_171 = arith.constant dense<0.000000e+00> : vector<4x32xf32>
    %123 = tpu.matmul %120, %122, %cst_171 {dimension_numbers = #tpu.dot_dimension_numbers<[1], [0], [0], [1], [0, 0, 1, 1], [], []>} : vector<4x16xbf16>, vector<16x32xbf16>, vector<4x32xf32> -> vector<4x32xf32>
    %124 = arith.addf %118, %123 : vector<4x32xf32>
    %c0_172 = arith.constant 0 : index
    %c1_173 = arith.constant 1 : index
    %c2_174 = arith.constant 2 : index
    %c0_175 = arith.constant 0 : index
    %c0_176 = arith.constant 0 : index
    %125 = vector.load %arg1[%c0_172, %c1_173, %c2_174, %c0_175, %c0_176] : memref<1x4x5x5x16xbf16, #tpu.memory_space<vmem>>, vector<1x1x1x4x16xbf16>
    %126 = vector.shape_cast %125 : vector<1x1x1x4x16xbf16> to vector<4x16xbf16>
    %c1_177 = arith.constant 1 : index
    %c0_178 = arith.constant 0 : index
    %c0_179 = arith.constant 0 : index
    %127 = vector.load %arg2[%c1_177, %c0_178, %c0_179] : memref<9x16x32xbf16, #tpu.memory_space<vmem>>, vector<1x16x32xbf16>
    %128 = vector.shape_cast %127 : vector<1x16x32xbf16> to vector<16x32xbf16>
    %cst_180 = arith.constant dense<0.000000e+00> : vector<4x32xf32>
    %129 = tpu.matmul %126, %128, %cst_180 {dimension_numbers = #tpu.dot_dimension_numbers<[1], [0], [0], [1], [0, 0, 1, 1], [], []>} : vector<4x16xbf16>, vector<16x32xbf16>, vector<4x32xf32> -> vector<4x32xf32>
    %130 = arith.addf %124, %129 : vector<4x32xf32>
    %c0_181 = arith.constant 0 : index
    %c0_182 = arith.constant 0 : index
    %c2_183 = arith.constant 2 : index
    %c1_184 = arith.constant 1 : index
    %c0_185 = arith.constant 0 : index
    %131 = vector.load %arg1[%c0_181, %c0_182, %c2_183, %c1_184, %c0_185] : memref<1x4x5x5x16xbf16, #tpu.memory_space<vmem>>, vector<1x1x1x4x16xbf16>
    %132 = vector.shape_cast %131 : vector<1x1x1x4x16xbf16> to vector<4x16xbf16>
    %c2_186 = arith.constant 2 : index
    %c0_187 = arith.constant 0 : index
    %c0_188 = arith.constant 0 : index
    %133 = vector.load %arg2[%c2_186, %c0_187, %c0_188] : memref<9x16x32xbf16, #tpu.memory_space<vmem>>, vector<1x16x32xbf16>
    %134 = vector.shape_cast %133 : vector<1x16x32xbf16> to vector<16x32xbf16>
    %cst_189 = arith.constant dense<0.000000e+00> : vector<4x32xf32>
    %135 = tpu.matmul %132, %134, %cst_189 {dimension_numbers = #tpu.dot_dimension_numbers<[1], [0], [0], [1], [0, 0, 1, 1], [], []>} : vector<4x16xbf16>, vector<16x32xbf16>, vector<4x32xf32> -> vector<4x32xf32>
    %136 = arith.addf %130, %135 : vector<4x32xf32>
    %c0_190 = arith.constant 0 : index
    %c2_191 = arith.constant 2 : index
    %c2_192 = arith.constant 2 : index
    %c0_193 = arith.constant 0 : index
    %c0_194 = arith.constant 0 : index
    %137 = vector.load %arg1[%c0_190, %c2_191, %c2_192, %c0_193, %c0_194] : memref<1x4x5x5x16xbf16, #tpu.memory_space<vmem>>, vector<1x1x1x4x16xbf16>
    %138 = vector.shape_cast %137 : vector<1x1x1x4x16xbf16> to vector<4x16xbf16>
    %c3_195 = arith.constant 3 : index
    %c0_196 = arith.constant 0 : index
    %c0_197 = arith.constant 0 : index
    %139 = vector.load %arg2[%c3_195, %c0_196, %c0_197] : memref<9x16x32xbf16, #tpu.memory_space<vmem>>, vector<1x16x32xbf16>
    %140 = vector.shape_cast %139 : vector<1x16x32xbf16> to vector<16x32xbf16>
    %cst_198 = arith.constant dense<0.000000e+00> : vector<4x32xf32>
    %141 = tpu.matmul %138, %140, %cst_198 {dimension_numbers = #tpu.dot_dimension_numbers<[1], [0], [0], [1], [0, 0, 1, 1], [], []>} : vector<4x16xbf16>, vector<16x32xbf16>, vector<4x32xf32> -> vector<4x32xf32>
    %142 = arith.addf %136, %141 : vector<4x32xf32>
    %c0_199 = arith.constant 0 : index
    %c3_200 = arith.constant 3 : index
    %c2_201 = arith.constant 2 : index
    %c0_202 = arith.constant 0 : index
    %c0_203 = arith.constant 0 : index
    %143 = vector.load %arg1[%c0_199, %c3_200, %c2_201, %c0_202, %c0_203] : memref<1x4x5x5x16xbf16, #tpu.memory_space<vmem>>, vector<1x1x1x4x16xbf16>
    %144 = vector.shape_cast %143 : vector<1x1x1x4x16xbf16> to vector<4x16xbf16>
    %c4_204 = arith.constant 4 : index
    %c0_205 = arith.constant 0 : index
    %c0_206 = arith.constant 0 : index
    %145 = vector.load %arg2[%c4_204, %c0_205, %c0_206] : memref<9x16x32xbf16, #tpu.memory_space<vmem>>, vector<1x16x32xbf16>
    %146 = vector.shape_cast %145 : vector<1x16x32xbf16> to vector<16x32xbf16>
    %cst_207 = arith.constant dense<0.000000e+00> : vector<4x32xf32>
    %147 = tpu.matmul %144, %146, %cst_207 {dimension_numbers = #tpu.dot_dimension_numbers<[1], [0], [0], [1], [0, 0, 1, 1], [], []>} : vector<4x16xbf16>, vector<16x32xbf16>, vector<4x32xf32> -> vector<4x32xf32>
    %148 = arith.addf %142, %147 : vector<4x32xf32>
    %c0_208 = arith.constant 0 : index
    %c2_209 = arith.constant 2 : index
    %c2_210 = arith.constant 2 : index
    %c1_211 = arith.constant 1 : index
    %c0_212 = arith.constant 0 : index
    %149 = vector.load %arg1[%c0_208, %c2_209, %c2_210, %c1_211, %c0_212] : memref<1x4x5x5x16xbf16, #tpu.memory_space<vmem>>, vector<1x1x1x4x16xbf16>
    %150 = vector.shape_cast %149 : vector<1x1x1x4x16xbf16> to vector<4x16xbf16>
    %c5_213 = arith.constant 5 : index
    %c0_214 = arith.constant 0 : index
    %c0_215 = arith.constant 0 : index
    %151 = vector.load %arg2[%c5_213, %c0_214, %c0_215] : memref<9x16x32xbf16, #tpu.memory_space<vmem>>, vector<1x16x32xbf16>
    %152 = vector.shape_cast %151 : vector<1x16x32xbf16> to vector<16x32xbf16>
    %cst_216 = arith.constant dense<0.000000e+00> : vector<4x32xf32>
    %153 = tpu.matmul %150, %152, %cst_216 {dimension_numbers = #tpu.dot_dimension_numbers<[1], [0], [0], [1], [0, 0, 1, 1], [], []>} : vector<4x16xbf16>, vector<16x32xbf16>, vector<4x32xf32> -> vector<4x32xf32>
    %154 = arith.addf %148, %153 : vector<4x32xf32>
    %c0_217 = arith.constant 0 : index
    %c0_218 = arith.constant 0 : index
    %c3_219 = arith.constant 3 : index
    %c0_220 = arith.constant 0 : index
    %c0_221 = arith.constant 0 : index
    %155 = vector.load %arg1[%c0_217, %c0_218, %c3_219, %c0_220, %c0_221] : memref<1x4x5x5x16xbf16, #tpu.memory_space<vmem>>, vector<1x1x1x4x16xbf16>
    %156 = vector.shape_cast %155 : vector<1x1x1x4x16xbf16> to vector<4x16xbf16>
    %c6_222 = arith.constant 6 : index
    %c0_223 = arith.constant 0 : index
    %c0_224 = arith.constant 0 : index
    %157 = vector.load %arg2[%c6_222, %c0_223, %c0_224] : memref<9x16x32xbf16, #tpu.memory_space<vmem>>, vector<1x16x32xbf16>
    %158 = vector.shape_cast %157 : vector<1x16x32xbf16> to vector<16x32xbf16>
    %cst_225 = arith.constant dense<0.000000e+00> : vector<4x32xf32>
    %159 = tpu.matmul %156, %158, %cst_225 {dimension_numbers = #tpu.dot_dimension_numbers<[1], [0], [0], [1], [0, 0, 1, 1], [], []>} : vector<4x16xbf16>, vector<16x32xbf16>, vector<4x32xf32> -> vector<4x32xf32>
    %160 = arith.addf %154, %159 : vector<4x32xf32>
    %c0_226 = arith.constant 0 : index
    %c1_227 = arith.constant 1 : index
    %c3_228 = arith.constant 3 : index
    %c0_229 = arith.constant 0 : index
    %c0_230 = arith.constant 0 : index
    %161 = vector.load %arg1[%c0_226, %c1_227, %c3_228, %c0_229, %c0_230] : memref<1x4x5x5x16xbf16, #tpu.memory_space<vmem>>, vector<1x1x1x4x16xbf16>
    %162 = vector.shape_cast %161 : vector<1x1x1x4x16xbf16> to vector<4x16xbf16>
    %c7_231 = arith.constant 7 : index
    %c0_232 = arith.constant 0 : index
    %c0_233 = arith.constant 0 : index
    %163 = vector.load %arg2[%c7_231, %c0_232, %c0_233] : memref<9x16x32xbf16, #tpu.memory_space<vmem>>, vector<1x16x32xbf16>
    %164 = vector.shape_cast %163 : vector<1x16x32xbf16> to vector<16x32xbf16>
    %cst_234 = arith.constant dense<0.000000e+00> : vector<4x32xf32>
    %165 = tpu.matmul %162, %164, %cst_234 {dimension_numbers = #tpu.dot_dimension_numbers<[1], [0], [0], [1], [0, 0, 1, 1], [], []>} : vector<4x16xbf16>, vector<16x32xbf16>, vector<4x32xf32> -> vector<4x32xf32>
    %166 = arith.addf %160, %165 : vector<4x32xf32>
    %c0_235 = arith.constant 0 : index
    %c0_236 = arith.constant 0 : index
    %c3_237 = arith.constant 3 : index
    %c1_238 = arith.constant 1 : index
    %c0_239 = arith.constant 0 : index
    %167 = vector.load %arg1[%c0_235, %c0_236, %c3_237, %c1_238, %c0_239] : memref<1x4x5x5x16xbf16, #tpu.memory_space<vmem>>, vector<1x1x1x4x16xbf16>
    %168 = vector.shape_cast %167 : vector<1x1x1x4x16xbf16> to vector<4x16xbf16>
    %c8_240 = arith.constant 8 : index
    %c0_241 = arith.constant 0 : index
    %c0_242 = arith.constant 0 : index
    %169 = vector.load %arg2[%c8_240, %c0_241, %c0_242] : memref<9x16x32xbf16, #tpu.memory_space<vmem>>, vector<1x16x32xbf16>
    %170 = vector.shape_cast %169 : vector<1x16x32xbf16> to vector<16x32xbf16>
    %cst_243 = arith.constant dense<0.000000e+00> : vector<4x32xf32>
    %171 = tpu.matmul %168, %170, %cst_243 {dimension_numbers = #tpu.dot_dimension_numbers<[1], [0], [0], [1], [0, 0, 1, 1], [], []>} : vector<4x16xbf16>, vector<16x32xbf16>, vector<4x32xf32> -> vector<4x32xf32>
    %172 = arith.addf %166, %171 : vector<4x32xf32>
    %c0_244 = arith.constant 0 : index
    %c0_245 = arith.constant 0 : index
    %173 = vector.load %arg3[%c0_244, %c0_245] : memref<1x32xf32, #tpu.memory_space<vmem>>, vector<1x32xf32>
    %174 = vector.broadcast %173 : vector<1x32xf32> to vector<4x32xf32>
    %175 = arith.addf %172, %174 : vector<4x32xf32>
    %c8_246 = arith.constant 8 : index
    %c0_247 = arith.constant 0 : index
    %176 = vector.load %arg5[%c8_246, %c0_247] : memref<16x32xf32, #tpu.memory_space<vmem>>, vector<4x32xf32>
    tpu.vector_store %arg5[%c8_246, %c0_247], %175 {strides = array<i32>} : memref<16x32xf32, #tpu.memory_space<vmem>>, vector<4x32xf32>,
    %cst_248 = arith.constant 0.000000e+00 : f32
    %177 = vector.broadcast %cst_248 : f32 to vector<4x32xf32>
    %c0_249 = arith.constant 0 : index
    %c0_250 = arith.constant 0 : index
    %c3_251 = arith.constant 3 : index
    %c0_252 = arith.constant 0 : index
    %c0_253 = arith.constant 0 : index
    %178 = vector.load %arg1[%c0_249, %c0_250, %c3_251, %c0_252, %c0_253] : memref<1x4x5x5x16xbf16, #tpu.memory_space<vmem>>, vector<1x1x1x4x16xbf16>
    %179 = vector.shape_cast %178 : vector<1x1x1x4x16xbf16> to vector<4x16xbf16>
    %c0_254 = arith.constant 0 : index
    %c0_255 = arith.constant 0 : index
    %c0_256 = arith.constant 0 : index
    %180 = vector.load %arg2[%c0_254, %c0_255, %c0_256] : memref<9x16x32xbf16, #tpu.memory_space<vmem>>, vector<1x16x32xbf16>
    %181 = vector.shape_cast %180 : vector<1x16x32xbf16> to vector<16x32xbf16>
    %cst_257 = arith.constant dense<0.000000e+00> : vector<4x32xf32>
    %182 = tpu.matmul %179, %181, %cst_257 {dimension_numbers = #tpu.dot_dimension_numbers<[1], [0], [0], [1], [0, 0, 1, 1], [], []>} : vector<4x16xbf16>, vector<16x32xbf16>, vector<4x32xf32> -> vector<4x32xf32>
    %183 = arith.addf %177, %182 : vector<4x32xf32>
    %c0_258 = arith.constant 0 : index
    %c1_259 = arith.constant 1 : index
    %c3_260 = arith.constant 3 : index
    %c0_261 = arith.constant 0 : index
    %c0_262 = arith.constant 0 : index
    %184 = vector.load %arg1[%c0_258, %c1_259, %c3_260, %c0_261, %c0_262] : memref<1x4x5x5x16xbf16, #tpu.memory_space<vmem>>, vector<1x1x1x4x16xbf16>
    %185 = vector.shape_cast %184 : vector<1x1x1x4x16xbf16> to vector<4x16xbf16>
    %c1_263 = arith.constant 1 : index
    %c0_264 = arith.constant 0 : index
    %c0_265 = arith.constant 0 : index
    %186 = vector.load %arg2[%c1_263, %c0_264, %c0_265] : memref<9x16x32xbf16, #tpu.memory_space<vmem>>, vector<1x16x32xbf16>
    %187 = vector.shape_cast %186 : vector<1x16x32xbf16> to vector<16x32xbf16>
    %cst_266 = arith.constant dense<0.000000e+00> : vector<4x32xf32>
    %188 = tpu.matmul %185, %187, %cst_266 {dimension_numbers = #tpu.dot_dimension_numbers<[1], [0], [0], [1], [0, 0, 1, 1], [], []>} : vector<4x16xbf16>, vector<16x32xbf16>, vector<4x32xf32> -> vector<4x32xf32>
    %189 = arith.addf %183, %188 : vector<4x32xf32>
    %c0_267 = arith.constant 0 : index
    %c0_268 = arith.constant 0 : index
    %c3_269 = arith.constant 3 : index
    %c1_270 = arith.constant 1 : index
    %c0_271 = arith.constant 0 : index
    %190 = vector.load %arg1[%c0_267, %c0_268, %c3_269, %c1_270, %c0_271] : memref<1x4x5x5x16xbf16, #tpu.memory_space<vmem>>, vector<1x1x1x4x16xbf16>
    %191 = vector.shape_cast %190 : vector<1x1x1x4x16xbf16> to vector<4x16xbf16>
    %c2_272 = arith.constant 2 : index
    %c0_273 = arith.constant 0 : index
    %c0_274 = arith.constant 0 : index
    %192 = vector.load %arg2[%c2_272, %c0_273, %c0_274] : memref<9x16x32xbf16, #tpu.memory_space<vmem>>, vector<1x16x32xbf16>
    %193 = vector.shape_cast %192 : vector<1x16x32xbf16> to vector<16x32xbf16>
    %cst_275 = arith.constant dense<0.000000e+00> : vector<4x32xf32>
    %194 = tpu.matmul %191, %193, %cst_275 {dimension_numbers = #tpu.dot_dimension_numbers<[1], [0], [0], [1], [0, 0, 1, 1], [], []>} : vector<4x16xbf16>, vector<16x32xbf16>, vector<4x32xf32> -> vector<4x32xf32>
    %195 = arith.addf %189, %194 : vector<4x32xf32>
    %c0_276 = arith.constant 0 : index
    %c2_277 = arith.constant 2 : index
    %c3_278 = arith.constant 3 : index
    %c0_279 = arith.constant 0 : index
    %c0_280 = arith.constant 0 : index
    %196 = vector.load %arg1[%c0_276, %c2_277, %c3_278, %c0_279, %c0_280] : memref<1x4x5x5x16xbf16, #tpu.memory_space<vmem>>, vector<1x1x1x4x16xbf16>
    %197 = vector.shape_cast %196 : vector<1x1x1x4x16xbf16> to vector<4x16xbf16>
    %c3_281 = arith.constant 3 : index
    %c0_282 = arith.constant 0 : index
    %c0_283 = arith.constant 0 : index
    %198 = vector.load %arg2[%c3_281, %c0_282, %c0_283] : memref<9x16x32xbf16, #tpu.memory_space<vmem>>, vector<1x16x32xbf16>
    %199 = vector.shape_cast %198 : vector<1x16x32xbf16> to vector<16x32xbf16>
    %cst_284 = arith.constant dense<0.000000e+00> : vector<4x32xf32>
    %200 = tpu.matmul %197, %199, %cst_284 {dimension_numbers = #tpu.dot_dimension_numbers<[1], [0], [0], [1], [0, 0, 1, 1], [], []>} : vector<4x16xbf16>, vector<16x32xbf16>, vector<4x32xf32> -> vector<4x32xf32>
    %201 = arith.addf %195, %200 : vector<4x32xf32>
    %c0_285 = arith.constant 0 : index
    %c3_286 = arith.constant 3 : index
    %c3_287 = arith.constant 3 : index
    %c0_288 = arith.constant 0 : index
    %c0_289 = arith.constant 0 : index
    %202 = vector.load %arg1[%c0_285, %c3_286, %c3_287, %c0_288, %c0_289] : memref<1x4x5x5x16xbf16, #tpu.memory_space<vmem>>, vector<1x1x1x4x16xbf16>
    %203 = vector.shape_cast %202 : vector<1x1x1x4x16xbf16> to vector<4x16xbf16>
    %c4_290 = arith.constant 4 : index
    %c0_291 = arith.constant 0 : index
    %c0_292 = arith.constant 0 : index
    %204 = vector.load %arg2[%c4_290, %c0_291, %c0_292] : memref<9x16x32xbf16, #tpu.memory_space<vmem>>, vector<1x16x32xbf16>
    %205 = vector.shape_cast %204 : vector<1x16x32xbf16> to vector<16x32xbf16>
    %cst_293 = arith.constant dense<0.000000e+00> : vector<4x32xf32>
    %206 = tpu.matmul %203, %205, %cst_293 {dimension_numbers = #tpu.dot_dimension_numbers<[1], [0], [0], [1], [0, 0, 1, 1], [], []>} : vector<4x16xbf16>, vector<16x32xbf16>, vector<4x32xf32> -> vector<4x32xf32>
    %207 = arith.addf %201, %206 : vector<4x32xf32>
    %c0_294 = arith.constant 0 : index
    %c2_295 = arith.constant 2 : index
    %c3_296 = arith.constant 3 : index
    %c1_297 = arith.constant 1 : index
    %c0_298 = arith.constant 0 : index
    %208 = vector.load %arg1[%c0_294, %c2_295, %c3_296, %c1_297, %c0_298] : memref<1x4x5x5x16xbf16, #tpu.memory_space<vmem>>, vector<1x1x1x4x16xbf16>
    %209 = vector.shape_cast %208 : vector<1x1x1x4x16xbf16> to vector<4x16xbf16>
    %c5_299 = arith.constant 5 : index
    %c0_300 = arith.constant 0 : index
    %c0_301 = arith.constant 0 : index
    %210 = vector.load %arg2[%c5_299, %c0_300, %c0_301] : memref<9x16x32xbf16, #tpu.memory_space<vmem>>, vector<1x16x32xbf16>
    %211 = vector.shape_cast %210 : vector<1x16x32xbf16> to vector<16x32xbf16>
    %cst_302 = arith.constant dense<0.000000e+00> : vector<4x32xf32>
    %212 = tpu.matmul %209, %211, %cst_302 {dimension_numbers = #tpu.dot_dimension_numbers<[1], [0], [0], [1], [0, 0, 1, 1], [], []>} : vector<4x16xbf16>, vector<16x32xbf16>, vector<4x32xf32> -> vector<4x32xf32>
    %213 = arith.addf %207, %212 : vector<4x32xf32>
    %c0_303 = arith.constant 0 : index
    %c0_304 = arith.constant 0 : index
    %c4_305 = arith.constant 4 : index
    %c0_306 = arith.constant 0 : index
    %c0_307 = arith.constant 0 : index
    %214 = vector.load %arg1[%c0_303, %c0_304, %c4_305, %c0_306, %c0_307] : memref<1x4x5x5x16xbf16, #tpu.memory_space<vmem>>, vector<1x1x1x4x16xbf16>
    %215 = vector.shape_cast %214 : vector<1x1x1x4x16xbf16> to vector<4x16xbf16>
    %c6_308 = arith.constant 6 : index
    %c0_309 = arith.constant 0 : index
    %c0_310 = arith.constant 0 : index
    %216 = vector.load %arg2[%c6_308, %c0_309, %c0_310] : memref<9x16x32xbf16, #tpu.memory_space<vmem>>, vector<1x16x32xbf16>
    %217 = vector.shape_cast %216 : vector<1x16x32xbf16> to vector<16x32xbf16>
    %cst_311 = arith.constant dense<0.000000e+00> : vector<4x32xf32>
    %218 = tpu.matmul %215, %217, %cst_311 {dimension_numbers = #tpu.dot_dimension_numbers<[1], [0], [0], [1], [0, 0, 1, 1], [], []>} : vector<4x16xbf16>, vector<16x32xbf16>, vector<4x32xf32> -> vector<4x32xf32>
    %219 = arith.addf %213, %218 : vector<4x32xf32>
    %c0_312 = arith.constant 0 : index
    %c1_313 = arith.constant 1 : index
    %c4_314 = arith.constant 4 : index
    %c0_315 = arith.constant 0 : index
    %c0_316 = arith.constant 0 : index
    %220 = vector.load %arg1[%c0_312, %c1_313, %c4_314, %c0_315, %c0_316] : memref<1x4x5x5x16xbf16, #tpu.memory_space<vmem>>, vector<1x1x1x4x16xbf16>
    %221 = vector.shape_cast %220 : vector<1x1x1x4x16xbf16> to vector<4x16xbf16>
    %c7_317 = arith.constant 7 : index
    %c0_318 = arith.constant 0 : index
    %c0_319 = arith.constant 0 : index
    %222 = vector.load %arg2[%c7_317, %c0_318, %c0_319] : memref<9x16x32xbf16, #tpu.memory_space<vmem>>, vector<1x16x32xbf16>
    %223 = vector.shape_cast %222 : vector<1x16x32xbf16> to vector<16x32xbf16>
    %cst_320 = arith.constant dense<0.000000e+00> : vector<4x32xf32>
    %224 = tpu.matmul %221, %223, %cst_320 {dimension_numbers = #tpu.dot_dimension_numbers<[1], [0], [0], [1], [0, 0, 1, 1], [], []>} : vector<4x16xbf16>, vector<16x32xbf16>, vector<4x32xf32> -> vector<4x32xf32>
    %225 = arith.addf %219, %224 : vector<4x32xf32>
    %c0_321 = arith.constant 0 : index
    %c0_322 = arith.constant 0 : index
    %c4_323 = arith.constant 4 : index
    %c1_324 = arith.constant 1 : index
    %c0_325 = arith.constant 0 : index
    %226 = vector.load %arg1[%c0_321, %c0_322, %c4_323, %c1_324, %c0_325] : memref<1x4x5x5x16xbf16, #tpu.memory_space<vmem>>, vector<1x1x1x4x16xbf16>
    %227 = vector.shape_cast %226 : vector<1x1x1x4x16xbf16> to vector<4x16xbf16>
    %c8_326 = arith.constant 8 : index
    %c0_327 = arith.constant 0 : index
    %c0_328 = arith.constant 0 : index
    %228 = vector.load %arg2[%c8_326, %c0_327, %c0_328] : memref<9x16x32xbf16, #tpu.memory_space<vmem>>, vector<1x16x32xbf16>
    %229 = vector.shape_cast %228 : vector<1x16x32xbf16> to vector<16x32xbf16>
    %cst_329 = arith.constant dense<0.000000e+00> : vector<4x32xf32>
    %230 = tpu.matmul %227, %229, %cst_329 {dimension_numbers = #tpu.dot_dimension_numbers<[1], [0], [0], [1], [0, 0, 1, 1], [], []>} : vector<4x16xbf16>, vector<16x32xbf16>, vector<4x32xf32> -> vector<4x32xf32>
    %231 = arith.addf %225, %230 : vector<4x32xf32>
    %c0_330 = arith.constant 0 : index
    %c0_331 = arith.constant 0 : index
    %232 = vector.load %arg3[%c0_330, %c0_331] : memref<1x32xf32, #tpu.memory_space<vmem>>, vector<1x32xf32>
    %233 = vector.broadcast %232 : vector<1x32xf32> to vector<4x32xf32>
    %234 = arith.addf %231, %233 : vector<4x32xf32>
    %c12 = arith.constant 12 : index
    %c0_332 = arith.constant 0 : index
    %235 = vector.load %arg5[%c12, %c0_332] : memref<16x32xf32, #tpu.memory_space<vmem>>, vector<4x32xf32>
    tpu.vector_store %arg5[%c12, %c0_332], %234 {strides = array<i32>} : memref<16x32xf32, #tpu.memory_space<vmem>>, vector<4x32xf32>,
    %c0_333 = arith.constant 0 : index
    %c0_334 = arith.constant 0 : index
    %236 = vector.load %arg5[%c0_333, %c0_334] : memref<16x32xf32, #tpu.memory_space<vmem>>, vector<16x32xf32>
    %cst_335 = arith.constant dense<0.000000e+00> : vector<32xf32>
    %237 = vector.multi_reduction <add>, %236, %cst_335 [0] : vector<16x32xf32> to vector<32xf32>
    %238 = vector.shape_cast %237 : vector<32xf32> to vector<1x32xf32>
    %cst_336 = arith.constant 6.250000e-02 : f32
    %239 = vector.broadcast %cst_336 : f32 to vector<1x32xf32>
    %240 = arith.mulf %238, %239 : vector<1x32xf32>
    %241 = vector.broadcast %240 : vector<1x32xf32> to vector<16x32xf32>
    %242 = arith.subf %236, %241 : vector<16x32xf32>
    %243 = arith.mulf %242, %242 : vector<16x32xf32>
    %cst_337 = arith.constant dense<0.000000e+00> : vector<32xf32>
    %244 = vector.multi_reduction <add>, %243, %cst_337 [0] : vector<16x32xf32> to vector<32xf32>
    %245 = vector.shape_cast %244 : vector<32xf32> to vector<1x32xf32>
    %cst_338 = arith.constant 6.250000e-02 : f32
    %246 = vector.broadcast %cst_338 : f32 to vector<1x32xf32>
    %247 = arith.mulf %245, %246 : vector<1x32xf32>
    %cst_339 = arith.constant 9.99999974E-6 : f32
    %248 = vector.broadcast %cst_339 : f32 to vector<1x32xf32>
    %249 = arith.addf %247, %248 : vector<1x32xf32>
    %250 = math.rsqrt %249 : vector<1x32xf32>
    %251 = vector.broadcast %250 : vector<1x32xf32> to vector<16x32xf32>
    %252 = arith.mulf %242, %251 : vector<16x32xf32>
    %cst_340 = arith.constant 0.000000e+00 : f32
    %253 = vector.broadcast %cst_340 : f32 to vector<16x32xf32>
    %254 = arith.cmpf ogt, %252, %253 : vector<16x32xf32>
    %cst_341 = arith.constant 2.000000e-01 : f32
    %255 = vector.broadcast %cst_341 : f32 to vector<16x32xf32>
    %256 = arith.mulf %255, %252 : vector<16x32xf32>
    %257 = arith.select %254, %252, %256 : vector<16x32xi1>, vector<16x32xf32>
    %258 = arith.truncf %257 : vector<16x32xf32> to vector<16x32xbf16>
    %c0_342 = arith.constant 0 : index
    %c0_343 = arith.constant 0 : index
    %c0_344 = arith.constant 0 : index
    %259 = vector.load %arg4[%c0_342, %c0_343, %c0_344] : memref<1x16x32xbf16, #tpu.memory_space<vmem>>, vector<1x16x32xbf16>
    %260 = vector.shape_cast %259 : vector<1x16x32xbf16> to vector<16x32xbf16>
    %261 = vector.shape_cast %258 : vector<16x32xbf16> to vector<1x16x32xbf16>
    tpu.vector_store %arg4[%c0_342, %c0_343, %c0_344], %261 {strides = array<i32>} : memref<1x16x32xbf16, #tpu.memory_space<vmem>>, vector<1x16x32xbf16>,
    return
  }
  func.func @transform_0(%arg0: i32) -> (i32, i32, i32, i32, i32) {
    %c0_i32 = arith.constant 0 : i32
    %c0_i32_0 = arith.constant 0 : i32
    %c0_i32_1 = arith.constant 0 : i32
    %c0_i32_2 = arith.constant 0 : i32
    %c0_i32_3 = arith.constant 0 : i32
    return %arg0, %c0_i32, %c0_i32_0, %c0_i32_1, %c0_i32_2 : i32, i32, i32, i32, i32
  }
  func.func @transform_1(%arg0: i32) -> (i32, i32, i32) {
    %c0_i32 = arith.constant 0 : i32
    %c0_i32_0 = arith.constant 0 : i32
    %c0_i32_1 = arith.constant 0 : i32
    %c0_i32_2 = arith.constant 0 : i32
    return %c0_i32, %c0_i32_0, %c0_i32_1 : i32, i32, i32
  }
  func.func @transform_2(%arg0: i32) -> (i32, i32) {
    %c0_i32 = arith.constant 0 : i32
    %c0_i32_0 = arith.constant 0 : i32
    %c0_i32_1 = arith.constant 0 : i32
    return %c0_i32, %c0_i32_0 : i32, i32
  }
  func.func @transform_3(%arg0: i32) -> (i32, i32, i32) {
    %c0_i32 = arith.constant 0 : i32
    %c0_i32_0 = arith.constant 0 : i32
    %c0_i32_1 = arith.constant 0 : i32
    return %arg0, %c0_i32, %c0_i32_0 : i32, i32, i32
  }
}

module attributes {stable_mosaic.version = 11 : i64} {
  func.func @_fc_kernel(%arg0: i32, %arg1: i32, %arg2: memref<2x256xbf16, #tpu.memory_space<vmem>>, %arg3: memref<256x64xbf16, #tpu.memory_space<vmem>>, %arg4: memref<1x64xf32, #tpu.memory_space<vmem>>, %arg5: memref<2x64xbf16, #tpu.memory_space<vmem>>, %arg6: memref<2x64xf32, #tpu.memory_space<vmem>>) attributes {dimension_semantics = [#tpu.dimension_semantics<parallel>, #tpu.dimension_semantics<arbitrary>], iteration_bounds = array<i64: 1, 2>, scalar_prefetch = 0 : i64, scratch_operands = 1 : i64, tpu.core_type = #tpu.core_type<tc>, window_params = [{transform_indices = @transform_0, window_bounds = array<i64: 2, 256>}, {transform_indices = @transform_1, window_bounds = array<i64: 256, 64>}, {transform_indices = @transform_2, window_bounds = array<i64: 1, 64>}, {transform_indices = @transform_3, window_bounds = array<i64: 2, 64>}]} {
    %c0_i32 = arith.constant 0 : i32
    %0 = arith.cmpi eq, %arg1, %c0_i32 : i32
    %1 = arith.extui %0 : i1 to i32
    %c0_i32_0 = arith.constant 0 : i32
    %2 = arith.cmpi ne, %1, %c0_i32_0 : i32
    scf.if %2 {
      %cst_9 = arith.constant 0.000000e+00 : f32
      %12 = vector.broadcast %cst_9 : f32 to vector<2x64xf32>
      %c0_10 = arith.constant 0 : index
      %c0_11 = arith.constant 0 : index
      %13 = vector.load %arg6[%c0_10, %c0_11] : memref<2x64xf32, #tpu.memory_space<vmem>>, vector<2x64xf32>
      tpu.vector_store %arg6[%c0_10, %c0_11], %12 {strides = array<i32>} : memref<2x64xf32, #tpu.memory_space<vmem>>, vector<2x64xf32>,
    } else {
    }
    %c0 = arith.constant 0 : index
    %c0_1 = arith.constant 0 : index
    %3 = vector.load %arg6[%c0, %c0_1] : memref<2x64xf32, #tpu.memory_space<vmem>>, vector<2x64xf32>
    %c0_2 = arith.constant 0 : index
    %c0_3 = arith.constant 0 : index
    %4 = vector.load %arg2[%c0_2, %c0_3] : memref<2x256xbf16, #tpu.memory_space<vmem>>, vector<2x256xbf16>
    %c0_4 = arith.constant 0 : index
    %c0_5 = arith.constant 0 : index
    %5 = vector.load %arg3[%c0_4, %c0_5] : memref<256x64xbf16, #tpu.memory_space<vmem>>, vector<256x64xbf16>
    %cst = arith.constant dense<0.000000e+00> : vector<2x64xf32>
    %6 = tpu.matmul %4, %5, %cst {dimension_numbers = #tpu.dot_dimension_numbers<[1], [0], [0], [1], [0, 0, 1, 1], [], []>} : vector<2x256xbf16>, vector<256x64xbf16>, vector<2x64xf32> -> vector<2x64xf32>
    %7 = arith.addf %3, %6 : vector<2x64xf32>
    %c0_6 = arith.constant 0 : index
    %c0_7 = arith.constant 0 : index
    %8 = vector.load %arg6[%c0_6, %c0_7] : memref<2x64xf32, #tpu.memory_space<vmem>>, vector<2x64xf32>
    tpu.vector_store %arg6[%c0_6, %c0_7], %7 {strides = array<i32>} : memref<2x64xf32, #tpu.memory_space<vmem>>, vector<2x64xf32>,
    %c1_i32 = arith.constant 1 : i32
    %9 = arith.cmpi eq, %arg1, %c1_i32 : i32
    %10 = arith.extui %9 : i1 to i32
    %c0_i32_8 = arith.constant 0 : i32
    %11 = arith.cmpi ne, %10, %c0_i32_8 : i32
    scf.if %11 {
      %c0_9 = arith.constant 0 : index
      %c0_10 = arith.constant 0 : index
      %12 = vector.load %arg6[%c0_9, %c0_10] : memref<2x64xf32, #tpu.memory_space<vmem>>, vector<2x64xf32>
      %c0_11 = arith.constant 0 : index
      %c0_12 = arith.constant 0 : index
      %13 = vector.load %arg4[%c0_11, %c0_12] : memref<1x64xf32, #tpu.memory_space<vmem>>, vector<1x64xf32>
      %14 = vector.broadcast %13 : vector<1x64xf32> to vector<2x64xf32>
      %15 = arith.addf %12, %14 : vector<2x64xf32>
      %cst_13 = arith.constant 0.000000e+00 : f32
      %16 = vector.broadcast %cst_13 : f32 to vector<2x64xf32>
      %17 = arith.cmpf ogt, %15, %16 : vector<2x64xf32>
      %cst_14 = arith.constant 2.000000e-01 : f32
      %18 = vector.broadcast %cst_14 : f32 to vector<2x64xf32>
      %19 = arith.mulf %18, %15 : vector<2x64xf32>
      %20 = arith.select %17, %15, %19 : vector<2x64xi1>, vector<2x64xf32>
      %21 = arith.truncf %20 : vector<2x64xf32> to vector<2x64xbf16>
      %c0_15 = arith.constant 0 : index
      %c0_16 = arith.constant 0 : index
      %22 = vector.load %arg5[%c0_15, %c0_16] : memref<2x64xbf16, #tpu.memory_space<vmem>>, vector<2x64xbf16>
      tpu.vector_store %arg5[%c0_15, %c0_16], %21 {strides = array<i32>} : memref<2x64xbf16, #tpu.memory_space<vmem>>, vector<2x64xbf16>,
    } else {
    }
    return
  }
  func.func @transform_0(%arg0: i32, %arg1: i32) -> (i32, i32) {
    %c0_i32 = arith.constant 0 : i32
    %c0_i32_0 = arith.constant 0 : i32
    return %c0_i32, %arg1 : i32, i32
  }
  func.func @transform_1(%arg0: i32, %arg1: i32) -> (i32, i32) {
    %c0_i32 = arith.constant 0 : i32
    return %arg1, %arg0 : i32, i32
  }
  func.func @transform_2(%arg0: i32, %arg1: i32) -> (i32, i32) {
    %c0_i32 = arith.constant 0 : i32
    %c0_i32_0 = arith.constant 0 : i32
    return %c0_i32, %arg0 : i32, i32
  }
  func.func @transform_3(%arg0: i32, %arg1: i32) -> (i32, i32) {
    %c0_i32 = arith.constant 0 : i32
    %c0_i32_0 = arith.constant 0 : i32
    return %c0_i32, %arg0 : i32, i32
  }
}

module attributes {stable_mosaic.version = 11 : i64} {
  func.func @_fc_kernel(%arg0: i32, %arg1: i32, %arg2: memref<2x64xbf16, #tpu.memory_space<vmem>>, %arg3: memref<64x64xbf16, #tpu.memory_space<vmem>>, %arg4: memref<1x64xf32, #tpu.memory_space<vmem>>, %arg5: memref<2x64xf32, #tpu.memory_space<vmem>>, %arg6: memref<2x64xf32, #tpu.memory_space<vmem>>) attributes {dimension_semantics = [#tpu.dimension_semantics<parallel>, #tpu.dimension_semantics<arbitrary>], iteration_bounds = array<i64: 1, 1>, scalar_prefetch = 0 : i64, scratch_operands = 1 : i64, tpu.core_type = #tpu.core_type<tc>, window_params = [{transform_indices = @transform_0, window_bounds = array<i64: 2, 64>}, {transform_indices = @transform_1, window_bounds = array<i64: 64, 64>}, {transform_indices = @transform_2, window_bounds = array<i64: 1, 64>}, {transform_indices = @transform_3, window_bounds = array<i64: 2, 64>}]} {
    %c0_i32 = arith.constant 0 : i32
    %0 = arith.cmpi eq, %arg1, %c0_i32 : i32
    %1 = arith.extui %0 : i1 to i32
    %c0_i32_0 = arith.constant 0 : i32
    %2 = arith.cmpi ne, %1, %c0_i32_0 : i32
    scf.if %2 {
      %cst_10 = arith.constant 0.000000e+00 : f32
      %12 = vector.broadcast %cst_10 : f32 to vector<2x64xf32>
      %c0_11 = arith.constant 0 : index
      %c0_12 = arith.constant 0 : index
      %13 = vector.load %arg6[%c0_11, %c0_12] : memref<2x64xf32, #tpu.memory_space<vmem>>, vector<2x64xf32>
      tpu.vector_store %arg6[%c0_11, %c0_12], %12 {strides = array<i32>} : memref<2x64xf32, #tpu.memory_space<vmem>>, vector<2x64xf32>,
    } else {
    }
    %c0 = arith.constant 0 : index
    %c0_1 = arith.constant 0 : index
    %3 = vector.load %arg6[%c0, %c0_1] : memref<2x64xf32, #tpu.memory_space<vmem>>, vector<2x64xf32>
    %c0_2 = arith.constant 0 : index
    %c0_3 = arith.constant 0 : index
    %4 = vector.load %arg2[%c0_2, %c0_3] : memref<2x64xbf16, #tpu.memory_space<vmem>>, vector<2x64xbf16>
    %c0_4 = arith.constant 0 : index
    %c0_5 = arith.constant 0 : index
    %5 = vector.load %arg3[%c0_4, %c0_5] : memref<64x64xbf16, #tpu.memory_space<vmem>>, vector<64x64xbf16>
    %cst = arith.constant dense<0.000000e+00> : vector<2x64xf32>
    %6 = tpu.matmul %4, %5, %cst {dimension_numbers = #tpu.dot_dimension_numbers<[1], [0], [0], [1], [0, 0, 1, 1], [], []>} : vector<2x64xbf16>, vector<64x64xbf16>, vector<2x64xf32> -> vector<2x64xf32>
    %7 = arith.addf %3, %6 : vector<2x64xf32>
    %c0_6 = arith.constant 0 : index
    %c0_7 = arith.constant 0 : index
    %8 = vector.load %arg6[%c0_6, %c0_7] : memref<2x64xf32, #tpu.memory_space<vmem>>, vector<2x64xf32>
    tpu.vector_store %arg6[%c0_6, %c0_7], %7 {strides = array<i32>} : memref<2x64xf32, #tpu.memory_space<vmem>>, vector<2x64xf32>,
    %c0_i32_8 = arith.constant 0 : i32
    %9 = arith.cmpi eq, %arg1, %c0_i32_8 : i32
    %10 = arith.extui %9 : i1 to i32
    %c0_i32_9 = arith.constant 0 : i32
    %11 = arith.cmpi ne, %10, %c0_i32_9 : i32
    scf.if %11 {
      %c0_10 = arith.constant 0 : index
      %c0_11 = arith.constant 0 : index
      %12 = vector.load %arg6[%c0_10, %c0_11] : memref<2x64xf32, #tpu.memory_space<vmem>>, vector<2x64xf32>
      %c0_12 = arith.constant 0 : index
      %c0_13 = arith.constant 0 : index
      %13 = vector.load %arg4[%c0_12, %c0_13] : memref<1x64xf32, #tpu.memory_space<vmem>>, vector<1x64xf32>
      %14 = vector.broadcast %13 : vector<1x64xf32> to vector<2x64xf32>
      %15 = arith.addf %12, %14 : vector<2x64xf32>
      %c0_14 = arith.constant 0 : index
      %c0_15 = arith.constant 0 : index
      %16 = vector.load %arg5[%c0_14, %c0_15] : memref<2x64xf32, #tpu.memory_space<vmem>>, vector<2x64xf32>
      tpu.vector_store %arg5[%c0_14, %c0_15], %15 {strides = array<i32>} : memref<2x64xf32, #tpu.memory_space<vmem>>, vector<2x64xf32>,
    } else {
    }
    return
  }
  func.func @transform_0(%arg0: i32, %arg1: i32) -> (i32, i32) {
    %c0_i32 = arith.constant 0 : i32
    %c0_i32_0 = arith.constant 0 : i32
    return %c0_i32, %arg1 : i32, i32
  }
  func.func @transform_1(%arg0: i32, %arg1: i32) -> (i32, i32) {
    %c0_i32 = arith.constant 0 : i32
    return %arg1, %arg0 : i32, i32
  }
  func.func @transform_2(%arg0: i32, %arg1: i32) -> (i32, i32) {
    %c0_i32 = arith.constant 0 : i32
    %c0_i32_0 = arith.constant 0 : i32
    return %c0_i32, %arg0 : i32, i32
  }
  func.func @transform_3(%arg0: i32, %arg1: i32) -> (i32, i32) {
    %c0_i32 = arith.constant 0 : i32
    %c0_i32_0 = arith.constant 0 : i32
    return %c0_i32, %arg0 : i32, i32
  }
}

</mosaic_0001>

<bundles_post_ra>
// kernel: style_encoder_forward.8
= control target key start
LH: loop header
LB: loop body
LE: loop exit
PB: predicated region body
PF: predicated region fallthrough
CT: control target
= control target key end

     0   :  { %s667_s12 = smov 0   ;;  %s669_s13 = smov 0   ;;  %s733_s0 = inlined_call_operand.vmem [shape: bf16[2,512], index: 0, kind: input, shape index: {}]   ;;  %s734_s1 = inlined_call_operand.vmem [shape: bf16[512,64], index: 1, kind: input, shape index: {}]   ;;  %s735_s2 = inlined_call_operand.vmem [shape: f32[1,64], index: 2, kind: input, shape index: {}]   ;;  %s736_s3 = inlined_call_operand.vmem [shape: bf16[2,64], index: 3, kind: output, shape index: {}]  }
   0x1   :  { %s671_s14 = smov 0  }
   0x2 LB: > { %s22_s15 = sadd.s32 1, %s639_s13  ;;  %p530_p0 = scmp.ge.s32.totalorder %s643_s14, 1  ;;  %s643_s14 = sphi %s671_s14, %s13_s14   ;;  %s639_s13 = sphi %s669_s13, %s738_s13   ;;  %s635_s12 = sphi %s667_s12, %s737_s12  }
   0x3   : > { %p23_p1 = scmp.ge.s32.totalorder %s22_s15, 2  ;;  %p173_p2 = scmp.lt.s32.totalorder %s643_s14, 3 }
   0x5   : > { %s740_s15 = smov (%p23_p1, %s22_s15), 0  ;;  %p174_p3 = pnand %p530_p0, %p173_p2 }
   0x6   : > { %s531_s16 = sshll.u32 (!%p174_p3), %s635_s12, 1  ;;  %s532_s17 = sshll.u32 (!%p174_p3), %s635_s12, 5 }
   0x7   : > { %177 = sbr.rel (%p174_p3) target bundleno = 289 (0x121), region = 32  ;;  %p206_p4 = scmp.lt.s32.totalorder (!%p174_p3), %s531_s16, 3 }
   0x8   : > { %p211_p5 = scmp.lt.s32.totalorder (!%p174_p3), %s532_s17, 63  ;;  %p534_p6 = scmp.ne.s32.totalorder (!%p174_p3), %s635_s12, 0 }
   0xe   : > { %s742_s16 = smov (!%p206_p4, %s531_s16), 3  ;;  %s744_s17 = smov (!%p211_p5, %s532_s17), 63 }
   0xf   : > { %s208_s20 = scalar_lea.vmem %s733_s0, %s742_s16  ;;  %s533_s21 = sshll.u32 %s744_s17, 2  ;;  %vm230_vm0 = vcmask (!%p534_p6), 517120   ;;  %v645_v0 = vmov (!%p534_p6), 0.0  }
  0x10   : > { %s698_s24 = scalar_lea.vmem %s734_s1, %s533_s21  ;;  %229 = sbr.rel (%p534_p6) target bundleno = 23 (0x17), region = 36  ;;  %231 = vst.msk [vmem:[#allocation2] sm:$0x3] (!%p534_p6), %vm230_vm0, %v645_v0 }
  0x17 PF: > { %v605_v1 = vld [vmem:[%s698_s24 + $0x40] sm:$0xff]   ;;  %v607_v3 = vld [vmem:[%s698_s24 + $0x48] sm:$0xff]   ;;  %v609_v5 = vld [vmem:[%s698_s24 + $0x50] sm:$0xff]   ;;  %v278_v10 = vlaneseq  ;;  %v646_v14 = vmov 1966171168   ;;  %vm428_vm1 = vcmask 517120  }
  0x18   : > { %v606_v2 = vld [vmem:[%s698_s24] sm:$0xff]   ;;  %557 = vmatprep.subr.bf16.mxu0 %v605_v1  ;;  %v608_v4 = vld [vmem:[%s698_s24 + $0x8] sm:$0xff]   ;;  %v610_v6 = vld [vmem:[%s698_s24 + $0x10] sm:$0xff]   ;;  %v276_v15 = vunpack.c.l.s4 %v646_v14  ;;  %p552_p7 = scmp.ne.s32.totalorder %s635_s12, 1 }
  0x19   : > { %558 = vmatpush3.bf16.msra.mxu0 %v606_v2  ;;  %v611_v7 = vld [vmem:[%s698_s24 + $0x58] sm:$0xff]   ;;  %v613_v9 = vld [vmem:[%s698_s24 + $0x60] sm:$0xff]   ;;  %v615_v12 = vld [vmem:[%s698_s24 + $0x68] sm:$0xff]   ;;  %v279_v16 = vshrl.u32 %v278_v10, 7  ;;  %vm447_vm3 = vcmask (!%p552_p7), 516096  }
  0x1a   : > { %559 = vmatprep.subr.bf16.mxu0 %v607_v3  ;;  %v612_v8 = vld [vmem:[%s698_s24 + $0x18] sm:$0xff]   ;;  %v614_v11 = vld [vmem:[%s698_s24 + $0x20] sm:$0xff]   ;;  %v616_v17 = vld [vmem:[%s698_s24 + $0x28] sm:$0xff]   ;;  %v277_v19 = vunpack.c.0.s8 %v276_v15 }
  0x1b   : > { %v535_v13 = vld.sshfl [vmem:[%s208_s20] sm:$0x11 pattern:$0x75316420]  ;;  %v617_v20 = vld [vmem:[%s698_s24 + $0x70] sm:$0xff]   ;;  %v619_v24 = vld [vmem:[%s698_s24 + $0x78] sm:$0xff]  }
  0x1c   : > { %v274_v18 = vcombine.high %v535_v13, %v535_v13  ;;  %v280_v21 = vsub.s32 %v277_v19, %v279_v16  ;;  %v618_v22 = vld [vmem:[%s698_s24 + $0x30] sm:$0xff]   ;;  %v620_v25 = vld [vmem:[%s698_s24 + $0x38] sm:$0xff]   ;;  %v232_v28 = vld [vmem:[#allocation2] sm:$0x3] }
  0x1d   : > { %560 = vmatpush3.bf16.msra.mxu0 %v608_v4  ;;  %v553_v35 = vld [vmem:[%s735_s2] ss:$0 sm:$0xff] (!%p552_p7) }
  0x1e   : > { %561 = vmatprep.subr.bf16.mxu0 %v609_v5  ;;  %v288_v23 = vrot.slane %v274_v18, %v280_v21  ;;  %v281_v26 = vrot.slane %v535_v13, %v280_v21 }
  0x20   : > { %419 = vmatprep.mubr.bf16.mxu0 %v288_v23 }
  0x21   : > { %562 = vmatpush3.bf16.msra.mxu0 %v610_v6 }
  0x22   : > { %563 = vmatprep.subr.bf16.mxu0 %v611_v7 }
  0x25   : > { %564 = vmatpush3.bf16.msra.mxu0 %v612_v8 }
  0x26   : > { %565 = vmatprep.subr.bf16.mxu0 %v613_v9 }
  0x29   : > { %566 = vmatpush3.bf16.msra.mxu0 %v614_v11 }
  0x2a   : > { %567 = vmatprep.subr.bf16.mxu0 %v615_v12 }
  0x2d   : > { %568 = vmatpush3.bf16.msra.mxu0 %v616_v17 }
  0x2e   : > { %569 = vmatprep.subr.bf16.mxu0 %v617_v20 }
  0x31   : > { %570 = vmatpush3.bf16.msra.mxu0 %v618_v22 }
  0x32   : > { %571 = vmatprep.subr.bf16.mxu0 %v619_v24 }
  0x35   : > { %572 = vmatpush3.bf16.msra.mxu0 %v620_v25 }
  0x38   : > { %420 = vmatmul.mubr.bf16.vlgmr.msra.gmra.mrb[0].mxu0 %v281_v26 }
 0x10b   : > { %v573_v27 = vpop.f32.mrb[0].mxu0  ;;  %433 = sbr.rel (%p552_p7) target bundleno = 289 (0x121), region = 40 }
 0x10c   : > { %v574_v29 = vpop.f32.mrb[1].mxu0 }
 0x10d   : > { %v575_v30 = vadd.f32 %v574_v29, %v573_v27  ;;  %v576_v31 = vpop.f32.mrb[2].mxu0 }
 0x10e   : > { %v577_v32 = vpop.f32.mrb[3].mxu0 }
 0x10f   : > { %v427_v33 = vadd.f32 %v575_v30, %v232_v28 }
 0x111   : > { %429 = vst.msk [vmem:[#allocation2] sm:$0x3] %vm428_vm1, %v427_v33 }
 0x118   : > { %v434_v34 = vld [vmem:[#allocation2] sm:$0x3] }
 0x119   : > { %v442_v36 = vadd.f32 %v553_v35, %v434_v34 }
 0x11b   : > { %vm443_vm2 = vcmp.gt.f32.partialorder %v442_v36, 0.0  ;;  %v444_v37 = vmul.f32 0.2, %v442_v36 }
 0x11d   : > { %v445_v38 = vsel %vm443_vm2, %v442_v36, %v444_v37 }
 0x11e   : > { %v446_v39 = vpack.c.bf16 %v445_v38, %v445_v38 }
 0x120   : > { %448 = vst.msk [vmem:[%s736_s3] sm:$0x1] %vm447_vm3, %v446_v39 }
 0x121 PF: > { %s13_s14 = sadd.s32 1, %s643_s14   ;;  %s737_s12 = smov %s639_s13 }
 0x122   : > { %p10_p8 = scmp.ge.s32.totalorder %s13_s14, 4   ;;  %s738_s13 = smov %s740_s15 }
 0x124   :  { %12 = sbr.rel (!%p10_p8) target bundleno = 2 (0x2), region = 76 }

// kernel: style_encoder_forward.7
= control target key start
LH: loop header
LB: loop body
LE: loop exit
PB: predicated region body
PF: predicated region fallthrough
CT: control target
= control target key end

     0   :  { %s2937_s12 = smov 0   ;;  %s3267_s0 = inlined_call_operand.vmem [shape: bf16[2,4,5,5,16], index: 0, kind: input, shape index: {}]   ;;  %s3268_s1 = inlined_call_operand.vmem [shape: bf16[9,16,32], index: 1, kind: input, shape index: {}]   ;;  %s3269_s2 = inlined_call_operand.vmem [shape: f32[1,32], index: 2, kind: input, shape index: {}]   ;;  %s3270_s3 = inlined_call_operand.vmem [shape: bf16[2,16,32], index: 3, kind: output, shape index: {}]  }
   0x1 LB: > { %s2357_s13 = sadd.s32 4294967295, %s2913_s12   ;;  %p2361_p0 = scmp.ge.s32.totalorder %s2913_s12, 1  ;;  %s2913_s12 = sphi %s2937_s12, %s13_s12  }
   0x2   : > { %p137_p1 = scmp.lt.s32.totalorder %s2913_s12, 3 }
   0x4   : > { %p138_p2 = pnand %p2361_p0, %p137_p1 }
   0x5   : > { %v2857_v0 = vld [vmem:[%s3268_s1 + $0x8] sm:$0xff] (!%p138_p2)   ;;  %v2915_v1 = vmov (!%p138_p2), 0.0   ;;  %v2858_v2 = vld [vmem:[%s3268_s1] sm:$0xff] (!%p138_p2)   ;;  %vm2916_vm0 = vmmov (!%p138_p2), 0   ;;  %p161_p3 = scmp.lt.s32.totalorder (!%p138_p2), %s2357_s13, 1  ;;  %v2859_v3 = vld [vmem:[%s3268_s1 + $0x10] sm:$0xff] (!%p138_p2)  }
   0x6   : > { %141 = sbr.rel (%p138_p2) target bundleno = 439 (0x1b7), region = 32  ;;  %2630 = vmatprep.subr.bf16.mxu0 (!%p138_p2), %v2915_v1  ;;  %2636 = vmatprep.subr.bf16.mxu1 (!%p138_p2), %v2915_v1  ;;  %vm186_vm1 = vcmask (!%p138_p2), 130048   ;;  %v2860_v4 = vld [vmem:[%s3268_s1 + $0x18] sm:$0xff] (!%p138_p2)   ;;  %v2862_v14 = vld [vmem:[%s3268_s1 + $0x20] sm:$0xff] (!%p138_p2)   ;;  %v2863_v15 = vld [vmem:[%s3268_s1 + $0x28] sm:$0xff] (!%p138_p2)   ;;  %vm699_vm2 = vcmask (!%p138_p2), 257024  }
   0x7   : > { %2631 = vmatpush3.bf16.msra.mxu0 (!%p138_p2), %v2857_v0  ;;  %2632 = vmatprep.mubr.msk.bf16.mxu0 (!%p138_p2), %vm2916_vm0, %v2915_v1  ;;  %v2865_v19 = vld [vmem:[%s3268_s1 + $0x30] sm:$0xff] (!%p138_p2)   ;;  %v2866_v21 = vld [vmem:[%s3268_s1 + $0x38] sm:$0xff] (!%p138_p2)   ;;  %v2867_v25 = vld [vmem:[%s3268_s1 + $0x40] sm:$0xff] (!%p138_p2)   ;;  %vm2257_vm3 = vcmask (!%p138_p2), 261120  }
   0x8   : > { %2637 = vmatpush3.bf16.msra.mxu1 (!%p138_p2), %v2858_v2  ;;  %2638 = vmatprep.mubr.msk.bf16.mxu1 (!%p138_p2), %vm2916_vm0, %v2915_v1  ;;  %v2868_v28 = vld [vmem:[%s3268_s1 + $0x8] sm:$0xff] (!%p138_p2)   ;;  %v2870_v34 = vld [vmem:[%s3268_s1] sm:$0xff] (!%p138_p2)   ;;  %v2871_v36 = vld [vmem:[%s3268_s1 + $0x10] sm:$0xff] (!%p138_p2)  }
   0x9   : > { %2642 = vmatprep.subr.bf16.mxu0 (!%p138_p2), %v2915_v1  ;;  %2648 = vmatprep.subr.bf16.mxu1 (!%p138_p2), %v2915_v1  ;;  %v2873_v41 = vld [vmem:[%s3268_s1 + $0x18] sm:$0xff] (!%p138_p2)   ;;  %v2874_v42 = vld [vmem:[%s3268_s1 + $0x20] sm:$0xff] (!%p138_p2)   ;;  %v2875_v47 = vld [vmem:[%s3268_s1 + $0x28] sm:$0xff] (!%p138_p2)  }
   0xa   : > { %v2876_v48 = vld [vmem:[%s3268_s1 + $0x30] sm:$0xff] (!%p138_p2)   ;;  %v2878_v55 = vld [vmem:[%s3268_s1 + $0x38] sm:$0xff] (!%p138_p2)   ;;  %v2879_v56 = vld [vmem:[%s3268_s1 + $0x40] sm:$0xff] (!%p138_p2)  }
   0xb   : > { %v2881_v61 = vld [vmem:[%s3268_s1 + $0x8] sm:$0xff] (!%p138_p2)   ;;  %v2882_v62 = vld [vmem:[%s3268_s1] sm:$0xff] (!%p138_p2)   ;;  %v2883_v0 = vld [vmem:[%s3268_s1 + $0x10] sm:$0xff] (!%p138_p2)  }
   0xd   : > { %s3272_s13 = smov (!%p161_p3, %s2357_s13), 1 }
   0xe   : > { %s2846_s18 = smul.u32 80, %s3272_s13 }
  0x10   : > { %s2971_s25 = scalar_lea.vmem %s3267_s0, %s2846_s18  ;;  %s2555_s18 = sshll.u32 %s3272_s13, 3 }
  0x11   : > { %v2365_v5 = vld [vmem:[%s2971_s25 + $0x14] sm:$0x3]  ;;  %v172_v6 = vld [vmem:[%s2971_s25] sm:$0x3]  ;;  %v2377_v13 = vld [vmem:[%s2971_s25 + $0x28] sm:$0x3]  ;;  %s170_s21 = scalar_lea.vmem %s3270_s3, %s2555_s18 }
  0x12   : > { %2633 = vmatmul.mubr.msk.bf16.vlgmr.msra.gmra.mrb[0].mxu0 %vm186_vm1, %v2365_v5  ;;  %2639 = vmatmul.mubr.msk.bf16.vlgmr.msra.gmra.mrb[0].mxu1 %vm186_vm1, %v172_v6  ;;  %v2861_v7 = vld [vmem:[%s2971_s25] ss:$0 sps:$4 sm:$0x77]   ;;  %v2864_v10 = vld [vmem:[%s2971_s25 + $0x28] ss:$0 sps:$4 sm:$0x77]  }
  0x13   : > { %2643 = vmatpush3.bf16.msra.mxu0 %v2859_v3  ;;  %2649 = vmatpush3.bf16.msra.mxu1 %v2860_v4  ;;  %v287_v8 = vshrl.u32 %v2861_v7, 16  ;;  %v289_v9 = vshll.u32 %v2861_v7, 16  ;;  %v463_v12 = vshll.u32 %v2864_v10, 16  ;;  %v461_v17 = vshrl.u32 %v2864_v10, 16  ;;  %v2382_v22 = vld [vmem:[%s2971_s25 + $0x3c] sm:$0x3] }
  0x14   : > { %2644 = vmatprep.mubr.msk.bf16.mxu0 %vm2916_vm0, %v2915_v1  ;;  %2650 = vmatprep.mubr.msk.bf16.mxu1 %vm2916_vm0, %v2915_v1  ;;  %v2869_v23 = vld [vmem:[%s2971_s25 + $0x4] ss:$0 sps:$4 sm:$0x77]   ;;  %v2398_v27 = vld [vmem:[%s2971_s25 + $0x18] sm:$0x3] }
  0x15   : > { %2654 = vmatprep.subr.bf16.mxu0 %v2915_v1  ;;  %2660 = vmatprep.subr.bf16.mxu1 %v2915_v1  ;;  %v291_v11 = vrot.slane %v289_v9, 1  ;;  %v465_v18 = vrot.slane %v463_v12, 1  ;;  %v2393_v24 = vld [vmem:[%s2971_s25 + $0x4] sm:$0x3]  ;;  %v637_v26 = vshll.u32 %v2869_v23, 16  ;;  %v635_v29 = vshrl.u32 %v2869_v23, 16 }
  0x16   : > { %v2872_v31 = vld [vmem:[%s2971_s25 + $0x4] ss:$0 sps:$4 sm:$0x77]   ;;  %v2411_v32 = vld [vmem:[%s2971_s25 + $0x18] sm:$0x3] }
  0x17   : > { %v292_v16 = vor.u32 %v291_v11, %v287_v8  ;;  %v466_v20 = vor.u32 %v465_v18, %v461_v17  ;;  %v639_v30 = vrot.slane %v637_v26, 1  ;;  %v814_v35 = vshll.u32 %v2872_v31, 16  ;;  %v2410_v39 = vld [vmem:[%s2971_s25 + $0x4] sm:$0x3]  ;;  %v2424_v44 = vld [vmem:[%s2971_s25 + $0x2c] sm:$0x3] }
  0x18   : > { %v812_v37 = vshrl.u32 %v2872_v31, 16  ;;  %v2877_v43 = vld [vmem:[%s2971_s25 + $0x2c] ss:$0 sps:$4 sm:$0x77]   ;;  %v2429_v45 = vld [vmem:[%s2971_s25 + $0x40] sm:$0x3] }
  0x19   : > { %v640_v33 = vor.u32 %v639_v30, %v635_v29  ;;  %v816_v38 = vrot.slane %v814_v35, 1  ;;  %v985_v46 = vshll.u32 %v2877_v43, 16  ;;  %v983_v49 = vshrl.u32 %v2877_v43, 16  ;;  %v2880_v51 = vld [vmem:[%s2971_s25 + $0x8] ss:$0 sps:$4 sm:$0x77]  }
  0x1a   : > { %2645 = vmatmul.mubr.msk.bf16.vlgmr.msra.gmra.mrb[4].mxu0 %vm186_vm1, %v292_v16  ;;  %2651 = vmatmul.mubr.msk.bf16.vlgmr.msra.gmra.mrb[4].mxu1 %vm186_vm1, %v2377_v13  ;;  %v1156_v53 = vshll.u32 %v2880_v51, 16  ;;  %v2440_v54 = vld [vmem:[%s2971_s25 + $0x8] sm:$0x3]  ;;  %v1154_v57 = vshrl.u32 %v2880_v51, 16  ;;  %v2445_v60 = vld [vmem:[%s2971_s25 + $0x1c] sm:$0x3] }
  0x1b   : > { %2655 = vmatpush3.bf16.msra.mxu0 %v2862_v14  ;;  %2661 = vmatpush3.bf16.msra.mxu1 %v2863_v15  ;;  %v817_v40 = vor.u32 %v816_v38, %v812_v37  ;;  %v987_v50 = vrot.slane %v985_v46, 1  ;;  %v2885_v63 = vld [vmem:[%s2971_s25 + $0x8] ss:$0 sps:$4 sm:$0x77]   ;;  %v2458_v3 = vld [vmem:[%s2971_s25 + $0x1c] sm:$0x3] }
  0x1c   : > { %2656 = vmatprep.mubr.msk.bf16.mxu0 %vm2916_vm0, %v2915_v1  ;;  %2662 = vmatprep.mubr.msk.bf16.mxu1 %vm2916_vm0, %v2915_v1  ;;  %v1158_v58 = vrot.slane %v1156_v53, 1  ;;  %v1332_v2 = vshll.u32 %v2885_v63, 16  ;;  %v2457_v4 = vld [vmem:[%s2971_s25 + $0x8] sm:$0x3]  ;;  %v2884_v5 = vld [vmem:[%s3268_s1 + $0x18] sm:$0xff]   ;;  %v1330_v6 = vshrl.u32 %v2885_v63, 16 }
  0x1d   : > { %2666 = vmatprep.subr.bf16.mxu0 %v2915_v1  ;;  %2672 = vmatprep.subr.bf16.mxu1 %v2915_v1  ;;  %v988_v52 = vor.u32 %v987_v50, %v983_v49  ;;  %v2888_v8 = vld [vmem:[%s2971_s25 + $0x30] ss:$0 sps:$4 sm:$0x77]   ;;  %v2886_v12 = vld [vmem:[%s3268_s1 + $0x20] sm:$0xff]   ;;  %v2887_v13 = vld [vmem:[%s3268_s1 + $0x28] sm:$0xff]  }
  0x1e   : > { %v1159_v59 = vor.u32 %v1158_v58, %v1154_v57  ;;  %v1334_v7 = vrot.slane %v1332_v2, 1  ;;  %v1503_v10 = vshll.u32 %v2888_v8, 16  ;;  %v2471_v11 = vld [vmem:[%s2971_s25 + $0x30] sm:$0x3]  ;;  %v1501_v14 = vshrl.u32 %v2888_v8, 16  ;;  %v2897_v38 = vld [vmem:[%s3268_s1 + $0x18] sm:$0xff]  }
  0x1f   : > { %v2476_v17 = vld [vmem:[%s2971_s25 + $0x44] sm:$0x3]  ;;  %v2889_v18 = vld [vmem:[%s3268_s1 + $0x30] sm:$0xff]   ;;  %v2487_v23 = vld [vmem:[%s2971_s25 + $0xc] sm:$0x3] }
  0x20   : > { %v1335_v9 = vor.u32 %v1334_v7, %v1330_v6  ;;  %v1505_v15 = vrot.slane %v1503_v10, 1  ;;  %v2505_v31 = vld [vmem:[%s2971_s25 + $0x20] sm:$0x3]  ;;  %v2504_v37 = vld [vmem:[%s2971_s25 + $0xc] sm:$0x3] }
  0x21   : > { %v2518_v43 = vld [vmem:[%s2971_s25 + $0x34] sm:$0x3]  ;;  %v2534_v51 = vld [vmem:[%s2971_s25 + $0x10] sm:$0x3]  ;;  %v2903_v53 = vld [vmem:[%s3268_s1 + $0x40] sm:$0xff]  }
  0x22   : > { %2657 = vmatmul.mubr.msk.bf16.vlgmr.msra.gmra.mrb[8].mxu0 %vm186_vm1, %v2382_v22  ;;  %2663 = vmatmul.mubr.msk.bf16.vlgmr.msra.gmra.mrb[8].mxu1 %vm186_vm1, %v466_v20  ;;  %v1506_v16 = vor.u32 %v1505_v15, %v1501_v14  ;;  %v2893_v20 = vld [vmem:[%s2971_s25 + $0xc] ss:$0 sps:$4 sm:$0x77]   ;;  %v2539_v57 = vld [vmem:[%s2971_s25 + $0x24] sm:$0x3] }
  0x23   : > { %2667 = vmatpush3.bf16.msra.mxu0 %v2865_v19  ;;  %2673 = vmatpush3.bf16.msra.mxu1 %v2866_v21  ;;  %v2890_v19 = vld [vmem:[%s3268_s1 + $0x38] sm:$0xff]   ;;  %v2891_v21 = vld [vmem:[%s3268_s1 + $0x40] sm:$0xff]   ;;  %v1674_v22 = vshll.u32 %v2893_v20, 16  ;;  %v1672_v26 = vshrl.u32 %v2893_v20, 16 }
  0x24   : > { %2668 = vmatprep.mubr.msk.bf16.mxu0 %vm2916_vm0, %v2915_v1  ;;  %2674 = vmatprep.mubr.msk.bf16.mxu1 %vm2916_vm0, %v2915_v1 }
  0x25   : > { %2678 = vmatprep.subr.bf16.mxu0 %v2915_v1  ;;  %2684 = vmatprep.subr.bf16.mxu1 %v2915_v1 }
  0x2a   : > { %2669 = vmatmul.mubr.msk.bf16.vlgmr.msra.gmra.mrb[12].mxu0 %vm186_vm1, %v2393_v24  ;;  %2675 = vmatmul.mubr.msk.bf16.vlgmr.msra.gmra.mrb[12].mxu1 %vm186_vm1, %v2398_v27  ;;  %v2492_v24 = vld [vmem:[%s2971_s25 + $0x20] sm:$0x3]  ;;  %v1676_v27 = vrot.slane %v1674_v22, 1 }
  0x2b   : > { %2679 = vmatpush3.bf16.msra.mxu0 %v2867_v25  ;;  %2685 = vmatpush3.bf16.msra.mxu1 %v2868_v28  ;;  %v2892_v25 = vld [vmem:[%s3268_s1 + $0x8] sm:$0xff]  }
  0x2c   : > { %2680 = vmatprep.mubr.msk.bf16.mxu0 %vm2916_vm0, %v2915_v1  ;;  %2686 = vmatprep.mubr.msk.bf16.mxu1 %vm2916_vm0, %v2915_v1  ;;  %v2896_v28 = vld [vmem:[%s2971_s25 + $0xc] ss:$0 sps:$4 sm:$0x77]   ;;  %v1677_v29 = vor.u32 %v1676_v27, %v1672_v26 }
  0x2d   : > { %2690 = vmatprep.subr.bf16.mxu0 %v2915_v1  ;;  %2696 = vmatprep.subr.bf16.mxu1 %v2915_v1  ;;  %v1850_v30 = vshll.u32 %v2896_v28, 16 }
  0x2f   : > { %v1852_v35 = vrot.slane %v1850_v30, 1 }
  0x32   : > { %2681 = vmatmul.mubr.msk.bf16.vlgmr.msra.gmra.mrb[16].mxu0 %vm186_vm1, %v640_v33  ;;  %2687 = vmatmul.mubr.msk.bf16.vlgmr.msra.gmra.mrb[16].mxu1 %vm186_vm1, %v2411_v32  ;;  %v2894_v32 = vld [vmem:[%s3268_s1] sm:$0xff]   ;;  %v2895_v33 = vld [vmem:[%s3268_s1 + $0x10] sm:$0xff]  }
  0x33   : > { %2691 = vmatpush3.bf16.msra.mxu0 %v2870_v34  ;;  %2697 = vmatpush3.bf16.msra.mxu1 %v2871_v36  ;;  %v1848_v34 = vshrl.u32 %v2896_v28, 16 }
  0x34   : > { %2692 = vmatprep.mubr.msk.bf16.mxu0 %vm2916_vm0, %v2915_v1  ;;  %2698 = vmatprep.mubr.msk.bf16.mxu1 %vm2916_vm0, %v2915_v1 }
  0x35   : > { %2702 = vmatprep.subr.bf16.mxu0 %v2915_v1  ;;  %2708 = vmatprep.subr.bf16.mxu1 %v2915_v1  ;;  %v1853_v36 = vor.u32 %v1852_v35, %v1848_v34  ;;  %v3244_v34 = vld [vmem:[%s3269_s2] ss:$0 sm:$0xff] }
  0x3a   : > { %2693 = vmatmul.mubr.msk.bf16.vlgmr.msra.gmra.mrb[20].mxu0 %vm186_vm1, %v2410_v39  ;;  %2699 = vmatmul.mubr.msk.bf16.vlgmr.msra.gmra.mrb[20].mxu1 %vm186_vm1, %v817_v40  ;;  %v2898_v39 = vld [vmem:[%s3268_s1 + $0x20] sm:$0xff]   ;;  %v2901_v40 = vld [vmem:[%s2971_s25 + $0x34] ss:$0 sps:$4 sm:$0x77]  }
  0x3b   : > { %2703 = vmatpush3.bf16.msra.mxu0 %v2873_v41  ;;  %2709 = vmatpush3.bf16.msra.mxu1 %v2874_v42  ;;  %v2899_v41 = vld [vmem:[%s3268_s1 + $0x28] sm:$0xff]   ;;  %v2021_v42 = vshll.u32 %v2901_v40, 16  ;;  %v2019_v46 = vshrl.u32 %v2901_v40, 16 }
  0x3c   : > { %2704 = vmatprep.mubr.msk.bf16.mxu0 %vm2916_vm0, %v2915_v1  ;;  %2710 = vmatprep.mubr.msk.bf16.mxu1 %vm2916_vm0, %v2915_v1 }
  0x3d   : > { %2714 = vmatprep.subr.bf16.mxu0 %v2915_v1  ;;  %2720 = vmatprep.subr.bf16.mxu1 %v2915_v1 }
  0x42   : > { %2705 = vmatmul.mubr.msk.bf16.vlgmr.msra.gmra.mrb[24].mxu0 %vm186_vm1, %v2424_v44  ;;  %2711 = vmatmul.mubr.msk.bf16.vlgmr.msra.gmra.mrb[24].mxu1 %vm186_vm1, %v2429_v45  ;;  %v2523_v44 = vld [vmem:[%s2971_s25 + $0x48] sm:$0x3]  ;;  %v2900_v45 = vld [vmem:[%s3268_s1 + $0x30] sm:$0xff]  }
  0x43   : > { %2715 = vmatpush3.bf16.msra.mxu0 %v2875_v47  ;;  %2721 = vmatpush3.bf16.msra.mxu1 %v2876_v48  ;;  %v2023_v47 = vrot.slane %v2021_v42, 1  ;;  %v2904_v48 = vld [vmem:[%s2971_s25 + $0x10] ss:$0 sps:$4 sm:$0x77]  }
  0x44   : > { %2716 = vmatprep.mubr.msk.bf16.mxu0 %vm2916_vm0, %v2915_v1  ;;  %2722 = vmatprep.mubr.msk.bf16.mxu1 %vm2916_vm0, %v2915_v1  ;;  %v2192_v50 = vshll.u32 %v2904_v48, 16 }
  0x45   : > { %2726 = vmatprep.subr.bf16.mxu0 %v2915_v1  ;;  %2732 = vmatprep.subr.bf16.mxu1 %v2915_v1  ;;  %v2024_v49 = vor.u32 %v2023_v47, %v2019_v46 }
  0x4a   : > { %2717 = vmatmul.mubr.msk.bf16.vlgmr.msra.gmra.mrb[28].mxu0 %vm186_vm1, %v988_v52  ;;  %2723 = vmatmul.mubr.msk.bf16.vlgmr.msra.gmra.mrb[28].mxu1 %vm186_vm1, %v2440_v54  ;;  %v2902_v52 = vld [vmem:[%s3268_s1 + $0x38] sm:$0xff]   ;;  %v2190_v54 = vshrl.u32 %v2904_v48, 16 }
  0x4b   : > { %2727 = vmatpush3.bf16.msra.mxu0 %v2878_v55  ;;  %2733 = vmatpush3.bf16.msra.mxu1 %v2879_v56  ;;  %v2194_v55 = vrot.slane %v2192_v50, 1 }
  0x4c   : > { %2728 = vmatprep.mubr.msk.bf16.mxu0 %vm2916_vm0, %v2915_v1  ;;  %2734 = vmatprep.mubr.msk.bf16.mxu1 %vm2916_vm0, %v2915_v1 }
  0x4d   : > { %2738 = vmatprep.subr.bf16.mxu0 %v2915_v1  ;;  %2744 = vmatprep.subr.bf16.mxu1 %v2915_v1  ;;  %v2195_v56 = vor.u32 %v2194_v55, %v2190_v54 }
  0x52   : > { %2729 = vmatmul.mubr.msk.bf16.vlgmr.msra.gmra.mrb[32].mxu0 %vm186_vm1, %v2445_v60  ;;  %2735 = vmatmul.mubr.msk.bf16.vlgmr.msra.gmra.mrb[32].mxu1 %vm186_vm1, %v1159_v59 }
  0x53   : > { %2739 = vmatpush3.bf16.msra.mxu0 %v2881_v61  ;;  %2745 = vmatpush3.bf16.msra.mxu1 %v2882_v62 }
  0x54   : > { %2740 = vmatprep.mubr.msk.bf16.mxu0 %vm2916_vm0, %v2915_v1  ;;  %2746 = vmatprep.mubr.msk.bf16.mxu1 %vm2916_vm0, %v2915_v1 }
  0x55   : > { %2750 = vmatprep.subr.bf16.mxu0 %v2915_v1  ;;  %2756 = vmatprep.subr.bf16.mxu1 %v2915_v1 }
  0x5a   : > { %2741 = vmatmul.mubr.msk.bf16.vlgmr.msra.gmra.mrb[36].mxu0 %vm186_vm1, %v2458_v3  ;;  %2747 = vmatmul.mubr.msk.bf16.vlgmr.msra.gmra.mrb[36].mxu1 %vm186_vm1, %v2457_v4 }
  0x5b   : > { %2751 = vmatpush3.bf16.msra.mxu0 %v2883_v0  ;;  %2757 = vmatpush3.bf16.msra.mxu1 %v2884_v5 }
  0x5c   : > { %2752 = vmatprep.mubr.msk.bf16.mxu0 %vm2916_vm0, %v2915_v1  ;;  %2758 = vmatprep.mubr.msk.bf16.mxu1 %vm2916_vm0, %v2915_v1 }
  0x5d   : > { %2762 = vmatprep.subr.bf16.mxu0 %v2915_v1  ;;  %2768 = vmatprep.subr.bf16.mxu1 %v2915_v1 }
  0x62   : > { %2753 = vmatmul.mubr.msk.bf16.vlgmr.msra.gmra.mrb[40].mxu0 %vm186_vm1, %v1335_v9  ;;  %2759 = vmatmul.mubr.msk.bf16.vlgmr.msra.gmra.mrb[40].mxu1 %vm186_vm1, %v2471_v11 }
  0x63   : > { %2763 = vmatpush3.bf16.msra.mxu0 %v2886_v12  ;;  %2769 = vmatpush3.bf16.msra.mxu1 %v2887_v13 }
  0x64   : > { %2764 = vmatprep.mubr.msk.bf16.mxu0 %vm2916_vm0, %v2915_v1  ;;  %2770 = vmatprep.mubr.msk.bf16.mxu1 %vm2916_vm0, %v2915_v1 }
  0x65   : > { %2774 = vmatprep.subr.bf16.mxu0 %v2915_v1  ;;  %2780 = vmatprep.subr.bf16.mxu1 %v2915_v1 }
  0x6a   : > { %2765 = vmatmul.mubr.msk.bf16.vlgmr.msra.gmra.mrb[44].mxu0 %vm186_vm1, %v2476_v17  ;;  %2771 = vmatmul.mubr.msk.bf16.vlgmr.msra.gmra.mrb[44].mxu1 %vm186_vm1, %v1506_v16 }
  0x6b   : > { %2775 = vmatpush3.bf16.msra.mxu0 %v2889_v18  ;;  %2781 = vmatpush3.bf16.msra.mxu1 %v2890_v19 }
  0x6c   : > { %2776 = vmatprep.mubr.msk.bf16.mxu0 %vm2916_vm0, %v2915_v1  ;;  %2782 = vmatprep.mubr.msk.bf16.mxu1 %vm2916_vm0, %v2915_v1 }
  0x6d   : > { %2786 = vmatprep.subr.bf16.mxu0 %v2915_v1  ;;  %2792 = vmatprep.subr.bf16.mxu1 %v2915_v1 }
  0x72   : > { %2777 = vmatmul.mubr.msk.bf16.vlgmr.msra.gmra.mrb[48].mxu0 %vm186_vm1, %v2487_v23  ;;  %2783 = vmatmul.mubr.msk.bf16.vlgmr.msra.gmra.mrb[48].mxu1 %vm186_vm1, %v2492_v24 }
  0x73   : > { %2787 = vmatpush3.bf16.msra.mxu0 %v2891_v21  ;;  %2793 = vmatpush3.bf16.msra.mxu1 %v2892_v25 }
  0x74   : > { %2788 = vmatprep.mubr.msk.bf16.mxu0 %vm2916_vm0, %v2915_v1  ;;  %2794 = vmatprep.mubr.msk.bf16.mxu1 %vm2916_vm0, %v2915_v1 }
  0x75   : > { %2798 = vmatprep.subr.bf16.mxu0 %v2915_v1  ;;  %2804 = vmatprep.subr.bf16.mxu1 %v2915_v1 }
  0x7a   : > { %2789 = vmatmul.mubr.msk.bf16.vlgmr.msra.gmra.mrb[52].mxu0 %vm186_vm1, %v1677_v29  ;;  %2795 = vmatmul.mubr.msk.bf16.vlgmr.msra.gmra.mrb[52].mxu1 %vm186_vm1, %v2505_v31 }
  0x7b   : > { %2799 = vmatpush3.bf16.msra.mxu0 %v2894_v32  ;;  %2805 = vmatpush3.bf16.msra.mxu1 %v2895_v33 }
  0x7c   : > { %2800 = vmatprep.mubr.msk.bf16.mxu0 %vm2916_vm0, %v2915_v1  ;;  %2806 = vmatprep.mubr.msk.bf16.mxu1 %vm2916_vm0, %v2915_v1 }
  0x7d   : > { %2810 = vmatprep.subr.bf16.mxu0 %v2915_v1  ;;  %2816 = vmatprep.subr.bf16.mxu1 %v2915_v1 }
  0x82   : > { %2801 = vmatmul.mubr.msk.bf16.vlgmr.msra.gmra.mrb[56].mxu0 %vm186_vm1, %v2504_v37  ;;  %2807 = vmatmul.mubr.msk.bf16.vlgmr.msra.gmra.mrb[56].mxu1 %vm186_vm1, %v1853_v36 }
  0x83   : > { %2811 = vmatpush3.bf16.msra.mxu0 %v2897_v38  ;;  %2817 = vmatpush3.bf16.msra.mxu1 %v2898_v39 }
  0x84   : > { %2812 = vmatprep.mubr.msk.bf16.mxu0 %vm2916_vm0, %v2915_v1  ;;  %2818 = vmatprep.mubr.msk.bf16.mxu1 %vm2916_vm0, %v2915_v1 }
  0x85   : > { %2822 = vmatprep.subr.bf16.mxu0 %v2915_v1  ;;  %2828 = vmatprep.subr.bf16.mxu1 %v2915_v1 }
  0x8a   : > { %2813 = vmatmul.mubr.msk.bf16.vlgmr.msra.gmra.mrb[60].mxu0 %vm186_vm1, %v2518_v43  ;;  %2819 = vmatmul.mubr.msk.bf16.vlgmr.msra.gmra.mrb[60].mxu1 %vm186_vm1, %v2523_v44 }
  0x8b   : > { %2823 = vmatpush3.bf16.msra.mxu0 %v2899_v41  ;;  %2829 = vmatpush3.bf16.msra.mxu1 %v2900_v45 }
  0x8c   : > { %2824 = vmatprep.mubr.msk.bf16.mxu0 %vm2916_vm0, %v2915_v1  ;;  %2830 = vmatprep.mubr.msk.bf16.mxu1 %vm2916_vm0, %v2915_v1 }
  0x8d   : > { %2834 = vmatprep.subr.bf16.mxu0 %v2915_v1  ;;  %2840 = vmatprep.subr.bf16.mxu1 %v2915_v1 }
  0x92   : > { %2825 = vmatmul.mubr.msk.bf16.vlgmr.msra.gmra.mrb[64].mxu0 %vm186_vm1, %v2024_v49  ;;  %2831 = vmatmul.mubr.msk.bf16.vlgmr.msra.gmra.mrb[64].mxu1 %vm186_vm1, %v2534_v51 }
  0x93   : > { %2835 = vmatpush3.bf16.msra.mxu0 %v2902_v52  ;;  %2841 = vmatpush3.bf16.msra.mxu1 %v2903_v53 }
  0x94   : > { %2836 = vmatprep.mubr.msk.bf16.mxu0 %vm2916_vm0, %v2915_v1  ;;  %2842 = vmatprep.mubr.msk.bf16.mxu1 %vm2916_vm0, %v2915_v1 }
  0x9a   : > { %2837 = vmatmul.mubr.msk.bf16.vlgmr.msra.gmra.mrb[68].mxu0 %vm186_vm1, %v2539_v57  ;;  %2843 = vmatmul.mubr.msk.bf16.vlgmr.msra.gmra.mrb[68].mxu1 %vm186_vm1, %v2195_v56 }
  0xe5   : > { %v224_v58 = vpop.f32.mrb[0].mxu0  ;;  %v273_v59 = vpop.f32.mrb[0].mxu1 }
  0xe6   : > { %v274_v60 = vadd.f32 %v273_v59, %v224_v58  ;;  %v2634_v61 = vpop.f32.mrb[1].mxu0  ;;  %v2640_v62 = vpop.f32.mrb[1].mxu1 }
  0xe7   : > { %v227_v63 = vpop.f32.mrb[2].mxu0  ;;  %v276_v0 = vpop.f32.mrb[2].mxu1 }
  0xe8   : > { %v2635_v2 = vpop.f32.mrb[3].mxu0  ;;  %v2641_v3 = vpop.f32.mrb[3].mxu1 }
  0xed   : > { %v336_v4 = vpop.f32.mrb[4].mxu0  ;;  %v391_v5 = vpop.f32.mrb[4].mxu1 }
  0xee   : > { %v342_v6 = vadd.f32 %v336_v4, %v274_v60  ;;  %v2646_v7 = vpop.f32.mrb[5].mxu0  ;;  %v2652_v1 = vpop.f32.mrb[5].mxu1 }
  0xef   : > { %v339_v8 = vpop.f32.mrb[6].mxu0  ;;  %v394_v9 = vpop.f32.mrb[6].mxu1 }
  0xf0   : > { %v397_v10 = vadd.f32 %v391_v5, %v342_v6  ;;  %v2647_v11 = vpop.f32.mrb[7].mxu0  ;;  %v2653_v12 = vpop.f32.mrb[7].mxu1 }
  0xf5   : > { %v446_v13 = vpop.f32.mrb[8].mxu0  ;;  %v510_v14 = vpop.f32.mrb[8].mxu1 }
  0xf6   : > { %v452_v15 = vadd.f32 %v446_v13, %v397_v10  ;;  %v2658_v16 = vpop.f32.mrb[9].mxu0  ;;  %v2664_v17 = vpop.f32.mrb[9].mxu1 }
  0xf7   : > { %v449_v18 = vpop.f32.mrb[10].mxu0  ;;  %v513_v19 = vpop.f32.mrb[10].mxu1 }
  0xf8   : > { %v516_v20 = vadd.f32 %v510_v14, %v452_v15  ;;  %v2659_v21 = vpop.f32.mrb[11].mxu0  ;;  %v2665_v22 = vpop.f32.mrb[11].mxu1 }
  0xfd   : > { %v565_v23 = vpop.f32.mrb[12].mxu0  ;;  %v620_v24 = vpop.f32.mrb[12].mxu1 }
  0xfe   : > { %v571_v25 = vadd.f32 %v565_v23, %v516_v20  ;;  %v2670_v26 = vpop.f32.mrb[13].mxu0  ;;  %v2676_v27 = vpop.f32.mrb[13].mxu1 }
  0xff   : > { %v568_v28 = vpop.f32.mrb[14].mxu0  ;;  %v623_v29 = vpop.f32.mrb[14].mxu1 }
 0x100   : > { %v626_v30 = vadd.f32 %v620_v24, %v571_v25  ;;  %v2671_v31 = vpop.f32.mrb[15].mxu0  ;;  %v2677_v32 = vpop.f32.mrb[15].mxu1 }
 0x105   : > { %v684_v33 = vpop.f32.mrb[16].mxu0  ;;  %v750_v35 = vpop.f32.mrb[16].mxu1 }
 0x106   : > { %v690_v36 = vadd.f32 %v684_v33, %v626_v30  ;;  %v2682_v37 = vpop.f32.mrb[17].mxu0  ;;  %v2688_v38 = vpop.f32.mrb[17].mxu1 }
 0x107   : > { %v687_v39 = vpop.f32.mrb[18].mxu0  ;;  %v753_v40 = vpop.f32.mrb[18].mxu1 }
 0x108   : > { %v698_v41 = vadd.f32 %v3244_v34, %v690_v36  ;;  %v2683_v42 = vpop.f32.mrb[19].mxu0  ;;  %v2689_v43 = vpop.f32.mrb[19].mxu1 }
 0x10a   : > { %700 = vst.msk [vmem:[#allocation2] sm:$0xf] %vm699_vm2, %v698_v41 }
 0x10d   : > { %v799_v44 = vpop.f32.mrb[20].mxu0  ;;  %v861_v45 = vpop.f32.mrb[20].mxu1 }
 0x10e   : > { %v800_v46 = vadd.f32 %v799_v44, %v750_v35  ;;  %v2694_v47 = vpop.f32.mrb[21].mxu0  ;;  %v2700_v48 = vpop.f32.mrb[21].mxu1 }
 0x10f   : > { %v802_v49 = vpop.f32.mrb[22].mxu0  ;;  %v864_v50 = vpop.f32.mrb[22].mxu1 }
 0x110   : > { %v867_v51 = vadd.f32 %v861_v45, %v800_v46  ;;  %v2695_v52 = vpop.f32.mrb[23].mxu0  ;;  %v2701_v53 = vpop.f32.mrb[23].mxu1 }
 0x115   : > { %v915_v54 = vpop.f32.mrb[24].mxu0  ;;  %v969_v55 = vpop.f32.mrb[24].mxu1 }
 0x116   : > { %v921_v56 = vadd.f32 %v915_v54, %v867_v51  ;;  %v2706_v57 = vpop.f32.mrb[25].mxu0  ;;  %v2712_v58 = vpop.f32.mrb[25].mxu1 }
 0x117   : > { %v918_v59 = vpop.f32.mrb[26].mxu0  ;;  %v972_v60 = vpop.f32.mrb[26].mxu1 }
 0x118   : > { %v975_v61 = vadd.f32 %v969_v55, %v921_v56  ;;  %v2707_v62 = vpop.f32.mrb[27].mxu0  ;;  %v2713_v63 = vpop.f32.mrb[27].mxu1 }
 0x11d   : > { %v1032_v0 = vpop.f32.mrb[28].mxu0  ;;  %v1086_v2 = vpop.f32.mrb[28].mxu1 }
 0x11e   : > { %v1038_v3 = vadd.f32 %v1032_v0, %v975_v61  ;;  %v2718_v4 = vpop.f32.mrb[29].mxu0  ;;  %v2724_v5 = vpop.f32.mrb[29].mxu1 }
 0x11f   : > { %v1035_v6 = vpop.f32.mrb[30].mxu0  ;;  %v1089_v7 = vpop.f32.mrb[30].mxu1 }
 0x120   : > { %v1092_v1 = vadd.f32 %v1086_v2, %v1038_v3  ;;  %v2719_v8 = vpop.f32.mrb[31].mxu0  ;;  %v2725_v9 = vpop.f32.mrb[31].mxu1 }
 0x125   : > { %v1140_v10 = vpop.f32.mrb[32].mxu0  ;;  %v1203_v11 = vpop.f32.mrb[32].mxu1 }
 0x126   : > { %v1146_v12 = vadd.f32 %v1140_v10, %v1092_v1  ;;  %v2730_v13 = vpop.f32.mrb[33].mxu0  ;;  %v2736_v14 = vpop.f32.mrb[33].mxu1 }
 0x127   : > { %v1143_v15 = vpop.f32.mrb[34].mxu0  ;;  %v1206_v16 = vpop.f32.mrb[34].mxu1 }
 0x128   : > { %v1209_v17 = vadd.f32 %v1203_v11, %v1146_v12  ;;  %v2731_v18 = vpop.f32.mrb[35].mxu0  ;;  %v2737_v19 = vpop.f32.mrb[35].mxu1 }
 0x12a   : > { %v1217_v20 = vadd.f32 %v3244_v34, %v1209_v17 }
 0x12c   : > { %1218 = vst.msk [vmem:[#allocation2 + $0x4] sm:$0xf] %vm699_vm2, %v1217_v20 }
 0x12d   : > { %v1268_v21 = vpop.f32.mrb[36].mxu0  ;;  %v1317_v22 = vpop.f32.mrb[36].mxu1 }
 0x12e   : > { %v1318_v23 = vadd.f32 %v1317_v22, %v1268_v21  ;;  %v2742_v24 = vpop.f32.mrb[37].mxu0  ;;  %v2748_v25 = vpop.f32.mrb[37].mxu1 }
 0x12f   : > { %v1271_v26 = vpop.f32.mrb[38].mxu0  ;;  %v1320_v27 = vpop.f32.mrb[38].mxu1 }
 0x130   : > { %v2743_v28 = vpop.f32.mrb[39].mxu0  ;;  %v2749_v29 = vpop.f32.mrb[39].mxu1 }
 0x135   : > { %v1379_v30 = vpop.f32.mrb[40].mxu0  ;;  %v1433_v31 = vpop.f32.mrb[40].mxu1 }
 0x136   : > { %v1385_v32 = vadd.f32 %v1379_v30, %v1318_v23  ;;  %v2754_v33 = vpop.f32.mrb[41].mxu0  ;;  %v2760_v35 = vpop.f32.mrb[41].mxu1 }
 0x137   : > { %v1382_v36 = vpop.f32.mrb[42].mxu0  ;;  %v1436_v37 = vpop.f32.mrb[42].mxu1 }
 0x138   : > { %v1439_v38 = vadd.f32 %v1433_v31, %v1385_v32  ;;  %v2755_v39 = vpop.f32.mrb[43].mxu0  ;;  %v2761_v40 = vpop.f32.mrb[43].mxu1 }
 0x13d   : > { %v1487_v41 = vpop.f32.mrb[44].mxu0  ;;  %v1550_v42 = vpop.f32.mrb[44].mxu1 }
 0x13e   : > { %v1493_v43 = vadd.f32 %v1487_v41, %v1439_v38  ;;  %v2766_v44 = vpop.f32.mrb[45].mxu0  ;;  %v2772_v45 = vpop.f32.mrb[45].mxu1 }
 0x13f   : > { %v1490_v46 = vpop.f32.mrb[46].mxu0  ;;  %v1553_v47 = vpop.f32.mrb[46].mxu1 }
 0x140   : > { %v1556_v48 = vadd.f32 %v1550_v42, %v1493_v43  ;;  %v2767_v49 = vpop.f32.mrb[47].mxu0  ;;  %v2773_v50 = vpop.f32.mrb[47].mxu1 }
 0x141   : > { %v2255_v49 = vld [vmem:[#allocation2] sm:$0xff] }
 0x145   : > { %v1604_v51 = vpop.f32.mrb[48].mxu0  ;;  %v1658_v52 = vpop.f32.mrb[48].mxu1 }
 0x146   : > { %v1610_v53 = vadd.f32 %v1604_v51, %v1556_v48  ;;  %v2778_v54 = vpop.f32.mrb[49].mxu0  ;;  %v2784_v55 = vpop.f32.mrb[49].mxu1  ;;  %v2258_v51 = vsel %vm2257_vm3, %v2255_v49, 0.0 }
 0x147   : > { %v1607_v56 = vpop.f32.mrb[50].mxu0  ;;  %v1661_v57 = vpop.f32.mrb[50].mxu1 }
 0x148   : > { %v1664_v58 = vadd.f32 %v1658_v52, %v1610_v53  ;;  %v2779_v59 = vpop.f32.mrb[51].mxu0  ;;  %v2785_v60 = vpop.f32.mrb[51].mxu1 }
 0x14d   : > { %v1721_v61 = vpop.f32.mrb[52].mxu0  ;;  %v1786_v62 = vpop.f32.mrb[52].mxu1 }
 0x14e   : > { %v1727_v63 = vadd.f32 %v1721_v61, %v1664_v58  ;;  %v2790_v0 = vpop.f32.mrb[53].mxu0  ;;  %v2796_v2 = vpop.f32.mrb[53].mxu1 }
 0x14f   : > { %v1724_v3 = vpop.f32.mrb[54].mxu0  ;;  %v1789_v4 = vpop.f32.mrb[54].mxu1 }
 0x150   : > { %v1735_v5 = vadd.f32 %v3244_v34, %v1727_v63  ;;  %v2791_v6 = vpop.f32.mrb[55].mxu0  ;;  %v2797_v7 = vpop.f32.mrb[55].mxu1 }
 0x152   : > { %1736 = vst.msk [vmem:[#allocation2 + $0x8] sm:$0xf] %vm699_vm2, %v1735_v5 }
 0x155   : > { %v1835_v1 = vpop.f32.mrb[56].mxu0  ;;  %v1897_v8 = vpop.f32.mrb[56].mxu1 }
 0x156   : > { %v1836_v9 = vadd.f32 %v1835_v1, %v1786_v62  ;;  %v2802_v10 = vpop.f32.mrb[57].mxu0  ;;  %v2808_v11 = vpop.f32.mrb[57].mxu1 }
 0x157   : > { %v1838_v12 = vpop.f32.mrb[58].mxu0  ;;  %v1900_v13 = vpop.f32.mrb[58].mxu1 }
 0x158   : > { %v1903_v14 = vadd.f32 %v1897_v8, %v1836_v9  ;;  %v2803_v15 = vpop.f32.mrb[59].mxu0  ;;  %v2809_v16 = vpop.f32.mrb[59].mxu1 }
 0x15d   : > { %v1951_v17 = vpop.f32.mrb[60].mxu0  ;;  %v2005_v18 = vpop.f32.mrb[60].mxu1 }
 0x15e   : > { %v1957_v19 = vadd.f32 %v1951_v17, %v1903_v14  ;;  %v2814_v20 = vpop.f32.mrb[61].mxu0  ;;  %v2820_v21 = vpop.f32.mrb[61].mxu1 }
 0x15f   : > { %v1954_v22 = vpop.f32.mrb[62].mxu0  ;;  %v2008_v23 = vpop.f32.mrb[62].mxu1 }
 0x160   : > { %v2011_v24 = vadd.f32 %v2005_v18, %v1957_v19  ;;  %v2815_v25 = vpop.f32.mrb[63].mxu0  ;;  %v2821_v26 = vpop.f32.mrb[63].mxu1 }
 0x165   : > { %v2068_v27 = vpop.f32.mrb[64].mxu0  ;;  %v2122_v28 = vpop.f32.mrb[64].mxu1 }
 0x166   : > { %v2074_v29 = vadd.f32 %v2068_v27, %v2011_v24  ;;  %v2826_v30 = vpop.f32.mrb[65].mxu0  ;;  %v2832_v31 = vpop.f32.mrb[65].mxu1 }
 0x167   : > { %v2071_v32 = vpop.f32.mrb[66].mxu0  ;;  %v2125_v33 = vpop.f32.mrb[66].mxu1 }
 0x168   : > { %v2128_v35 = vadd.f32 %v2122_v28, %v2074_v29  ;;  %v2827_v36 = vpop.f32.mrb[67].mxu0  ;;  %v2833_v37 = vpop.f32.mrb[67].mxu1 }
 0x16d   : > { %v2176_v38 = vpop.f32.mrb[68].mxu0  ;;  %v2239_v39 = vpop.f32.mrb[68].mxu1 }
 0x16e   : > { %v2182_v40 = vadd.f32 %v2176_v38, %v2128_v35  ;;  %v2838_v41 = vpop.f32.mrb[69].mxu0  ;;  %v2844_v42 = vpop.f32.mrb[69].mxu1 }
 0x16f   : > { %v2179_v43 = vpop.f32.mrb[70].mxu0  ;;  %v2242_v44 = vpop.f32.mrb[70].mxu1 }
 0x170   : > { %v2245_v45 = vadd.f32 %v2239_v39, %v2182_v40  ;;  %v2839_v46 = vpop.f32.mrb[71].mxu0  ;;  %v2845_v47 = vpop.f32.mrb[71].mxu1 }
 0x172   : > { %v2253_v48 = vadd.f32 %v3244_v34, %v2245_v45 }
 0x174   : > { %2254 = vst.msk [vmem:[#allocation2 + $0xc] sm:$0xf] %vm699_vm2, %v2253_v48 }
 0x17b   : > { %v2256_v50 = vld [vmem:[#allocation2 + $0x8] sm:$0xff] }
 0x17c   : > { %v2259_v52 = vsel %vm2257_vm3, %v2256_v50, 0.0 }
 0x17d   : > { %v2260_v53 = vadd.f32 %v2259_v52, %v2258_v51 }
 0x17f   : > { %v2261_v54 = vrot.slane %v2260_v53, 4 }
 0x181   : > { %v2262_v55 = vadd.f32 %v2261_v54, %v2260_v53 }
 0x183   : > { %v2263_v56 = vrot.slane %v2262_v55, 2 }
 0x185   : > { %v2264_v57 = vadd.f32 %v2263_v56, %v2262_v55 }
 0x187   : > { %v2265_v58 = vrot.slane %v2264_v57, 1 }
 0x189   : > { %v2266_v59 = vadd.f32 %v2265_v58, %v2264_v57 }
 0x18b   : > { %v2267_v60 = vmul.f32 0.0625, %v2266_v59 }
 0x18d   : > { %v2268_v61 = vsub.f32 %v2255_v49, %v2267_v60  ;;  %v2269_v62 = vsub.f32 %v2256_v50, %v2267_v60 }
 0x18f   : > { %v2270_v34 = vmul.f32 %v2268_v61, %v2268_v61  ;;  %v2271_v63 = vmul.f32 %v2269_v62, %v2269_v62 }
 0x191   : > { %v2272_v0 = vsel %vm2257_vm3, %v2270_v34, 0.0  ;;  %v2273_v2 = vsel %vm2257_vm3, %v2271_v63, 0.0 }
 0x192   : > { %v2274_v3 = vadd.f32 %v2273_v2, %v2272_v0 }
 0x194   : > { %v2275_v4 = vrot.slane %v2274_v3, 4 }
 0x196   : > { %v2276_v5 = vadd.f32 %v2275_v4, %v2274_v3 }
 0x198   : > { %v2277_v6 = vrot.slane %v2276_v5, 2 }
 0x19a   : > { %v2278_v7 = vadd.f32 %v2277_v6, %v2276_v5 }
 0x19c   : > { %v2279_v1 = vrot.slane %v2278_v7, 1 }
 0x19e   : > { %v2280_v8 = vadd.f32 %v2279_v1, %v2278_v7 }
 0x1a0   : > { %v2281_v9 = vmul.f32 0.0625, %v2280_v8 }
 0x1a2   : > { %v2282_v10 = vadd.f32 1e-05, %v2281_v9 }
 0x1a4   : > { %2905 = vrsqrt.f32 %v2282_v10 }
 0x1ae   : > { %v2906_v11 = vpop.eup %2905 }
 0x1af   : > { %v2284_v12 = vmul.f32 %v2906_v11, %v2268_v61  ;;  %v2285_v13 = vmul.f32 %v2906_v11, %v2269_v62 }
 0x1b1   : > { %vm2286_vm4 = vcmp.gt.f32.partialorder %v2284_v12, 0.0  ;;  %vm2287_vm5 = vcmp.gt.f32.partialorder %v2285_v13, 0.0  ;;  %v2288_v14 = vmul.f32 0.2, %v2284_v12  ;;  %v2289_v15 = vmul.f32 0.2, %v2285_v13 }
 0x1b3   : > { %v2290_v16 = vsel %vm2286_vm4, %v2284_v12, %v2288_v14  ;;  %v2291_v17 = vsel %vm2287_vm5, %v2285_v13, %v2289_v15 }
 0x1b4   : > { %v2556_v18 = vpack.c.bf16 %v2290_v16, %v2290_v16  ;;  %v2557_v19 = vpack.c.bf16 %v2291_v17, %v2291_v17 }
 0x1b6   : > { %2300 = vst.msk [vmem:[%s170_s21] sm:$0xf] %vm699_vm2, %v2556_v18  ;;  %2301 = vst.msk [vmem:[%s170_s21 + $0x4] sm:$0xf] %vm699_vm2, %v2557_v19 }
 0x1b7 PF: > { %s13_s12 = sadd.s32 1, %s2913_s12  }
 0x1b8   : > { %p10_p4 = scmp.ge.s32.totalorder %s13_s12, 4  }
 0x1ba   :  { %12 = sbr.rel (!%p10_p4) target bundleno = 1 (0x1), region = 87 }

// kernel: style_encoder_forward.5
= control target key start
LH: loop header
LB: loop body
LE: loop exit
PB: predicated region body
PF: predicated region fallthrough
CT: control target
= control target key end

     0   :  { %s4198_s12 = smov 0   ;;  %s4846_s0 = inlined_call_operand.vmem [shape: bf16[2,1,22,22,4], index: 0, kind: input, shape index: {}]   ;;  %s4847_s1 = inlined_call_operand.vmem [shape: bf16[49,4,8], index: 1, kind: input, shape index: {}]   ;;  %s4848_s2 = inlined_call_operand.vmem [shape: f32[1,8], index: 2, kind: input, shape index: {}]   ;;  %s4849_s3 = inlined_call_operand.vmem [shape: bf16[2,16,16,8], index: 3, kind: output, shape index: {}]  }
   0x1 LB: > { %s3461_s13 = sadd.s32 4294967295, %s4170_s12   ;;  %p3465_p0 = scmp.ge.s32.totalorder %s4170_s12, 1  ;;  %s4170_s12 = sphi %s4198_s12, %s13_s12  }
   0x2   : > { %p137_p1 = scmp.lt.s32.totalorder %s4170_s12, 3 }
   0x4   : > { %p138_p2 = pnand %p3465_p0, %p137_p1 }
   0x5   : > { %p161_p3 = scmp.lt.s32.totalorder (!%p138_p2), %s3461_s13, 1  ;;  %s4216_s22 = smov (!%p138_p2), 0  }
   0x6   : > { %141 = sbr.rel (%p138_p2) target bundleno = 447 (0x1bf), region = 32 }
   0xd   : > { %s4851_s13 = smov (!%p161_p3, %s3461_s13), 1 }
   0xe   : > { %s4086_s14 = smul.u32 264, %s4851_s13  ;;  %s3689_s15 = sshll.u32 %s4851_s13, 7 }
   0xf   : > { %s4209_s18 = scalar_lea.vmem %s4849_s3, %s3689_s15 }
  0x10   : > { %s4214_s21 = scalar_lea.vmem %s4846_s0, %s4086_s14 }
  0x11 LB: >> { %v3470_v0 = vld [vmem:[%s4847_s1 + $0x2] sm:$0x3]  ;;  %vm212_vm0 = vcmask 1041408   ;;  %v183_v1 = vld [vmem:[%s4847_s1] sm:$0x3]  ;;  %v4176_v2 = vmov 0.0   ;;  %s4174_s22 = sphi %s4216_s22, %s177_s22  }
  0x12   : >> { %3792 = vmatprep.subr.bf16.mxu0 %v4176_v2  ;;  %v214_v3 = vsel %vm212_vm0, %v3470_v0, 0  ;;  %3798 = vmatprep.subr.bf16.mxu1 %v4176_v2  ;;  %v260_v4 = vsel %vm212_vm0, %v183_v1, 0  ;;  %s3690_s27 = smul.u32 12, %s4174_s22  ;;  %vm4177_vm1 = vmmov 0   ;;  %v3478_v5 = vld [vmem:[%s4847_s1 + $0x6] sm:$0x3] }
  0x13   : >> { %3793 = vmatpush3.bf16.msra.mxu0 %v214_v3  ;;  %3799 = vmatpush3.bf16.msra.mxu1 %v260_v4  ;;  %vm195_vm2 = vsmask.f32 7424  ;;  %vm208_vm3 = vcmask 31744   ;;  %v390_v10 = vsel %vm212_vm0, %v3478_v5, 0  ;;  %v3475_v18 = vld [vmem:[%s4847_s1 + $0x4] sm:$0x3] }
  0x14   : >> { %3794 = vmatprep.mubr.msk.bf16.mxu0 %vm4177_vm1, %v4176_v2  ;;  %3800 = vmatprep.mubr.msk.bf16.mxu1 %vm4177_vm1, %v4176_v2  ;;  %s4241_s30 = scalar_lea.vmem %s4214_s21, %s3690_s27  ;;  %v3484_v32 = vld [vmem:[%s4847_s1 + $0xa] sm:$0x3]  ;;  %v317_v33 = vsel %vm212_vm0, %v3475_v18, 0  ;;  %vm368_vm4 = vsmask.f32 6400  ;;  %vm309_vm5 = vcmask 1046528  }
  0x15   : >> { %3804 = vmatprep.subr.bf16.mxu0 %v4176_v2  ;;  %3810 = vmatprep.subr.bf16.mxu1 %v4176_v2  ;;  %v181_v6 = vld [vmem:[%s4241_s30] sm:$0xf]  ;;  %v4246_v7 = vld [vmem:[%s4241_s30 + $0x4] sm:$0xf]  ;;  %v522_v39 = vsel %vm212_vm0, %v3484_v32, 0  ;;  %vm441_vm7 = vcmask 1045504  }
  0x16   : >> { %v3471_v8 = vcombine.low %v181_v6, %v4246_v7  ;;  %v4106_v9 = vld [vmem:[%s4241_s30 + $0x8] ss:$0 sps:$4 sm:$0x11]   ;;  %v303_v11 = vld [vmem:[%s4241_s30] sm:$0xe]  ;;  %v4112_v6 = vld [vmem:[%s4241_s30 + $0xc] sm:$0xff]  }
  0x17   : >> { %v3476_v12 = vcombine.low %v303_v11, %v4246_v7  ;;  %v4254_v13 = vld [vmem:[%s4241_s30 + $0x8] ss:$0 sps:$4 sm:$0x33]   ;;  %v204_v16 = vshll.u32 %v4106_v9, 16  ;;  %v435_v17 = vld [vmem:[%s4241_s30] sm:$0xc] }
  0x18   : >> { %v197_v14 = vshrl.u32 %v3471_v8, 16  ;;  %v199_v15 = vshll.u32 %v3471_v8, 16  ;;  %3801 = vmatmul.mubr.msk.bf16.vlgmr.msra.gmra.mrb[0].mxu1 %vm208_vm3, %v3471_v8  ;;  %v378_v21 = vshrl.u32 %v4254_v13, 16  ;;  %v381_v24 = vshll.u32 %v4254_v13, 16  ;;  %v3481_v49 = vld [vmem:[%s4847_s1 + $0x8] sm:$0x3] }
  0x19   : >> { %3811 = vmatpush3.bf16.msra.mxu1 %v390_v10  ;;  %3812 = vmatprep.mubr.msk.bf16.mxu1 %vm4177_vm1, %v4176_v2  ;;  %v370_v19 = vshrl.u32 %v3476_v12, 16  ;;  %v373_v20 = vshll.u32 %v3476_v12, 16  ;;  %v206_v23 = vrot.slane %v204_v16, 1  ;;  %v3482_v25 = vcombine.low %v435_v17, %v4246_v7  ;;  %v4268_v29 = vld [vmem:[%s4241_s30 + $0x8] ss:$0 sps:$4 sm:$0x77]  }
  0x1a   : >> { %v201_v22 = vrot.slane %v199_v15, 1  ;;  %3822 = vmatprep.subr.bf16.mxu1 %v4176_v2  ;;  %v380_v28 = vrot.slane %v378_v21, 1  ;;  %v383_v31 = vrot.slane %v381_v24, 2  ;;  %v510_v41 = vshrl.u32 %v4268_v29, 16  ;;  %v3492_v53 = vld [vmem:[%s4847_s1 + $0xe] sm:$0x3] }
  0x1b   : >> { %v372_v26 = vrot.slane %v370_v19, 1  ;;  %v375_v27 = vrot.slane %v373_v20, 2  ;;  %v502_v35 = vshrl.u32 %v3482_v25, 16  ;;  %v505_v38 = vshll.u32 %v3482_v25, 16  ;;  %v567_v59 = vld [vmem:[%s4241_s30] sm:$0x8] }
  0x1c   : >> { %v202_v30 = vor.u32 %v201_v22, %v197_v14  ;;  %v384_v37 = vor.u32 %v383_v31, %v380_v28  ;;  %v513_v42 = vshll.u32 %v4268_v29, 16  ;;  %v310_v43 = vrot.slane %v3476_v12, 1  ;;  %v3495_v60 = vld [vmem:[%s4241_s30 + $0xc] sm:$0xf]  ;;  %v4306_v61 = vld [vmem:[%s4241_s30 + $0x10] sm:$0xf] }
  0x1d   : >> { %v376_v34 = vor.u32 %v375_v27, %v372_v26  ;;  %v504_v40 = vrot.slane %v502_v35, 2  ;;  %v311_v44 = vrot.slane %v4106_v9, 1  ;;  %v507_v46 = vrot.slane %v505_v38, 3  ;;  %v3487_v62 = vld [vmem:[%s4847_s1 + $0xc] sm:$0x3]  ;;  %s3693_s9 = sshll.u32 %s4174_s22, 3 }
  0x1e   : >> { %v207_v36 = vsel %vm195_vm2, %v202_v30, %v206_v23  ;;  %v512_v47 = vrot.slane %v510_v41, 2  ;;  %v515_v48 = vrot.slane %v513_v42, 3  ;;  %vm500_vm6 = vsmask.f32 5376  ;;  %v3502_v0 = vld [vmem:[%s4241_s30 + $0xc] sm:$0xe]  ;;  %s3375_s10 = scalar_lea.vmem %s4209_s18, %s3693_s9 }
  0x1f   : >> { %3795 = vmatmul.mubr.msk.bf16.vlgmr.msra.gmra.mrb[0].mxu0 %vm208_vm3, %v207_v36  ;;  %v385_v45 = vsel %vm368_vm4, %v376_v34, %v384_v37  ;;  %v508_v50 = vor.u32 %v507_v46, %v504_v40  ;;  %v312_v52 = vsel %vm309_vm5, %v310_v43, %v311_v44  ;;  %v449_v54 = vsel %vm212_vm0, %v3481_v49, 0  ;;  %v3503_v3 = vld [vmem:[%s4847_s1 + $0x12] sm:$0x3]  ;;  %v4114_v11 = vld [vmem:[%s4241_s30 + $0x14] ss:$0 sps:$4 sm:$0x11]  }
  0x20   : >> { %3805 = vmatpush3.bf16.msra.mxu0 %v317_v33  ;;  %3806 = vmatprep.mubr.msk.bf16.mxu0 %vm4177_vm1, %v4176_v2  ;;  %v516_v51 = vor.u32 %v515_v48, %v512_v47  ;;  %v643_v56 = vsel %vm212_vm0, %v3492_v53, 0  ;;  %v442_v57 = vrot.slane %v3482_v25, 2  ;;  %v443_v58 = vrot.slane %v4254_v13, 2  ;;  %v3498_v13 = vld [vmem:[%s4847_s1 + $0x10] sm:$0x3]  ;;  %s177_s22 = sadd.s32 1, %s4174_s22  }
  0x21   : >> { %3816 = vmatprep.subr.bf16.mxu0 %v4176_v2  ;;  %3813 = vmatmul.mubr.msk.bf16.vlgmr.msra.gmra.mrb[4].mxu1 %vm208_vm3, %v385_v45  ;;  %v3488_v63 = vcombine.low %v567_v59, %v4246_v7  ;;  %v3499_v4 = vcombine.low %v3495_v60, %v4306_v61  ;;  %v581_v5 = vsel %vm212_vm0, %v3487_v62, 0  ;;  %v3504_v8 = vcombine.low %v3502_v0, %v4306_v61  ;;  %v3511_v16 = vld [vmem:[%s4847_s1 + $0x16] sm:$0x3]  ;;  %v3510_v17 = vld [vmem:[%s4241_s30 + $0xc] sm:$0xc]  ;;  %p174_p4 = scmp.ge.s32.totalorder %s177_s22, 16  }
  0x22   : >> { %3823 = vmatpush3.bf16.msra.mxu1 %v522_v39  ;;  %3824 = vmatprep.mubr.msk.bf16.mxu1 %vm4177_vm1, %v4176_v2  ;;  %v517_v55 = vsel %vm500_vm6, %v508_v50, %v516_v51  ;;  %v444_v1 = vsel %vm441_vm7, %v442_v57, %v443_v58  ;;  %v575_v7 = vrot.slane %v4268_v29, 3  ;;  %v775_v10 = vsel %vm212_vm0, %v3503_v3, 0  ;;  %v4116_v22 = vld [vmem:[%s4241_s30 + $0x14] ss:$0 sps:$4 sm:$0x33]  }
  0x23   : >> { %3834 = vmatprep.subr.bf16.mxu1 %v4176_v2  ;;  %v574_v9 = vrot.slane %v3488_v63, 3  ;;  %v704_v12 = vshll.u32 %v3499_v4, 16  ;;  %vm573_vm8 = vcmask 1044480   ;;  %v768_v14 = vrot.slane %v3504_v8, 1  ;;  %v3507_v33 = vld [vmem:[%s4847_s1 + $0x14] sm:$0x3] }
  0x24   : >> { %v769_v15 = vrot.slane %v4114_v11, 1  ;;  %v702_v19 = vshrl.u32 %v3499_v4, 16  ;;  %v709_v21 = vshll.u32 %v4114_v11, 16  ;;  %v717_v23 = vsel %vm212_vm0, %v3498_v13, 0  ;;  %v3519_v38 = vld [vmem:[%s4847_s1 + $0x1a] sm:$0x3] }
  0x25   : >> { %v576_v18 = vsel %vm573_vm8, %v574_v9, %v575_v7  ;;  %v706_v20 = vrot.slane %v704_v12, 1  ;;  %v827_v24 = vshrl.u32 %v3504_v8, 16  ;;  %v830_v25 = vshll.u32 %v3504_v8, 16  ;;  %v3518_v39 = vld [vmem:[%s4241_s30 + $0xc] sm:$0x8] }
  0x26   : >> { %v770_v26 = vsel %vm309_vm5, %v768_v14, %v769_v15  ;;  %v3512_v27 = vcombine.low %v3510_v17, %v4306_v61  ;;  %v905_v28 = vsel %vm212_vm0, %v3511_v16, 0  ;;  %v711_v30 = vrot.slane %v709_v21, 1  ;;  %v3527_v40 = vld [vmem:[%s4241_s30 + $0x18] sm:$0xf]  ;;  %v4365_v41 = vld [vmem:[%s4241_s30 + $0x1c] sm:$0xf] }
  0x27   : >> { %3807 = vmatmul.mubr.msk.bf16.vlgmr.msra.gmra.mrb[4].mxu0 %vm208_vm3, %v312_v52  ;;  %v707_v29 = vor.u32 %v706_v20, %v702_v19  ;;  %v835_v31 = vshrl.u32 %v4116_v22, 16  ;;  %v838_v32 = vshll.u32 %v4116_v22, 16  ;;  %v829_v34 = vrot.slane %v827_v24, 1  ;;  %v4118_v45 = vld [vmem:[%s4241_s30 + $0x14] ss:$0 sps:$4 sm:$0x77]  }
  0x28   : >> { %3817 = vmatpush3.bf16.msra.mxu0 %v449_v54  ;;  %3818 = vmatprep.mubr.msk.bf16.mxu0 %vm4177_vm1, %v4176_v2  ;;  %v832_v35 = vrot.slane %v830_v25, 2  ;;  %v898_v36 = vrot.slane %v3512_v27, 2  ;;  %v899_v37 = vrot.slane %v4116_v22, 2  ;;  %v847_v46 = vsel %vm212_vm0, %v3507_v33, 0  ;;  %v3515_v57 = vld [vmem:[%s4847_s1 + $0x18] sm:$0x3] }
  0x29   : >> { %3828 = vmatprep.subr.bf16.mxu0 %v4176_v2  ;;  %3825 = vmatmul.mubr.msk.bf16.vlgmr.msra.gmra.mrb[8].mxu1 %vm208_vm3, %v517_v55  ;;  %v712_v42 = vsel %vm195_vm2, %v707_v29, %v711_v30  ;;  %v837_v43 = vrot.slane %v835_v31, 1  ;;  %v840_v44 = vrot.slane %v838_v32, 2  ;;  %v3520_v48 = vcombine.low %v3518_v39, %v4306_v61  ;;  %v4383_v58 = vld [vmem:[%s4241_s30 + $0x20] ss:$0 sps:$4 sm:$0x11]  }
  0x2a   : >> { %3835 = vmatpush3.bf16.msra.mxu1 %v643_v56  ;;  %3836 = vmatprep.mubr.msk.bf16.mxu1 %vm4177_vm1, %v4176_v2  ;;  %v900_v47 = vsel %vm441_vm7, %v898_v36, %v899_v37  ;;  %v3531_v49 = vcombine.low %v3527_v40, %v4365_v41  ;;  %v833_v50 = vor.u32 %v832_v35, %v829_v34  ;;  %v1035_v51 = vsel %vm212_vm0, %v3519_v38, 0  ;;  %v3534_v62 = vld [vmem:[%s4241_s30 + $0x18] sm:$0xe]  ;;  %v3530_v0 = vld [vmem:[%s4847_s1 + $0x1e] sm:$0x3] }
  0x2b   : >> { %3846 = vmatprep.subr.bf16.mxu1 %v4176_v2  ;;  %v957_v52 = vshrl.u32 %v3512_v27, 16  ;;  %v841_v53 = vor.u32 %v840_v44, %v837_v43  ;;  %v960_v54 = vshll.u32 %v3512_v27, 16  ;;  %v965_v55 = vshrl.u32 %v4118_v45, 16  ;;  %v4400_v12 = vld [vmem:[%s4241_s30 + $0x20] ss:$0 sps:$4 sm:$0x33]  }
  0x2c   : >> { %v968_v56 = vshll.u32 %v4118_v45, 16  ;;  %v1028_v59 = vrot.slane %v3520_v48, 3  ;;  %v1029_v60 = vrot.slane %v4118_v45, 3  ;;  %v1158_v61 = vshll.u32 %v3531_v49, 16  ;;  %v3524_v16 = vld [vmem:[%s4847_s1 + $0x1c] sm:$0x3] }
  0x2d   : >> { %v959_v63 = vrot.slane %v957_v52, 2  ;;  %v962_v3 = vrot.slane %v960_v54, 3  ;;  %v967_v4 = vrot.slane %v965_v55, 2  ;;  %v1163_v8 = vshll.u32 %v4383_v58, 16  ;;  %v3539_v25 = vld [vmem:[%s4847_s1 + $0x22] sm:$0x3] }
  0x2e   : >> { %v4396_v9 = vcombine.low %v3534_v62, %v4365_v41  ;;  %v1030_v7 = vsel %vm573_vm8, %v1028_v59, %v1029_v60  ;;  %v1160_v11 = vrot.slane %v1158_v61, 1  ;;  %v1171_v13 = vsel %vm212_vm0, %v3530_v0, 0  ;;  %v4428_v29 = vld [vmem:[%s4241_s30 + $0x20] ss:$0 sps:$4 sm:$0x77]   ;;  %v4120_v43 = vld [vmem:[%s4241_s30 + $0x18] sm:$0xff]  }
  0x2f   : >> { %3819 = vmatmul.mubr.msk.bf16.vlgmr.msra.gmra.mrb[8].mxu0 %vm208_vm3, %v444_v1  ;;  %v842_v1 = vsel %vm368_vm4, %v833_v50, %v841_v53  ;;  %v963_v14 = vor.u32 %v962_v3, %v959_v63  ;;  %v1165_v17 = vrot.slane %v1163_v8, 1  ;;  %v1289_v21 = vshrl.u32 %v4400_v12, 16  ;;  %v3535_v37 = vld [vmem:[%s4847_s1 + $0x20] sm:$0x3]  ;;  %v3547_v44 = vld [vmem:[%s4847_s1 + $0x26] sm:$0x3] }
  0x30   : >> { %3829 = vmatpush3.bf16.msra.mxu0 %v581_v5  ;;  %3830 = vmatprep.mubr.msk.bf16.mxu0 %vm4177_vm1, %v4176_v2  ;;  %v970_v5 = vrot.slane %v968_v56, 3  ;;  %v1284_v20 = vshll.u32 %v4396_v9, 16  ;;  %v1292_v22 = vshll.u32 %v4400_v12, 16  ;;  %v1301_v34 = vsel %vm212_vm0, %v3539_v25, 0  ;;  %v3543_v54 = vld [vmem:[%s4847_s1 + $0x24] sm:$0x3] }
  0x31   : >> { %3840 = vmatprep.subr.bf16.mxu0 %v4176_v2  ;;  %3837 = vmatmul.mubr.msk.bf16.vlgmr.msra.gmra.mrb[12].mxu1 %vm208_vm3, %v4112_v6  ;;  %v977_v6 = vsel %vm212_vm0, %v3515_v57, 0  ;;  %v1291_v32 = vrot.slane %v1289_v21, 1  ;;  %v1419_v40 = vshrl.u32 %v4428_v29, 16  ;;  %v1229_v45 = vsel %vm212_vm0, %v3535_v37, 0  ;;  %v3550_v0 = vld [vmem:[%s4241_s30 + $0x18] sm:$0x8] }
  0x32   : >> { %3847 = vmatpush3.bf16.msra.mxu1 %v775_v10  ;;  %3848 = vmatprep.mubr.msk.bf16.mxu1 %vm4177_vm1, %v4176_v2  ;;  %v1156_v10 = vshrl.u32 %v3531_v49, 16  ;;  %v971_v15 = vor.u32 %v970_v5, %v967_v4  ;;  %v1286_v31 = vrot.slane %v1284_v20, 2  ;;  %v1294_v33 = vrot.slane %v1292_v22, 2  ;;  %v4484_v3 = vld [vmem:[%s4241_s30 + $0x28] sm:$0xf] }
  0x33   : >> { %3858 = vmatprep.subr.bf16.mxu1 %v4176_v2  ;;  %v1421_v49 = vrot.slane %v1419_v40, 2  ;;  %v1222_v52 = vrot.slane %v4396_v9, 1  ;;  %v1223_v53 = vrot.slane %v4383_v58, 1  ;;  %v3556_v58 = vld [vmem:[%s4847_s1 + $0x2a] sm:$0x3]  ;;  %v1359_v59 = vsel %vm212_vm0, %v3543_v54, 0 }
  0x34   : >> { %v1161_v19 = vor.u32 %v1160_v11, %v1156_v10  ;;  %v972_v24 = vsel %vm500_vm6, %v963_v14, %v971_v15  ;;  %v1295_v39 = vor.u32 %v1294_v33, %v1291_v32  ;;  %v1551_v61 = vsel %vm212_vm0, %v3556_v58, 0  ;;  %v3551_v4 = vld [vmem:[%s4847_s1 + $0x28] sm:$0x3]  ;;  %v4130_v15 = vld [vmem:[%s4241_s30 + $0x2c] ss:$0 sps:$4 sm:$0x11]  }
  0x35   : >> { %v1224_v57 = vsel %vm309_vm5, %v1222_v52, %v1223_v53  ;;  %v1353_v63 = vrot.slane %v4400_v12, 2  ;;  %v3552_v5 = vcombine.low %v3550_v0, %v4365_v41  ;;  %v1489_v10 = vsel %vm212_vm0, %v3551_v4, 0  ;;  %v4128_v11 = vld [vmem:[%s4241_s30 + $0x24] sm:$0xff]   ;;  %v3575_v20 = vld [vmem:[%s4847_s1 + $0x32] sm:$0x3] }
  0x36   : >> { %v1166_v30 = vsel %vm195_vm2, %v1161_v19, %v1165_v17  ;;  %v3562_v17 = vld [vmem:[%s4847_s1 + $0x2c] sm:$0x3]  ;;  %v1677_v19 = vrot.slane %v4130_v15, 1  ;;  %v3574_v21 = vld [vmem:[%s4241_s30 + $0x24] sm:$0xc]  ;;  %v1617_v25 = vshll.u32 %v4130_v15, 16 }
  0x37   : >> { %3831 = vmatmul.mubr.msk.bf16.vlgmr.msra.gmra.mrb[12].mxu0 %vm208_vm3, %v576_v18  ;;  %v1281_v18 = vshrl.u32 %v4396_v9, 16  ;;  %v3567_v9 = vld [vmem:[%s4847_s1 + $0x2e] sm:$0x3]  ;;  %v3571_v37 = vld [vmem:[%s4847_s1 + $0x30] sm:$0x3]  ;;  %vm3376_vm10 = vcmask 60416  }
  0x38   : >> { %3841 = vmatpush3.bf16.msra.mxu0 %v717_v23  ;;  %3842 = vmatprep.mubr.msk.bf16.mxu0 %vm4177_vm1, %v4176_v2  ;;  %v3542_v23 = vld [vmem:[%s4241_s30 + $0x18] sm:$0xc]  ;;  %v1683_v14 = vsel %vm212_vm0, %v3567_v9, 0  ;;  %v3583_v40 = vld [vmem:[%s4847_s1 + $0x36] sm:$0x3] }
  0x39   : >> { %3852 = vmatprep.subr.bf16.mxu0 %v4176_v2  ;;  %3849 = vmatmul.mubr.msk.bf16.vlgmr.msra.gmra.mrb[16].mxu1 %vm208_vm3, %v770_v26  ;;  %v1097_v26 = vsel %vm212_vm0, %v3524_v16, 0  ;;  %v1283_v27 = vrot.slane %v1281_v18, 1  ;;  %v3598_v4 = vld [vmem:[%s4241_s30 + $0x30] sm:$0xe] }
  0x3a   : >> { %3859 = vmatpush3.bf16.msra.mxu1 %v905_v28  ;;  %3860 = vmatprep.mubr.msk.bf16.mxu1 %vm4177_vm1, %v4176_v2  ;;  %v4425_v28 = vcombine.low %v3542_v23, %v4365_v41  ;;  %v1483_v41 = vrot.slane %v4428_v29, 3 }
  0x3b   : >> { %3870 = vmatprep.subr.bf16.mxu1 %v4176_v2  ;;  %v1287_v38 = vor.u32 %v1286_v31, %v1283_v27  ;;  %v1625_v27 = vsel %vm212_vm0, %v3562_v17, 0 }
  0x3c   : >> { %v1411_v35 = vshrl.u32 %v4425_v28, 16  ;;  %v1414_v36 = vshll.u32 %v4425_v28, 16  ;;  %v1352_v62 = vrot.slane %v4425_v28, 2 }
  0x3d   : >> { %v1296_v48 = vsel %vm368_vm4, %v1287_v38, %v1295_v39 }
  0x3e   : >> { %v1354_v8 = vsel %vm441_vm7, %v1352_v62, %v1353_v63  ;;  %v3579_v62 = vld [vmem:[%s4847_s1 + $0x34] sm:$0x3] }
  0x3f   : >> { %3843 = vmatmul.mubr.msk.bf16.vlgmr.msra.gmra.mrb[16].mxu0 %vm208_vm3, %v712_v42  ;;  %v1422_v42 = vshll.u32 %v4428_v29, 16  ;;  %v3576_v29 = vcombine.low %v3574_v21, %v4484_v3 }
  0x40   : >> { %3853 = vmatpush3.bf16.msra.mxu0 %v847_v46  ;;  %3854 = vmatprep.mubr.msk.bf16.mxu0 %vm4177_vm1, %v4176_v2  ;;  %v1413_v46 = vrot.slane %v1411_v35, 2 }
  0x41   : >> { %3864 = vmatprep.subr.bf16.mxu0 %v4176_v2  ;;  %3861 = vmatmul.mubr.msk.bf16.vlgmr.msra.gmra.mrb[20].mxu1 %vm208_vm3, %v900_v47  ;;  %v1416_v47 = vrot.slane %v1414_v36, 3  ;;  %v1424_v50 = vrot.slane %v1422_v42, 3  ;;  %v1806_v38 = vrot.slane %v3576_v29, 2  ;;  %v3582_v42 = vld [vmem:[%s4241_s30 + $0x24] sm:$0x8] }
  0x42   : >> { %3871 = vmatpush3.bf16.msra.mxu1 %v1035_v51  ;;  %3872 = vmatprep.mubr.msk.bf16.mxu1 %vm4177_vm1, %v4176_v2  ;;  %v1431_v51 = vsel %vm212_vm0, %v3547_v44, 0  ;;  %v3584_v52 = vcombine.low %v3582_v42, %v4484_v3  ;;  %v3599_v42 = vld [vmem:[%s4847_s1 + $0x3c] sm:$0x3] }
  0x43   : >> { %3882 = vmatprep.subr.bf16.mxu1 %v4176_v2  ;;  %v1417_v55 = vor.u32 %v1416_v47, %v1413_v46  ;;  %v1425_v56 = vor.u32 %v1424_v50, %v1421_v49  ;;  %v4543_v46 = vld [vmem:[%s4241_s30 + $0x34] sm:$0xf]  ;;  %v4134_v50 = vld [vmem:[%s4241_s30 + $0x2c] ss:$0 sps:$4 sm:$0x77]  }
  0x44   : >> { %v1936_v63 = vrot.slane %v3584_v52, 3  ;;  %v1937_v0 = vrot.slane %v4134_v50, 3 }
  0x45   : >> { %v1426_v60 = vsel %vm500_vm6, %v1417_v55, %v1425_v56  ;;  %v1943_v56 = vsel %vm212_vm0, %v3583_v40, 0 }
  0x47   : >> { %3855 = vmatmul.mubr.msk.bf16.vlgmr.msra.gmra.mrb[20].mxu0 %vm208_vm3, %v842_v1  ;;  %v3559_v1 = vld [vmem:[%s4241_s30 + $0x24] sm:$0xf] }
  0x48   : >> { %3865 = vmatpush3.bf16.msra.mxu0 %v977_v6  ;;  %3866 = vmatprep.mubr.msk.bf16.mxu0 %vm4177_vm1, %v4176_v2  ;;  %v3566_v6 = vld [vmem:[%s4241_s30 + $0x24] sm:$0xe] }
  0x49   : >> { %3876 = vmatprep.subr.bf16.mxu0 %v4176_v2  ;;  %3873 = vmatmul.mubr.msk.bf16.vlgmr.msra.gmra.mrb[24].mxu1 %vm208_vm3, %v1030_v7  ;;  %v3563_v7 = vcombine.low %v3559_v1, %v4484_v3  ;;  %v3568_v12 = vcombine.low %v3566_v6, %v4484_v3  ;;  %v4563_v1 = vld [vmem:[%s4241_s30 + $0x38] ss:$0 sps:$4 sm:$0x11]  }
  0x4a   : >> { %3883 = vmatpush3.bf16.msra.mxu1 %v1171_v13  ;;  %3884 = vmatprep.mubr.msk.bf16.mxu1 %vm4177_vm1, %v4176_v2  ;;  %v1482_v13 = vrot.slane %v3552_v5, 3  ;;  %v2071_v15 = vshll.u32 %v4563_v1, 16 }
  0x4b   : >> { %3894 = vmatprep.subr.bf16.mxu1 %v4176_v2  ;;  %v1612_v16 = vshll.u32 %v3563_v7, 16  ;;  %v1676_v18 = vrot.slane %v3568_v12, 1  ;;  %v1610_v23 = vshrl.u32 %v3563_v7, 16  ;;  %v1735_v31 = vshrl.u32 %v3568_v12, 16 }
  0x4c   : >> { %v1484_v22 = vsel %vm573_vm8, %v1482_v13, %v1483_v41  ;;  %v1738_v32 = vshll.u32 %v3568_v12, 16  ;;  %v4573_v12 = vcombine.low %v3598_v4, %v4543_v46  ;;  %v1938_v13 = vsel %vm573_vm8, %v1936_v63, %v1937_v0  ;;  %v3620_v63 = vld [vmem:[%s4847_s1 + $0x46] sm:$0x3] }
  0x4d   : >> { %v1678_v28 = vsel %vm309_vm5, %v1676_v18, %v1677_v19 }
  0x4e   : >> { %v1740_v44 = vrot.slane %v1738_v32, 2  ;;  %v2189_v21 = vshrl.u32 %v4573_v12, 16 }
  0x4f   : >> { %3867 = vmatmul.mubr.msk.bf16.vlgmr.msra.gmra.mrb[24].mxu0 %vm208_vm3, %v972_v24  ;;  %v1614_v24 = vrot.slane %v1612_v16, 1  ;;  %v4578_v16 = vld [vmem:[%s4241_s30 + $0x38] ss:$0 sps:$4 sm:$0x33]  }
  0x50   : >> { %3877 = vmatpush3.bf16.msra.mxu0 %v1097_v26  ;;  %3878 = vmatprep.mubr.msk.bf16.mxu0 %vm4177_vm1, %v4176_v2  ;;  %v4132_v26 = vld [vmem:[%s4241_s30 + $0x2c] ss:$0 sps:$4 sm:$0x33]  }
  0x51   : >> { %3888 = vmatprep.subr.bf16.mxu0 %v4176_v2  ;;  %3885 = vmatmul.mubr.msk.bf16.vlgmr.msra.gmra.mrb[28].mxu1 %vm208_vm3, %v1166_v30  ;;  %v1813_v30 = vsel %vm212_vm0, %v3575_v20, 0  ;;  %v1615_v33 = vor.u32 %v1614_v24, %v1610_v23  ;;  %v1743_v35 = vshrl.u32 %v4132_v26, 16  ;;  %v1746_v36 = vshll.u32 %v4132_v26, 16  ;;  %v3588_v20 = vld [vmem:[%s4847_s1 + $0x38] sm:$0x3] }
  0x52   : >> { %3895 = vmatpush3.bf16.msra.mxu1 %v1301_v34  ;;  %3896 = vmatprep.mubr.msk.bf16.mxu1 %vm4177_vm1, %v4176_v2  ;;  %v1619_v34 = vrot.slane %v1617_v25, 1  ;;  %v1807_v39 = vrot.slane %v4132_v26, 2  ;;  %v2073_v24 = vrot.slane %v2071_v15, 1  ;;  %v2197_v25 = vshrl.u32 %v4578_v16, 16  ;;  %v4144_v15 = vld [vmem:[%s4241_s30 + $0x3c] sm:$0xff]  }
  0x53   : >> { %3906 = vmatprep.subr.bf16.mxu1 %v4176_v2  ;;  %v1748_v49 = vrot.slane %v1746_v36, 2  ;;  %v2200_v26 = vshll.u32 %v4578_v16, 16 }
  0x54   : >> { %v1620_v47 = vsel %vm195_vm2, %v1615_v33, %v1619_v34  ;;  %v1808_v53 = vsel %vm441_vm7, %v1806_v38, %v1807_v39 }
  0x55   : >> { %v2202_v36 = vrot.slane %v2200_v26, 2 }
  0x57   : >> { %3879 = vmatmul.mubr.msk.bf16.vlgmr.msra.gmra.mrb[28].mxu0 %vm208_vm3, %v4120_v43  ;;  %v1737_v43 = vrot.slane %v1735_v31, 1  ;;  %v2191_v31 = vrot.slane %v2189_v21, 1  ;;  %v3626_v21 = vld [vmem:[%s4847_s1 + $0x48] sm:$0x3] }
  0x58   : >> { %3889 = vmatpush3.bf16.msra.mxu0 %v1229_v45  ;;  %3890 = vmatprep.mubr.msk.bf16.mxu0 %vm4177_vm1, %v4176_v2  ;;  %v3591_v45 = vld [vmem:[%s4241_s30 + $0x30] sm:$0xf] }
  0x59   : >> { %3900 = vmatprep.subr.bf16.mxu0 %v4176_v2  ;;  %3897 = vmatmul.mubr.msk.bf16.vlgmr.msra.gmra.mrb[32].mxu1 %vm208_vm3, %v1296_v48  ;;  %v1745_v48 = vrot.slane %v1743_v35, 1  ;;  %v3595_v54 = vcombine.low %v3591_v45, %v4543_v46  ;;  %v1741_v55 = vor.u32 %v1740_v44, %v1737_v43  ;;  %v2199_v35 = vrot.slane %v2197_v25, 1  ;;  %v3638_v25 = vld [vmem:[%s4241_s30 + $0x3c] sm:$0xc] }
  0x5a   : >> { %3907 = vmatpush3.bf16.msra.mxu1 %v1431_v51  ;;  %3908 = vmatprep.mubr.msk.bf16.mxu1 %vm4177_vm1, %v4176_v2  ;;  %v1755_v51 = vsel %vm212_vm0, %v3571_v37, 0  ;;  %v4607_v37 = vld [vmem:[%s4241_s30 + $0x38] ss:$0 sps:$4 sm:$0x77]  }
  0x5b   : >> { %3918 = vmatprep.subr.bf16.mxu1 %v4176_v2  ;;  %v1749_v58 = vor.u32 %v1748_v49, %v1745_v48  ;;  %v2066_v3 = vshll.u32 %v3595_v54, 16  ;;  %v2064_v41 = vshrl.u32 %v3595_v54, 16  ;;  %v2203_v43 = vor.u32 %v2202_v36, %v2199_v35  ;;  %v4136_v48 = vld [vmem:[%s4241_s30 + $0x30] sm:$0xff]   ;;  %v3611_v49 = vld [vmem:[%s4847_s1 + $0x42] sm:$0x3] }
  0x5c   : >> { %v2327_v45 = vshrl.u32 %v4607_v37, 16 }
  0x5d   : >> { %v1750_v6 = vsel %vm368_vm4, %v1741_v55, %v1749_v58  ;;  %v2131_v58 = vrot.slane %v4563_v1, 1 }
  0x5e   : >> { %v2329_v54 = vrot.slane %v2327_v45, 2  ;;  %v3647_v45 = vld [vmem:[%s4847_s1 + $0x52] sm:$0x3] }
  0x5f   : >> { %3891 = vmatmul.mubr.msk.bf16.vlgmr.msra.gmra.mrb[32].mxu0 %vm208_vm3, %v1224_v57  ;;  %v1865_v57 = vshrl.u32 %v3576_v29, 16 }
  0x60   : >> { %3901 = vmatpush3.bf16.msra.mxu0 %v1359_v59  ;;  %3902 = vmatprep.mubr.msk.bf16.mxu0 %vm4177_vm1, %v4176_v2  ;;  %v1868_v59 = vshll.u32 %v3576_v29, 16  ;;  %v3603_v29 = vld [vmem:[%s4847_s1 + $0x3e] sm:$0x3] }
  0x61   : >> { %3912 = vmatprep.subr.bf16.mxu0 %v4176_v2  ;;  %3909 = vmatmul.mubr.msk.bf16.vlgmr.msra.gmra.mrb[36].mxu1 %vm208_vm3, %v1426_v60  ;;  %v1873_v60 = vshrl.u32 %v4134_v50, 16  ;;  %v1867_v5 = vrot.slane %v1865_v57, 2  ;;  %v2209_v38 = vsel %vm212_vm0, %v3603_v29, 0  ;;  %v2130_v57 = vrot.slane %v4573_v12, 1 }
  0x62   : >> { %3919 = vmatpush3.bf16.msra.mxu1 %v1551_v61  ;;  %3920 = vmatprep.mubr.msk.bf16.mxu1 %vm4177_vm1, %v4176_v2  ;;  %v1876_v61 = vshll.u32 %v4134_v50, 16  ;;  %v2137_v50 = vsel %vm212_vm0, %v3599_v42, 0  ;;  %v3635_v42 = vld [vmem:[%s4847_s1 + $0x4c] sm:$0x3] }
  0x63   : >> { %3930 = vmatprep.subr.bf16.mxu1 %v4176_v2  ;;  %v1875_v9 = vrot.slane %v1873_v60, 2 }
  0x64   : >> { %v1878_v7 = vrot.slane %v1876_v61, 3 }
  0x66   : >> { %v1879_v19 = vor.u32 %v1878_v7, %v1875_v9  ;;  %v4662_v9 = vld [vmem:[%s4241_s30 + $0x40] sm:$0xf]  ;;  %v3615_v7 = vld [vmem:[%s4847_s1 + $0x44] sm:$0x3] }
  0x67   : >> { %3903 = vmatmul.mubr.msk.bf16.vlgmr.msra.gmra.mrb[36].mxu0 %vm208_vm3, %v1354_v8  ;;  %v1870_v8 = vrot.slane %v1868_v59, 3  ;;  %v3607_v59 = vld [vmem:[%s4847_s1 + $0x40] sm:$0x3] }
  0x68   : >> { %3913 = vmatpush3.bf16.msra.mxu0 %v1489_v10  ;;  %3914 = vmatprep.mubr.msk.bf16.mxu0 %vm4177_vm1, %v4176_v2  ;;  %v3594_v10 = vld [vmem:[%s4847_s1 + $0x3a] sm:$0x3]  ;;  %v2267_v0 = vsel %vm212_vm0, %v3607_v59, 0 }
  0x69   : >> { %3924 = vmatprep.subr.bf16.mxu0 %v4176_v2  ;;  %3921 = vmatmul.mubr.msk.bf16.vlgmr.msra.gmra.mrb[40].mxu1 %vm208_vm3, %v4128_v11  ;;  %v1885_v11 = vsel %vm212_vm0, %v3579_v62, 0  ;;  %v2079_v17 = vsel %vm212_vm0, %v3594_v10, 0  ;;  %v1871_v18 = vor.u32 %v1870_v8, %v1867_v5  ;;  %v2132_v62 = vsel %vm309_vm5, %v2130_v57, %v2131_v58  ;;  %v3623_v8 = vld [vmem:[%s4241_s30 + $0x3c] sm:$0xf] }
  0x6a   : >> { %3931 = vmatpush3.bf16.msra.mxu1 %v1683_v14  ;;  %3932 = vmatprep.mubr.msk.bf16.mxu1 %vm4177_vm1, %v4176_v2  ;;  %v2068_v14 = vrot.slane %v2066_v3, 1  ;;  %v2459_v3 = vsel %vm212_vm0, %v3620_v63, 0  ;;  %v2261_v5 = vrot.slane %v4578_v16, 2  ;;  %v3630_v10 = vld [vmem:[%s4241_s30 + $0x3c] sm:$0xe] }
  0x6b   : >> { %3942 = vmatprep.subr.bf16.mxu1 %v4176_v2  ;;  %v3632_v16 = vcombine.low %v3630_v10, %v4662_v9 }
  0x6c   : >> { %v2069_v23 = vor.u32 %v2068_v14, %v2064_v41  ;;  %v3627_v41 = vcombine.low %v3623_v8, %v4662_v9  ;;  %v2397_v14 = vsel %vm212_vm0, %v3615_v7, 0  ;;  %v4741_v8 = vld [vmem:[%s4241_s30 + $0x50] ss:$0 sps:$4 sm:$0x11]   ;;  %v3662_v7 = vld [vmem:[%s4241_s30 + $0x48] sm:$0xe] }
  0x6d   : >> { %v2643_v35 = vshrl.u32 %v3632_v16, 16  ;;  %v2646_v36 = vshll.u32 %v3632_v16, 16 }
  0x6e   : >> { %v2074_v34 = vsel %vm195_vm2, %v2069_v23, %v2073_v24  ;;  %v3639_v24 = vld [vmem:[%s4847_s1 + $0x4e] sm:$0x3] }
  0x6f   : >> { %3915 = vmatmul.mubr.msk.bf16.vlgmr.msra.gmra.mrb[40].mxu0 %vm208_vm3, %v1484_v22  ;;  %v2192_v22 = vshll.u32 %v4573_v12, 16 }
  0x70   : >> { %3925 = vmatpush3.bf16.msra.mxu0 %v1625_v27  ;;  %3926 = vmatprep.mubr.msk.bf16.mxu0 %vm4177_vm1, %v4176_v2  ;;  %v3606_v27 = vld [vmem:[%s4241_s30 + $0x30] sm:$0xc] }
  0x71   : >> { %3936 = vmatprep.subr.bf16.mxu0 %v4176_v2  ;;  %3933 = vmatmul.mubr.msk.bf16.vlgmr.msra.gmra.mrb[44].mxu1 %vm208_vm3, %v1678_v28  ;;  %v1880_v28 = vsel %vm500_vm6, %v1871_v18, %v1879_v19  ;;  %v2194_v32 = vrot.slane %v2192_v22, 2  ;;  %v4603_v33 = vcombine.low %v3606_v27, %v4543_v46  ;;  %v2391_v18 = vrot.slane %v4607_v37, 3  ;;  %v4146_v19 = vld [vmem:[%s4241_s30 + $0x44] ss:$0 sps:$4 sm:$0x11]  }
  0x72   : >> { %3943 = vmatpush3.bf16.msra.mxu1 %v1813_v30  ;;  %3944 = vmatprep.mubr.msk.bf16.mxu1 %vm4177_vm1, %v4176_v2  ;;  %v2005_v30 = vsel %vm212_vm0, %v3588_v20, 0  ;;  %v2520_v20 = vshll.u32 %v3627_v41, 16  ;;  %v2584_v22 = vrot.slane %v3632_v16, 1  ;;  %v2585_v23 = vrot.slane %v4146_v19, 1 }
  0x73   : >> { %3954 = vmatprep.subr.bf16.mxu1 %v4176_v2  ;;  %v2195_v39 = vor.u32 %v2194_v32, %v2191_v31  ;;  %v2319_v40 = vshrl.u32 %v4603_v33, 16  ;;  %v2322_v44 = vshll.u32 %v4603_v33, 16  ;;  %v2260_v4 = vrot.slane %v4603_v33, 2 }
  0x74   : >> { %v2518_v27 = vshrl.u32 %v3627_v41, 16  ;;  %v2525_v29 = vshll.u32 %v4146_v19, 16  ;;  %v2533_v31 = vsel %vm212_vm0, %v3626_v21, 0  ;;  %v2586_v32 = vsel %vm309_vm5, %v2584_v22, %v2585_v23 }
  0x75   : >> { %v2204_v52 = vsel %vm368_vm4, %v2195_v39, %v2203_v43  ;;  %v3640_v33 = vcombine.low %v3638_v25, %v4662_v9  ;;  %v2979_v19 = vshll.u32 %v4741_v8, 16 }
  0x77   : >> { %3927 = vmatmul.mubr.msk.bf16.vlgmr.msra.gmra.mrb[44].mxu0 %vm208_vm3, %v1620_v47  ;;  %v2330_v47 = vshll.u32 %v4607_v37, 16  ;;  %v2714_v43 = vrot.slane %v3640_v33, 2 }
  0x78   : >> { %3937 = vmatpush3.bf16.msra.mxu0 %v1755_v51  ;;  %3938 = vmatprep.mubr.msk.bf16.mxu0 %vm4177_vm1, %v4176_v2  ;;  %v2321_v51 = vrot.slane %v2319_v40, 2 }
  0x79   : >> { %3948 = vmatprep.subr.bf16.mxu0 %v4176_v2  ;;  %3945 = vmatmul.mubr.msk.bf16.vlgmr.msra.gmra.mrb[48].mxu1 %vm208_vm3, %v1808_v53  ;;  %v2324_v53 = vrot.slane %v2322_v44, 3  ;;  %v2332_v55 = vrot.slane %v2330_v47, 3  ;;  %v3646_v47 = vld [vmem:[%s4241_s30 + $0x3c] sm:$0x8] }
  0x7a   : >> { %3955 = vmatpush3.bf16.msra.mxu1 %v1943_v56  ;;  %3956 = vmatprep.mubr.msk.bf16.mxu1 %vm4177_vm1, %v4176_v2  ;;  %v2339_v56 = vsel %vm212_vm0, %v3611_v49, 0  ;;  %v2648_v49 = vrot.slane %v2646_v36, 2  ;;  %v3648_v57 = vcombine.low %v3646_v47, %v4662_v9  ;;  %v3663_v47 = vld [vmem:[%s4847_s1 + $0x58] sm:$0x3] }
  0x7b   : >> { %3966 = vmatprep.subr.bf16.mxu1 %v4176_v2  ;;  %v2325_v60 = vor.u32 %v2324_v53, %v2321_v51  ;;  %v2333_v61 = vor.u32 %v2332_v55, %v2329_v54  ;;  %v4721_v51 = vld [vmem:[%s4241_s30 + $0x4c] sm:$0xf]  ;;  %v4150_v55 = vld [vmem:[%s4241_s30 + $0x44] ss:$0 sps:$4 sm:$0x77]  }
  0x7c   : >> { %v4751_v16 = vcombine.low %v3662_v7, %v4721_v51  ;;  %v3678_v7 = vld [vmem:[%s4241_s30 + $0x48] sm:$0x8] }
  0x7d   : >> { %v2334_v1 = vsel %vm500_vm6, %v2325_v60, %v2333_v61  ;;  %v2851_v61 = vsel %vm212_vm0, %v3647_v45, 0 }
  0x7e   : >> { %v3097_v25 = vshrl.u32 %v4751_v16, 16 }
  0x7f   : >> { %3939 = vmatmul.mubr.msk.bf16.vlgmr.msra.gmra.mrb[48].mxu0 %vm208_vm3, %v1750_v6  ;;  %v3614_v6 = vld [vmem:[%s4241_s30 + $0x30] sm:$0x8] }
  0x80   : >> { %3949 = vmatpush3.bf16.msra.mxu0 %v1885_v11  ;;  %3950 = vmatprep.mubr.msk.bf16.mxu0 %vm4177_vm1, %v4176_v2  ;;  %v2262_v11 = vsel %vm441_vm7, %v2260_v4, %v2261_v5  ;;  %v3616_v12 = vcombine.low %v3614_v6, %v4543_v46  ;;  %v3643_v4 = vld [vmem:[%s4847_s1 + $0x50] sm:$0x3]  ;;  %v2844_v5 = vrot.slane %v3648_v57, 3  ;;  %v2845_v6 = vrot.slane %v4150_v55, 3 }
  0x81   : >> { %3960 = vmatprep.subr.bf16.mxu0 %v4176_v2  ;;  %3957 = vmatmul.mubr.msk.bf16.vlgmr.msra.gmra.mrb[52].mxu1 %vm208_vm3, %v1938_v13  ;;  %v3631_v13 = vld [vmem:[%s4847_s1 + $0x4a] sm:$0x3] }
  0x82   : >> { %3967 = vmatpush3.bf16.msra.mxu1 %v2079_v17  ;;  %3968 = vmatprep.mubr.msk.bf16.mxu1 %vm4177_vm1, %v4176_v2  ;;  %v2591_v17 = vsel %vm212_vm0, %v3631_v13, 0  ;;  %v2390_v46 = vrot.slane %v3616_v12, 3 }
  0x83   : >> { %3978 = vmatprep.subr.bf16.mxu1 %v4176_v2 }
  0x84   : >> { %v2392_v26 = vsel %vm573_vm8, %v2390_v46, %v2391_v18 }
  0x87   : >> { %3951 = vmatmul.mubr.msk.bf16.vlgmr.msra.gmra.mrb[52].mxu0 %vm208_vm3, %v1880_v28  ;;  %v2522_v28 = vrot.slane %v2520_v20, 1  ;;  %v4756_v20 = vld [vmem:[%s4241_s30 + $0x50] ss:$0 sps:$4 sm:$0x33]  }
  0x88   : >> { %3961 = vmatpush3.bf16.msra.mxu0 %v2005_v30  ;;  %3962 = vmatprep.mubr.msk.bf16.mxu0 %vm4177_vm1, %v4176_v2  ;;  %v4148_v30 = vld [vmem:[%s4241_s30 + $0x44] ss:$0 sps:$4 sm:$0x33]  }
  0x89   : >> { %3972 = vmatprep.subr.bf16.mxu0 %v4176_v2  ;;  %3969 = vmatmul.mubr.msk.bf16.vlgmr.msra.gmra.mrb[56].mxu1 %vm208_vm3, %v2074_v34  ;;  %v2721_v34 = vsel %vm212_vm0, %v3639_v24, 0  ;;  %v2523_v37 = vor.u32 %v2522_v28, %v2518_v27  ;;  %v2651_v39 = vshrl.u32 %v4148_v30, 16  ;;  %v2654_v40 = vshll.u32 %v4148_v30, 16  ;;  %v3652_v24 = vld [vmem:[%s4847_s1 + $0x54] sm:$0x3] }
  0x8a   : >> { %3979 = vmatpush3.bf16.msra.mxu1 %v2209_v38  ;;  %3980 = vmatprep.mubr.msk.bf16.mxu1 %vm4177_vm1, %v4176_v2  ;;  %v2527_v38 = vrot.slane %v2525_v29, 1  ;;  %v2715_v44 = vrot.slane %v4148_v30, 2  ;;  %v2981_v28 = vrot.slane %v2979_v19, 1  ;;  %v3105_v29 = vshrl.u32 %v4756_v20, 16 }
  0x8b   : >> { %3990 = vmatprep.subr.bf16.mxu1 %v4176_v2  ;;  %v2653_v53 = vrot.slane %v2651_v39, 1  ;;  %v2656_v54 = vrot.slane %v2654_v40, 2  ;;  %v3108_v30 = vshll.u32 %v4756_v20, 16 }
  0x8c   : >> { %v2716_v58 = vsel %vm441_vm7, %v2714_v43, %v2715_v44  ;;  %v3107_v39 = vrot.slane %v3105_v29, 1 }
  0x8d   : >> { %v2657_v63 = vor.u32 %v2656_v54, %v2653_v53  ;;  %v3110_v40 = vrot.slane %v3108_v30, 2  ;;  %v4152_v53 = vld [vmem:[%s4241_s30 + $0x48] sm:$0xff]   ;;  %v3675_v54 = vld [vmem:[%s4847_s1 + $0x5e] sm:$0x3] }
  0x8f   : >> { %3963 = vmatmul.mubr.msk.bf16.vlgmr.msra.gmra.mrb[56].mxu0 %vm208_vm3, %v4136_v48  ;;  %v2645_v48 = vrot.slane %v2643_v35, 1  ;;  %v3099_v35 = vrot.slane %v3097_v25, 1 }
  0x90   : >> { %3973 = vmatpush3.bf16.msra.mxu0 %v2137_v50  ;;  %3974 = vmatprep.mubr.msk.bf16.mxu0 %vm4177_vm1, %v4176_v2  ;;  %v3655_v50 = vld [vmem:[%s4241_s30 + $0x48] sm:$0xf] }
  0x91   : >> { %3984 = vmatprep.subr.bf16.mxu0 %v4176_v2  ;;  %3981 = vmatmul.mubr.msk.bf16.vlgmr.msra.gmra.mrb[60].mxu1 %vm208_vm3, %v2204_v52  ;;  %v2528_v52 = vsel %vm195_vm2, %v2523_v37, %v2527_v38  ;;  %v3659_v59 = vcombine.low %v3655_v50, %v4721_v51  ;;  %v2649_v60 = vor.u32 %v2648_v49, %v2645_v48 }
  0x92   : >> { %3991 = vmatpush3.bf16.msra.mxu1 %v2339_v56  ;;  %3992 = vmatprep.mubr.msk.bf16.mxu1 %vm4177_vm1, %v4176_v2  ;;  %v2663_v56 = vsel %vm212_vm0, %v3635_v42, 0  ;;  %v4158_v42 = vld [vmem:[%s4241_s30 + $0x50] ss:$0 sps:$4 sm:$0x77]   ;;  %v3111_v48 = vor.u32 %v3110_v40, %v3107_v39 }
  0x93   : >> { %4002 = vmatprep.subr.bf16.mxu1 %v4176_v2  ;;  %v2974_v9 = vshll.u32 %v3659_v59, 16  ;;  %v2972_v46 = vshrl.u32 %v3659_v59, 16  ;;  %v3235_v50 = vshrl.u32 %v4158_v42, 16 }
  0x95   : >> { %v2976_v18 = vrot.slane %v2974_v9, 1  ;;  %v3237_v59 = vrot.slane %v3235_v50, 2  ;;  %v3169_v9 = vrot.slane %v4756_v20, 2 }
  0x97   : >> { %3975 = vmatmul.mubr.msk.bf16.vlgmr.msra.gmra.mrb[60].mxu0 %vm208_vm3, %v2132_v62  ;;  %v2773_v62 = vshrl.u32 %v3640_v33, 16  ;;  %v2977_v27 = vor.u32 %v2976_v18, %v2972_v46 }
  0x98   : >> { %3985 = vmatpush3.bf16.msra.mxu0 %v2267_v0  ;;  %3986 = vmatprep.mubr.msk.bf16.mxu0 %vm4177_vm1, %v4176_v2  ;;  %v2776_v0 = vshll.u32 %v3640_v33, 16  ;;  %v3667_v33 = vld [vmem:[%s4847_s1 + $0x5a] sm:$0x3] }
  0x99   : >> { %3996 = vmatprep.subr.bf16.mxu0 %v4176_v2  ;;  %3993 = vmatmul.mubr.msk.bf16.vlgmr.msra.gmra.mrb[64].mxu1 %vm208_vm3, %v2334_v1  ;;  %v2781_v1 = vshrl.u32 %v4150_v55, 16  ;;  %v2775_v10 = vrot.slane %v2773_v62, 2  ;;  %v2982_v38 = vsel %vm195_vm2, %v2977_v27, %v2981_v28  ;;  %v3117_v43 = vsel %vm212_vm0, %v3667_v33, 0 }
  0x9a   : >> { %4003 = vmatpush3.bf16.msra.mxu1 %v2459_v3  ;;  %4004 = vmatprep.mubr.msk.bf16.mxu1 %vm4177_vm1, %v4176_v2  ;;  %v2784_v3 = vshll.u32 %v4150_v55, 16  ;;  %v2778_v12 = vrot.slane %v2776_v0, 3  ;;  %v3045_v55 = vsel %vm212_vm0, %v3663_v47, 0  ;;  %v3038_v62 = vrot.slane %v4751_v16, 1  ;;  %v3671_v0 = vld [vmem:[%s4847_s1 + $0x5c] sm:$0x3] }
  0x9b   : >> { %4014 = vmatprep.subr.bf16.mxu1 %v4176_v2  ;;  %v2783_v13 = vrot.slane %v2781_v1, 2 }
  0x9c   : >> { %v2786_v41 = vrot.slane %v2784_v3, 3  ;;  %v2779_v22 = vor.u32 %v2778_v12, %v2775_v10  ;;  %v3679_v10 = vld [vmem:[%s4847_s1 + $0x60] sm:$0x3]  ;;  %v3680_v12 = vcombine.low %v3678_v7, %v4721_v51 }
  0x9e   : >> { %v2787_v23 = vor.u32 %v2786_v41, %v2783_v13  ;;  %v3305_v13 = vsel %vm212_vm0, %v3679_v10, 0  ;;  %v3298_v41 = vrot.slane %v3680_v12, 3 }
  0x9f   : >> { %3987 = vmatmul.mubr.msk.bf16.vlgmr.msra.gmra.mrb[64].mxu0 %vm208_vm3, %v2262_v11  ;;  %v2658_v11 = vsel %vm368_vm4, %v2649_v60, %v2657_v63  ;;  %v3039_v63 = vrot.slane %v4741_v8, 1 }
  0xa0   : >> { %3997 = vmatpush3.bf16.msra.mxu0 %v2397_v14  ;;  %3998 = vmatprep.mubr.msk.bf16.mxu0 %vm4177_vm1, %v4176_v2  ;;  %v3658_v14 = vld [vmem:[%s4847_s1 + $0x56] sm:$0x3] }
  0xa1   : >> { %4008 = vmatprep.subr.bf16.mxu0 %v4176_v2  ;;  %4005 = vmatmul.mubr.msk.bf16.vlgmr.msra.gmra.mrb[68].mxu1 %vm208_vm3, %v4144_v15  ;;  %v2793_v15 = vsel %vm212_vm0, %v3643_v4, 0  ;;  %v2987_v21 = vsel %vm212_vm0, %v3658_v14, 0  ;;  %v3040_v4 = vsel %vm309_vm5, %v3038_v62, %v3039_v63  ;;  %v3299_v14 = vrot.slane %v4158_v42, 3 }
  0xa2   : >> { %4015 = vmatpush3.bf16.msra.mxu1 %v2591_v17  ;;  %4016 = vmatprep.mubr.msk.bf16.mxu1 %vm4177_vm1, %v4176_v2  ;;  %v2846_v17 = vsel %vm573_vm8, %v2844_v5, %v2845_v6  ;;  %v3175_v5 = vsel %vm212_vm0, %v3671_v0, 0 }
  0xa3   : >> { %4026 = vmatprep.subr.bf16.mxu1 %v4176_v2 }
  0xa7   : >> { %3999 = vmatmul.mubr.msk.bf16.vlgmr.msra.gmra.mrb[68].mxu0 %vm208_vm3, %v2392_v26  ;;  %v3100_v26 = vshll.u32 %v4751_v16, 16 }
  0xa8   : >> { %4009 = vmatpush3.bf16.msra.mxu0 %v2533_v31  ;;  %4010 = vmatprep.mubr.msk.bf16.mxu0 %vm4177_vm1, %v4176_v2  ;;  %v3670_v31 = vld [vmem:[%s4241_s30 + $0x48] sm:$0xc] }
  0xa9   : >> { %4020 = vmatprep.subr.bf16.mxu0 %v4176_v2  ;;  %4017 = vmatmul.mubr.msk.bf16.vlgmr.msra.gmra.mrb[72].mxu1 %vm208_vm3, %v2586_v32  ;;  %v2788_v32 = vsel %vm500_vm6, %v2779_v22, %v2787_v23  ;;  %v3102_v36 = vrot.slane %v3100_v26, 2  ;;  %v3672_v37 = vcombine.low %v3670_v31, %v4721_v51 }
  0xaa   : >> { %4027 = vmatpush3.bf16.msra.mxu1 %v2721_v34  ;;  %4028 = vmatprep.mubr.msk.bf16.mxu1 %vm4177_vm1, %v4176_v2  ;;  %v2913_v34 = vsel %vm212_vm0, %v3652_v24, 0 }
  0xab   : >> { %4038 = vmatprep.subr.bf16.mxu1 %v4176_v2  ;;  %v3103_v44 = vor.u32 %v3102_v36, %v3099_v35  ;;  %v3227_v45 = vshrl.u32 %v3672_v37, 16  ;;  %v3230_v49 = vshll.u32 %v3672_v37, 16  ;;  %v3168_v8 = vrot.slane %v3672_v37, 2 }
  0xad   : >> { %v3112_v57 = vsel %vm368_vm4, %v3103_v44, %v3111_v48 }
  0xaf   : >> { %4011 = vmatmul.mubr.msk.bf16.vlgmr.msra.gmra.mrb[72].mxu0 %vm208_vm3, %v2528_v52  ;;  %v3238_v52 = vshll.u32 %v4158_v42, 16 }
  0xb0   : >> { %4021 = vmatpush3.bf16.msra.mxu0 %v2663_v56  ;;  %4022 = vmatprep.mubr.msk.bf16.mxu0 %vm4177_vm1, %v4176_v2  ;;  %v3229_v56 = vrot.slane %v3227_v45, 2 }
  0xb1   : >> { %4032 = vmatprep.subr.bf16.mxu0 %v4176_v2  ;;  %4029 = vmatmul.mubr.msk.bf16.vlgmr.msra.gmra.mrb[76].mxu1 %vm208_vm3, %v2716_v58  ;;  %v3232_v58 = vrot.slane %v3230_v49, 3  ;;  %v3240_v60 = vrot.slane %v3238_v52, 3 }
  0xb2   : >> { %4039 = vmatpush3.bf16.msra.mxu1 %v2851_v61  ;;  %4040 = vmatprep.mubr.msk.bf16.mxu1 %vm4177_vm1, %v4176_v2  ;;  %v3247_v61 = vsel %vm212_vm0, %v3675_v54, 0 }
  0xb3   : >> { %4050 = vmatprep.subr.bf16.mxu1 %v4176_v2  ;;  %v3233_v1 = vor.u32 %v3232_v58, %v3229_v56  ;;  %v3241_v3 = vor.u32 %v3240_v60, %v3237_v59 }
  0xb5   : >> { %v3242_v6 = vsel %vm500_vm6, %v3233_v1, %v3241_v3 }
  0xb7   : >> { %4023 = vmatmul.mubr.msk.bf16.vlgmr.msra.gmra.mrb[76].mxu0 %vm208_vm3, %v2658_v11  ;;  %v3170_v11 = vsel %vm441_vm7, %v3168_v8, %v3169_v9 }
  0xb8   : >> { %4033 = vmatpush3.bf16.msra.mxu0 %v2793_v15  ;;  %4034 = vmatprep.mubr.msk.bf16.mxu0 %vm4177_vm1, %v4176_v2  ;;  %v3300_v15 = vsel %vm573_vm8, %v3298_v41, %v3299_v14 }
  0xb9   : >> { %4044 = vmatprep.subr.bf16.mxu0 %v4176_v2  ;;  %4041 = vmatmul.mubr.msk.bf16.vlgmr.msra.gmra.mrb[80].mxu1 %vm208_vm3, %v2846_v17 }
  0xba   : >> { %4051 = vmatpush3.bf16.msra.mxu1 %v2987_v21  ;;  %4052 = vmatprep.mubr.msk.bf16.mxu1 %vm4177_vm1, %v4176_v2 }
  0xbb   : >> { %4062 = vmatprep.subr.bf16.mxu1 %v4176_v2 }
  0xbf   : >> { %4035 = vmatmul.mubr.msk.bf16.vlgmr.msra.gmra.mrb[80].mxu0 %vm208_vm3, %v2788_v32 }
  0xc0   : >> { %4045 = vmatpush3.bf16.msra.mxu0 %v2913_v34  ;;  %4046 = vmatprep.mubr.msk.bf16.mxu0 %vm4177_vm1, %v4176_v2 }
  0xc1   : >> { %4056 = vmatprep.subr.bf16.mxu0 %v4176_v2  ;;  %4053 = vmatmul.mubr.msk.bf16.vlgmr.msra.gmra.mrb[84].mxu1 %vm208_vm3, %v2982_v38 }
  0xc2   : >> { %4063 = vmatpush3.bf16.msra.mxu1 %v3117_v43  ;;  %4064 = vmatprep.mubr.msk.bf16.mxu1 %vm4177_vm1, %v4176_v2 }
  0xc3   : >> { %4074 = vmatprep.subr.bf16.mxu1 %v4176_v2 }
  0xc7   : >> { %4047 = vmatmul.mubr.msk.bf16.vlgmr.msra.gmra.mrb[84].mxu0 %vm208_vm3, %v4152_v53 }
  0xc8   : >> { %4057 = vmatpush3.bf16.msra.mxu0 %v3045_v55  ;;  %4058 = vmatprep.mubr.msk.bf16.mxu0 %vm4177_vm1, %v4176_v2 }
  0xc9   : >> { %4068 = vmatprep.subr.bf16.mxu0 %v4176_v2  ;;  %4065 = vmatmul.mubr.msk.bf16.vlgmr.msra.gmra.mrb[88].mxu1 %vm208_vm3, %v3112_v57 }
  0xca   : >> { %4075 = vmatpush3.bf16.msra.mxu1 %v3247_v61  ;;  %4076 = vmatprep.mubr.msk.bf16.mxu1 %vm4177_vm1, %v4176_v2 }
  0xcf   : >> { %4059 = vmatmul.mubr.msk.bf16.vlgmr.msra.gmra.mrb[88].mxu0 %vm208_vm3, %v3040_v4 }
  0xd0   : >> { %4069 = vmatpush3.bf16.msra.mxu0 %v3175_v5  ;;  %4070 = vmatprep.mubr.msk.bf16.mxu0 %vm4177_vm1, %v4176_v2 }
  0xd1   : >> { %4080 = vmatprep.subr.bf16.mxu0 %v4176_v2  ;;  %4077 = vmatmul.mubr.msk.bf16.vlgmr.msra.gmra.mrb[92].mxu1 %vm208_vm3, %v3242_v6 }
  0xd7   : >> { %4071 = vmatmul.mubr.msk.bf16.vlgmr.msra.gmra.mrb[92].mxu0 %vm208_vm3, %v3170_v11 }
  0xd8   : >> { %4081 = vmatpush3.bf16.msra.mxu0 %v3305_v13  ;;  %4082 = vmatprep.mubr.msk.bf16.mxu0 %vm4177_vm1, %v4176_v2 }
  0xdf   : >> { %4083 = vmatmul.mubr.msk.bf16.vlgmr.msra.gmra.mrb[96].mxu0 %vm208_vm3, %v3300_v15 }
  0xeb   : >> { %v296_v16 = vpop.f32.mrb[0].mxu1 }
  0xec   : >> { %v3802_v17 = vpop.f32.mrb[1].mxu1 }
  0xed   : >> { %v299_v46 = vpop.f32.mrb[2].mxu1 }
  0xee   : >> { %v3803_v18 = vpop.f32.mrb[3].mxu1 }
  0xf2   : >> { %v250_v19 = vpop.f32.mrb[0].mxu0 }
  0xf3   : >> { %v297_v51 = vadd.f32 %v296_v16, %v250_v19  ;;  %v3796_v20 = vpop.f32.mrb[1].mxu0 }
  0xf4   : >> { %v253_v21 = vpop.f32.mrb[2].mxu0  ;;  %v426_v22 = vpop.f32.mrb[4].mxu1 }
  0xf5   : >> { %v300_v23 = vadd.f32 %v299_v46, %v253_v21  ;;  %v3797_v24 = vpop.f32.mrb[3].mxu0  ;;  %v3814_v25 = vpop.f32.mrb[5].mxu1 }
  0xf6   : >> { %v429_v26 = vpop.f32.mrb[6].mxu1 }
  0xf7   : >> { %v3815_v2 = vpop.f32.mrb[7].mxu1 }
  0xfa   : >> { %v353_v27 = vpop.f32.mrb[4].mxu0 }
  0xfb   : >> { %v360_v28 = vadd.f32 %v353_v27, %v297_v51  ;;  %v3808_v29 = vpop.f32.mrb[5].mxu0 }
  0xfc   : >> { %v356_v30 = vpop.f32.mrb[6].mxu0  ;;  %v558_v31 = vpop.f32.mrb[8].mxu1 }
  0xfd   : >> { %v361_v32 = vadd.f32 %v356_v30, %v300_v23  ;;  %v433_v33 = vadd.f32 %v426_v22, %v360_v28  ;;  %v3809_v34 = vpop.f32.mrb[7].mxu0  ;;  %v3826_v35 = vpop.f32.mrb[9].mxu1 }
  0xfe   : >> { %v561_v36 = vpop.f32.mrb[10].mxu1 }
  0xff   : >> { %v434_v37 = vadd.f32 %v429_v26, %v361_v32  ;;  %v3827_v38 = vpop.f32.mrb[11].mxu1 }
 0x102   : >> { %v485_v39 = vpop.f32.mrb[8].mxu0 }
 0x103   : >> { %v492_v40 = vadd.f32 %v485_v39, %v433_v33  ;;  %v3820_v42 = vpop.f32.mrb[9].mxu0 }
 0x104   : >> { %v488_v43 = vpop.f32.mrb[10].mxu0  ;;  %v679_v44 = vpop.f32.mrb[12].mxu1 }
 0x105   : >> { %v493_v45 = vadd.f32 %v488_v43, %v434_v37  ;;  %v565_v47 = vadd.f32 %v558_v31, %v492_v40  ;;  %v3821_v48 = vpop.f32.mrb[11].mxu0  ;;  %v3838_v49 = vpop.f32.mrb[13].mxu1 }
 0x106   : >> { %v682_v50 = vpop.f32.mrb[14].mxu1 }
 0x107   : >> { %v566_v52 = vadd.f32 %v561_v36, %v493_v45  ;;  %v3839_v53 = vpop.f32.mrb[15].mxu1 }
 0x10a   : >> { %v617_v54 = vpop.f32.mrb[12].mxu0 }
 0x10b   : >> { %v624_v55 = vadd.f32 %v617_v54, %v565_v47  ;;  %v3832_v56 = vpop.f32.mrb[13].mxu0 }
 0x10c   : >> { %v620_v57 = vpop.f32.mrb[14].mxu0  ;;  %v811_v58 = vpop.f32.mrb[16].mxu1 }
 0x10d   : >> { %v625_v59 = vadd.f32 %v620_v57, %v566_v52  ;;  %v686_v60 = vadd.f32 %v679_v44, %v624_v55  ;;  %v3833_v61 = vpop.f32.mrb[15].mxu0  ;;  %v3850_v62 = vpop.f32.mrb[17].mxu1 }
 0x10e   : >> { %v814_v63 = vpop.f32.mrb[18].mxu1 }
 0x10f   : >> { %v687_v0 = vadd.f32 %v682_v50, %v625_v59  ;;  %v3851_v1 = vpop.f32.mrb[19].mxu1 }
 0x112   : >> { %v753_v3 = vpop.f32.mrb[16].mxu0 }
 0x113   : >> { %v760_v4 = vadd.f32 %v753_v3, %v686_v60  ;;  %v3844_v5 = vpop.f32.mrb[17].mxu0 }
 0x114   : >> { %v756_v6 = vpop.f32.mrb[18].mxu0  ;;  %v941_v8 = vpop.f32.mrb[20].mxu1 }
 0x115   : >> { %v761_v9 = vadd.f32 %v756_v6, %v687_v0  ;;  %v818_v7 = vadd.f32 %v811_v58, %v760_v4  ;;  %v3845_v10 = vpop.f32.mrb[19].mxu0  ;;  %v3862_v11 = vpop.f32.mrb[21].mxu1 }
 0x116   : >> { %v944_v12 = vpop.f32.mrb[22].mxu1 }
 0x117   : >> { %v819_v13 = vadd.f32 %v814_v63, %v761_v9  ;;  %v3863_v41 = vpop.f32.mrb[23].mxu1 }
 0x11a   : >> { %v883_v14 = vpop.f32.mrb[20].mxu0 }
 0x11b   : >> { %v890_v15 = vadd.f32 %v883_v14, %v818_v7  ;;  %v3856_v16 = vpop.f32.mrb[21].mxu0 }
 0x11c   : >> { %v886_v17 = vpop.f32.mrb[22].mxu0  ;;  %v1071_v46 = vpop.f32.mrb[24].mxu1 }
 0x11d   : >> { %v891_v18 = vadd.f32 %v886_v17, %v819_v13  ;;  %v948_v19 = vadd.f32 %v941_v8, %v890_v15  ;;  %v3857_v51 = vpop.f32.mrb[23].mxu0  ;;  %v3874_v20 = vpop.f32.mrb[25].mxu1 }
 0x11e   : >> { %v1074_v21 = vpop.f32.mrb[26].mxu1 }
 0x11f   : >> { %v949_v22 = vadd.f32 %v944_v12, %v891_v18  ;;  %v3875_v23 = vpop.f32.mrb[27].mxu1 }
 0x122   : >> { %v1013_v24 = vpop.f32.mrb[24].mxu0 }
 0x123   : >> { %v1020_v25 = vadd.f32 %v1013_v24, %v948_v19  ;;  %v3868_v26 = vpop.f32.mrb[25].mxu0 }
 0x124   : >> { %v1016_v2 = vpop.f32.mrb[26].mxu0  ;;  %v1207_v27 = vpop.f32.mrb[28].mxu1 }
 0x125   : >> { %v1021_v28 = vadd.f32 %v1016_v2, %v949_v22  ;;  %v1078_v29 = vadd.f32 %v1071_v46, %v1020_v25  ;;  %v3869_v30 = vpop.f32.mrb[27].mxu0  ;;  %v3886_v31 = vpop.f32.mrb[29].mxu1 }
 0x126   : >> { %v1210_v32 = vpop.f32.mrb[30].mxu1 }
 0x127   : >> { %v1079_v33 = vadd.f32 %v1074_v21, %v1021_v28  ;;  %v3887_v34 = vpop.f32.mrb[31].mxu1 }
 0x12a   : >> { %v1133_v35 = vpop.f32.mrb[28].mxu0 }
 0x12b   : >> { %v1140_v36 = vadd.f32 %v1133_v35, %v1078_v29  ;;  %v3880_v37 = vpop.f32.mrb[29].mxu0 }
 0x12c   : >> { %v1136_v38 = vpop.f32.mrb[30].mxu0  ;;  %v1337_v39 = vpop.f32.mrb[32].mxu1 }
 0x12d   : >> { %v1141_v40 = vadd.f32 %v1136_v38, %v1079_v33  ;;  %v1214_v42 = vadd.f32 %v1207_v27, %v1140_v36  ;;  %v3881_v43 = vpop.f32.mrb[31].mxu0  ;;  %v3898_v44 = vpop.f32.mrb[33].mxu1 }
 0x12e   : >> { %v1340_v45 = vpop.f32.mrb[34].mxu1 }
 0x12f   : >> { %v1215_v47 = vadd.f32 %v1210_v32, %v1141_v40  ;;  %v3899_v48 = vpop.f32.mrb[35].mxu1 }
 0x132   : >> { %v1265_v49 = vpop.f32.mrb[32].mxu0 }
 0x133   : >> { %v1272_v50 = vadd.f32 %v1265_v49, %v1214_v42  ;;  %v3892_v52 = vpop.f32.mrb[33].mxu0 }
 0x134   : >> { %v1268_v53 = vpop.f32.mrb[34].mxu0  ;;  %v1467_v54 = vpop.f32.mrb[36].mxu1 }
 0x135   : >> { %v1273_v55 = vadd.f32 %v1268_v53, %v1215_v47  ;;  %v1344_v56 = vadd.f32 %v1337_v39, %v1272_v50  ;;  %v3893_v57 = vpop.f32.mrb[35].mxu0  ;;  %v3910_v58 = vpop.f32.mrb[37].mxu1 }
 0x136   : >> { %v1470_v59 = vpop.f32.mrb[38].mxu1 }
 0x137   : >> { %v1345_v60 = vadd.f32 %v1340_v45, %v1273_v55  ;;  %v3911_v61 = vpop.f32.mrb[39].mxu1 }
 0x13a   : >> { %v1395_v62 = vpop.f32.mrb[36].mxu0 }
 0x13b   : >> { %v1402_v63 = vadd.f32 %v1395_v62, %v1344_v56  ;;  %v3904_v0 = vpop.f32.mrb[37].mxu0 }
 0x13c   : >> { %v1398_v1 = vpop.f32.mrb[38].mxu0  ;;  %v1587_v3 = vpop.f32.mrb[40].mxu1 }
 0x13d   : >> { %v1403_v4 = vadd.f32 %v1398_v1, %v1345_v60  ;;  %v1474_v5 = vadd.f32 %v1467_v54, %v1402_v63  ;;  %v3905_v6 = vpop.f32.mrb[39].mxu0  ;;  %v3922_v8 = vpop.f32.mrb[41].mxu1 }
 0x13e   : >> { %v1590_v9 = vpop.f32.mrb[42].mxu1 }
 0x13f   : >> { %v1475_v7 = vadd.f32 %v1470_v59, %v1403_v4  ;;  %v3923_v10 = vpop.f32.mrb[43].mxu1 }
 0x142   : >> { %v1525_v11 = vpop.f32.mrb[40].mxu0 }
 0x143   : >> { %v1532_v12 = vadd.f32 %v1525_v11, %v1474_v5  ;;  %v3916_v13 = vpop.f32.mrb[41].mxu0 }
 0x144   : >> { %v1528_v41 = vpop.f32.mrb[42].mxu0  ;;  %v1719_v14 = vpop.f32.mrb[44].mxu1 }
 0x145   : >> { %v1533_v15 = vadd.f32 %v1528_v41, %v1475_v7  ;;  %v1594_v16 = vadd.f32 %v1587_v3, %v1532_v12  ;;  %v3917_v17 = vpop.f32.mrb[43].mxu0  ;;  %v3934_v46 = vpop.f32.mrb[45].mxu1 }
 0x146   : >> { %v1722_v18 = vpop.f32.mrb[46].mxu1 }
 0x147   : >> { %v1595_v19 = vadd.f32 %v1590_v9, %v1533_v15  ;;  %v3935_v51 = vpop.f32.mrb[47].mxu1 }
 0x14a   : >> { %v1661_v20 = vpop.f32.mrb[44].mxu0 }
 0x14b   : >> { %v1668_v21 = vadd.f32 %v1661_v20, %v1594_v16  ;;  %v3928_v22 = vpop.f32.mrb[45].mxu0 }
 0x14c   : >> { %v1664_v23 = vpop.f32.mrb[46].mxu0  ;;  %v1849_v24 = vpop.f32.mrb[48].mxu1 }
 0x14d   : >> { %v1669_v25 = vadd.f32 %v1664_v23, %v1595_v19  ;;  %v1726_v26 = vadd.f32 %v1719_v14, %v1668_v21  ;;  %v3929_v2 = vpop.f32.mrb[47].mxu0  ;;  %v3946_v27 = vpop.f32.mrb[49].mxu1 }
 0x14e   : >> { %v1852_v28 = vpop.f32.mrb[50].mxu1 }
 0x14f   : >> { %v1727_v29 = vadd.f32 %v1722_v18, %v1669_v25  ;;  %v3947_v30 = vpop.f32.mrb[51].mxu1 }
 0x152   : >> { %v1791_v31 = vpop.f32.mrb[48].mxu0 }
 0x153   : >> { %v1798_v32 = vadd.f32 %v1791_v31, %v1726_v26  ;;  %v3940_v33 = vpop.f32.mrb[49].mxu0 }
 0x154   : >> { %v1794_v34 = vpop.f32.mrb[50].mxu0  ;;  %v1979_v35 = vpop.f32.mrb[52].mxu1 }
 0x155   : >> { %v1799_v36 = vadd.f32 %v1794_v34, %v1727_v29  ;;  %v1856_v37 = vadd.f32 %v1849_v24, %v1798_v32  ;;  %v3941_v38 = vpop.f32.mrb[51].mxu0  ;;  %v3958_v39 = vpop.f32.mrb[53].mxu1 }
 0x156   : >> { %v1982_v40 = vpop.f32.mrb[54].mxu1 }
 0x157   : >> { %v1857_v42 = vadd.f32 %v1852_v28, %v1799_v36  ;;  %v3959_v43 = vpop.f32.mrb[55].mxu1 }
 0x15a   : >> { %v1921_v44 = vpop.f32.mrb[52].mxu0 }
 0x15b   : >> { %v1928_v45 = vadd.f32 %v1921_v44, %v1856_v37  ;;  %v3952_v47 = vpop.f32.mrb[53].mxu0 }
 0x15c   : >> { %v1924_v48 = vpop.f32.mrb[54].mxu0  ;;  %v2115_v49 = vpop.f32.mrb[56].mxu1 }
 0x15d   : >> { %v1929_v50 = vadd.f32 %v1924_v48, %v1857_v42  ;;  %v1986_v52 = vadd.f32 %v1979_v35, %v1928_v45  ;;  %v3953_v53 = vpop.f32.mrb[55].mxu0  ;;  %v3970_v54 = vpop.f32.mrb[57].mxu1 }
 0x15e   : >> { %v2118_v55 = vpop.f32.mrb[58].mxu1 }
 0x15f   : >> { %v1987_v56 = vadd.f32 %v1982_v40, %v1929_v50  ;;  %v3971_v57 = vpop.f32.mrb[59].mxu1 }
 0x162   : >> { %v2041_v58 = vpop.f32.mrb[56].mxu0 }
 0x163   : >> { %v2048_v59 = vadd.f32 %v2041_v58, %v1986_v52  ;;  %v3964_v60 = vpop.f32.mrb[57].mxu0 }
 0x164   : >> { %v2044_v61 = vpop.f32.mrb[58].mxu0  ;;  %v2245_v62 = vpop.f32.mrb[60].mxu1 }
 0x165   : >> { %v2049_v63 = vadd.f32 %v2044_v61, %v1987_v56  ;;  %v2122_v0 = vadd.f32 %v2115_v49, %v2048_v59  ;;  %v3965_v1 = vpop.f32.mrb[59].mxu0  ;;  %v3982_v3 = vpop.f32.mrb[61].mxu1 }
 0x166   : >> { %v2248_v4 = vpop.f32.mrb[62].mxu1 }
 0x167   : >> { %v2123_v5 = vadd.f32 %v2118_v55, %v2049_v63  ;;  %v3983_v6 = vpop.f32.mrb[63].mxu1 }
 0x16a   : >> { %v2173_v8 = vpop.f32.mrb[60].mxu0 }
 0x16b   : >> { %v2180_v9 = vadd.f32 %v2173_v8, %v2122_v0  ;;  %v3976_v7 = vpop.f32.mrb[61].mxu0 }
 0x16c   : >> { %v2176_v10 = vpop.f32.mrb[62].mxu0  ;;  %v2375_v11 = vpop.f32.mrb[64].mxu1 }
 0x16d   : >> { %v2181_v12 = vadd.f32 %v2176_v10, %v2123_v5  ;;  %v2252_v13 = vadd.f32 %v2245_v62, %v2180_v9  ;;  %v3977_v41 = vpop.f32.mrb[63].mxu0  ;;  %v3994_v14 = vpop.f32.mrb[65].mxu1 }
 0x16e   : >> { %v2378_v15 = vpop.f32.mrb[66].mxu1 }
 0x16f   : >> { %v2253_v16 = vadd.f32 %v2248_v4, %v2181_v12  ;;  %v3995_v17 = vpop.f32.mrb[67].mxu1 }
 0x172   : >> { %v2303_v46 = vpop.f32.mrb[64].mxu0 }
 0x173   : >> { %v2310_v18 = vadd.f32 %v2303_v46, %v2252_v13  ;;  %v3988_v19 = vpop.f32.mrb[65].mxu0 }
 0x174   : >> { %v2306_v51 = vpop.f32.mrb[66].mxu0  ;;  %v2495_v20 = vpop.f32.mrb[68].mxu1 }
 0x175   : >> { %v2311_v21 = vadd.f32 %v2306_v51, %v2253_v16  ;;  %v2382_v22 = vadd.f32 %v2375_v11, %v2310_v18  ;;  %v3989_v23 = vpop.f32.mrb[67].mxu0  ;;  %v4006_v24 = vpop.f32.mrb[69].mxu1 }
 0x176   : >> { %v2498_v25 = vpop.f32.mrb[70].mxu1 }
 0x177   : >> { %v2383_v26 = vadd.f32 %v2378_v15, %v2311_v21  ;;  %v4007_v2 = vpop.f32.mrb[71].mxu1 }
 0x17a   : >> { %v2433_v27 = vpop.f32.mrb[68].mxu0 }
 0x17b   : >> { %v2440_v28 = vadd.f32 %v2433_v27, %v2382_v22  ;;  %v4000_v29 = vpop.f32.mrb[69].mxu0 }
 0x17c   : >> { %v2436_v30 = vpop.f32.mrb[70].mxu0  ;;  %v2627_v31 = vpop.f32.mrb[72].mxu1 }
 0x17d   : >> { %v2441_v32 = vadd.f32 %v2436_v30, %v2383_v26  ;;  %v2502_v33 = vadd.f32 %v2495_v20, %v2440_v28  ;;  %v4001_v34 = vpop.f32.mrb[71].mxu0  ;;  %v4018_v35 = vpop.f32.mrb[73].mxu1 }
 0x17e   : >> { %v2630_v36 = vpop.f32.mrb[74].mxu1 }
 0x17f   : >> { %v2503_v37 = vadd.f32 %v2498_v25, %v2441_v32  ;;  %v4019_v38 = vpop.f32.mrb[75].mxu1 }
 0x182   : >> { %v2569_v39 = vpop.f32.mrb[72].mxu0 }
 0x183   : >> { %v2576_v40 = vadd.f32 %v2569_v39, %v2502_v33  ;;  %v4012_v42 = vpop.f32.mrb[73].mxu0 }
 0x184   : >> { %v2572_v43 = vpop.f32.mrb[74].mxu0  ;;  %v2757_v44 = vpop.f32.mrb[76].mxu1 }
 0x185   : >> { %v2577_v45 = vadd.f32 %v2572_v43, %v2503_v37  ;;  %v2634_v47 = vadd.f32 %v2627_v31, %v2576_v40  ;;  %v4013_v48 = vpop.f32.mrb[75].mxu0  ;;  %v4030_v49 = vpop.f32.mrb[77].mxu1 }
 0x186   : >> { %v2760_v50 = vpop.f32.mrb[78].mxu1 }
 0x187   : >> { %v2635_v52 = vadd.f32 %v2630_v36, %v2577_v45  ;;  %v4031_v53 = vpop.f32.mrb[79].mxu1  ;;  %v3682_v45 = vld [vmem:[%s4848_s2] ss:$0 sm:$0xff] }
 0x18a   : >> { %v2699_v54 = vpop.f32.mrb[76].mxu0 }
 0x18b   : >> { %v2706_v55 = vadd.f32 %v2699_v54, %v2634_v47  ;;  %v4024_v56 = vpop.f32.mrb[77].mxu0 }
 0x18c   : >> { %v2702_v57 = vpop.f32.mrb[78].mxu0  ;;  %v2887_v58 = vpop.f32.mrb[80].mxu1 }
 0x18d   : >> { %v2707_v59 = vadd.f32 %v2702_v57, %v2635_v52  ;;  %v2764_v60 = vadd.f32 %v2757_v44, %v2706_v55  ;;  %v4025_v61 = vpop.f32.mrb[79].mxu0  ;;  %v4042_v62 = vpop.f32.mrb[81].mxu1 }
 0x18e   : >> { %v2890_v63 = vpop.f32.mrb[82].mxu1 }
 0x18f   : >> { %v2765_v0 = vadd.f32 %v2760_v50, %v2707_v59  ;;  %v4043_v1 = vpop.f32.mrb[83].mxu1 }
 0x192   : >> { %v2829_v3 = vpop.f32.mrb[80].mxu0 }
 0x193   : >> { %v2836_v4 = vadd.f32 %v2829_v3, %v2764_v60  ;;  %v4036_v5 = vpop.f32.mrb[81].mxu0 }
 0x194   : >> { %v2832_v6 = vpop.f32.mrb[82].mxu0  ;;  %v3023_v8 = vpop.f32.mrb[84].mxu1 }
 0x195   : >> { %v2837_v9 = vadd.f32 %v2832_v6, %v2765_v0  ;;  %v2894_v7 = vadd.f32 %v2887_v58, %v2836_v4  ;;  %v4037_v10 = vpop.f32.mrb[83].mxu0  ;;  %v4054_v11 = vpop.f32.mrb[85].mxu1 }
 0x196   : >> { %v3026_v12 = vpop.f32.mrb[86].mxu1 }
 0x197   : >> { %v2895_v13 = vadd.f32 %v2890_v63, %v2837_v9  ;;  %v4055_v41 = vpop.f32.mrb[87].mxu1 }
 0x19a   : >> { %v2949_v14 = vpop.f32.mrb[84].mxu0 }
 0x19b   : >> { %v2956_v15 = vadd.f32 %v2949_v14, %v2894_v7  ;;  %v4048_v16 = vpop.f32.mrb[85].mxu0 }
 0x19c   : >> { %v2952_v17 = vpop.f32.mrb[86].mxu0  ;;  %v3153_v46 = vpop.f32.mrb[88].mxu1 }
 0x19d   : >> { %v2957_v18 = vadd.f32 %v2952_v17, %v2895_v13  ;;  %v3030_v19 = vadd.f32 %v3023_v8, %v2956_v15  ;;  %v4049_v51 = vpop.f32.mrb[87].mxu0  ;;  %v4066_v20 = vpop.f32.mrb[89].mxu1 }
 0x19e   : >> { %v3156_v21 = vpop.f32.mrb[90].mxu1 }
 0x19f   : >> { %v3031_v22 = vadd.f32 %v3026_v12, %v2957_v18  ;;  %v4067_v23 = vpop.f32.mrb[91].mxu1 }
 0x1a2   : >> { %v3081_v24 = vpop.f32.mrb[88].mxu0 }
 0x1a3   : >> { %v3088_v25 = vadd.f32 %v3081_v24, %v3030_v19  ;;  %v4060_v26 = vpop.f32.mrb[89].mxu0 }
 0x1a4   : >> { %v3084_v2 = vpop.f32.mrb[90].mxu0  ;;  %v3283_v27 = vpop.f32.mrb[92].mxu1 }
 0x1a5   : >> { %v3089_v28 = vadd.f32 %v3084_v2, %v3031_v22  ;;  %v3160_v29 = vadd.f32 %v3153_v46, %v3088_v25  ;;  %v4061_v30 = vpop.f32.mrb[91].mxu0  ;;  %v4078_v31 = vpop.f32.mrb[93].mxu1 }
 0x1a6   : >> { %v3286_v32 = vpop.f32.mrb[94].mxu1 }
 0x1a7   : >> { %v3161_v33 = vadd.f32 %v3156_v21, %v3089_v28  ;;  %v4079_v34 = vpop.f32.mrb[95].mxu1 }
 0x1aa   : >> { %v3211_v35 = vpop.f32.mrb[92].mxu0 }
 0x1ab   : >> { %v3218_v36 = vadd.f32 %v3211_v35, %v3160_v29  ;;  %v4072_v37 = vpop.f32.mrb[93].mxu0 }
 0x1ac   : >> { %v3214_v38 = vpop.f32.mrb[94].mxu0 }
 0x1ad   : >> { %v3219_v39 = vadd.f32 %v3214_v38, %v3161_v33  ;;  %v3290_v40 = vadd.f32 %v3283_v27, %v3218_v36  ;;  %v4073_v42 = vpop.f32.mrb[95].mxu0 }
 0x1af   : >> { %v3291_v43 = vadd.f32 %v3286_v32, %v3219_v39 }
 0x1b2   : >> { %v3341_v44 = vpop.f32.mrb[96].mxu0 }
 0x1b3   : >> { %v3348_v47 = vadd.f32 %v3341_v44, %v3290_v40  ;;  %v4084_v48 = vpop.f32.mrb[97].mxu0 }
 0x1b4   : >> { %v3344_v49 = vpop.f32.mrb[98].mxu0 }
 0x1b5   : >> { %v3357_v50 = vadd.f32 %v3682_v45, %v3348_v47  ;;  %v3349_v52 = vadd.f32 %v3344_v49, %v3291_v43  ;;  %v4085_v53 = vpop.f32.mrb[99].mxu0 }
 0x1b7   : >> { %vm3359_vm9 = vcmp.gt.f32.partialorder %v3357_v50, 0.0  ;;  %v3361_v54 = vmul.f32 0.2, %v3357_v50  ;;  %v3358_v55 = vadd.f32 %v3682_v45, %v3349_v52 }
 0x1b8   : > { %176 = sbr.rel (!%p174_p4) target bundleno = 17 (0x11), region = 125 }
 0x1b9   : >> { %v3363_v56 = vsel %vm3359_vm9, %v3357_v50, %v3361_v54  ;;  %vm3360_vm11 = vcmp.gt.f32.partialorder %v3358_v55, 0.0  ;;  %v3362_v57 = vmul.f32 0.2, %v3358_v55 }
 0x1ba   : >> { %v3691_v58 = vpack.c.bf16 %v3363_v56, %v3363_v56 }
 0x1bb   : >> { %v3364_v59 = vsel %vm3360_vm11, %v3358_v55, %v3362_v57 }
 0x1bc   : >> { %3377 = vst.msk [vmem:[%s3375_s10] sm:$0xf] %vm3376_vm10, %v3691_v58  ;;  %v3692_v60 = vpack.c.bf16 %v3364_v59, %v3364_v59 }
 0x1be   : >> { %3378 = vst.msk [vmem:[%s3375_s10 + $0x4] sm:$0xf] %vm3376_vm10, %v3692_v60 }
 0x1bf PF: > { %s13_s12 = sadd.s32 1, %s4170_s12  }
 0x1c0   : > { %p10_p5 = scmp.ge.s32.totalorder %s13_s12, 4  }
 0x1c2   :  { %12 = sbr.rel (!%p10_p5) target bundleno = 1 (0x1), region = 136 }

// kernel: style_encoder_forward.9
= control target key start
LH: loop header
LB: loop body
LE: loop exit
PB: predicated region body
PF: predicated region fallthrough
CT: control target
= control target key end

     0   :  { %v184_v1 = vmov 0.0   ;;  %vm185_vm0 = vmmov 0   ;;  %vm20_vm1 = vcmask 517120   ;;  %s240_s0 = inlined_call_operand.vmem [shape: bf16[2,64], index: 0, kind: input, shape index: {}]   ;;  %s241_s1 = inlined_call_operand.vmem [shape: bf16[64,64], index: 1, kind: input, shape index: {}]   ;;  %s242_s2 = inlined_call_operand.vmem [shape: f32[1,64], index: 2, kind: input, shape index: {}]   ;;  %s243_s3 = inlined_call_operand.hbm [shape: f32[2,64], index: 3, kind: output, shape index: {}]  }
   0x1   :  { %v156_v0 = vld [vmem:[%s241_s1] sm:$0xff]   ;;  %141 = vmatprep.subr.bf16.mxu0 %v184_v1  ;;  %v157_v2 = vld [vmem:[%s241_s1 + $0x8] sm:$0xff]   ;;  %149 = vmatprep.mubr.msk.bf16.mxu0 %vm185_vm0, %v184_v1  ;;  %21 = vst.msk [vmem:[#allocation2] sm:$0x3] %vm20_vm1, %v184_v1 }
   0x2   :  { %142 = vmatpush3.bf16.msra.mxu0 %v156_v0 }
   0x3   :  { %143 = vmatprep.subr.bf16.mxu0 %v184_v1 }
   0x4   :  { %8 = vsyncpa [#allocation4], 0  ;;  %v158_v3 = vld [vmem:[%s241_s1 + $0x10] sm:$0xff]   ;;  %v159_v4 = vld [vmem:[%s241_s1 + $0x18] sm:$0xff]   ;;  %vm56_vm2 = vcmask 523264   ;;  %s186_s1 = smov [#allocation3]  }
   0x5   :  { %v23_v5 = vld [vmem:[%s240_s0] sm:$0x1]  ;;  %s122_s24 = sshll.u32 %s186_s1, 4  ;;  %s123_s24 = int_to_ptr.vmem [resolvable:$true] %s122_s24 }
   0x6   :  { %144 = vmatpush3.bf16.msra.mxu0 %v157_v2  ;;  %v135_v12 = vld [vmem:[%s242_s2] ss:$0 sm:$0xff]  ;;  %s160_s0 = scalar_lea.vmem %s123_s24, 32  ;;  %p165_p1 = scmp.lt.s32.totalorder %s123_s24, %s123_s24 }
   0x7   :  { %145 = vmatprep.subr.bf16.mxu0 %v184_v1  ;;  %p161_p0 = scmp.ne.s32.totalorder %s123_s24, %s160_s0  ;;  %p166_p2 = scmp.lt.s32.totalorder %s160_s0, %s160_s0 }
   0x8   :  { %v22_v6 = vld [vmem:[#allocation2] sm:$0x3] }
   0x9   :  { %p167_p3 = por %p166_p2, %p165_p1 }
   0xa   :  { %146 = vmatpush3.bf16.msra.mxu0 %v158_v3 }
   0xb   :  { %147 = vmatprep.subr.bf16.mxu0 %v184_v1  ;;  %p168_p4 = pnand %p167_p3, %p161_p0 }
   0xe   :  { %148 = vmatpush3.bf16.msra.mxu0 %v159_v4 }
  0x11   :  { %150 = vmatmul.mubr.msk.bf16.vlgmr.msra.gmra.mrb[0].mxu0 %vm56_vm2, %v23_v5 }
  0xe4   :  { %v94_v7 = vpop.f32.mrb[0].mxu0 }
  0xe5   :  { %v100_v8 = vadd.f32 %v94_v7, %v22_v6  ;;  %v151_v9 = vpop.f32.mrb[1].mxu0 }
  0xe6   :  { %v97_v10 = vpop.f32.mrb[2].mxu0 }
  0xe7   :  { %102 = vst.msk [vmem:[#allocation2] sm:$0x3] %vm20_vm1, %v100_v8  ;;  %v152_v11 = vpop.f32.mrb[3].mxu0 }
  0xee   :  { %v106_v13 = vld [vmem:[#allocation2] sm:$0x3] }
  0xef   :  { %v114_v14 = vadd.f32 %v135_v12, %v106_v13 }
  0xf1   :  { %115 = vst.msk [vmem:[#allocation3] sm:$0x3] %vm20_vm1, %v114_v14 }
  0xf2   :  { %171 = shalt.err (!%p168_p4)
}
  0xf3   :  { %s172_s27 = scalar_lea.hbm %s243_s3, 32 }
  0xf4   :  { %p173_p5 = scmp.ne.s32.totalorder %s243_s3, %s172_s27  ;;  %p176_p6 = scmp.lt.u32.totalorder %s172_s27, %s243_s3 }
  0xf6   :  { %p178_p7 = pnand %p176_p6, %p173_p5 }
  0xf8   :  { %181 = shalt.err (!%p178_p7)
}
  0xf9   :  { %125 = dma.vmem_to_hbm [thread:$0]  %s123_s24, 32, %s243_s3, [#allocation4]  }
  0xfa   :  { %182 = dma.done.wait [#allocation4], 32  }
  0xfb   :  { %183 = vsyncadd [#allocation4], 4294967264 }
  0xfc   :  { %129 = vsyncpa [#allocation4], 1 }

// kernel: style_encoder_forward.6
= control target key start
LH: loop header
LB: loop body
LE: loop exit
PB: predicated region body
PF: predicated region fallthrough
CT: control target
= control target key end

     0   :  { %s5241_s12 = smov 0   ;;  %s5965_s0 = inlined_call_operand.vmem [shape: bf16[2,4,9,9,8], index: 0, kind: input, shape index: {}]   ;;  %s5966_s1 = inlined_call_operand.vmem [shape: bf16[9,8,16], index: 1, kind: input, shape index: {}]   ;;  %s5967_s2 = inlined_call_operand.vmem [shape: f32[1,16], index: 2, kind: input, shape index: {}]   ;;  %s5968_s3 = inlined_call_operand.vmem [shape: bf16[2,64,16], index: 3, kind: output, shape index: {}]  }
   0x1 LB: > { %s4310_s13 = sadd.s32 4294967295, %s5217_s12   ;;  %p4314_p0 = scmp.ge.s32.totalorder %s5217_s12, 1  ;;  %s5217_s12 = sphi %s5241_s12, %s13_s12  }
   0x2   : > { %p137_p1 = scmp.lt.s32.totalorder %s5217_s12, 3 }
   0x4   : > { %p138_p2 = pnand %p4314_p0, %p137_p1 }
   0x5   : > { %v4319_v0 = vld [vmem:[%s5966_s1 + $0x4] sm:$0xf] (!%p138_p2)  ;;  %vm182_vm0 = vcmask (!%p138_p2), 1043456   ;;  %v173_v1 = vld [vmem:[%s5966_s1] sm:$0xf] (!%p138_p2)  ;;  %v5219_v2 = vmov (!%p138_p2), 0.0  }
   0x6   : > { %141 = sbr.rel (%p138_p2) target bundleno = 601 (0x259), region = 32  ;;  %4742 = vmatprep.subr.bf16.mxu0 (!%p138_p2), %v5219_v2  ;;  %v184_v3 = vsel (!%p138_p2), %vm182_vm0, %v4319_v0, 0  ;;  %4748 = vmatprep.subr.bf16.mxu1 (!%p138_p2), %v5219_v2  ;;  %v230_v4 = vsel (!%p138_p2), %vm182_vm0, %v173_v1, 0  ;;  %p161_p3 = scmp.lt.s32.totalorder (!%p138_p2), %s4310_s13, 1  ;;  %vm5220_vm1 = vmmov (!%p138_p2), 0   ;;  %vm178_vm2 = vcmask (!%p138_p2), 64512  }
   0x7   : > { %4743 = vmatpush3.bf16.msra.mxu0 (!%p138_p2), %v184_v3  ;;  %4749 = vmatpush3.bf16.msra.mxu1 (!%p138_p2), %v230_v4  ;;  %v4322_v5 = vld [vmem:[%s5966_s1 + $0x8] sm:$0xf] (!%p138_p2)  ;;  %v4326_v6 = vld [vmem:[%s5966_s1 + $0xc] sm:$0xf] (!%p138_p2)  ;;  %v4329_v14 = vld [vmem:[%s5966_s1 + $0x10] sm:$0xf] (!%p138_p2) }
   0x8   : > { %4744 = vmatprep.mubr.msk.bf16.mxu0 (!%p138_p2), %vm5220_vm1, %v5219_v2  ;;  %4750 = vmatprep.mubr.msk.bf16.mxu1 (!%p138_p2), %vm5220_vm1, %v5219_v2  ;;  %v292_v7 = vsel (!%p138_p2), %vm182_vm0, %v4322_v5, 0  ;;  %v343_v8 = vsel (!%p138_p2), %vm182_vm0, %v4326_v6, 0  ;;  %v4333_v16 = vld [vmem:[%s5966_s1 + $0x14] sm:$0xf] (!%p138_p2)  ;;  %v394_v21 = vsel (!%p138_p2), %vm182_vm0, %v4329_v14, 0  ;;  %vm673_vm3 = vcmask (!%p138_p2), 130048  }
   0x9   : > { %4754 = vmatprep.subr.bf16.mxu0 (!%p138_p2), %v5219_v2  ;;  %4760 = vmatprep.subr.bf16.mxu1 (!%p138_p2), %v5219_v2  ;;  %v457_v22 = vsel (!%p138_p2), %vm182_vm0, %v4333_v16, 0  ;;  %v4337_v25 = vld [vmem:[%s5966_s1 + $0x18] sm:$0xf] (!%p138_p2)  ;;  %v4340_v26 = vld [vmem:[%s5966_s1 + $0x1c] sm:$0xf] (!%p138_p2)  ;;  %vm4246_vm4 = vcmask (!%p138_p2), 125952  }
   0xa   : > { %v508_v29 = vsel (!%p138_p2), %vm182_vm0, %v4337_v25, 0  ;;  %v559_v30 = vsel (!%p138_p2), %vm182_vm0, %v4340_v26, 0  ;;  %v4344_v32 = vld [vmem:[%s5966_s1 + $0x20] sm:$0xf] (!%p138_p2)  ;;  %v4350_v33 = vld [vmem:[%s5966_s1 + $0x4] sm:$0xf] (!%p138_p2) }
   0xb   : > { %v622_v37 = vsel (!%p138_p2), %vm182_vm0, %v4344_v32, 0  ;;  %v683_v38 = vsel (!%p138_p2), %vm182_vm0, %v4350_v33, 0  ;;  %v676_v42 = vld [vmem:[%s5966_s1] sm:$0xf] (!%p138_p2)  ;;  %v4355_v43 = vld [vmem:[%s5966_s1 + $0x8] sm:$0xf] (!%p138_p2) }
   0xc   : > { %v729_v47 = vsel (!%p138_p2), %vm182_vm0, %v676_v42, 0  ;;  %v790_v48 = vsel (!%p138_p2), %vm182_vm0, %v4355_v43, 0  ;;  %v4359_v51 = vld [vmem:[%s5966_s1 + $0xc] sm:$0xf] (!%p138_p2)  ;;  %v4362_v52 = vld [vmem:[%s5966_s1 + $0x10] sm:$0xf] (!%p138_p2) }
   0xd   : > { %s5970_s13 = smov (!%p161_p3, %s4310_s13), 1  ;;  %v840_v55 = vsel %vm182_vm0, %v4359_v51, 0  ;;  %v890_v56 = vsel %vm182_vm0, %v4362_v52, 0  ;;  %v4366_v58 = vld [vmem:[%s5966_s1 + $0x14] sm:$0xf] }
   0xe   : > { %s5174_s22 = smul.u32 288, %s5970_s13  ;;  %v4370_v59 = vld [vmem:[%s5966_s1 + $0x18] sm:$0xf]  ;;  %v952_v63 = vsel %vm182_vm0, %v4366_v58, 0  ;;  %v4373_v5 = vld [vmem:[%s5966_s1 + $0x1c] sm:$0xf] }
   0xf   : > { %v1002_v0 = vsel %vm182_vm0, %v4370_v59, 0  ;;  %v4377_v6 = vld [vmem:[%s5966_s1 + $0x20] sm:$0xf]  ;;  %v4383_v14 = vld [vmem:[%s5966_s1 + $0x4] sm:$0xf] }
  0x10   : > { %s5277_s25 = scalar_lea.vmem %s5965_s0, %s5174_s22  ;;  %v1167_v16 = vld [vmem:[%s5966_s1] sm:$0xf]  ;;  %v4399_v32 = vld [vmem:[%s5966_s1 + $0x14] sm:$0xf]  ;;  %v4421_v58 = vld [vmem:[%s5966_s1 + $0x8] sm:$0xf] }
  0x11   : > { %v4318_v9 = vld [vmem:[%s5277_s25 + $0x48] sm:$0xf]  ;;  %v172_v10 = vld [vmem:[%s5277_s25] sm:$0xf]  ;;  %v5186_v15 = vld [vmem:[%s5277_s25 + $0x90] sm:$0x1f]  }
  0x12   : > { %4745 = vmatmul.mubr.msk.bf16.vlgmr.msra.gmra.mrb[0].mxu0 %vm178_vm2, %v4318_v9  ;;  %4751 = vmatmul.mubr.msk.bf16.vlgmr.msra.gmra.mrb[0].mxu1 %vm178_vm2, %v172_v10  ;;  %v5185_v11 = vld [vmem:[%s5277_s25] sm:$0x1f]   ;;  %v449_v18 = vshll.u32 %v5186_v15, 16  ;;  %v4325_v19 = vld [vmem:[%s5277_s25 + $0x90] sm:$0xf]  ;;  %v447_v23 = vshrl.u32 %v5186_v15, 16 }
  0x13   : > { %4755 = vmatpush3.bf16.msra.mxu0 %v292_v7  ;;  %4761 = vmatpush3.bf16.msra.mxu1 %v343_v8  ;;  %v282_v12 = vshrl.u32 %v5185_v11, 16  ;;  %v284_v13 = vshll.u32 %v5185_v11, 16  ;;  %v4328_v28 = vld [vmem:[%s5277_s25 + $0xd8] sm:$0xf]  ;;  %v5187_v31 = vld [vmem:[%s5277_s25 + $0x8] sm:$0x1f]  }
  0x14   : > { %4756 = vmatprep.mubr.msk.bf16.mxu0 %vm5220_vm1, %v5219_v2  ;;  %4762 = vmatprep.mubr.msk.bf16.mxu1 %vm5220_vm1, %v5219_v2  ;;  %v451_v24 = vrot.slane %v449_v18, 1  ;;  %v614_v34 = vshll.u32 %v5187_v31, 16  ;;  %v4336_v35 = vld [vmem:[%s5277_s25 + $0x8] sm:$0xf]  ;;  %v4339_v36 = vld [vmem:[%s5277_s25 + $0x50] sm:$0xf] }
  0x15   : > { %4766 = vmatprep.subr.bf16.mxu0 %v5219_v2  ;;  %4772 = vmatprep.subr.bf16.mxu1 %v5219_v2  ;;  %v286_v17 = vrot.slane %v284_v13, 1  ;;  %v612_v39 = vshrl.u32 %v5187_v31, 16  ;;  %v5188_v41 = vld [vmem:[%s5277_s25 + $0x8] sm:$0x1f]   ;;  %v4349_v46 = vld [vmem:[%s5277_s25 + $0x50] sm:$0xf] }
  0x16   : > { %v452_v27 = vor.u32 %v451_v24, %v447_v23  ;;  %v616_v40 = vrot.slane %v614_v34, 1  ;;  %v782_v45 = vshll.u32 %v5188_v41, 16  ;;  %v780_v49 = vshrl.u32 %v5188_v41, 16  ;;  %v4348_v54 = vld [vmem:[%s5277_s25 + $0x8] sm:$0xf] }
  0x17   : > { %v287_v20 = vor.u32 %v286_v17, %v282_v12  ;;  %v5189_v57 = vld [vmem:[%s5277_s25 + $0x98] sm:$0x1f]   ;;  %v4361_v62 = vld [vmem:[%s5277_s25 + $0xe0] sm:$0xf]  ;;  %v5190_v4 = vld [vmem:[%s5277_s25 + $0x10] sm:$0x1f]  }
  0x18   : > { %v617_v44 = vor.u32 %v616_v40, %v612_v39  ;;  %v784_v50 = vrot.slane %v782_v45, 1  ;;  %v944_v60 = vshll.u32 %v5189_v57, 16  ;;  %v4358_v61 = vld [vmem:[%s5277_s25 + $0x98] sm:$0xf]  ;;  %v942_v1 = vshrl.u32 %v5189_v57, 16 }
  0x19   : > { %v1106_v8 = vshll.u32 %v5190_v4, 16  ;;  %v4369_v9 = vld [vmem:[%s5277_s25 + $0x10] sm:$0xf]  ;;  %v1052_v10 = vsel %vm182_vm0, %v4373_v5, 0  ;;  %v1114_v11 = vsel %vm182_vm0, %v4377_v6, 0  ;;  %v1104_v12 = vshrl.u32 %v5190_v4, 16 }
  0x1a   : > { %4757 = vmatmul.mubr.msk.bf16.vlgmr.msra.gmra.mrb[4].mxu0 %vm178_vm2, %v287_v20  ;;  %4763 = vmatmul.mubr.msk.bf16.vlgmr.msra.gmra.mrb[4].mxu1 %vm178_vm2, %v4325_v19  ;;  %v785_v53 = vor.u32 %v784_v50, %v780_v49  ;;  %v946_v3 = vrot.slane %v944_v60, 1  ;;  %v4372_v15 = vld [vmem:[%s5277_s25 + $0x58] sm:$0xf]  ;;  %v1174_v18 = vsel %vm182_vm0, %v4383_v14, 0  ;;  %v1220_v19 = vsel %vm182_vm0, %v1167_v16, 0 }
  0x1b   : > { %4767 = vmatpush3.bf16.msra.mxu0 %v394_v21  ;;  %4773 = vmatpush3.bf16.msra.mxu1 %v457_v22  ;;  %v1108_v13 = vrot.slane %v1106_v8, 1  ;;  %v5191_v20 = vld [vmem:[%s5277_s25 + $0x10] sm:$0x1f]   ;;  %v4388_v21 = vld [vmem:[%s5966_s1 + $0x8] sm:$0xf] }
  0x1c   : > { %4768 = vmatprep.mubr.msk.bf16.mxu0 %vm5220_vm1, %v5219_v2  ;;  %4774 = vmatprep.mubr.msk.bf16.mxu1 %vm5220_vm1, %v5219_v2  ;;  %v947_v7 = vor.u32 %v946_v3, %v942_v1  ;;  %v4392_v22 = vld [vmem:[%s5966_s1 + $0xc] sm:$0xf]  ;;  %v1273_v23 = vshll.u32 %v5191_v20, 16  ;;  %v4382_v24 = vld [vmem:[%s5277_s25 + $0x58] sm:$0xf]  ;;  %v1281_v26 = vsel %vm182_vm0, %v4388_v21, 0 }
  0x1d   : > { %4778 = vmatprep.subr.bf16.mxu0 %v5219_v2  ;;  %4784 = vmatprep.subr.bf16.mxu1 %v5219_v2  ;;  %v1109_v17 = vor.u32 %v1108_v13, %v1104_v12  ;;  %v4381_v25 = vld [vmem:[%s5277_s25 + $0x10] sm:$0xf]  ;;  %v4403_v40 = vld [vmem:[%s5966_s1 + $0x18] sm:$0xf]  ;;  %v4406_v41 = vld [vmem:[%s5966_s1 + $0x1c] sm:$0xf] }
  0x1e   : > { %v4395_v31 = vld [vmem:[%s5966_s1 + $0x10] sm:$0xf]  ;;  %v4394_v43 = vld [vmem:[%s5277_s25 + $0xe8] sm:$0xf]  ;;  %v1543_v45 = vsel %vm182_vm0, %v4406_v41, 0 }
  0x1f   : > { %v4402_v50 = vld [vmem:[%s5277_s25 + $0x18] sm:$0xf]  ;;  %v4405_v51 = vld [vmem:[%s5277_s25 + $0x60] sm:$0xf]  ;;  %v4425_v3 = vld [vmem:[%s5966_s1 + $0xc] sm:$0xf] }
  0x20   : > { %v1658_v57 = vld [vmem:[%s5966_s1] sm:$0xf]  ;;  %v4428_v4 = vld [vmem:[%s5966_s1 + $0x10] sm:$0xf]  ;;  %v4414_v6 = vld [vmem:[%s5277_s25 + $0x18] sm:$0xf] }
  0x21   : > { %v1872_v8 = vsel %vm182_vm0, %v4428_v4, 0  ;;  %v4424_v13 = vld [vmem:[%s5277_s25 + $0xa8] sm:$0xf]  ;;  %v4427_v14 = vld [vmem:[%s5277_s25 + $0xf0] sm:$0xf] }
  0x22   : > { %4769 = vmatmul.mubr.msk.bf16.vlgmr.msra.gmra.mrb[8].mxu0 %vm178_vm2, %v4328_v28  ;;  %4775 = vmatmul.mubr.msk.bf16.vlgmr.msra.gmra.mrb[8].mxu1 %vm178_vm2, %v452_v27  ;;  %v1331_v27 = vsel %vm182_vm0, %v4392_v22, 0  ;;  %v1271_v28 = vshrl.u32 %v5191_v20, 16  ;;  %v4439_v20 = vld [vmem:[%s5966_s1 + $0x1c] sm:$0xf]  ;;  %v4443_v21 = vld [vmem:[%s5966_s1 + $0x20] sm:$0xf] }
  0x23   : > { %4779 = vmatpush3.bf16.msra.mxu0 %v508_v29  ;;  %4785 = vmatpush3.bf16.msra.mxu1 %v559_v30  ;;  %v1275_v29 = vrot.slane %v1273_v23, 1  ;;  %v5192_v30 = vld [vmem:[%s5277_s25 + $0xa0] sm:$0x1f]  }
  0x24   : > { %4780 = vmatprep.mubr.msk.bf16.mxu0 %vm5220_vm1, %v5219_v2  ;;  %4786 = vmatprep.mubr.msk.bf16.mxu1 %vm5220_vm1, %v5219_v2  ;;  %v1435_v34 = vshll.u32 %v5192_v30, 16 }
  0x25   : > { %4790 = vmatprep.subr.bf16.mxu0 %v5219_v2  ;;  %4796 = vmatprep.subr.bf16.mxu1 %v5219_v2  ;;  %v1276_v33 = vor.u32 %v1275_v29, %v1271_v28  ;;  %v4449_v29 = vld [vmem:[%s5966_s1 + $0x4] sm:$0xf] }
  0x26   : > { %v1437_v39 = vrot.slane %v1435_v34, 1 }
  0x2a   : > { %4781 = vmatmul.mubr.msk.bf16.vlgmr.msra.gmra.mrb[12].mxu0 %vm178_vm2, %v4336_v35  ;;  %4787 = vmatmul.mubr.msk.bf16.vlgmr.msra.gmra.mrb[12].mxu1 %vm178_vm2, %v4339_v36  ;;  %v4391_v35 = vld [vmem:[%s5277_s25 + $0xa0] sm:$0xf]  ;;  %v1381_v36 = vsel %vm182_vm0, %v4395_v31, 0 }
  0x2b   : > { %4791 = vmatpush3.bf16.msra.mxu0 %v622_v37  ;;  %4797 = vmatpush3.bf16.msra.mxu1 %v683_v38  ;;  %v1443_v37 = vsel %vm182_vm0, %v4399_v32, 0  ;;  %v1433_v38 = vshrl.u32 %v5192_v30, 16  ;;  %v2149_v30 = vld [vmem:[%s5966_s1] sm:$0xf]  ;;  %v4438_v32 = vld [vmem:[%s5277_s25 + $0x68] sm:$0xf] }
  0x2c   : > { %4792 = vmatprep.mubr.msk.bf16.mxu0 %vm5220_vm1, %v5219_v2  ;;  %4798 = vmatprep.mubr.msk.bf16.mxu1 %vm5220_vm1, %v5219_v2  ;;  %v2202_v34 = vsel %vm182_vm0, %v2149_v30, 0 }
  0x2d   : > { %4802 = vmatprep.subr.bf16.mxu0 %v5219_v2  ;;  %4808 = vmatprep.subr.bf16.mxu1 %v5219_v2  ;;  %v1438_v42 = vor.u32 %v1437_v39, %v1433_v38  ;;  %v4448_v39 = vld [vmem:[%s5277_s25 + $0x68] sm:$0xf] }
  0x32   : > { %4793 = vmatmul.mubr.msk.bf16.vlgmr.msra.gmra.mrb[16].mxu0 %vm178_vm2, %v617_v44  ;;  %4799 = vmatmul.mubr.msk.bf16.vlgmr.msra.gmra.mrb[16].mxu1 %vm178_vm2, %v4349_v46  ;;  %v1493_v44 = vsel %vm182_vm0, %v4403_v40, 0  ;;  %v5193_v46 = vld [vmem:[%s5277_s25 + $0x18] sm:$0x1f]   ;;  %v4447_v40 = vld [vmem:[%s5277_s25 + $0x20] sm:$0xf] }
  0x33   : > { %4803 = vmatpush3.bf16.msra.mxu0 %v729_v47  ;;  %4809 = vmatpush3.bf16.msra.mxu1 %v790_v48  ;;  %v4410_v47 = vld [vmem:[%s5966_s1 + $0x20] sm:$0xf]  ;;  %v4416_v48 = vld [vmem:[%s5966_s1 + $0x4] sm:$0xf]  ;;  %v1597_v49 = vshll.u32 %v5193_v46, 16 }
  0x34   : > { %4804 = vmatprep.mubr.msk.bf16.mxu0 %vm5220_vm1, %v5219_v2  ;;  %4810 = vmatprep.mubr.msk.bf16.mxu1 %vm5220_vm1, %v5219_v2  ;;  %v1605_v52 = vsel %vm182_vm0, %v4410_v47, 0  ;;  %v4465_v47 = vld [vmem:[%s5966_s1 + $0x14] sm:$0xf] }
  0x35   : > { %4814 = vmatprep.subr.bf16.mxu0 %v5219_v2  ;;  %4820 = vmatprep.subr.bf16.mxu1 %v5219_v2 }
  0x3a   : > { %4805 = vmatmul.mubr.msk.bf16.vlgmr.msra.gmra.mrb[20].mxu0 %vm178_vm2, %v4348_v54  ;;  %4811 = vmatmul.mubr.msk.bf16.vlgmr.msra.gmra.mrb[20].mxu1 %vm178_vm2, %v785_v53  ;;  %v1665_v53 = vsel %vm182_vm0, %v4416_v48, 0  ;;  %v1595_v54 = vshrl.u32 %v5193_v46, 16  ;;  %v4461_v46 = vld [vmem:[%s5966_s1 + $0x10] sm:$0xf] }
  0x3b   : > { %4815 = vmatpush3.bf16.msra.mxu0 %v840_v55  ;;  %4821 = vmatpush3.bf16.msra.mxu1 %v890_v56  ;;  %v1599_v55 = vrot.slane %v1597_v49, 1  ;;  %v5194_v56 = vld [vmem:[%s5277_s25 + $0x18] sm:$0x1f]  }
  0x3c   : > { %4816 = vmatprep.mubr.msk.bf16.mxu0 %vm5220_vm1, %v5219_v2  ;;  %4822 = vmatprep.mubr.msk.bf16.mxu1 %vm5220_vm1, %v5219_v2  ;;  %v1764_v60 = vshll.u32 %v5194_v56, 16 }
  0x3d   : > { %4826 = vmatprep.subr.bf16.mxu0 %v5219_v2  ;;  %4832 = vmatprep.subr.bf16.mxu1 %v5219_v2  ;;  %v1600_v59 = vor.u32 %v1599_v55, %v1595_v54  ;;  %v4469_v55 = vld [vmem:[%s5966_s1 + $0x18] sm:$0xf] }
  0x3e   : > { %v1766_v1 = vrot.slane %v1764_v60, 1 }
  0x42   : > { %4817 = vmatmul.mubr.msk.bf16.vlgmr.msra.gmra.mrb[24].mxu0 %vm178_vm2, %v4358_v61  ;;  %4823 = vmatmul.mubr.msk.bf16.vlgmr.msra.gmra.mrb[24].mxu1 %vm178_vm2, %v4361_v62  ;;  %v4415_v61 = vld [vmem:[%s5277_s25 + $0x60] sm:$0xf]  ;;  %v1711_v62 = vsel %vm182_vm0, %v1658_v57, 0 }
  0x43   : > { %4827 = vmatpush3.bf16.msra.mxu0 %v952_v63  ;;  %4833 = vmatpush3.bf16.msra.mxu1 %v1002_v0  ;;  %v1772_v63 = vsel %vm182_vm0, %v4421_v58, 0  ;;  %v1762_v0 = vshrl.u32 %v5194_v56, 16  ;;  %v4472_v56 = vld [vmem:[%s5966_s1 + $0x1c] sm:$0xf]  ;;  %v4460_v58 = vld [vmem:[%s5277_s25 + $0xf8] sm:$0xf] }
  0x44   : > { %4828 = vmatprep.mubr.msk.bf16.mxu0 %vm5220_vm1, %v5219_v2  ;;  %4834 = vmatprep.mubr.msk.bf16.mxu1 %vm5220_vm1, %v5219_v2  ;;  %v2525_v60 = vsel %vm182_vm0, %v4472_v56, 0 }
  0x45   : > { %4838 = vmatprep.subr.bf16.mxu0 %v5219_v2  ;;  %4844 = vmatprep.subr.bf16.mxu1 %v5219_v2  ;;  %v1767_v5 = vor.u32 %v1766_v1, %v1762_v0  ;;  %v4468_v1 = vld [vmem:[%s5277_s25 + $0x28] sm:$0xf] }
  0x4a   : > { %4829 = vmatmul.mubr.msk.bf16.vlgmr.msra.gmra.mrb[28].mxu0 %vm178_vm2, %v947_v7  ;;  %4835 = vmatmul.mubr.msk.bf16.vlgmr.msra.gmra.mrb[28].mxu1 %vm178_vm2, %v4369_v9  ;;  %v1822_v7 = vsel %vm182_vm0, %v4425_v3, 0  ;;  %v5195_v9 = vld [vmem:[%s5277_s25 + $0xa8] sm:$0x1f]   ;;  %v4471_v3 = vld [vmem:[%s5277_s25 + $0x70] sm:$0xf] }
  0x4b   : > { %4839 = vmatpush3.bf16.msra.mxu0 %v1052_v10  ;;  %4845 = vmatpush3.bf16.msra.mxu1 %v1114_v11  ;;  %v4432_v10 = vld [vmem:[%s5966_s1 + $0x14] sm:$0xf]  ;;  %v4436_v11 = vld [vmem:[%s5966_s1 + $0x18] sm:$0xf]  ;;  %v1926_v12 = vshll.u32 %v5195_v9, 16 }
  0x4c   : > { %4840 = vmatprep.mubr.msk.bf16.mxu0 %vm5220_vm1, %v5219_v2  ;;  %4846 = vmatprep.mubr.msk.bf16.mxu1 %vm5220_vm1, %v5219_v2  ;;  %v1984_v16 = vsel %vm182_vm0, %v4436_v11, 0 }
  0x4d   : > { %4850 = vmatprep.subr.bf16.mxu0 %v5219_v2  ;;  %4856 = vmatprep.subr.bf16.mxu1 %v5219_v2 }
  0x52   : > { %4841 = vmatmul.mubr.msk.bf16.vlgmr.msra.gmra.mrb[32].mxu0 %vm178_vm2, %v4372_v15  ;;  %4847 = vmatmul.mubr.msk.bf16.vlgmr.msra.gmra.mrb[32].mxu1 %vm178_vm2, %v1109_v17  ;;  %v1934_v15 = vsel %vm182_vm0, %v4432_v10, 0  ;;  %v1924_v17 = vshrl.u32 %v5195_v9, 16  ;;  %v2640_v9 = vld [vmem:[%s5966_s1] sm:$0xf]  ;;  %v4487_v10 = vld [vmem:[%s5966_s1 + $0x8] sm:$0xf] }
  0x53   : > { %4851 = vmatpush3.bf16.msra.mxu0 %v1174_v18  ;;  %4857 = vmatpush3.bf16.msra.mxu1 %v1220_v19  ;;  %v1928_v18 = vrot.slane %v1926_v12, 1  ;;  %v5196_v19 = vld [vmem:[%s5277_s25 + $0x20] sm:$0x1f]  }
  0x54   : > { %4852 = vmatprep.mubr.msk.bf16.mxu0 %vm5220_vm1, %v5219_v2  ;;  %4858 = vmatprep.mubr.msk.bf16.mxu1 %vm5220_vm1, %v5219_v2  ;;  %v2088_v23 = vshll.u32 %v5196_v19, 16 }
  0x55   : > { %4862 = vmatprep.subr.bf16.mxu0 %v5219_v2  ;;  %4868 = vmatprep.subr.bf16.mxu1 %v5219_v2  ;;  %v1929_v22 = vor.u32 %v1928_v18, %v1924_v17  ;;  %v4491_v18 = vld [vmem:[%s5966_s1 + $0xc] sm:$0xf] }
  0x56   : > { %v2090_v28 = vrot.slane %v2088_v23, 1 }
  0x5a   : > { %4853 = vmatmul.mubr.msk.bf16.vlgmr.msra.gmra.mrb[36].mxu0 %vm178_vm2, %v4382_v24  ;;  %4859 = vmatmul.mubr.msk.bf16.vlgmr.msra.gmra.mrb[36].mxu1 %vm178_vm2, %v4381_v25  ;;  %v4435_v24 = vld [vmem:[%s5277_s25 + $0x20] sm:$0xf]  ;;  %v2034_v25 = vsel %vm182_vm0, %v4439_v20, 0 }
  0x5b   : > { %4863 = vmatpush3.bf16.msra.mxu0 %v1281_v26  ;;  %4869 = vmatpush3.bf16.msra.mxu1 %v1331_v27  ;;  %v2096_v26 = vsel %vm182_vm0, %v4443_v21, 0  ;;  %v2086_v27 = vshrl.u32 %v5196_v19, 16  ;;  %v4494_v19 = vld [vmem:[%s5966_s1 + $0x10] sm:$0xf]  ;;  %v4480_v21 = vld [vmem:[%s5277_s25 + $0x28] sm:$0xf] }
  0x5c   : > { %4864 = vmatprep.mubr.msk.bf16.mxu0 %vm5220_vm1, %v5219_v2  ;;  %4870 = vmatprep.mubr.msk.bf16.mxu1 %vm5220_vm1, %v5219_v2  ;;  %v2854_v23 = vsel %vm182_vm0, %v4494_v19, 0 }
  0x5d   : > { %4874 = vmatprep.subr.bf16.mxu0 %v5219_v2  ;;  %4880 = vmatprep.subr.bf16.mxu1 %v5219_v2  ;;  %v2091_v31 = vor.u32 %v2090_v28, %v2086_v27  ;;  %v4490_v28 = vld [vmem:[%s5277_s25 + $0xb8] sm:$0xf] }
  0x62   : > { %4865 = vmatmul.mubr.msk.bf16.vlgmr.msra.gmra.mrb[40].mxu0 %vm178_vm2, %v1276_v33  ;;  %4871 = vmatmul.mubr.msk.bf16.vlgmr.msra.gmra.mrb[40].mxu1 %vm178_vm2, %v4391_v35  ;;  %v2156_v33 = vsel %vm182_vm0, %v4449_v29, 0  ;;  %v5197_v35 = vld [vmem:[%s5277_s25 + $0x20] sm:$0x1f]  }
  0x63   : > { %4875 = vmatpush3.bf16.msra.mxu0 %v1381_v36  ;;  %4881 = vmatpush3.bf16.msra.mxu1 %v1443_v37  ;;  %v4454_v36 = vld [vmem:[%s5966_s1 + $0x8] sm:$0xf]  ;;  %v4458_v37 = vld [vmem:[%s5966_s1 + $0xc] sm:$0xf]  ;;  %v2255_v38 = vshll.u32 %v5197_v35, 16 }
  0x64   : > { %4876 = vmatprep.mubr.msk.bf16.mxu0 %vm5220_vm1, %v5219_v2  ;;  %4882 = vmatprep.mubr.msk.bf16.mxu1 %vm5220_vm1, %v5219_v2  ;;  %v2263_v41 = vsel %vm182_vm0, %v4454_v36, 0  ;;  %v4493_v29 = vld [vmem:[%s5277_s25 + $0x100] sm:$0xf] }
  0x65   : > { %4886 = vmatprep.subr.bf16.mxu0 %v5219_v2  ;;  %4892 = vmatprep.subr.bf16.mxu1 %v5219_v2  ;;  %v4509_v36 = vld [vmem:[%s5966_s1 + $0x20] sm:$0xf] }
  0x6a   : > { %4877 = vmatmul.mubr.msk.bf16.vlgmr.msra.gmra.mrb[44].mxu0 %vm178_vm2, %v4394_v43  ;;  %4883 = vmatmul.mubr.msk.bf16.vlgmr.msra.gmra.mrb[44].mxu1 %vm178_vm2, %v1438_v42  ;;  %v2313_v42 = vsel %vm182_vm0, %v4458_v37, 0  ;;  %v2253_v43 = vshrl.u32 %v5197_v35, 16  ;;  %v4505_v35 = vld [vmem:[%s5966_s1 + $0x1c] sm:$0xf] }
  0x6b   : > { %4887 = vmatpush3.bf16.msra.mxu0 %v1493_v44  ;;  %4893 = vmatpush3.bf16.msra.mxu1 %v1543_v45  ;;  %v2257_v44 = vrot.slane %v2255_v38, 1  ;;  %v5198_v45 = vld [vmem:[%s5277_s25 + $0xb0] sm:$0x1f]  }
  0x6c   : > { %4888 = vmatprep.mubr.msk.bf16.mxu0 %vm5220_vm1, %v5219_v2  ;;  %4894 = vmatprep.mubr.msk.bf16.mxu1 %vm5220_vm1, %v5219_v2  ;;  %v2417_v49 = vshll.u32 %v5198_v45, 16 }
  0x6d   : > { %4898 = vmatprep.subr.bf16.mxu0 %v5219_v2  ;;  %4904 = vmatprep.subr.bf16.mxu1 %v5219_v2  ;;  %v2258_v48 = vor.u32 %v2257_v44, %v2253_v43  ;;  %v4515_v44 = vld [vmem:[%s5966_s1 + $0x4] sm:$0xf] }
  0x6e   : > { %v2419_v54 = vrot.slane %v2417_v49, 1 }
  0x72   : > { %4889 = vmatmul.mubr.msk.bf16.vlgmr.msra.gmra.mrb[48].mxu0 %vm178_vm2, %v4402_v50  ;;  %4895 = vmatmul.mubr.msk.bf16.vlgmr.msra.gmra.mrb[48].mxu1 %vm178_vm2, %v4405_v51  ;;  %v4457_v50 = vld [vmem:[%s5277_s25 + $0xb0] sm:$0xf]  ;;  %v2363_v51 = vsel %vm182_vm0, %v4461_v46, 0 }
  0x73   : > { %4899 = vmatpush3.bf16.msra.mxu0 %v1605_v52  ;;  %4905 = vmatpush3.bf16.msra.mxu1 %v1665_v53  ;;  %v2425_v52 = vsel %vm182_vm0, %v4465_v47, 0  ;;  %v2415_v53 = vshrl.u32 %v5198_v45, 16  ;;  %v3131_v45 = vld [vmem:[%s5966_s1] sm:$0xf]  ;;  %v4504_v47 = vld [vmem:[%s5277_s25 + $0x78] sm:$0xf] }
  0x74   : > { %4900 = vmatprep.mubr.msk.bf16.mxu0 %vm5220_vm1, %v5219_v2  ;;  %4906 = vmatprep.mubr.msk.bf16.mxu1 %vm5220_vm1, %v5219_v2  ;;  %v3184_v49 = vsel %vm182_vm0, %v3131_v45, 0  ;;  %v4542_v45 = vld [vmem:[%s5966_s1 + $0x20] sm:$0xf] }
  0x75   : > { %4910 = vmatprep.subr.bf16.mxu0 %v5219_v2  ;;  %4916 = vmatprep.subr.bf16.mxu1 %v5219_v2  ;;  %v2420_v57 = vor.u32 %v2419_v54, %v2415_v53  ;;  %v4520_v53 = vld [vmem:[%s5966_s1 + $0x8] sm:$0xf]  ;;  %v4524_v54 = vld [vmem:[%s5966_s1 + $0xc] sm:$0xf] }
  0x7a   : > { %4901 = vmatmul.mubr.msk.bf16.vlgmr.msra.gmra.mrb[52].mxu0 %vm178_vm2, %v1600_v59  ;;  %4907 = vmatmul.mubr.msk.bf16.vlgmr.msra.gmra.mrb[52].mxu1 %vm178_vm2, %v4415_v61  ;;  %v2475_v59 = vsel %vm182_vm0, %v4469_v55, 0  ;;  %v5199_v61 = vld [vmem:[%s5277_s25 + $0x28] sm:$0x1f]  }
  0x7b   : > { %4911 = vmatpush3.bf16.msra.mxu0 %v1711_v62  ;;  %4917 = vmatpush3.bf16.msra.mxu1 %v1772_v63  ;;  %v4476_v62 = vld [vmem:[%s5966_s1 + $0x20] sm:$0xf]  ;;  %v4482_v63 = vld [vmem:[%s5966_s1 + $0x4] sm:$0xf]  ;;  %v2579_v0 = vshll.u32 %v5199_v61, 16 }
  0x7c   : > { %4912 = vmatprep.mubr.msk.bf16.mxu0 %vm5220_vm1, %v5219_v2  ;;  %4918 = vmatprep.mubr.msk.bf16.mxu1 %vm5220_vm1, %v5219_v2  ;;  %v2587_v4 = vsel %vm182_vm0, %v4476_v62, 0  ;;  %v4513_v62 = vld [vmem:[%s5277_s25 + $0x30] sm:$0xf] }
  0x7d   : > { %4922 = vmatprep.subr.bf16.mxu0 %v5219_v2  ;;  %4928 = vmatprep.subr.bf16.mxu1 %v5219_v2 }
  0x82   : > { %4913 = vmatmul.mubr.msk.bf16.vlgmr.msra.gmra.mrb[56].mxu0 %vm178_vm2, %v4414_v6  ;;  %4919 = vmatmul.mubr.msk.bf16.vlgmr.msra.gmra.mrb[56].mxu1 %vm178_vm2, %v1767_v5  ;;  %v2647_v5 = vsel %vm182_vm0, %v4482_v63, 0  ;;  %v2577_v6 = vshrl.u32 %v5199_v61, 16  ;;  %v4514_v61 = vld [vmem:[%s5277_s25 + $0x78] sm:$0xf] }
  0x83   : > { %4923 = vmatpush3.bf16.msra.mxu0 %v1822_v7  ;;  %4929 = vmatpush3.bf16.msra.mxu1 %v1872_v8  ;;  %v2581_v7 = vrot.slane %v2579_v0, 1  ;;  %v5200_v8 = vld [vmem:[%s5277_s25 + $0x28] sm:$0x1f]  }
  0x84   : > { %4924 = vmatprep.mubr.msk.bf16.mxu0 %vm5220_vm1, %v5219_v2  ;;  %4930 = vmatprep.mubr.msk.bf16.mxu1 %vm5220_vm1, %v5219_v2  ;;  %v2746_v12 = vshll.u32 %v5200_v8, 16 }
  0x85   : > { %4934 = vmatprep.subr.bf16.mxu0 %v5219_v2  ;;  %4940 = vmatprep.subr.bf16.mxu1 %v5219_v2  ;;  %v2582_v11 = vor.u32 %v2581_v7, %v2577_v6  ;;  %v5204_v6 = vld [vmem:[%s5277_s25 + $0xc0] sm:$0x1f]  }
  0x86   : > { %v2748_v17 = vrot.slane %v2746_v12, 1 }
  0x8a   : > { %4925 = vmatmul.mubr.msk.bf16.vlgmr.msra.gmra.mrb[60].mxu0 %vm178_vm2, %v4424_v13  ;;  %4931 = vmatmul.mubr.msk.bf16.vlgmr.msra.gmra.mrb[60].mxu1 %vm178_vm2, %v4427_v14  ;;  %v4481_v13 = vld [vmem:[%s5277_s25 + $0x70] sm:$0xf]  ;;  %v2693_v14 = vsel %vm182_vm0, %v2640_v9, 0 }
  0x8b   : > { %4935 = vmatpush3.bf16.msra.mxu0 %v1934_v15  ;;  %4941 = vmatpush3.bf16.msra.mxu1 %v1984_v16  ;;  %v2754_v15 = vsel %vm182_vm0, %v4487_v10, 0  ;;  %v2744_v16 = vshrl.u32 %v5200_v8, 16  ;;  %v4527_v9 = vld [vmem:[%s5966_s1 + $0x10] sm:$0xf]  ;;  %v4531_v10 = vld [vmem:[%s5966_s1 + $0x14] sm:$0xf] }
  0x8c   : > { %4936 = vmatprep.mubr.msk.bf16.mxu0 %vm5220_vm1, %v5219_v2  ;;  %4942 = vmatprep.mubr.msk.bf16.mxu1 %vm5220_vm1, %v5219_v2 }
  0x8d   : > { %4946 = vmatprep.subr.bf16.mxu0 %v5219_v2  ;;  %4952 = vmatprep.subr.bf16.mxu1 %v5219_v2  ;;  %v2749_v20 = vor.u32 %v2748_v17, %v2744_v16 }
  0x92   : > { %4937 = vmatmul.mubr.msk.bf16.vlgmr.msra.gmra.mrb[64].mxu0 %vm178_vm2, %v1929_v22  ;;  %4943 = vmatmul.mubr.msk.bf16.vlgmr.msra.gmra.mrb[64].mxu1 %vm178_vm2, %v4435_v24  ;;  %v2804_v22 = vsel %vm182_vm0, %v4491_v18, 0  ;;  %v5201_v24 = vld [vmem:[%s5277_s25 + $0xb8] sm:$0x1f]   ;;  %v4523_v18 = vld [vmem:[%s5277_s25 + $0xc0] sm:$0xf] }
  0x93   : > { %4947 = vmatpush3.bf16.msra.mxu0 %v2034_v25  ;;  %4953 = vmatpush3.bf16.msra.mxu1 %v2096_v26  ;;  %v4498_v25 = vld [vmem:[%s5966_s1 + $0x14] sm:$0xf]  ;;  %v4502_v26 = vld [vmem:[%s5966_s1 + $0x18] sm:$0xf]  ;;  %v2908_v27 = vshll.u32 %v5201_v24, 16 }
  0x94   : > { %4948 = vmatprep.mubr.msk.bf16.mxu0 %vm5220_vm1, %v5219_v2  ;;  %4954 = vmatprep.mubr.msk.bf16.mxu1 %vm5220_vm1, %v5219_v2  ;;  %v2916_v30 = vsel %vm182_vm0, %v4498_v25, 0 }
  0x95   : > { %4958 = vmatprep.subr.bf16.mxu0 %v5219_v2  ;;  %4964 = vmatprep.subr.bf16.mxu1 %v5219_v2 }
  0x9a   : > { %4949 = vmatmul.mubr.msk.bf16.vlgmr.msra.gmra.mrb[68].mxu0 %vm178_vm2, %v4438_v32  ;;  %4955 = vmatmul.mubr.msk.bf16.vlgmr.msra.gmra.mrb[68].mxu1 %vm178_vm2, %v2091_v31  ;;  %v2966_v31 = vsel %vm182_vm0, %v4502_v26, 0  ;;  %v2906_v32 = vshrl.u32 %v5201_v24, 16  ;;  %v3397_v24 = vshrl.u32 %v5204_v6, 16 }
  0x9b   : > { %4959 = vmatpush3.bf16.msra.mxu0 %v2156_v33  ;;  %4965 = vmatpush3.bf16.msra.mxu1 %v2202_v34  ;;  %v2910_v33 = vrot.slane %v2908_v27, 1  ;;  %v5202_v34 = vld [vmem:[%s5277_s25 + $0x30] sm:$0x1f]  }
  0x9c   : > { %4960 = vmatprep.mubr.msk.bf16.mxu0 %vm5220_vm1, %v5219_v2  ;;  %4966 = vmatprep.mubr.msk.bf16.mxu1 %vm5220_vm1, %v5219_v2  ;;  %v3070_v38 = vshll.u32 %v5202_v34, 16 }
  0x9d   : > { %4970 = vmatprep.subr.bf16.mxu0 %v5219_v2  ;;  %4976 = vmatprep.subr.bf16.mxu1 %v5219_v2  ;;  %v2911_v37 = vor.u32 %v2910_v33, %v2906_v32 }
  0x9e   : > { %v3072_v43 = vrot.slane %v3070_v38, 1 }
  0xa2   : > { %4961 = vmatmul.mubr.msk.bf16.vlgmr.msra.gmra.mrb[72].mxu0 %vm178_vm2, %v4448_v39  ;;  %4967 = vmatmul.mubr.msk.bf16.vlgmr.msra.gmra.mrb[72].mxu1 %vm178_vm2, %v4447_v40  ;;  %v4501_v39 = vld [vmem:[%s5277_s25 + $0x30] sm:$0xf]  ;;  %v3016_v40 = vsel %vm182_vm0, %v4505_v35, 0 }
  0xa3   : > { %4971 = vmatpush3.bf16.msra.mxu0 %v2263_v41  ;;  %4977 = vmatpush3.bf16.msra.mxu1 %v2313_v42  ;;  %v3078_v41 = vsel %vm182_vm0, %v4509_v36, 0  ;;  %v3068_v42 = vshrl.u32 %v5202_v34, 16  ;;  %v4526_v36 = vld [vmem:[%s5277_s25 + $0x108] sm:$0xf] }
  0xa4   : > { %4972 = vmatprep.mubr.msk.bf16.mxu0 %vm5220_vm1, %v5219_v2  ;;  %4978 = vmatprep.mubr.msk.bf16.mxu1 %vm5220_vm1, %v5219_v2 }
  0xa5   : > { %4982 = vmatprep.subr.bf16.mxu0 %v5219_v2  ;;  %4988 = vmatprep.subr.bf16.mxu1 %v5219_v2  ;;  %v3073_v46 = vor.u32 %v3072_v43, %v3068_v42  ;;  %v5205_v42 = vld [vmem:[%s5277_s25 + $0x38] sm:$0x1f]  }
  0xaa   : > { %4973 = vmatmul.mubr.msk.bf16.vlgmr.msra.gmra.mrb[76].mxu0 %vm178_vm2, %v2258_v48  ;;  %4979 = vmatmul.mubr.msk.bf16.vlgmr.msra.gmra.mrb[76].mxu1 %vm178_vm2, %v4457_v50  ;;  %v3138_v48 = vsel %vm182_vm0, %v4515_v44, 0  ;;  %v5203_v50 = vld [vmem:[%s5277_s25 + $0x30] sm:$0x1f]  }
  0xab   : > { %4983 = vmatpush3.bf16.msra.mxu0 %v2363_v51  ;;  %4989 = vmatpush3.bf16.msra.mxu1 %v2425_v52 }
  0xac   : > { %4984 = vmatprep.mubr.msk.bf16.mxu0 %vm5220_vm1, %v5219_v2  ;;  %4990 = vmatprep.mubr.msk.bf16.mxu1 %vm5220_vm1, %v5219_v2 }
  0xad   : > { %4994 = vmatprep.subr.bf16.mxu0 %v5219_v2  ;;  %5000 = vmatprep.subr.bf16.mxu1 %v5219_v2 }
  0xb2   : > { %4985 = vmatmul.mubr.msk.bf16.vlgmr.msra.gmra.mrb[80].mxu0 %vm178_vm2, %v4460_v58  ;;  %4991 = vmatmul.mubr.msk.bf16.vlgmr.msra.gmra.mrb[80].mxu1 %vm178_vm2, %v2420_v57  ;;  %v3237_v58 = vshll.u32 %v5203_v50, 16 }
  0xb3   : > { %4995 = vmatpush3.bf16.msra.mxu0 %v2475_v59  ;;  %5001 = vmatpush3.bf16.msra.mxu1 %v2525_v60 }
  0xb4   : > { %4996 = vmatprep.mubr.msk.bf16.mxu0 %vm5220_vm1, %v5219_v2  ;;  %5002 = vmatprep.mubr.msk.bf16.mxu1 %vm5220_vm1, %v5219_v2 }
  0xb5   : > { %5006 = vmatprep.subr.bf16.mxu0 %v5219_v2  ;;  %5012 = vmatprep.subr.bf16.mxu1 %v5219_v2 }
  0xba   : > { %4997 = vmatmul.mubr.msk.bf16.vlgmr.msra.gmra.mrb[84].mxu0 %vm178_vm2, %v4468_v1  ;;  %5003 = vmatmul.mubr.msk.bf16.vlgmr.msra.gmra.mrb[84].mxu1 %vm178_vm2, %v4471_v3  ;;  %v3245_v1 = vsel %vm182_vm0, %v4520_v53, 0  ;;  %v3295_v3 = vsel %vm182_vm0, %v4524_v54, 0  ;;  %v4534_v53 = vld [vmem:[%s5277_s25 + $0x38] sm:$0xf]  ;;  %v4537_v54 = vld [vmem:[%s5277_s25 + $0x80] sm:$0xf] }
  0xbb   : > { %5007 = vmatpush3.bf16.msra.mxu0 %v2587_v4  ;;  %5013 = vmatpush3.bf16.msra.mxu1 %v2647_v5  ;;  %v3235_v4 = vshrl.u32 %v5203_v50, 16  ;;  %v3239_v5 = vrot.slane %v3237_v58, 1  ;;  %v3561_v50 = vshll.u32 %v5205_v42, 16  ;;  %v3569_v58 = vsel %vm182_vm0, %v4542_v45, 0 }
  0xbc   : > { %5008 = vmatprep.mubr.msk.bf16.mxu0 %vm5220_vm1, %v5219_v2  ;;  %5014 = vmatprep.mubr.msk.bf16.mxu1 %vm5220_vm1, %v5219_v2 }
  0xbd   : > { %5018 = vmatprep.subr.bf16.mxu0 %v5219_v2  ;;  %5024 = vmatprep.subr.bf16.mxu1 %v5219_v2 }
  0xc2   : > { %5009 = vmatmul.mubr.msk.bf16.vlgmr.msra.gmra.mrb[88].mxu0 %vm178_vm2, %v2582_v11  ;;  %5015 = vmatmul.mubr.msk.bf16.vlgmr.msra.gmra.mrb[88].mxu1 %vm178_vm2, %v4481_v13 }
  0xc3   : > { %5019 = vmatpush3.bf16.msra.mxu0 %v2693_v14  ;;  %5025 = vmatpush3.bf16.msra.mxu1 %v2754_v15  ;;  %v3240_v14 = vor.u32 %v3239_v5, %v3235_v4  ;;  %v3399_v15 = vshll.u32 %v5204_v6, 16  ;;  %v4553_v4 = vld [vmem:[%s5966_s1 + $0x8] sm:$0xf] }
  0xc4   : > { %5020 = vmatprep.mubr.msk.bf16.mxu0 %vm5220_vm1, %v5219_v2  ;;  %5026 = vmatprep.mubr.msk.bf16.mxu1 %vm5220_vm1, %v5219_v2 }
  0xc5   : > { %5030 = vmatprep.subr.bf16.mxu0 %v5219_v2  ;;  %5036 = vmatprep.subr.bf16.mxu1 %v5219_v2  ;;  %v3401_v25 = vrot.slane %v3399_v15, 1 }
  0xc7   : > { %v3402_v33 = vor.u32 %v3401_v25, %v3397_v24 }
  0xca   : > { %5021 = vmatmul.mubr.msk.bf16.vlgmr.msra.gmra.mrb[92].mxu0 %vm178_vm2, %v4480_v21  ;;  %5027 = vmatmul.mubr.msk.bf16.vlgmr.msra.gmra.mrb[92].mxu1 %vm178_vm2, %v2749_v20 }
  0xcb   : > { %5031 = vmatpush3.bf16.msra.mxu0 %v2804_v22  ;;  %5037 = vmatpush3.bf16.msra.mxu1 %v2854_v23  ;;  %v3345_v22 = vsel %vm182_vm0, %v4527_v9, 0  ;;  %v3407_v23 = vsel %vm182_vm0, %v4531_v10, 0 }
  0xcc   : > { %5032 = vmatprep.mubr.msk.bf16.mxu0 %vm5220_vm1, %v5219_v2  ;;  %5038 = vmatprep.mubr.msk.bf16.mxu1 %vm5220_vm1, %v5219_v2 }
  0xcd   : > { %5042 = vmatprep.subr.bf16.mxu0 %v5219_v2  ;;  %5048 = vmatprep.subr.bf16.mxu1 %v5219_v2 }
  0xd2   : > { %5033 = vmatmul.mubr.msk.bf16.vlgmr.msra.gmra.mrb[96].mxu0 %vm178_vm2, %v4490_v28  ;;  %5039 = vmatmul.mubr.msk.bf16.vlgmr.msra.gmra.mrb[96].mxu1 %vm178_vm2, %v4493_v29  ;;  %v4535_v28 = vld [vmem:[%s5966_s1 + $0x18] sm:$0xf]  ;;  %v4538_v29 = vld [vmem:[%s5966_s1 + $0x1c] sm:$0xf] }
  0xd3   : > { %5043 = vmatpush3.bf16.msra.mxu0 %v2916_v30  ;;  %5049 = vmatpush3.bf16.msra.mxu1 %v2966_v31 }
  0xd4   : > { %5044 = vmatprep.mubr.msk.bf16.mxu0 %vm5220_vm1, %v5219_v2  ;;  %5050 = vmatprep.mubr.msk.bf16.mxu1 %vm5220_vm1, %v5219_v2 }
  0xd5   : > { %5054 = vmatprep.subr.bf16.mxu0 %v5219_v2  ;;  %5060 = vmatprep.subr.bf16.mxu1 %v5219_v2 }
  0xda   : > { %5045 = vmatmul.mubr.msk.bf16.vlgmr.msra.gmra.mrb[100].mxu0 %vm178_vm2, %v2911_v37  ;;  %5051 = vmatmul.mubr.msk.bf16.vlgmr.msra.gmra.mrb[100].mxu1 %vm178_vm2, %v4501_v39 }
  0xdb   : > { %5055 = vmatpush3.bf16.msra.mxu0 %v3016_v40  ;;  %5061 = vmatpush3.bf16.msra.mxu1 %v3078_v41  ;;  %v3457_v40 = vsel %vm182_vm0, %v4535_v28, 0  ;;  %v3507_v41 = vsel %vm182_vm0, %v4538_v29, 0 }
  0xdc   : > { %5056 = vmatprep.mubr.msk.bf16.mxu0 %vm5220_vm1, %v5219_v2  ;;  %5062 = vmatprep.mubr.msk.bf16.mxu1 %vm5220_vm1, %v5219_v2 }
  0xdd   : > { %5066 = vmatprep.subr.bf16.mxu0 %v5219_v2  ;;  %5072 = vmatprep.subr.bf16.mxu1 %v5219_v2 }
  0xe2   : > { %5057 = vmatmul.mubr.msk.bf16.vlgmr.msra.gmra.mrb[104].mxu0 %vm178_vm2, %v4504_v47  ;;  %5063 = vmatmul.mubr.msk.bf16.vlgmr.msra.gmra.mrb[104].mxu1 %vm178_vm2, %v3073_v46  ;;  %v4548_v46 = vld [vmem:[%s5966_s1 + $0x4] sm:$0xf] }
  0xe3   : > { %5067 = vmatpush3.bf16.msra.mxu0 %v3138_v48  ;;  %5073 = vmatpush3.bf16.msra.mxu1 %v3184_v49 }
  0xe4   : > { %5068 = vmatprep.mubr.msk.bf16.mxu0 %vm5220_vm1, %v5219_v2  ;;  %5074 = vmatprep.mubr.msk.bf16.mxu1 %vm5220_vm1, %v5219_v2 }
  0xe5   : > { %v220_v51 = vpop.f32.mrb[0].mxu0  ;;  %v266_v52 = vpop.f32.mrb[0].mxu1  ;;  %5078 = vmatprep.subr.bf16.mxu0 %v5219_v2  ;;  %5084 = vmatprep.subr.bf16.mxu1 %v5219_v2 }
  0xe6   : > { %v267_v55 = vadd.f32 %v266_v52, %v220_v51  ;;  %v4746_v56 = vpop.f32.mrb[1].mxu0  ;;  %v4752_v57 = vpop.f32.mrb[1].mxu1 }
  0xe7   : > { %v223_v59 = vpop.f32.mrb[2].mxu0  ;;  %v269_v60 = vpop.f32.mrb[2].mxu1 }
  0xe8   : > { %v4747_v63 = vpop.f32.mrb[3].mxu0  ;;  %v4753_v0 = vpop.f32.mrb[3].mxu1  ;;  %v3629_v59 = vsel %vm182_vm0, %v4548_v46, 0  ;;  %v3559_v60 = vshrl.u32 %v5205_v42, 16 }
  0xe9   : > { %v5830_v63 = vld [vmem:[%s5967_s2] ss:$0 sm:$0xff] }
  0xea   : > { %5069 = vmatmul.mubr.msk.bf16.vlgmr.msra.gmra.mrb[108].mxu0 %vm178_vm2, %v4514_v61  ;;  %5075 = vmatmul.mubr.msk.bf16.vlgmr.msra.gmra.mrb[108].mxu1 %vm178_vm2, %v4513_v62  ;;  %v3563_v61 = vrot.slane %v3561_v50, 1  ;;  %v5206_v62 = vld [vmem:[%s5277_s25 + $0x38] sm:$0x1f]  }
  0xeb   : > { %5079 = vmatpush3.bf16.msra.mxu0 %v3245_v1  ;;  %5085 = vmatpush3.bf16.msra.mxu1 %v3295_v3  ;;  %v3622_v3 = vld [vmem:[%s5966_s1] sm:$0xf]  ;;  %v3728_v9 = vshll.u32 %v5206_v62, 16 }
  0xec   : > { %5080 = vmatprep.mubr.msk.bf16.mxu0 %vm5220_vm1, %v5219_v2  ;;  %5086 = vmatprep.mubr.msk.bf16.mxu1 %vm5220_vm1, %v5219_v2 }
  0xed   : > { %v328_v7 = vpop.f32.mrb[4].mxu0  ;;  %v379_v8 = vpop.f32.mrb[4].mxu1  ;;  %5090 = vmatprep.subr.bf16.mxu0 %v5219_v2  ;;  %5096 = vmatprep.subr.bf16.mxu1 %v5219_v2 }
  0xee   : > { %v334_v11 = vadd.f32 %v328_v7, %v267_v55  ;;  %v4758_v12 = vpop.f32.mrb[5].mxu0  ;;  %v4764_v13 = vpop.f32.mrb[5].mxu1 }
  0xef   : > { %v331_v16 = vpop.f32.mrb[6].mxu0  ;;  %v382_v17 = vpop.f32.mrb[6].mxu1  ;;  %v4547_v12 = vld [vmem:[%s5277_s25 + $0x80] sm:$0xf] }
  0xf0   : > { %v385_v19 = vadd.f32 %v379_v8, %v334_v11  ;;  %v4759_v20 = vpop.f32.mrb[7].mxu0  ;;  %v4765_v21 = vpop.f32.mrb[7].mxu1  ;;  %v3564_v8 = vor.u32 %v3563_v61, %v3559_v60  ;;  %v3675_v16 = vsel %vm182_vm0, %v3622_v3, 0  ;;  %v3736_v17 = vsel %vm182_vm0, %v4553_v4, 0  ;;  %v4575_v60 = vld [vmem:[%s5966_s1 + $0x20] sm:$0xf] }
  0xf2   : > { %5081 = vmatmul.mubr.msk.bf16.vlgmr.msra.gmra.mrb[112].mxu0 %vm178_vm2, %v3240_v14  ;;  %5087 = vmatmul.mubr.msk.bf16.vlgmr.msra.gmra.mrb[112].mxu1 %vm178_vm2, %v4523_v18  ;;  %v3726_v18 = vshrl.u32 %v5206_v62, 16 }
  0xf3   : > { %5091 = vmatpush3.bf16.msra.mxu0 %v3345_v22  ;;  %5097 = vmatpush3.bf16.msra.mxu1 %v3407_v23  ;;  %v4557_v22 = vld [vmem:[%s5966_s1 + $0xc] sm:$0xf]  ;;  %v4560_v23 = vld [vmem:[%s5966_s1 + $0x10] sm:$0xf] }
  0xf4   : > { %5092 = vmatprep.mubr.msk.bf16.mxu0 %vm5220_vm1, %v5219_v2  ;;  %5098 = vmatprep.mubr.msk.bf16.mxu1 %vm5220_vm1, %v5219_v2 }
  0xf5   : > { %v430_v26 = vpop.f32.mrb[8].mxu0  ;;  %v493_v27 = vpop.f32.mrb[8].mxu1  ;;  %5102 = vmatprep.subr.bf16.mxu0 %v5219_v2  ;;  %5108 = vmatprep.subr.bf16.mxu1 %v5219_v2 }
  0xf6   : > { %v436_v30 = vadd.f32 %v430_v26, %v385_v19  ;;  %v4770_v31 = vpop.f32.mrb[9].mxu0  ;;  %v4776_v32 = vpop.f32.mrb[9].mxu1  ;;  %v3730_v19 = vrot.slane %v3728_v9, 1 }
  0xf7   : > { %v433_v34 = vpop.f32.mrb[10].mxu0  ;;  %v496_v35 = vpop.f32.mrb[10].mxu1 }
  0xf8   : > { %v499_v37 = vadd.f32 %v493_v27, %v436_v30  ;;  %v4771_v38 = vpop.f32.mrb[11].mxu0  ;;  %v4777_v39 = vpop.f32.mrb[11].mxu1  ;;  %v3731_v27 = vor.u32 %v3730_v19, %v3726_v18  ;;  %v4546_v30 = vld [vmem:[%s5277_s25 + $0x38] sm:$0xf]  ;;  %v3786_v34 = vsel %vm182_vm0, %v4557_v22, 0  ;;  %v3836_v35 = vsel %vm182_vm0, %v4560_v23, 0 }
  0xf9   : > { %v4564_v39 = vld [vmem:[%s5966_s1 + $0x14] sm:$0xf]  ;;  %v4570_v22 = vld [vmem:[%s5277_s25 + $0x88] sm:$0xf] }
  0xfa   : > { %5093 = vmatmul.mubr.msk.bf16.vlgmr.msra.gmra.mrb[116].mxu0 %vm178_vm2, %v4526_v36  ;;  %5099 = vmatmul.mubr.msk.bf16.vlgmr.msra.gmra.mrb[116].mxu1 %vm178_vm2, %v3402_v33  ;;  %v5207_v36 = vld [vmem:[%s5277_s25 + $0xc8] sm:$0x1f]  }
  0xfb   : > { %5103 = vmatpush3.bf16.msra.mxu0 %v3457_v40  ;;  %5109 = vmatpush3.bf16.msra.mxu1 %v3507_v41  ;;  %v4568_v40 = vld [vmem:[%s5966_s1 + $0x18] sm:$0xf] }
  0xfc   : > { %5104 = vmatprep.mubr.msk.bf16.mxu0 %vm5220_vm1, %v5219_v2  ;;  %5110 = vmatprep.mubr.msk.bf16.mxu1 %vm5220_vm1, %v5219_v2 }
  0xfd   : > { %v544_v43 = vpop.f32.mrb[12].mxu0  ;;  %v595_v44 = vpop.f32.mrb[12].mxu1  ;;  %5114 = vmatprep.subr.bf16.mxu0 %v5219_v2  ;;  %5120 = vmatprep.subr.bf16.mxu1 %v5219_v2 }
  0xfe   : > { %v550_v47 = vadd.f32 %v544_v43, %v499_v37  ;;  %v4782_v48 = vpop.f32.mrb[13].mxu0  ;;  %v4788_v49 = vpop.f32.mrb[13].mxu1 }
  0xff   : > { %v547_v51 = vpop.f32.mrb[14].mxu0  ;;  %v598_v52 = vpop.f32.mrb[14].mxu1  ;;  %v4559_v48 = vld [vmem:[%s5277_s25 + $0x110] sm:$0xf] }
 0x100   : > { %v601_v55 = vadd.f32 %v595_v44, %v550_v47  ;;  %v4783_v56 = vpop.f32.mrb[15].mxu0  ;;  %v4789_v57 = vpop.f32.mrb[15].mxu1  ;;  %v3890_v44 = vshll.u32 %v5207_v36, 16  ;;  %v4556_v47 = vld [vmem:[%s5277_s25 + $0xc8] sm:$0xf]  ;;  %v3898_v52 = vsel %vm182_vm0, %v4564_v39, 0 }
 0x101   : > { %v5208_v56 = vld [vmem:[%s5277_s25 + $0x40] sm:$0x1f]  }
 0x102   : > { %5105 = vmatmul.mubr.msk.bf16.vlgmr.msra.gmra.mrb[120].mxu0 %vm178_vm2, %v4534_v53  ;;  %5111 = vmatmul.mubr.msk.bf16.vlgmr.msra.gmra.mrb[120].mxu1 %vm178_vm2, %v4537_v54  ;;  %v3948_v53 = vsel %vm182_vm0, %v4568_v40, 0  ;;  %v3888_v54 = vshrl.u32 %v5207_v36, 16  ;;  %v4052_v3 = vshll.u32 %v5208_v56, 16 }
 0x103   : > { %5115 = vmatpush3.bf16.msra.mxu0 %v3569_v58  ;;  %5121 = vmatpush3.bf16.msra.mxu1 %v3629_v59  ;;  %v4571_v59 = vld [vmem:[%s5966_s1 + $0x1c] sm:$0xf] }
 0x104   : > { %5116 = vmatprep.mubr.msk.bf16.mxu0 %vm5220_vm1, %v5219_v2  ;;  %5122 = vmatprep.mubr.msk.bf16.mxu1 %vm5220_vm1, %v5219_v2 }
 0x105   : > { %v658_v0 = vpop.f32.mrb[16].mxu0  ;;  %v719_v1 = vpop.f32.mrb[16].mxu1  ;;  %5126 = vmatprep.subr.bf16.mxu0 %v5219_v2  ;;  %5132 = vmatprep.subr.bf16.mxu1 %v5219_v2 }
 0x106   : > { %v664_v5 = vadd.f32 %v658_v0, %v601_v55  ;;  %v4794_v6 = vpop.f32.mrb[17].mxu0  ;;  %v4800_v7 = vpop.f32.mrb[17].mxu1  ;;  %v3892_v55 = vrot.slane %v3890_v44, 1 }
 0x107   : > { %v661_v10 = vpop.f32.mrb[18].mxu0  ;;  %v722_v11 = vpop.f32.mrb[18].mxu1  ;;  %v4567_v6 = vld [vmem:[%s5277_s25 + $0x40] sm:$0xf]  ;;  %s4589_s25 = sshll.u32 %s5970_s13, 5 }
 0x108   : > { %v672_v13 = vadd.f32 %v5830_v63, %v664_v5  ;;  %v4795_v14 = vpop.f32.mrb[19].mxu0  ;;  %v4801_v15 = vpop.f32.mrb[19].mxu1  ;;  %v3998_v10 = vsel %vm182_vm0, %v4571_v59, 0  ;;  %v4060_v11 = vsel %vm182_vm0, %v4575_v60, 0  ;;  %s170_s13 = scalar_lea.vmem %s5968_s3, %s4589_s25 }
 0x10a   : > { %674 = vst.msk [vmem:[#allocation2] sm:$0xff] %vm673_vm3, %v672_v13  ;;  %5117 = vmatmul.mubr.msk.bf16.vlgmr.msra.gmra.mrb[124].mxu0 %vm178_vm2, %v3564_v8  ;;  %5123 = vmatmul.mubr.msk.bf16.vlgmr.msra.gmra.mrb[124].mxu1 %vm178_vm2, %v4547_v12  ;;  %v4050_v12 = vshrl.u32 %v5208_v56, 16  ;;  %v4054_v13 = vrot.slane %v4052_v3, 1 }
 0x10b   : > { %5127 = vmatpush3.bf16.msra.mxu0 %v3675_v16  ;;  %5133 = vmatpush3.bf16.msra.mxu1 %v3736_v17 }
 0x10c   : > { %5128 = vmatprep.mubr.msk.bf16.mxu0 %vm5220_vm1, %v5219_v2  ;;  %5134 = vmatprep.mubr.msk.bf16.mxu1 %vm5220_vm1, %v5219_v2  ;;  %v4055_v19 = vor.u32 %v4054_v13, %v4050_v12 }
 0x10d   : > { %v765_v20 = vpop.f32.mrb[20].mxu0  ;;  %v826_v21 = vpop.f32.mrb[20].mxu1  ;;  %5138 = vmatprep.subr.bf16.mxu0 %v5219_v2  ;;  %5144 = vmatprep.subr.bf16.mxu1 %v5219_v2 }
 0x10e   : > { %v766_v24 = vadd.f32 %v765_v20, %v719_v1  ;;  %v4806_v25 = vpop.f32.mrb[21].mxu0  ;;  %v4812_v26 = vpop.f32.mrb[21].mxu1  ;;  %v3893_v1 = vor.u32 %v3892_v55, %v3888_v54 }
 0x10f   : > { %v768_v28 = vpop.f32.mrb[22].mxu0  ;;  %v829_v29 = vpop.f32.mrb[22].mxu1 }
 0x110   : > { %v832_v31 = vadd.f32 %v826_v21, %v766_v24  ;;  %v4807_v32 = vpop.f32.mrb[23].mxu0  ;;  %v4813_v33 = vpop.f32.mrb[23].mxu1 }
 0x112   : > { %5129 = vmatmul.mubr.msk.bf16.vlgmr.msra.gmra.mrb[128].mxu0 %vm178_vm2, %v4546_v30  ;;  %5135 = vmatmul.mubr.msk.bf16.vlgmr.msra.gmra.mrb[128].mxu1 %vm178_vm2, %v3731_v27 }
 0x113   : > { %5139 = vmatpush3.bf16.msra.mxu0 %v3786_v34  ;;  %5145 = vmatpush3.bf16.msra.mxu1 %v3836_v35 }
 0x114   : > { %5140 = vmatprep.mubr.msk.bf16.mxu0 %vm5220_vm1, %v5219_v2  ;;  %5146 = vmatprep.mubr.msk.bf16.mxu1 %vm5220_vm1, %v5219_v2 }
 0x115   : > { %v876_v37 = vpop.f32.mrb[24].mxu0  ;;  %v926_v38 = vpop.f32.mrb[24].mxu1  ;;  %5150 = vmatprep.subr.bf16.mxu0 %v5219_v2  ;;  %5156 = vmatprep.subr.bf16.mxu1 %v5219_v2 }
 0x116   : > { %v882_v41 = vadd.f32 %v876_v37, %v832_v31  ;;  %v4818_v42 = vpop.f32.mrb[25].mxu0  ;;  %v4824_v43 = vpop.f32.mrb[25].mxu1 }
 0x117   : > { %v879_v45 = vpop.f32.mrb[26].mxu0  ;;  %v929_v46 = vpop.f32.mrb[26].mxu1 }
 0x118   : > { %v932_v49 = vadd.f32 %v926_v38, %v882_v41  ;;  %v4819_v50 = vpop.f32.mrb[27].mxu0  ;;  %v4825_v51 = vpop.f32.mrb[27].mxu1 }
 0x11a   : > { %5141 = vmatmul.mubr.msk.bf16.vlgmr.msra.gmra.mrb[132].mxu0 %vm178_vm2, %v4556_v47  ;;  %5147 = vmatmul.mubr.msk.bf16.vlgmr.msra.gmra.mrb[132].mxu1 %vm178_vm2, %v4559_v48 }
 0x11b   : > { %5151 = vmatpush3.bf16.msra.mxu0 %v3898_v52  ;;  %5157 = vmatpush3.bf16.msra.mxu1 %v3948_v53 }
 0x11c   : > { %5152 = vmatprep.mubr.msk.bf16.mxu0 %vm5220_vm1, %v5219_v2  ;;  %5158 = vmatprep.mubr.msk.bf16.mxu1 %vm5220_vm1, %v5219_v2 }
 0x11d   : > { %v988_v57 = vpop.f32.mrb[28].mxu0  ;;  %v1038_v58 = vpop.f32.mrb[28].mxu1  ;;  %5162 = vmatprep.subr.bf16.mxu0 %v5219_v2  ;;  %5168 = vmatprep.subr.bf16.mxu1 %v5219_v2 }
 0x11e   : > { %v994_v61 = vadd.f32 %v988_v57, %v932_v49  ;;  %v4830_v62 = vpop.f32.mrb[29].mxu0  ;;  %v4836_v0 = vpop.f32.mrb[29].mxu1 }
 0x11f   : > { %v991_v4 = vpop.f32.mrb[30].mxu0  ;;  %v1041_v5 = vpop.f32.mrb[30].mxu1 }
 0x120   : > { %v1044_v7 = vadd.f32 %v1038_v58, %v994_v61  ;;  %v4831_v8 = vpop.f32.mrb[31].mxu0  ;;  %v4837_v9 = vpop.f32.mrb[31].mxu1 }
 0x122   : > { %5153 = vmatmul.mubr.msk.bf16.vlgmr.msra.gmra.mrb[136].mxu0 %vm178_vm2, %v3893_v1  ;;  %5159 = vmatmul.mubr.msk.bf16.vlgmr.msra.gmra.mrb[136].mxu1 %vm178_vm2, %v4567_v6 }
 0x123   : > { %5163 = vmatpush3.bf16.msra.mxu0 %v3998_v10  ;;  %5169 = vmatpush3.bf16.msra.mxu1 %v4060_v11 }
 0x124   : > { %5164 = vmatprep.mubr.msk.bf16.mxu0 %vm5220_vm1, %v5219_v2  ;;  %5170 = vmatprep.mubr.msk.bf16.mxu1 %vm5220_vm1, %v5219_v2 }
 0x125   : > { %v1088_v14 = vpop.f32.mrb[32].mxu0  ;;  %v1150_v15 = vpop.f32.mrb[32].mxu1 }
 0x126   : > { %v1094_v16 = vadd.f32 %v1088_v14, %v1044_v7  ;;  %v4842_v17 = vpop.f32.mrb[33].mxu0  ;;  %v4848_v18 = vpop.f32.mrb[33].mxu1 }
 0x127   : > { %v1091_v20 = vpop.f32.mrb[34].mxu0  ;;  %v1153_v21 = vpop.f32.mrb[34].mxu1 }
 0x128   : > { %v1156_v23 = vadd.f32 %v1150_v15, %v1094_v16  ;;  %v4843_v24 = vpop.f32.mrb[35].mxu0  ;;  %v4849_v25 = vpop.f32.mrb[35].mxu1 }
 0x12a   : > { %v1164_v26 = vadd.f32 %v5830_v63, %v1156_v23  ;;  %5165 = vmatmul.mubr.msk.bf16.vlgmr.msra.gmra.mrb[140].mxu0 %vm178_vm2, %v4570_v22  ;;  %5171 = vmatmul.mubr.msk.bf16.vlgmr.msra.gmra.mrb[140].mxu1 %vm178_vm2, %v4055_v19 }
 0x12c   : > { %1165 = vst.msk [vmem:[#allocation2 + $0x8] sm:$0xff] %vm673_vm3, %v1164_v26 }
 0x12d   : > { %v1210_v2 = vpop.f32.mrb[36].mxu0  ;;  %v1256_v27 = vpop.f32.mrb[36].mxu1 }
 0x12e   : > { %v1257_v28 = vadd.f32 %v1256_v27, %v1210_v2  ;;  %v4854_v29 = vpop.f32.mrb[37].mxu0  ;;  %v4860_v30 = vpop.f32.mrb[37].mxu1 }
 0x12f   : > { %v1213_v31 = vpop.f32.mrb[38].mxu0  ;;  %v1259_v32 = vpop.f32.mrb[38].mxu1 }
 0x130   : > { %v4855_v33 = vpop.f32.mrb[39].mxu0  ;;  %v4861_v34 = vpop.f32.mrb[39].mxu1 }
 0x135   : > { %v1317_v35 = vpop.f32.mrb[40].mxu0  ;;  %v1367_v36 = vpop.f32.mrb[40].mxu1 }
 0x136   : > { %v1323_v37 = vadd.f32 %v1317_v35, %v1257_v28  ;;  %v4866_v38 = vpop.f32.mrb[41].mxu0  ;;  %v4872_v39 = vpop.f32.mrb[41].mxu1 }
 0x137   : > { %v1320_v40 = vpop.f32.mrb[42].mxu0  ;;  %v1370_v41 = vpop.f32.mrb[42].mxu1 }
 0x138   : > { %v1373_v42 = vadd.f32 %v1367_v36, %v1323_v37  ;;  %v4867_v43 = vpop.f32.mrb[43].mxu0  ;;  %v4873_v44 = vpop.f32.mrb[43].mxu1 }
 0x13d   : > { %v1417_v45 = vpop.f32.mrb[44].mxu0  ;;  %v1479_v46 = vpop.f32.mrb[44].mxu1 }
 0x13e   : > { %v1423_v47 = vadd.f32 %v1417_v45, %v1373_v42  ;;  %v4878_v48 = vpop.f32.mrb[45].mxu0  ;;  %v4884_v49 = vpop.f32.mrb[45].mxu1 }
 0x13f   : > { %v1420_v50 = vpop.f32.mrb[46].mxu0  ;;  %v1482_v51 = vpop.f32.mrb[46].mxu1 }
 0x140   : > { %v1485_v52 = vadd.f32 %v1479_v46, %v1423_v47  ;;  %v4879_v53 = vpop.f32.mrb[47].mxu0  ;;  %v4885_v54 = vpop.f32.mrb[47].mxu1 }
 0x145   : > { %v1529_v55 = vpop.f32.mrb[48].mxu0  ;;  %v1579_v56 = vpop.f32.mrb[48].mxu1 }
 0x146   : > { %v1535_v57 = vadd.f32 %v1529_v55, %v1485_v52  ;;  %v4890_v58 = vpop.f32.mrb[49].mxu0  ;;  %v4896_v59 = vpop.f32.mrb[49].mxu1 }
 0x147   : > { %v1532_v60 = vpop.f32.mrb[50].mxu0  ;;  %v1582_v61 = vpop.f32.mrb[50].mxu1 }
 0x148   : > { %v1585_v62 = vadd.f32 %v1579_v56, %v1535_v57  ;;  %v4891_v0 = vpop.f32.mrb[51].mxu0  ;;  %v4897_v1 = vpop.f32.mrb[51].mxu1 }
 0x14d   : > { %v1641_v3 = vpop.f32.mrb[52].mxu0  ;;  %v1701_v4 = vpop.f32.mrb[52].mxu1 }
 0x14e   : > { %v1647_v5 = vadd.f32 %v1641_v3, %v1585_v62  ;;  %v4902_v6 = vpop.f32.mrb[53].mxu0  ;;  %v4908_v7 = vpop.f32.mrb[53].mxu1 }
 0x14f   : > { %v1644_v8 = vpop.f32.mrb[54].mxu0  ;;  %v1704_v9 = vpop.f32.mrb[54].mxu1 }
 0x150   : > { %v1655_v10 = vadd.f32 %v5830_v63, %v1647_v5  ;;  %v4903_v11 = vpop.f32.mrb[55].mxu0  ;;  %v4909_v12 = vpop.f32.mrb[55].mxu1 }
 0x152   : > { %1656 = vst.msk [vmem:[#allocation2 + $0x10] sm:$0xff] %vm673_vm3, %v1655_v10 }
 0x155   : > { %v1747_v13 = vpop.f32.mrb[56].mxu0  ;;  %v1808_v14 = vpop.f32.mrb[56].mxu1 }
 0x156   : > { %v1748_v15 = vadd.f32 %v1747_v13, %v1701_v4  ;;  %v4914_v16 = vpop.f32.mrb[57].mxu0  ;;  %v4920_v17 = vpop.f32.mrb[57].mxu1 }
 0x157   : > { %v1750_v18 = vpop.f32.mrb[58].mxu0  ;;  %v1811_v19 = vpop.f32.mrb[58].mxu1 }
 0x158   : > { %v1814_v20 = vadd.f32 %v1808_v14, %v1748_v15  ;;  %v4915_v21 = vpop.f32.mrb[59].mxu0  ;;  %v4921_v22 = vpop.f32.mrb[59].mxu1 }
 0x15d   : > { %v1858_v23 = vpop.f32.mrb[60].mxu0  ;;  %v1908_v24 = vpop.f32.mrb[60].mxu1 }
 0x15e   : > { %v1864_v25 = vadd.f32 %v1858_v23, %v1814_v20  ;;  %v4926_v26 = vpop.f32.mrb[61].mxu0  ;;  %v4932_v2 = vpop.f32.mrb[61].mxu1 }
 0x15f   : > { %v1861_v27 = vpop.f32.mrb[62].mxu0  ;;  %v1911_v28 = vpop.f32.mrb[62].mxu1 }
 0x160   : > { %v1914_v29 = vadd.f32 %v1908_v24, %v1864_v25  ;;  %v4927_v30 = vpop.f32.mrb[63].mxu0  ;;  %v4933_v31 = vpop.f32.mrb[63].mxu1 }
 0x165   : > { %v1970_v32 = vpop.f32.mrb[64].mxu0  ;;  %v2020_v33 = vpop.f32.mrb[64].mxu1 }
 0x166   : > { %v1976_v34 = vadd.f32 %v1970_v32, %v1914_v29  ;;  %v4938_v35 = vpop.f32.mrb[65].mxu0  ;;  %v4944_v36 = vpop.f32.mrb[65].mxu1 }
 0x167   : > { %v1973_v37 = vpop.f32.mrb[66].mxu0  ;;  %v2023_v38 = vpop.f32.mrb[66].mxu1 }
 0x168   : > { %v2026_v39 = vadd.f32 %v2020_v33, %v1976_v34  ;;  %v4939_v40 = vpop.f32.mrb[67].mxu0  ;;  %v4945_v41 = vpop.f32.mrb[67].mxu1 }
 0x16d   : > { %v2070_v42 = vpop.f32.mrb[68].mxu0  ;;  %v2132_v43 = vpop.f32.mrb[68].mxu1 }
 0x16e   : > { %v2076_v44 = vadd.f32 %v2070_v42, %v2026_v39  ;;  %v4950_v45 = vpop.f32.mrb[69].mxu0  ;;  %v4956_v46 = vpop.f32.mrb[69].mxu1 }
 0x16f   : > { %v2073_v47 = vpop.f32.mrb[70].mxu0  ;;  %v2135_v48 = vpop.f32.mrb[70].mxu1 }
 0x170   : > { %v2138_v49 = vadd.f32 %v2132_v43, %v2076_v44  ;;  %v4951_v50 = vpop.f32.mrb[71].mxu0  ;;  %v4957_v51 = vpop.f32.mrb[71].mxu1 }
 0x172   : > { %v2146_v52 = vadd.f32 %v5830_v63, %v2138_v49 }
 0x174   : > { %2147 = vst.msk [vmem:[#allocation2 + $0x18] sm:$0xff] %vm673_vm3, %v2146_v52 }
 0x175   : > { %v2192_v53 = vpop.f32.mrb[72].mxu0  ;;  %v2238_v54 = vpop.f32.mrb[72].mxu1 }
 0x176   : > { %v2239_v55 = vadd.f32 %v2238_v54, %v2192_v53  ;;  %v4962_v56 = vpop.f32.mrb[73].mxu0  ;;  %v4968_v57 = vpop.f32.mrb[73].mxu1 }
 0x177   : > { %v2195_v58 = vpop.f32.mrb[74].mxu0  ;;  %v2241_v59 = vpop.f32.mrb[74].mxu1 }
 0x178   : > { %v4963_v60 = vpop.f32.mrb[75].mxu0  ;;  %v4969_v61 = vpop.f32.mrb[75].mxu1 }
 0x17d   : > { %v2299_v62 = vpop.f32.mrb[76].mxu0  ;;  %v2349_v0 = vpop.f32.mrb[76].mxu1 }
 0x17e   : > { %v2305_v1 = vadd.f32 %v2299_v62, %v2239_v55  ;;  %v4974_v3 = vpop.f32.mrb[77].mxu0  ;;  %v4980_v4 = vpop.f32.mrb[77].mxu1 }
 0x17f   : > { %v2302_v5 = vpop.f32.mrb[78].mxu0  ;;  %v2352_v6 = vpop.f32.mrb[78].mxu1 }
 0x180   : > { %v2355_v7 = vadd.f32 %v2349_v0, %v2305_v1  ;;  %v4975_v8 = vpop.f32.mrb[79].mxu0  ;;  %v4981_v9 = vpop.f32.mrb[79].mxu1 }
 0x185   : > { %v2399_v10 = vpop.f32.mrb[80].mxu0  ;;  %v2461_v11 = vpop.f32.mrb[80].mxu1 }
 0x186   : > { %v2405_v12 = vadd.f32 %v2399_v10, %v2355_v7  ;;  %v4986_v13 = vpop.f32.mrb[81].mxu0  ;;  %v4992_v14 = vpop.f32.mrb[81].mxu1 }
 0x187   : > { %v2402_v15 = vpop.f32.mrb[82].mxu0  ;;  %v2464_v16 = vpop.f32.mrb[82].mxu1 }
 0x188   : > { %v2467_v17 = vadd.f32 %v2461_v11, %v2405_v12  ;;  %v4987_v18 = vpop.f32.mrb[83].mxu0  ;;  %v4993_v19 = vpop.f32.mrb[83].mxu1 }
 0x18d   : > { %v2511_v20 = vpop.f32.mrb[84].mxu0  ;;  %v2561_v21 = vpop.f32.mrb[84].mxu1 }
 0x18e   : > { %v2517_v22 = vadd.f32 %v2511_v20, %v2467_v17  ;;  %v4998_v23 = vpop.f32.mrb[85].mxu0  ;;  %v5004_v24 = vpop.f32.mrb[85].mxu1 }
 0x18f   : > { %v2514_v25 = vpop.f32.mrb[86].mxu0  ;;  %v2564_v26 = vpop.f32.mrb[86].mxu1 }
 0x190   : > { %v2567_v2 = vadd.f32 %v2561_v21, %v2517_v22  ;;  %v4999_v27 = vpop.f32.mrb[87].mxu0  ;;  %v5005_v28 = vpop.f32.mrb[87].mxu1 }
 0x195   : > { %v2623_v29 = vpop.f32.mrb[88].mxu0  ;;  %v2683_v30 = vpop.f32.mrb[88].mxu1 }
 0x196   : > { %v2629_v31 = vadd.f32 %v2623_v29, %v2567_v2  ;;  %v5010_v32 = vpop.f32.mrb[89].mxu0  ;;  %v5016_v33 = vpop.f32.mrb[89].mxu1 }
 0x197   : > { %v2626_v34 = vpop.f32.mrb[90].mxu0  ;;  %v2686_v35 = vpop.f32.mrb[90].mxu1 }
 0x198   : > { %v2637_v36 = vadd.f32 %v5830_v63, %v2629_v31  ;;  %v5011_v37 = vpop.f32.mrb[91].mxu0  ;;  %v5017_v38 = vpop.f32.mrb[91].mxu1 }
 0x19a   : > { %2638 = vst.msk [vmem:[#allocation2 + $0x20] sm:$0xff] %vm673_vm3, %v2637_v36 }
 0x19d   : > { %v2729_v39 = vpop.f32.mrb[92].mxu0  ;;  %v2790_v40 = vpop.f32.mrb[92].mxu1 }
 0x19e   : > { %v2730_v41 = vadd.f32 %v2729_v39, %v2683_v30  ;;  %v5022_v42 = vpop.f32.mrb[93].mxu0  ;;  %v5028_v43 = vpop.f32.mrb[93].mxu1 }
 0x19f   : > { %v2732_v44 = vpop.f32.mrb[94].mxu0  ;;  %v2793_v45 = vpop.f32.mrb[94].mxu1 }
 0x1a0   : > { %v2796_v46 = vadd.f32 %v2790_v40, %v2730_v41  ;;  %v5023_v47 = vpop.f32.mrb[95].mxu0  ;;  %v5029_v48 = vpop.f32.mrb[95].mxu1 }
 0x1a5   : > { %v2840_v49 = vpop.f32.mrb[96].mxu0  ;;  %v2890_v50 = vpop.f32.mrb[96].mxu1 }
 0x1a6   : > { %v2846_v51 = vadd.f32 %v2840_v49, %v2796_v46  ;;  %v5034_v52 = vpop.f32.mrb[97].mxu0  ;;  %v5040_v53 = vpop.f32.mrb[97].mxu1 }
 0x1a7   : > { %v2843_v54 = vpop.f32.mrb[98].mxu0  ;;  %v2893_v55 = vpop.f32.mrb[98].mxu1 }
 0x1a8   : > { %v2896_v56 = vadd.f32 %v2890_v50, %v2846_v51  ;;  %v5035_v57 = vpop.f32.mrb[99].mxu0  ;;  %v5041_v58 = vpop.f32.mrb[99].mxu1 }
 0x1ad   : > { %v2952_v59 = vpop.f32.mrb[100].mxu0  ;;  %v3002_v60 = vpop.f32.mrb[100].mxu1 }
 0x1ae   : > { %v2958_v61 = vadd.f32 %v2952_v59, %v2896_v56  ;;  %v5046_v62 = vpop.f32.mrb[101].mxu0  ;;  %v5052_v0 = vpop.f32.mrb[101].mxu1 }
 0x1af   : > { %v2955_v1 = vpop.f32.mrb[102].mxu0  ;;  %v3005_v3 = vpop.f32.mrb[102].mxu1 }
 0x1b0   : > { %v3008_v4 = vadd.f32 %v3002_v60, %v2958_v61  ;;  %v5047_v5 = vpop.f32.mrb[103].mxu0  ;;  %v5053_v6 = vpop.f32.mrb[103].mxu1 }
 0x1b5   : > { %v3052_v7 = vpop.f32.mrb[104].mxu0  ;;  %v3114_v8 = vpop.f32.mrb[104].mxu1 }
 0x1b6   : > { %v3058_v9 = vadd.f32 %v3052_v7, %v3008_v4  ;;  %v5058_v10 = vpop.f32.mrb[105].mxu0  ;;  %v5064_v11 = vpop.f32.mrb[105].mxu1 }
 0x1b7   : > { %v3055_v12 = vpop.f32.mrb[106].mxu0  ;;  %v3117_v13 = vpop.f32.mrb[106].mxu1 }
 0x1b8   : > { %v3120_v14 = vadd.f32 %v3114_v8, %v3058_v9  ;;  %v5059_v15 = vpop.f32.mrb[107].mxu0  ;;  %v5065_v16 = vpop.f32.mrb[107].mxu1 }
 0x1ba   : > { %v3128_v17 = vadd.f32 %v5830_v63, %v3120_v14 }
 0x1bc   : > { %3129 = vst.msk [vmem:[#allocation2 + $0x28] sm:$0xff] %vm673_vm3, %v3128_v17 }
 0x1bd   : > { %v3174_v18 = vpop.f32.mrb[108].mxu0  ;;  %v3220_v19 = vpop.f32.mrb[108].mxu1 }
 0x1be   : > { %v3221_v20 = vadd.f32 %v3220_v19, %v3174_v18  ;;  %v5070_v21 = vpop.f32.mrb[109].mxu0  ;;  %v5076_v22 = vpop.f32.mrb[109].mxu1 }
 0x1bf   : > { %v3177_v23 = vpop.f32.mrb[110].mxu0  ;;  %v3223_v24 = vpop.f32.mrb[110].mxu1 }
 0x1c0   : > { %v5071_v25 = vpop.f32.mrb[111].mxu0  ;;  %v5077_v26 = vpop.f32.mrb[111].mxu1 }
 0x1c5   : > { %v3281_v2 = vpop.f32.mrb[112].mxu0  ;;  %v3331_v27 = vpop.f32.mrb[112].mxu1 }
 0x1c6   : > { %v3287_v28 = vadd.f32 %v3281_v2, %v3221_v20  ;;  %v5082_v29 = vpop.f32.mrb[113].mxu0  ;;  %v5088_v30 = vpop.f32.mrb[113].mxu1 }
 0x1c7   : > { %v3284_v31 = vpop.f32.mrb[114].mxu0  ;;  %v3334_v32 = vpop.f32.mrb[114].mxu1 }
 0x1c8   : > { %v3337_v33 = vadd.f32 %v3331_v27, %v3287_v28  ;;  %v5083_v34 = vpop.f32.mrb[115].mxu0  ;;  %v5089_v35 = vpop.f32.mrb[115].mxu1 }
 0x1c9   : > { %v4112_v34 = vld [vmem:[#allocation2] sm:$0xff]  ;;  %v4114_v35 = vld [vmem:[#allocation2 + $0x10] sm:$0xff] }
 0x1cd   : > { %v3381_v36 = vpop.f32.mrb[116].mxu0  ;;  %v3443_v37 = vpop.f32.mrb[116].mxu1 }
 0x1ce   : > { %v3387_v38 = vadd.f32 %v3381_v36, %v3337_v33  ;;  %v5094_v39 = vpop.f32.mrb[117].mxu0  ;;  %v5100_v40 = vpop.f32.mrb[117].mxu1  ;;  %v4113_v33 = vld [vmem:[#allocation2 + $0x8] sm:$0xff] }
 0x1cf   : > { %v3384_v41 = vpop.f32.mrb[118].mxu0  ;;  %v3446_v42 = vpop.f32.mrb[118].mxu1 }
 0x1d0   : > { %v3449_v43 = vadd.f32 %v3443_v37, %v3387_v38  ;;  %v5095_v44 = vpop.f32.mrb[119].mxu0  ;;  %v5101_v45 = vpop.f32.mrb[119].mxu1  ;;  %v4121_v38 = vsel %vm673_vm3, %v4113_v33, 0.0  ;;  %v4115_v42 = vld [vmem:[#allocation2 + $0x18] sm:$0xff] }
 0x1d1   : > { %v4120_v45 = vsel %vm673_vm3, %v4112_v34, 0.0 }
 0x1d5   : > { %v3493_v46 = vpop.f32.mrb[120].mxu0  ;;  %v3543_v47 = vpop.f32.mrb[120].mxu1 }
 0x1d6   : > { %v3499_v48 = vadd.f32 %v3493_v46, %v3449_v43  ;;  %v5106_v49 = vpop.f32.mrb[121].mxu0  ;;  %v5112_v50 = vpop.f32.mrb[121].mxu1  ;;  %v4123_v46 = vsel %vm673_vm3, %v4114_v35, 0.0 }
 0x1d7   : > { %v3496_v51 = vpop.f32.mrb[122].mxu0  ;;  %v3546_v52 = vpop.f32.mrb[122].mxu1  ;;  %v4122_v50 = vadd.f32 %v4121_v38, %v4120_v45 }
 0x1d8   : > { %v3549_v53 = vadd.f32 %v3543_v47, %v3499_v48  ;;  %v5107_v54 = vpop.f32.mrb[123].mxu0  ;;  %v5113_v55 = vpop.f32.mrb[123].mxu1  ;;  %v4116_v51 = vld [vmem:[#allocation2 + $0x20] sm:$0xff]  ;;  %v4125_v52 = vsel %vm673_vm3, %v4115_v42, 0.0 }
 0x1d9   : > { %v4124_v54 = vadd.f32 %v4123_v46, %v4122_v50  ;;  %v4117_v55 = vld [vmem:[#allocation2 + $0x28] sm:$0xff] }
 0x1dd   : > { %v3605_v56 = vpop.f32.mrb[124].mxu0  ;;  %v3665_v57 = vpop.f32.mrb[124].mxu1 }
 0x1de   : > { %v3611_v58 = vadd.f32 %v3605_v56, %v3549_v53  ;;  %v5118_v59 = vpop.f32.mrb[125].mxu0  ;;  %v5124_v60 = vpop.f32.mrb[125].mxu1  ;;  %v4127_v56 = vsel %vm673_vm3, %v4116_v51, 0.0 }
 0x1df   : > { %v3608_v61 = vpop.f32.mrb[126].mxu0  ;;  %v3668_v62 = vpop.f32.mrb[126].mxu1  ;;  %v4129_v59 = vsel %vm673_vm3, %v4117_v55, 0.0 }
 0x1e0   : > { %v3619_v0 = vadd.f32 %v5830_v63, %v3611_v58  ;;  %v5119_v1 = vpop.f32.mrb[127].mxu0  ;;  %v5125_v3 = vpop.f32.mrb[127].mxu1 }
 0x1e2   : > { %3620 = vst.msk [vmem:[#allocation2 + $0x30] sm:$0xff] %vm673_vm3, %v3619_v0 }
 0x1e5   : > { %v3711_v4 = vpop.f32.mrb[128].mxu0  ;;  %v3772_v5 = vpop.f32.mrb[128].mxu1 }
 0x1e6   : > { %v3712_v6 = vadd.f32 %v3711_v4, %v3665_v57  ;;  %v5130_v7 = vpop.f32.mrb[129].mxu0  ;;  %v5136_v8 = vpop.f32.mrb[129].mxu1  ;;  %v4126_v57 = vadd.f32 %v4125_v52, %v4124_v54 }
 0x1e7   : > { %v3714_v9 = vpop.f32.mrb[130].mxu0  ;;  %v3775_v10 = vpop.f32.mrb[130].mxu1 }
 0x1e8   : > { %v3778_v11 = vadd.f32 %v3772_v5, %v3712_v6  ;;  %v5131_v12 = vpop.f32.mrb[131].mxu0  ;;  %v5137_v13 = vpop.f32.mrb[131].mxu1  ;;  %v4128_v60 = vadd.f32 %v4127_v56, %v4126_v57 }
 0x1e9   : > { %v4118_v58 = vld [vmem:[#allocation2 + $0x30] sm:$0xff] }
 0x1ea   : > { %v4131_v61 = vsel %vm673_vm3, %v4118_v58, 0.0  ;;  %v4130_v62 = vadd.f32 %v4129_v59, %v4128_v60 }
 0x1ec   : > { %v4132_v0 = vadd.f32 %v4131_v61, %v4130_v62 }
 0x1ed   : > { %v3822_v14 = vpop.f32.mrb[132].mxu0  ;;  %v3872_v15 = vpop.f32.mrb[132].mxu1 }
 0x1ee   : > { %v3828_v16 = vadd.f32 %v3822_v14, %v3778_v11  ;;  %v5142_v17 = vpop.f32.mrb[133].mxu0  ;;  %v5148_v18 = vpop.f32.mrb[133].mxu1 }
 0x1ef   : > { %v3825_v19 = vpop.f32.mrb[134].mxu0  ;;  %v3875_v20 = vpop.f32.mrb[134].mxu1 }
 0x1f0   : > { %v3878_v21 = vadd.f32 %v3872_v15, %v3828_v16  ;;  %v5143_v22 = vpop.f32.mrb[135].mxu0  ;;  %v5149_v23 = vpop.f32.mrb[135].mxu1 }
 0x1f5   : > { %v3934_v24 = vpop.f32.mrb[136].mxu0  ;;  %v3984_v25 = vpop.f32.mrb[136].mxu1 }
 0x1f6   : > { %v3940_v26 = vadd.f32 %v3934_v24, %v3878_v21  ;;  %v5154_v2 = vpop.f32.mrb[137].mxu0  ;;  %v5160_v27 = vpop.f32.mrb[137].mxu1 }
 0x1f7   : > { %v3937_v28 = vpop.f32.mrb[138].mxu0  ;;  %v3987_v29 = vpop.f32.mrb[138].mxu1 }
 0x1f8   : > { %v3990_v30 = vadd.f32 %v3984_v25, %v3940_v26  ;;  %v5155_v31 = vpop.f32.mrb[139].mxu0  ;;  %v5161_v32 = vpop.f32.mrb[139].mxu1 }
 0x1fd   : > { %v4034_v36 = vpop.f32.mrb[140].mxu0  ;;  %v4096_v37 = vpop.f32.mrb[140].mxu1 }
 0x1fe   : > { %v4040_v39 = vadd.f32 %v4034_v36, %v3990_v30  ;;  %v5166_v40 = vpop.f32.mrb[141].mxu0  ;;  %v5172_v41 = vpop.f32.mrb[141].mxu1 }
 0x1ff   : > { %v4037_v43 = vpop.f32.mrb[142].mxu0  ;;  %v4099_v44 = vpop.f32.mrb[142].mxu1 }
 0x200   : > { %v4102_v47 = vadd.f32 %v4096_v37, %v4040_v39  ;;  %v5167_v48 = vpop.f32.mrb[143].mxu0  ;;  %v5173_v49 = vpop.f32.mrb[143].mxu1 }
 0x202   : > { %v4110_v53 = vadd.f32 %v5830_v63, %v4102_v47 }
 0x204   : > { %4111 = vst.msk [vmem:[#allocation2 + $0x38] sm:$0xff] %vm673_vm3, %v4110_v53 }
 0x20b   : > { %v4119_v1 = vld [vmem:[#allocation2 + $0x38] sm:$0xff] }
 0x20c   : > { %v4133_v3 = vsel %vm673_vm3, %v4119_v1, 0.0 }
 0x20d   : > { %v4134_v4 = vadd.f32 %v4133_v3, %v4132_v0 }
 0x20f   : > { %v4135_v63 = vrot.slane %v4134_v4, 4 }
 0x211   : > { %v4136_v5 = vadd.f32 %v4135_v63, %v4134_v4 }
 0x213   : > { %v4137_v6 = vrot.slane %v4136_v5, 2 }
 0x215   : > { %v4138_v7 = vadd.f32 %v4137_v6, %v4136_v5 }
 0x217   : > { %v4139_v8 = vrot.slane %v4138_v7, 1 }
 0x219   : > { %v4140_v9 = vadd.f32 %v4139_v8, %v4138_v7 }
 0x21b   : > { %v4141_v10 = vmul.f32 0.015625, %v4140_v9 }
 0x21d   : > { %v4142_v11 = vsub.f32 %v4112_v34, %v4141_v10  ;;  %v4143_v12 = vsub.f32 %v4113_v33, %v4141_v10  ;;  %v4144_v13 = vsub.f32 %v4114_v35, %v4141_v10  ;;  %v4145_v14 = vsub.f32 %v4115_v42, %v4141_v10 }
 0x21e   : > { %v4146_v15 = vsub.f32 %v4116_v51, %v4141_v10  ;;  %v4147_v19 = vsub.f32 %v4117_v55, %v4141_v10  ;;  %v4148_v24 = vsub.f32 %v4118_v58, %v4141_v10  ;;  %v4149_v27 = vsub.f32 %v4119_v1, %v4141_v10 }
 0x21f   : > { %v4150_v16 = vmul.f32 %v4142_v11, %v4142_v11  ;;  %v4151_v17 = vmul.f32 %v4143_v12, %v4143_v12  ;;  %v4152_v18 = vmul.f32 %v4144_v13, %v4144_v13  ;;  %v4153_v20 = vmul.f32 %v4145_v14, %v4145_v14 }
 0x220   : > { %v4154_v25 = vmul.f32 %v4146_v15, %v4146_v15  ;;  %v4155_v28 = vmul.f32 %v4147_v19, %v4147_v19  ;;  %v4156_v31 = vmul.f32 %v4148_v24, %v4148_v24  ;;  %v4157_v34 = vmul.f32 %v4149_v27, %v4149_v27 }
 0x221   : > { %v4158_v21 = vsel %vm673_vm3, %v4150_v16, 0.0  ;;  %v4159_v22 = vsel %vm673_vm3, %v4151_v17, 0.0  ;;  %v4161_v26 = vsel %vm673_vm3, %v4152_v18, 0.0  ;;  %v4163_v29 = vsel %vm673_vm3, %v4153_v20, 0.0 }
 0x222   : > { %v4160_v23 = vadd.f32 %v4159_v22, %v4158_v21  ;;  %v4165_v32 = vsel %vm673_vm3, %v4154_v25, 0.0  ;;  %v4167_v35 = vsel %vm673_vm3, %v4155_v28, 0.0  ;;  %v4169_v37 = vsel %vm673_vm3, %v4156_v31, 0.0 }
 0x223   : > { %v4171_v39 = vsel %vm673_vm3, %v4157_v34, 0.0 }
 0x224   : > { %v4162_v2 = vadd.f32 %v4161_v26, %v4160_v23 }
 0x226   : > { %v4164_v30 = vadd.f32 %v4163_v29, %v4162_v2 }
 0x228   : > { %v4166_v33 = vadd.f32 %v4165_v32, %v4164_v30 }
 0x22a   : > { %v4168_v36 = vadd.f32 %v4167_v35, %v4166_v33 }
 0x22c   : > { %v4170_v38 = vadd.f32 %v4169_v37, %v4168_v36 }
 0x22e   : > { %v4172_v40 = vadd.f32 %v4171_v39, %v4170_v38 }
 0x230   : > { %v4173_v41 = vrot.slane %v4172_v40, 4 }
 0x232   : > { %v4174_v42 = vadd.f32 %v4173_v41, %v4172_v40 }
 0x234   : > { %v4175_v43 = vrot.slane %v4174_v42, 2 }
 0x236   : > { %v4176_v44 = vadd.f32 %v4175_v43, %v4174_v42 }
 0x238   : > { %v4177_v45 = vrot.slane %v4176_v44, 1 }
 0x23a   : > { %v4178_v46 = vadd.f32 %v4177_v45, %v4176_v44 }
 0x23c   : > { %v4179_v47 = vmul.f32 0.015625, %v4178_v46 }
 0x23e   : > { %v4180_v48 = vadd.f32 1e-05, %v4179_v47 }
 0x240   : > { %5209 = vrsqrt.f32 %v4180_v48 }
 0x24a   : > { %v5210_v49 = vpop.eup %5209 }
 0x24b   : > { %v4182_v50 = vmul.f32 %v5210_v49, %v4142_v11  ;;  %v4183_v51 = vmul.f32 %v5210_v49, %v4143_v12  ;;  %v4184_v52 = vmul.f32 %v5210_v49, %v4144_v13  ;;  %v4185_v53 = vmul.f32 %v5210_v49, %v4145_v14 }
 0x24c   : > { %v4186_v54 = vmul.f32 %v5210_v49, %v4146_v15  ;;  %v4187_v55 = vmul.f32 %v5210_v49, %v4147_v19  ;;  %v4188_v56 = vmul.f32 %v5210_v49, %v4148_v24  ;;  %v4189_v57 = vmul.f32 %v5210_v49, %v4149_v27 }
 0x24d   : > { %vm4190_vm5 = vcmp.gt.f32.partialorder %v4182_v50, 0.0  ;;  %vm4191_vm6 = vcmp.gt.f32.partialorder %v4183_v51, 0.0  ;;  %vm4192_vm7 = vcmp.gt.f32.partialorder %v4184_v52, 0.0  ;;  %vm4193_vm8 = vcmp.gt.f32.partialorder %v4185_v53, 0.0 }
 0x24e   : > { %vm4194_vm9 = vcmp.gt.f32.partialorder %v4186_v54, 0.0  ;;  %vm4195_vm10 = vcmp.gt.f32.partialorder %v4187_v55, 0.0  ;;  %vm4196_vm11 = vcmp.gt.f32.partialorder %v4188_v56, 0.0  ;;  %vm4197_vm12 = vcmp.gt.f32.partialorder %v4189_v57, 0.0 }
 0x24f   : > { %v4198_v58 = vmul.f32 0.2, %v4182_v50  ;;  %v4199_v59 = vmul.f32 0.2, %v4183_v51  ;;  %v4200_v60 = vmul.f32 0.2, %v4184_v52 }
 0x250   : > { %v4201_v61 = vmul.f32 0.2, %v4185_v53  ;;  %v4202_v62 = vmul.f32 0.2, %v4186_v54  ;;  %v4203_v0 = vmul.f32 0.2, %v4187_v55 }
 0x251   : > { %v4204_v1 = vmul.f32 0.2, %v4188_v56  ;;  %v4205_v3 = vmul.f32 0.2, %v4189_v57  ;;  %v4206_v4 = vsel %vm4190_vm5, %v4182_v50, %v4198_v58  ;;  %v4207_v63 = vsel %vm4191_vm6, %v4183_v51, %v4199_v59 }
 0x252   : > { %v4208_v5 = vsel %vm4192_vm7, %v4184_v52, %v4200_v60  ;;  %v4209_v6 = vsel %vm4193_vm8, %v4185_v53, %v4201_v61  ;;  %v4210_v7 = vsel %vm4194_vm9, %v4186_v54, %v4202_v62  ;;  %v4211_v8 = vsel %vm4195_vm10, %v4187_v55, %v4203_v0 }
 0x253   : > { %v4212_v9 = vsel %vm4196_vm11, %v4188_v56, %v4204_v1  ;;  %v4213_v10 = vsel %vm4197_vm12, %v4189_v57, %v4205_v3  ;;  %v4590_v11 = vpack.c.bf16 %v4206_v4, %v4206_v4  ;;  %v4591_v12 = vpack.c.bf16 %v4207_v63, %v4207_v63 }
 0x254   : > { %v4592_v13 = vpack.c.bf16 %v4208_v5, %v4208_v5  ;;  %v4593_v14 = vpack.c.bf16 %v4209_v6, %v4209_v6  ;;  %v4594_v15 = vpack.c.bf16 %v4210_v7, %v4210_v7  ;;  %v4595_v16 = vpack.c.bf16 %v4211_v8, %v4211_v8 }
 0x255   : > { %v4596_v17 = vpack.c.bf16 %v4212_v9, %v4212_v9  ;;  %v4597_v18 = vpack.c.bf16 %v4213_v10, %v4213_v10  ;;  %4247 = vst.msk [vmem:[%s170_s13] sm:$0xf] %vm4246_vm4, %v4590_v11  ;;  %4248 = vst.msk [vmem:[%s170_s13 + $0x4] sm:$0xf] %vm4246_vm4, %v4591_v12 }
 0x256   : > { %4249 = vst.msk [vmem:[%s170_s13 + $0x8] sm:$0xf] %vm4246_vm4, %v4592_v13  ;;  %4250 = vst.msk [vmem:[%s170_s13 + $0xc] sm:$0xf] %vm4246_vm4, %v4593_v14 }
 0x257   : > { %4251 = vst.msk [vmem:[%s170_s13 + $0x10] sm:$0xf] %vm4246_vm4, %v4594_v15  ;;  %4252 = vst.msk [vmem:[%s170_s13 + $0x14] sm:$0xf] %vm4246_vm4, %v4595_v16 }
 0x258   : > { %4253 = vst.msk [vmem:[%s170_s13 + $0x18] sm:$0xf] %vm4246_vm4, %v4596_v17  ;;  %4254 = vst.msk [vmem:[%s170_s13 + $0x1c] sm:$0xf] %vm4246_vm4, %v4597_v18 }
 0x259 PF: > { %s13_s12 = sadd.s32 1, %s5217_s12  }
 0x25a   : > { %p10_p4 = scmp.ge.s32.totalorder %s13_s12, 4  }
 0x25c   :  { %12 = sbr.rel (!%p10_p4) target bundleno = 1 (0x1), region = 103 }

</bundles_post_ra>
